<compile_context>
chip_gen: v7x
topology: tpu7x:2x2x1
jax: 0.10.0
libtpu: 0.0.40
codegen_flags: <defaults>
</compile_context>

<pallas_src>
import numpy as np
import jax
import jax.numpy as jnp
from jax.experimental import pallas as pl
from jax.experimental.pallas import tpu as pltpu

TB = 8          # images per grid step (batch tile); selection matrices below are built for TB
_NEG = -1e30    # bias for the padded fc2 lanes (ignored by the stabilised log-softmax)


# ---------------------------------------------------------------------------
# Host-side (numpy) preparation of all constant operands fed to the kernel.
# ---------------------------------------------------------------------------
def _build_operands(params, tb=TB):
    f32 = np.float32
    w1 = np.asarray(params["conv1_w"], f32)    # (20, 1, 5, 5)  torch OIHW
    b1 = np.asarray(params["conv1_b"], f32)    # (20,)
    w2 = np.asarray(params["conv2_w"], f32)    # (50, 20, 5, 5)
    b2 = np.asarray(params["conv2_b"], f32)    # (50,)
    w3 = np.asarray(params["fc1_w"], f32)      # (500, 800) torch (out,in), in = c*16 + h*4 + w
    b3 = np.asarray(params["fc1_b"], f32)      # (500,)
    w4 = np.asarray(params["fc2_w"], f32)      # (10, 500)
    b4 = np.asarray(params["fc2_b"], f32)      # (10,)

    # conv1 tap-row selectors: S1[ki] @ x2d gives rows (b,i) = image[b, i+ki, :]
    s1 = np.zeros((5, tb * 24, tb * 28), f32)
    for ki in range(5):
        for b in range(tb):
            for i in range(24):
                s1[ki, b * 24 + i, b * 28 + i + ki] = 1.0

    # conv1 banded weights: h1[(b,i), j*20+c] = sum_ki sum_w image[b,i+ki,w] * w1b[ki, w, j*20+c]
    w1b = np.zeros((5, 28, 24 * 20), f32)
    for ki in range(5):
        for j in range(24):
            for kj in range(5):
                w1b[ki, j + kj, j * 20:(j + 1) * 20] = w1[:, 0, ki, kj]
    b1t = np.tile(b1, 24)[None, :]                                   # (1, 480)

    # 2x2 max-pool #1: W-direction (column) and H-direction (row) 0/1 selectors
    c1 = np.zeros((2, 24 * 20, 12 * 20), f32)
    for dj in range(2):
        for jp in range(12):
            for c in range(20):
                c1[dj, (2 * jp + dj) * 20 + c, jp * 20 + c] = 1.0
    r1 = np.zeros((2, tb * 12, tb * 24), f32)
    for di in range(2):
        for m in range(tb * 12):
            r1[di, m, 2 * m + di] = 1.0

    # conv2 tap-row selectors and banded weights (lanes of p1 are jp*20 + cin)
    t2 = np.zeros((5, tb * 8, tb * 12), f32)
    for ki in range(5):
        for b in range(tb):
            for i2 in range(8):
                t2[ki, b * 8 + i2, b * 12 + i2 + ki] = 1.0
    w2b = np.zeros((5, 12 * 20, 8 * 50), f32)
    for ki in range(5):
        for j2 in range(8):
            for kj in range(5):
                w2b[ki, (j2 + kj) * 20:(j2 + kj + 1) * 20,
                    j2 * 50:(j2 + 1) * 50] = w2[:, :, ki, kj].T       # (cin, cout)
    b2t = np.tile(b2, 8)[None, :]                                     # (1, 400)

    # 2x2 max-pool #2 selectors
    c2 = np.zeros((2, 8 * 50, 4 * 50), f32)
    for dj in range(2):
        for j3 in range(4):
            for d in range(50):
                c2[dj, (2 * j3 + dj) * 50 + d, j3 * 50 + d] = 1.0
    r2 = np.zeros((2, tb * 4, tb * 8), f32)
    for di in range(2):
        for m in range(tb * 4):
            r2[di, m, 2 * m + di] = 1.0

    # fc1: per-row selectors; PyTorch's NCHW flatten is folded into the w3 row permutation
    f3 = np.zeros((4, tb, tb * 4), f32)
    for i3 in range(4):
        for b in range(tb):
            f3[i3, b, 4 * b + i3] = 1.0
    w3r = np.zeros((4, 200, 500), f32)
    for i3 in range(4):
        for j3 in range(4):
            for d in range(50):
                w3r[i3, j3 * 50 + d, :] = w3[:, d * 16 + i3 * 4 + j3]
    b3t = b3[None, :]                                                  # (1, 500)

    # fc2: pad N 10 -> 128 lanes (lane-dense output store); pad bias = -1e30
    w4p = np.zeros((500, 128), f32)
    w4p[:, :10] = w4.T
    b4p = np.full((1, 128), _NEG, f32)
    b4p[0, :10] = b4

    bf = jnp.bfloat16
    return [
        jnp.asarray(s1), jnp.asarray(w1b, bf), jnp.asarray(b1t),
        jnp.asarray(c1), jnp.asarray(r1),
        jnp.asarray(t2), jnp.asarray(w2b, bf), jnp.asarray(b2t),
        jnp.asarray(c2), jnp.asarray(r2),
        jnp.asarray(f3), jnp.asarray(w3r, bf), jnp.asarray(b3t),
        jnp.asarray(w4p, bf), jnp.asarray(b4p),
    ]


# ---------------------------------------------------------------------------
# Fused Pallas kernel (one batch tile of TB images per grid step).
# ---------------------------------------------------------------------------
def _mnist_fused_kernel(x_ref, s1_ref, w1b_ref, b1_ref, c1_ref, r1_ref,
                        t2_ref, w2b_ref, b2_ref, c2_ref, r2_ref,
                        f3_ref, w3_ref, b3_ref, w4_ref, b4_ref, o_ref):
    f32 = jnp.float32
    bf16 = jnp.bfloat16

    def mm(a, b):                                   # f32-accumulating MXU matmul
        return jnp.dot(a, b, preferred_element_type=f32)

    x = x_ref[...]                                  # (TB*28, 28) f32, rows = b*28 + h

    # ---- conv1 + bias + ReLU:  h1[(b,i), j*20+c] ----
    acc1 = None
    for ki in range(5):
        xi = mm(s1_ref[ki], x)                      # rows (b,i) = image[b, i+ki, :]
        part = mm(xi.astype(bf16), w1b_ref[ki])     # banded conv matmul (bf16 on MXU)
        acc1 = part if acc1 is None else acc1 + part
    h1 = jnp.maximum(acc1 + b1_ref[...], 0.0)       # (TB*24, 480)

    # ---- 2x2 max-pool #1:  p1[(b,ip), jp*20+c] ----
    a0 = mm(r1_ref[0], h1)
    a1 = mm(r1_ref[1], h1)
    p1 = jnp.maximum(jnp.maximum(mm(a0, c1_ref[0]), mm(a0, c1_ref[1])),
                     jnp.maximum(mm(a1, c1_ref[0]), mm(a1, c1_ref[1])))   # (TB*12, 240)

    # ---- conv2 + bias + ReLU:  h2[(b,i2), j2*50+d] ----
    acc2 = None
    for ki in range(5):
        rows = mm(t2_ref[ki], p1)                   # (TB*8, 240)
        part = mm(rows.astype(bf16), w2b_ref[ki])   # (TB*8, 400)
        acc2 = part if acc2 is None else acc2 + part
    h2 = jnp.maximum(acc2 + b2_ref[...], 0.0)

    # ---- 2x2 max-pool #2:  p2[(b,i3), j3*50+d] ----
    q0 = mm(r2_ref[0], h2)
    q1 = mm(r2_ref[1], h2)
    p2 = jnp.maximum(jnp.maximum(mm(q0, c2_ref[0]), mm(q0, c2_ref[1])),
                     jnp.maximum(mm(q1, c2_ref[0]), mm(q1, c2_ref[1])))   # (TB*4, 200)

    # ---- fc1 + ReLU (NCHW flatten folded into the w3 row permutation) ----
    acc3 = None
    for i3 in range(4):
        xp = mm(f3_ref[i3], p2)                     # (TB, 200)
        part = mm(xp.astype(bf16), w3_ref[i3])      # (TB, 500)
        acc3 = part if acc3 is None else acc3 + part
    h3 = jnp.maximum(acc3 + b3_ref[...], 0.0)

    # ---- fc2 (padded to 128 lanes) + log_softmax ----
    logits = mm(h3.astype(bf16), w4_ref[...]) + b4_ref[...]               # (TB, 128)
    m = jnp.max(logits, axis=-1, keepdims=True)
    s = logits - m
    lse = jnp.log(jnp.sum(jnp.exp(s), axis=-1, keepdims=True))
    o_ref[...] = (s - lse).astype(o_ref.dtype)


# ---------------------------------------------------------------------------
# Wrapper.
# ---------------------------------------------------------------------------
def mnist_net_forward(operands, x_nchw):
    """operands = _build_operands(params); x_nchw: (B, 1, 28, 28) float32 -> (B, 10) log-probs."""
    B = x_nchw.shape[0]
    assert x_nchw.shape[1:] == (1, 28, 28), "mnist_net geometry is fixed to 1x28x28"
    Bp = ((B + TB - 1) // TB) * TB
    x = x_nchw.reshape(B, 28, 28).astype(jnp.float32)
    if Bp != B:
        x = jnp.concatenate([x, jnp.zeros((Bp - B, 28, 28), jnp.float32)], axis=0)
    x2d = x.reshape(Bp * 28, 28)                    # rows = b*28 + h (lane dim = W)

    grid = (Bp // TB,)

    def resident(a):                                # whole-array block, constant index -> resident
        nd = a.ndim
        return pl.BlockSpec(a.shape, lambda i, nd=nd: (0,) * nd)

    in_specs = [pl.BlockSpec((TB * 28, 28), lambda i: (i, 0))] + [resident(a) for a in operands]
    out_specs = pl.BlockSpec((TB, 128), lambda i: (i, 0))

    # advisory cost estimate
    mms = ([(TB * 24, TB * 28, 28)] * 5 + [(TB * 24, 28, 480)] * 5
           + [(TB * 12, TB * 24, 480)] * 2 + [(TB * 12, 480, 240)] * 4
           + [(TB * 8, TB * 12, 240)] * 5 + [(TB * 8, 240, 400)] * 5
           + [(TB * 4, TB * 8, 400)] * 2 + [(TB * 4, 400, 200)] * 4
           + [(TB, TB * 4, 200)] * 4 + [(TB, 200, 500)] * 4 + [(TB, 500, 128)])
    steps = Bp // TB
    flops = steps * sum(2 * m * k * n for m, k, n in mms)
    bytes_accessed = int(x2d.size * 4 + Bp * 128 * 4
                         + sum(int(a.size) * a.dtype.itemsize for a in operands))
    cost = pl.CostEstimate(flops=int(flops), transcendentals=int(steps * TB * 130),
                           bytes_accessed=bytes_accessed)

    out = pl.pallas_call(
        _mnist_fused_kernel,
        grid=grid,
        in_specs=in_specs,
        out_specs=out_specs,
        out_shape=jax.ShapeDtypeStruct((Bp, 128), jnp.float32),
        compiler_params=pltpu.CompilerParams(
            dimension_semantics=("parallel",),
            vmem_limit_bytes=48 * 1024 * 1024),
        cost_estimate=cost,
    )(x2d, *operands)
    return out[:B, :10]


# ---------------------------------------------------------------------------
# Param init (PyTorch layouts) and a pure-JAX f32 reference for validation.
# ---------------------------------------------------------------------------
def init_params(key):
    ks = jax.random.split(key, 8)
    s = 0.05
    return {
        "conv1_w": jax.random.normal(ks[0], (20, 1, 5, 5), jnp.float32) * s,
        "conv1_b": jax.random.normal(ks[1], (20,), jnp.float32) * s,
        "conv2_w": jax.random.normal(ks[2], (50, 20, 5, 5), jnp.float32) * s,
        "conv2_b": jax.random.normal(ks[3], (50,), jnp.float32) * s,
        "fc1_w": jax.random.normal(ks[4], (500, 800), jnp.float32) * s,
        "fc1_b": jax.random.normal(ks[5], (500,), jnp.float32) * s,
        "fc2_w": jax.random.normal(ks[6], (10, 500), jnp.float32) * s,
        "fc2_b": jax.random.normal(ks[7], (10,), jnp.float32) * s,
    }


def mnist_net_reference(params, x_nchw):
    dn = ("NCHW", "OIHW", "NCHW")
    y = jax.lax.conv_general_dilated(x_nchw, params["conv1_w"], (1, 1), "VALID",
                                     dimension_numbers=dn)
    y = jax.nn.relu(y + params["conv1_b"][None, :, None, None])
    B = y.shape[0]
    y = y.reshape(B, 20, 12, 2, 12, 2).max(axis=(3, 5))
    y = jax.lax.conv_general_dilated(y, params["conv2_w"], (1, 1), "VALID",
                                     dimension_numbers=dn)
    y = jax.nn.relu(y + params["conv2_b"][None, :, None, None])
    y = y.reshape(B, 50, 4, 2, 4, 2).max(axis=(3, 5))
    y = y.reshape(B, 800)                           # == torch .view(-1, 4*4*50) (NCHW order)
    y = jax.nn.relu(y @ params["fc1_w"].T + params["fc1_b"])
    y = y @ params["fc2_w"].T + params["fc2_b"]
    return jax.nn.log_softmax(y, axis=-1)


if __name__ == "__main__":
    key = jax.random.PRNGKey(0)
    pkey, xkey = jax.random.split(key)
    params = init_params(pkey)
    operands = _build_operands(params)

    x = jax.random.normal(xkey, (2, 1, 28, 28), jnp.float32)
    out = jax.jit(mnist_net_forward)(operands, x)
    out = jax.block_until_ready(out)

    assert out.shape == (2, 10)
    # log-softmax rows exponentiate-sum to 1
    assert jnp.allclose(jnp.exp(out).sum(axis=1), 1.0, atol=1e-3)
    # matches the f32 XLA reference up to bf16 matmul rounding
    ref = mnist_net_reference(params, x)
    err = float(jnp.max(jnp.abs(out - ref)))
    assert err < 1e-1, f"mismatch vs reference: {err}"
    print("KERNEL_OK")
</pallas_src>

<mosaic_0001>
module attributes {stable_mosaic.version = 11 : i64} {
  func.func @_mnist_fused_kernel(%arg0: i32, %arg1: memref<224x28xf32, #tpu.memory_space<vmem>>, %arg2: memref<5x192x224xf32, #tpu.memory_space<vmem>>, %arg3: memref<5x28x480xbf16, #tpu.memory_space<vmem>>, %arg4: memref<1x480xf32, #tpu.memory_space<vmem>>, %arg5: memref<2x480x240xf32, #tpu.memory_space<vmem>>, %arg6: memref<2x96x192xf32, #tpu.memory_space<vmem>>, %arg7: memref<5x64x96xf32, #tpu.memory_space<vmem>>, %arg8: memref<5x240x400xbf16, #tpu.memory_space<vmem>>, %arg9: memref<1x400xf32, #tpu.memory_space<vmem>>, %arg10: memref<2x400x200xf32, #tpu.memory_space<vmem>>, %arg11: memref<2x32x64xf32, #tpu.memory_space<vmem>>, %arg12: memref<4x8x32xf32, #tpu.memory_space<vmem>>, %arg13: memref<4x200x500xbf16, #tpu.memory_space<vmem>>, %arg14: memref<1x500xf32, #tpu.memory_space<vmem>>, %arg15: memref<500x128xbf16, #tpu.memory_space<vmem>>, %arg16: memref<1x128xf32, #tpu.memory_space<vmem>>, %arg17: memref<8x128xf32, #tpu.memory_space<vmem>>) attributes {dimension_semantics = [#tpu.dimension_semantics<parallel>], iteration_bounds = array<i64: 1>, scalar_prefetch = 0 : i64, scratch_operands = 0 : i64, tpu.core_type = #tpu.core_type<tc>, window_params = [{transform_indices = @transform_0, window_bounds = array<i64: 224, 28>}, {pipeline_mode = #tpu.pipeline_mode<synchronous>, transform_indices = @transform_1, window_bounds = array<i64: 5, 192, 224>}, {pipeline_mode = #tpu.pipeline_mode<synchronous>, transform_indices = @transform_2, window_bounds = array<i64: 5, 28, 480>}, {pipeline_mode = #tpu.pipeline_mode<synchronous>, transform_indices = @transform_3, window_bounds = array<i64: 1, 480>}, {pipeline_mode = #tpu.pipeline_mode<synchronous>, transform_indices = @transform_4, window_bounds = array<i64: 2, 480, 240>}, {pipeline_mode = #tpu.pipeline_mode<synchronous>, transform_indices = @transform_5, window_bounds = array<i64: 2, 96, 192>}, {pipeline_mode = #tpu.pipeline_mode<synchronous>, transform_indices = @transform_6, window_bounds = array<i64: 5, 64, 96>}, {pipeline_mode = #tpu.pipeline_mode<synchronous>, transform_indices = @transform_7, window_bounds = array<i64: 5, 240, 400>}, {pipeline_mode = #tpu.pipeline_mode<synchronous>, transform_indices = @transform_8, window_bounds = array<i64: 1, 400>}, {pipeline_mode = #tpu.pipeline_mode<synchronous>, transform_indices = @transform_9, window_bounds = array<i64: 2, 400, 200>}, {pipeline_mode = #tpu.pipeline_mode<synchronous>, transform_indices = @transform_10, window_bounds = array<i64: 2, 32, 64>}, {pipeline_mode = #tpu.pipeline_mode<synchronous>, transform_indices = @transform_11, window_bounds = array<i64: 4, 8, 32>}, {pipeline_mode = #tpu.pipeline_mode<synchronous>, transform_indices = @transform_12, window_bounds = array<i64: 4, 200, 500>}, {pipeline_mode = #tpu.pipeline_mode<synchronous>, transform_indices = @transform_13, window_bounds = array<i64: 1, 500>}, {pipeline_mode = #tpu.pipeline_mode<synchronous>, transform_indices = @transform_14, window_bounds = array<i64: 500, 128>}, {pipeline_mode = #tpu.pipeline_mode<synchronous>, transform_indices = @transform_15, window_bounds = array<i64: 1, 128>}, {transform_indices = @transform_16, window_bounds = array<i64: 8, 128>}]} {
    %c0 = arith.constant 0 : index
    %c0_0 = arith.constant 0 : index
    %0 = vector.load %arg1[%c0, %c0_0] : memref<224x28xf32, #tpu.memory_space<vmem>>, vector<224x28xf32>
    %c0_1 = arith.constant 0 : index
    %c0_2 = arith.constant 0 : index
    %c0_3 = arith.constant 0 : index
    %1 = vector.load %arg2[%c0_1, %c0_2, %c0_3] : memref<5x192x224xf32, #tpu.memory_space<vmem>>, vector<1x192x224xf32>
    %2 = vector.shape_cast %1 : vector<1x192x224xf32> to vector<192x224xf32>
    %cst = arith.constant dense<0.000000e+00> : vector<192x28xf32>
    %3 = tpu.matmul %2, %0, %cst {dimension_numbers = #tpu.dot_dimension_numbers<[1], [0], [0], [1], [0, 0, 1, 1], [], []>} : vector<192x224xf32>, vector<224x28xf32>, vector<192x28xf32> -> vector<192x28xf32>
    %4 = arith.truncf %3 : vector<192x28xf32> to vector<192x28xbf16>
    %c0_4 = arith.constant 0 : index
    %c0_5 = arith.constant 0 : index
    %c0_6 = arith.constant 0 : index
    %5 = vector.load %arg3[%c0_4, %c0_5, %c0_6] : memref<5x28x480xbf16, #tpu.memory_space<vmem>>, vector<1x28x480xbf16>
    %6 = vector.shape_cast %5 : vector<1x28x480xbf16> to vector<28x480xbf16>
    %cst_7 = arith.constant dense<0.000000e+00> : vector<192x480xf32>
    %7 = tpu.matmul %4, %6, %cst_7 {dimension_numbers = #tpu.dot_dimension_numbers<[1], [0], [0], [1], [0, 0, 1, 1], [], []>} : vector<192x28xbf16>, vector<28x480xbf16>, vector<192x480xf32> -> vector<192x480xf32>
    %c1 = arith.constant 1 : index
    %c0_8 = arith.constant 0 : index
    %c0_9 = arith.constant 0 : index
    %8 = vector.load %arg2[%c1, %c0_8, %c0_9] : memref<5x192x224xf32, #tpu.memory_space<vmem>>, vector<1x192x224xf32>
    %9 = vector.shape_cast %8 : vector<1x192x224xf32> to vector<192x224xf32>
    %cst_10 = arith.constant dense<0.000000e+00> : vector<192x28xf32>
    %10 = tpu.matmul %9, %0, %cst_10 {dimension_numbers = #tpu.dot_dimension_numbers<[1], [0], [0], [1], [0, 0, 1, 1], [], []>} : vector<192x224xf32>, vector<224x28xf32>, vector<192x28xf32> -> vector<192x28xf32>
    %11 = arith.truncf %10 : vector<192x28xf32> to vector<192x28xbf16>
    %c1_11 = arith.constant 1 : index
    %c0_12 = arith.constant 0 : index
    %c0_13 = arith.constant 0 : index
    %12 = vector.load %arg3[%c1_11, %c0_12, %c0_13] : memref<5x28x480xbf16, #tpu.memory_space<vmem>>, vector<1x28x480xbf16>
    %13 = vector.shape_cast %12 : vector<1x28x480xbf16> to vector<28x480xbf16>
    %cst_14 = arith.constant dense<0.000000e+00> : vector<192x480xf32>
    %14 = tpu.matmul %11, %13, %cst_14 {dimension_numbers = #tpu.dot_dimension_numbers<[1], [0], [0], [1], [0, 0, 1, 1], [], []>} : vector<192x28xbf16>, vector<28x480xbf16>, vector<192x480xf32> -> vector<192x480xf32>
    %15 = arith.addf %7, %14 : vector<192x480xf32>
    %c2 = arith.constant 2 : index
    %c0_15 = arith.constant 0 : index
    %c0_16 = arith.constant 0 : index
    %16 = vector.load %arg2[%c2, %c0_15, %c0_16] : memref<5x192x224xf32, #tpu.memory_space<vmem>>, vector<1x192x224xf32>
    %17 = vector.shape_cast %16 : vector<1x192x224xf32> to vector<192x224xf32>
    %cst_17 = arith.constant dense<0.000000e+00> : vector<192x28xf32>
    %18 = tpu.matmul %17, %0, %cst_17 {dimension_numbers = #tpu.dot_dimension_numbers<[1], [0], [0], [1], [0, 0, 1, 1], [], []>} : vector<192x224xf32>, vector<224x28xf32>, vector<192x28xf32> -> vector<192x28xf32>
    %19 = arith.truncf %18 : vector<192x28xf32> to vector<192x28xbf16>
    %c2_18 = arith.constant 2 : index
    %c0_19 = arith.constant 0 : index
    %c0_20 = arith.constant 0 : index
    %20 = vector.load %arg3[%c2_18, %c0_19, %c0_20] : memref<5x28x480xbf16, #tpu.memory_space<vmem>>, vector<1x28x480xbf16>
    %21 = vector.shape_cast %20 : vector<1x28x480xbf16> to vector<28x480xbf16>
    %cst_21 = arith.constant dense<0.000000e+00> : vector<192x480xf32>
    %22 = tpu.matmul %19, %21, %cst_21 {dimension_numbers = #tpu.dot_dimension_numbers<[1], [0], [0], [1], [0, 0, 1, 1], [], []>} : vector<192x28xbf16>, vector<28x480xbf16>, vector<192x480xf32> -> vector<192x480xf32>
    %23 = arith.addf %15, %22 : vector<192x480xf32>
    %c3 = arith.constant 3 : index
    %c0_22 = arith.constant 0 : index
    %c0_23 = arith.constant 0 : index
    %24 = vector.load %arg2[%c3, %c0_22, %c0_23] : memref<5x192x224xf32, #tpu.memory_space<vmem>>, vector<1x192x224xf32>
    %25 = vector.shape_cast %24 : vector<1x192x224xf32> to vector<192x224xf32>
    %cst_24 = arith.constant dense<0.000000e+00> : vector<192x28xf32>
    %26 = tpu.matmul %25, %0, %cst_24 {dimension_numbers = #tpu.dot_dimension_numbers<[1], [0], [0], [1], [0, 0, 1, 1], [], []>} : vector<192x224xf32>, vector<224x28xf32>, vector<192x28xf32> -> vector<192x28xf32>
    %27 = arith.truncf %26 : vector<192x28xf32> to vector<192x28xbf16>
    %c3_25 = arith.constant 3 : index
    %c0_26 = arith.constant 0 : index
    %c0_27 = arith.constant 0 : index
    %28 = vector.load %arg3[%c3_25, %c0_26, %c0_27] : memref<5x28x480xbf16, #tpu.memory_space<vmem>>, vector<1x28x480xbf16>
    %29 = vector.shape_cast %28 : vector<1x28x480xbf16> to vector<28x480xbf16>
    %cst_28 = arith.constant dense<0.000000e+00> : vector<192x480xf32>
    %30 = tpu.matmul %27, %29, %cst_28 {dimension_numbers = #tpu.dot_dimension_numbers<[1], [0], [0], [1], [0, 0, 1, 1], [], []>} : vector<192x28xbf16>, vector<28x480xbf16>, vector<192x480xf32> -> vector<192x480xf32>
    %31 = arith.addf %23, %30 : vector<192x480xf32>
    %c4 = arith.constant 4 : index
    %c0_29 = arith.constant 0 : index
    %c0_30 = arith.constant 0 : index
    %32 = vector.load %arg2[%c4, %c0_29, %c0_30] : memref<5x192x224xf32, #tpu.memory_space<vmem>>, vector<1x192x224xf32>
    %33 = vector.shape_cast %32 : vector<1x192x224xf32> to vector<192x224xf32>
    %cst_31 = arith.constant dense<0.000000e+00> : vector<192x28xf32>
    %34 = tpu.matmul %33, %0, %cst_31 {dimension_numbers = #tpu.dot_dimension_numbers<[1], [0], [0], [1], [0, 0, 1, 1], [], []>} : vector<192x224xf32>, vector<224x28xf32>, vector<192x28xf32> -> vector<192x28xf32>
    %35 = arith.truncf %34 : vector<192x28xf32> to vector<192x28xbf16>
    %c4_32 = arith.constant 4 : index
    %c0_33 = arith.constant 0 : index
    %c0_34 = arith.constant 0 : index
    %36 = vector.load %arg3[%c4_32, %c0_33, %c0_34] : memref<5x28x480xbf16, #tpu.memory_space<vmem>>, vector<1x28x480xbf16>
    %37 = vector.shape_cast %36 : vector<1x28x480xbf16> to vector<28x480xbf16>
    %cst_35 = arith.constant dense<0.000000e+00> : vector<192x480xf32>
    %38 = tpu.matmul %35, %37, %cst_35 {dimension_numbers = #tpu.dot_dimension_numbers<[1], [0], [0], [1], [0, 0, 1, 1], [], []>} : vector<192x28xbf16>, vector<28x480xbf16>, vector<192x480xf32> -> vector<192x480xf32>
    %39 = arith.addf %31, %38 : vector<192x480xf32>
    %c0_36 = arith.constant 0 : index
    %c0_37 = arith.constant 0 : index
    %40 = vector.load %arg4[%c0_36, %c0_37] : memref<1x480xf32, #tpu.memory_space<vmem>>, vector<1x480xf32>
    %41 = vector.broadcast %40 : vector<1x480xf32> to vector<192x480xf32>
    %42 = arith.addf %39, %41 : vector<192x480xf32>
    %cst_38 = arith.constant 0.000000e+00 : f32
    %43 = vector.broadcast %cst_38 : f32 to vector<192x480xf32>
    %44 = arith.maximumf %42, %43 : vector<192x480xf32>
    %c0_39 = arith.constant 0 : index
    %c0_40 = arith.constant 0 : index
    %c0_41 = arith.constant 0 : index
    %45 = vector.load %arg6[%c0_39, %c0_40, %c0_41] : memref<2x96x192xf32, #tpu.memory_space<vmem>>, vector<1x96x192xf32>
    %46 = vector.shape_cast %45 : vector<1x96x192xf32> to vector<96x192xf32>
    %cst_42 = arith.constant dense<0.000000e+00> : vector<96x480xf32>
    %47 = tpu.matmul %46, %44, %cst_42 {dimension_numbers = #tpu.dot_dimension_numbers<[1], [0], [0], [1], [0, 0, 1, 1], [], []>} : vector<96x192xf32>, vector<192x480xf32>, vector<96x480xf32> -> vector<96x480xf32>
    %c1_43 = arith.constant 1 : index
    %c0_44 = arith.constant 0 : index
    %c0_45 = arith.constant 0 : index
    %48 = vector.load %arg6[%c1_43, %c0_44, %c0_45] : memref<2x96x192xf32, #tpu.memory_space<vmem>>, vector<1x96x192xf32>
    %49 = vector.shape_cast %48 : vector<1x96x192xf32> to vector<96x192xf32>
    %cst_46 = arith.constant dense<0.000000e+00> : vector<96x480xf32>
    %50 = tpu.matmul %49, %44, %cst_46 {dimension_numbers = #tpu.dot_dimension_numbers<[1], [0], [0], [1], [0, 0, 1, 1], [], []>} : vector<96x192xf32>, vector<192x480xf32>, vector<96x480xf32> -> vector<96x480xf32>
    %c0_47 = arith.constant 0 : index
    %c0_48 = arith.constant 0 : index
    %c0_49 = arith.constant 0 : index
    %51 = vector.load %arg5[%c0_47, %c0_48, %c0_49] : memref<2x480x240xf32, #tpu.memory_space<vmem>>, vector<1x480x240xf32>
    %52 = vector.shape_cast %51 : vector<1x480x240xf32> to vector<480x240xf32>
    %cst_50 = arith.constant dense<0.000000e+00> : vector<96x240xf32>
    %53 = tpu.matmul %47, %52, %cst_50 {dimension_numbers = #tpu.dot_dimension_numbers<[1], [0], [0], [1], [0, 0, 1, 1], [], []>} : vector<96x480xf32>, vector<480x240xf32>, vector<96x240xf32> -> vector<96x240xf32>
    %c1_51 = arith.constant 1 : index
    %c0_52 = arith.constant 0 : index
    %c0_53 = arith.constant 0 : index
    %54 = vector.load %arg5[%c1_51, %c0_52, %c0_53] : memref<2x480x240xf32, #tpu.memory_space<vmem>>, vector<1x480x240xf32>
    %55 = vector.shape_cast %54 : vector<1x480x240xf32> to vector<480x240xf32>
    %cst_54 = arith.constant dense<0.000000e+00> : vector<96x240xf32>
    %56 = tpu.matmul %47, %55, %cst_54 {dimension_numbers = #tpu.dot_dimension_numbers<[1], [0], [0], [1], [0, 0, 1, 1], [], []>} : vector<96x480xf32>, vector<480x240xf32>, vector<96x240xf32> -> vector<96x240xf32>
    %57 = arith.maximumf %53, %56 : vector<96x240xf32>
    %c0_55 = arith.constant 0 : index
    %c0_56 = arith.constant 0 : index
    %c0_57 = arith.constant 0 : index
    %58 = vector.load %arg5[%c0_55, %c0_56, %c0_57] : memref<2x480x240xf32, #tpu.memory_space<vmem>>, vector<1x480x240xf32>
    %59 = vector.shape_cast %58 : vector<1x480x240xf32> to vector<480x240xf32>
    %cst_58 = arith.constant dense<0.000000e+00> : vector<96x240xf32>
    %60 = tpu.matmul %50, %59, %cst_58 {dimension_numbers = #tpu.dot_dimension_numbers<[1], [0], [0], [1], [0, 0, 1, 1], [], []>} : vector<96x480xf32>, vector<480x240xf32>, vector<96x240xf32> -> vector<96x240xf32>
    %c1_59 = arith.constant 1 : index
    %c0_60 = arith.constant 0 : index
    %c0_61 = arith.constant 0 : index
    %61 = vector.load %arg5[%c1_59, %c0_60, %c0_61] : memref<2x480x240xf32, #tpu.memory_space<vmem>>, vector<1x480x240xf32>
    %62 = vector.shape_cast %61 : vector<1x480x240xf32> to vector<480x240xf32>
    %cst_62 = arith.constant dense<0.000000e+00> : vector<96x240xf32>
    %63 = tpu.matmul %50, %62, %cst_62 {dimension_numbers = #tpu.dot_dimension_numbers<[1], [0], [0], [1], [0, 0, 1, 1], [], []>} : vector<96x480xf32>, vector<480x240xf32>, vector<96x240xf32> -> vector<96x240xf32>
    %64 = arith.maximumf %60, %63 : vector<96x240xf32>
    %65 = arith.maximumf %57, %64 : vector<96x240xf32>
    %c0_63 = arith.constant 0 : index
    %c0_64 = arith.constant 0 : index
    %c0_65 = arith.constant 0 : index
    %66 = vector.load %arg7[%c0_63, %c0_64, %c0_65] : memref<5x64x96xf32, #tpu.memory_space<vmem>>, vector<1x64x96xf32>
    %67 = vector.shape_cast %66 : vector<1x64x96xf32> to vector<64x96xf32>
    %cst_66 = arith.constant dense<0.000000e+00> : vector<64x240xf32>
    %68 = tpu.matmul %67, %65, %cst_66 {dimension_numbers = #tpu.dot_dimension_numbers<[1], [0], [0], [1], [0, 0, 1, 1], [], []>} : vector<64x96xf32>, vector<96x240xf32>, vector<64x240xf32> -> vector<64x240xf32>
    %69 = arith.truncf %68 : vector<64x240xf32> to vector<64x240xbf16>
    %c0_67 = arith.constant 0 : index
    %c0_68 = arith.constant 0 : index
    %c0_69 = arith.constant 0 : index
    %70 = vector.load %arg8[%c0_67, %c0_68, %c0_69] : memref<5x240x400xbf16, #tpu.memory_space<vmem>>, vector<1x240x400xbf16>
    %71 = vector.shape_cast %70 : vector<1x240x400xbf16> to vector<240x400xbf16>
    %cst_70 = arith.constant dense<0.000000e+00> : vector<64x400xf32>
    %72 = tpu.matmul %69, %71, %cst_70 {dimension_numbers = #tpu.dot_dimension_numbers<[1], [0], [0], [1], [0, 0, 1, 1], [], []>} : vector<64x240xbf16>, vector<240x400xbf16>, vector<64x400xf32> -> vector<64x400xf32>
    %c1_71 = arith.constant 1 : index
    %c0_72 = arith.constant 0 : index
    %c0_73 = arith.constant 0 : index
    %73 = vector.load %arg7[%c1_71, %c0_72, %c0_73] : memref<5x64x96xf32, #tpu.memory_space<vmem>>, vector<1x64x96xf32>
    %74 = vector.shape_cast %73 : vector<1x64x96xf32> to vector<64x96xf32>
    %cst_74 = arith.constant dense<0.000000e+00> : vector<64x240xf32>
    %75 = tpu.matmul %74, %65, %cst_74 {dimension_numbers = #tpu.dot_dimension_numbers<[1], [0], [0], [1], [0, 0, 1, 1], [], []>} : vector<64x96xf32>, vector<96x240xf32>, vector<64x240xf32> -> vector<64x240xf32>
    %76 = arith.truncf %75 : vector<64x240xf32> to vector<64x240xbf16>
    %c1_75 = arith.constant 1 : index
    %c0_76 = arith.constant 0 : index
    %c0_77 = arith.constant 0 : index
    %77 = vector.load %arg8[%c1_75, %c0_76, %c0_77] : memref<5x240x400xbf16, #tpu.memory_space<vmem>>, vector<1x240x400xbf16>
    %78 = vector.shape_cast %77 : vector<1x240x400xbf16> to vector<240x400xbf16>
    %cst_78 = arith.constant dense<0.000000e+00> : vector<64x400xf32>
    %79 = tpu.matmul %76, %78, %cst_78 {dimension_numbers = #tpu.dot_dimension_numbers<[1], [0], [0], [1], [0, 0, 1, 1], [], []>} : vector<64x240xbf16>, vector<240x400xbf16>, vector<64x400xf32> -> vector<64x400xf32>
    %80 = arith.addf %72, %79 : vector<64x400xf32>
    %c2_79 = arith.constant 2 : index
    %c0_80 = arith.constant 0 : index
    %c0_81 = arith.constant 0 : index
    %81 = vector.load %arg7[%c2_79, %c0_80, %c0_81] : memref<5x64x96xf32, #tpu.memory_space<vmem>>, vector<1x64x96xf32>
    %82 = vector.shape_cast %81 : vector<1x64x96xf32> to vector<64x96xf32>
    %cst_82 = arith.constant dense<0.000000e+00> : vector<64x240xf32>
    %83 = tpu.matmul %82, %65, %cst_82 {dimension_numbers = #tpu.dot_dimension_numbers<[1], [0], [0], [1], [0, 0, 1, 1], [], []>} : vector<64x96xf32>, vector<96x240xf32>, vector<64x240xf32> -> vector<64x240xf32>
    %84 = arith.truncf %83 : vector<64x240xf32> to vector<64x240xbf16>
    %c2_83 = arith.constant 2 : index
    %c0_84 = arith.constant 0 : index
    %c0_85 = arith.constant 0 : index
    %85 = vector.load %arg8[%c2_83, %c0_84, %c0_85] : memref<5x240x400xbf16, #tpu.memory_space<vmem>>, vector<1x240x400xbf16>
    %86 = vector.shape_cast %85 : vector<1x240x400xbf16> to vector<240x400xbf16>
    %cst_86 = arith.constant dense<0.000000e+00> : vector<64x400xf32>
    %87 = tpu.matmul %84, %86, %cst_86 {dimension_numbers = #tpu.dot_dimension_numbers<[1], [0], [0], [1], [0, 0, 1, 1], [], []>} : vector<64x240xbf16>, vector<240x400xbf16>, vector<64x400xf32> -> vector<64x400xf32>
    %88 = arith.addf %80, %87 : vector<64x400xf32>
    %c3_87 = arith.constant 3 : index
    %c0_88 = arith.constant 0 : index
    %c0_89 = arith.constant 0 : index
    %89 = vector.load %arg7[%c3_87, %c0_88, %c0_89] : memref<5x64x96xf32, #tpu.memory_space<vmem>>, vector<1x64x96xf32>
    %90 = vector.shape_cast %89 : vector<1x64x96xf32> to vector<64x96xf32>
    %cst_90 = arith.constant dense<0.000000e+00> : vector<64x240xf32>
    %91 = tpu.matmul %90, %65, %cst_90 {dimension_numbers = #tpu.dot_dimension_numbers<[1], [0], [0], [1], [0, 0, 1, 1], [], []>} : vector<64x96xf32>, vector<96x240xf32>, vector<64x240xf32> -> vector<64x240xf32>
    %92 = arith.truncf %91 : vector<64x240xf32> to vector<64x240xbf16>
    %c3_91 = arith.constant 3 : index
    %c0_92 = arith.constant 0 : index
    %c0_93 = arith.constant 0 : index
    %93 = vector.load %arg8[%c3_91, %c0_92, %c0_93] : memref<5x240x400xbf16, #tpu.memory_space<vmem>>, vector<1x240x400xbf16>
    %94 = vector.shape_cast %93 : vector<1x240x400xbf16> to vector<240x400xbf16>
    %cst_94 = arith.constant dense<0.000000e+00> : vector<64x400xf32>
    %95 = tpu.matmul %92, %94, %cst_94 {dimension_numbers = #tpu.dot_dimension_numbers<[1], [0], [0], [1], [0, 0, 1, 1], [], []>} : vector<64x240xbf16>, vector<240x400xbf16>, vector<64x400xf32> -> vector<64x400xf32>
    %96 = arith.addf %88, %95 : vector<64x400xf32>
    %c4_95 = arith.constant 4 : index
    %c0_96 = arith.constant 0 : index
    %c0_97 = arith.constant 0 : index
    %97 = vector.load %arg7[%c4_95, %c0_96, %c0_97] : memref<5x64x96xf32, #tpu.memory_space<vmem>>, vector<1x64x96xf32>
    %98 = vector.shape_cast %97 : vector<1x64x96xf32> to vector<64x96xf32>
    %cst_98 = arith.constant dense<0.000000e+00> : vector<64x240xf32>
    %99 = tpu.matmul %98, %65, %cst_98 {dimension_numbers = #tpu.dot_dimension_numbers<[1], [0], [0], [1], [0, 0, 1, 1], [], []>} : vector<64x96xf32>, vector<96x240xf32>, vector<64x240xf32> -> vector<64x240xf32>
    %100 = arith.truncf %99 : vector<64x240xf32> to vector<64x240xbf16>
    %c4_99 = arith.constant 4 : index
    %c0_100 = arith.constant 0 : index
    %c0_101 = arith.constant 0 : index
    %101 = vector.load %arg8[%c4_99, %c0_100, %c0_101] : memref<5x240x400xbf16, #tpu.memory_space<vmem>>, vector<1x240x400xbf16>
    %102 = vector.shape_cast %101 : vector<1x240x400xbf16> to vector<240x400xbf16>
    %cst_102 = arith.constant dense<0.000000e+00> : vector<64x400xf32>
    %103 = tpu.matmul %100, %102, %cst_102 {dimension_numbers = #tpu.dot_dimension_numbers<[1], [0], [0], [1], [0, 0, 1, 1], [], []>} : vector<64x240xbf16>, vector<240x400xbf16>, vector<64x400xf32> -> vector<64x400xf32>
    %104 = arith.addf %96, %103 : vector<64x400xf32>
    %c0_103 = arith.constant 0 : index
    %c0_104 = arith.constant 0 : index
    %105 = vector.load %arg9[%c0_103, %c0_104] : memref<1x400xf32, #tpu.memory_space<vmem>>, vector<1x400xf32>
    %106 = vector.broadcast %105 : vector<1x400xf32> to vector<64x400xf32>
    %107 = arith.addf %104, %106 : vector<64x400xf32>
    %cst_105 = arith.constant 0.000000e+00 : f32
    %108 = vector.broadcast %cst_105 : f32 to vector<64x400xf32>
    %109 = arith.maximumf %107, %108 : vector<64x400xf32>
    %c0_106 = arith.constant 0 : index
    %c0_107 = arith.constant 0 : index
    %c0_108 = arith.constant 0 : index
    %110 = vector.load %arg11[%c0_106, %c0_107, %c0_108] : memref<2x32x64xf32, #tpu.memory_space<vmem>>, vector<1x32x64xf32>
    %111 = vector.shape_cast %110 : vector<1x32x64xf32> to vector<32x64xf32>
    %cst_109 = arith.constant dense<0.000000e+00> : vector<32x400xf32>
    %112 = tpu.matmul %111, %109, %cst_109 {dimension_numbers = #tpu.dot_dimension_numbers<[1], [0], [0], [1], [0, 0, 1, 1], [], []>} : vector<32x64xf32>, vector<64x400xf32>, vector<32x400xf32> -> vector<32x400xf32>
    %c1_110 = arith.constant 1 : index
    %c0_111 = arith.constant 0 : index
    %c0_112 = arith.constant 0 : index
    %113 = vector.load %arg11[%c1_110, %c0_111, %c0_112] : memref<2x32x64xf32, #tpu.memory_space<vmem>>, vector<1x32x64xf32>
    %114 = vector.shape_cast %113 : vector<1x32x64xf32> to vector<32x64xf32>
    %cst_113 = arith.constant dense<0.000000e+00> : vector<32x400xf32>
    %115 = tpu.matmul %114, %109, %cst_113 {dimension_numbers = #tpu.dot_dimension_numbers<[1], [0], [0], [1], [0, 0, 1, 1], [], []>} : vector<32x64xf32>, vector<64x400xf32>, vector<32x400xf32> -> vector<32x400xf32>
    %c0_114 = arith.constant 0 : index
    %c0_115 = arith.constant 0 : index
    %c0_116 = arith.constant 0 : index
    %116 = vector.load %arg10[%c0_114, %c0_115, %c0_116] : memref<2x400x200xf32, #tpu.memory_space<vmem>>, vector<1x400x200xf32>
    %117 = vector.shape_cast %116 : vector<1x400x200xf32> to vector<400x200xf32>
    %cst_117 = arith.constant dense<0.000000e+00> : vector<32x200xf32>
    %118 = tpu.matmul %112, %117, %cst_117 {dimension_numbers = #tpu.dot_dimension_numbers<[1], [0], [0], [1], [0, 0, 1, 1], [], []>} : vector<32x400xf32>, vector<400x200xf32>, vector<32x200xf32> -> vector<32x200xf32>
    %c1_118 = arith.constant 1 : index
    %c0_119 = arith.constant 0 : index
    %c0_120 = arith.constant 0 : index
    %119 = vector.load %arg10[%c1_118, %c0_119, %c0_120] : memref<2x400x200xf32, #tpu.memory_space<vmem>>, vector<1x400x200xf32>
    %120 = vector.shape_cast %119 : vector<1x400x200xf32> to vector<400x200xf32>
    %cst_121 = arith.constant dense<0.000000e+00> : vector<32x200xf32>
    %121 = tpu.matmul %112, %120, %cst_121 {dimension_numbers = #tpu.dot_dimension_numbers<[1], [0], [0], [1], [0, 0, 1, 1], [], []>} : vector<32x400xf32>, vector<400x200xf32>, vector<32x200xf32> -> vector<32x200xf32>
    %122 = arith.maximumf %118, %121 : vector<32x200xf32>
    %c0_122 = arith.constant 0 : index
    %c0_123 = arith.constant 0 : index
    %c0_124 = arith.constant 0 : index
    %123 = vector.load %arg10[%c0_122, %c0_123, %c0_124] : memref<2x400x200xf32, #tpu.memory_space<vmem>>, vector<1x400x200xf32>
    %124 = vector.shape_cast %123 : vector<1x400x200xf32> to vector<400x200xf32>
    %cst_125 = arith.constant dense<0.000000e+00> : vector<32x200xf32>
    %125 = tpu.matmul %115, %124, %cst_125 {dimension_numbers = #tpu.dot_dimension_numbers<[1], [0], [0], [1], [0, 0, 1, 1], [], []>} : vector<32x400xf32>, vector<400x200xf32>, vector<32x200xf32> -> vector<32x200xf32>
    %c1_126 = arith.constant 1 : index
    %c0_127 = arith.constant 0 : index
    %c0_128 = arith.constant 0 : index
    %126 = vector.load %arg10[%c1_126, %c0_127, %c0_128] : memref<2x400x200xf32, #tpu.memory_space<vmem>>, vector<1x400x200xf32>
    %127 = vector.shape_cast %126 : vector<1x400x200xf32> to vector<400x200xf32>
    %cst_129 = arith.constant dense<0.000000e+00> : vector<32x200xf32>
    %128 = tpu.matmul %115, %127, %cst_129 {dimension_numbers = #tpu.dot_dimension_numbers<[1], [0], [0], [1], [0, 0, 1, 1], [], []>} : vector<32x400xf32>, vector<400x200xf32>, vector<32x200xf32> -> vector<32x200xf32>
    %129 = arith.maximumf %125, %128 : vector<32x200xf32>
    %130 = arith.maximumf %122, %129 : vector<32x200xf32>
    %c0_130 = arith.constant 0 : index
    %c0_131 = arith.constant 0 : index
    %c0_132 = arith.constant 0 : index
    %131 = vector.load %arg12[%c0_130, %c0_131, %c0_132] : memref<4x8x32xf32, #tpu.memory_space<vmem>>, vector<1x8x32xf32>
    %132 = vector.shape_cast %131 : vector<1x8x32xf32> to vector<8x32xf32>
    %cst_133 = arith.constant dense<0.000000e+00> : vector<8x200xf32>
    %133 = tpu.matmul %132, %130, %cst_133 {dimension_numbers = #tpu.dot_dimension_numbers<[1], [0], [0], [1], [0, 0, 1, 1], [], []>} : vector<8x32xf32>, vector<32x200xf32>, vector<8x200xf32> -> vector<8x200xf32>
    %134 = arith.truncf %133 : vector<8x200xf32> to vector<8x200xbf16>
    %c0_134 = arith.constant 0 : index
    %c0_135 = arith.constant 0 : index
    %c0_136 = arith.constant 0 : index
    %135 = vector.load %arg13[%c0_134, %c0_135, %c0_136] : memref<4x200x500xbf16, #tpu.memory_space<vmem>>, vector<1x200x500xbf16>
    %136 = vector.shape_cast %135 : vector<1x200x500xbf16> to vector<200x500xbf16>
    %cst_137 = arith.constant dense<0.000000e+00> : vector<8x500xf32>
    %137 = tpu.matmul %134, %136, %cst_137 {dimension_numbers = #tpu.dot_dimension_numbers<[1], [0], [0], [1], [0, 0, 1, 1], [], []>} : vector<8x200xbf16>, vector<200x500xbf16>, vector<8x500xf32> -> vector<8x500xf32>
    %c1_138 = arith.constant 1 : index
    %c0_139 = arith.constant 0 : index
    %c0_140 = arith.constant 0 : index
    %138 = vector.load %arg12[%c1_138, %c0_139, %c0_140] : memref<4x8x32xf32, #tpu.memory_space<vmem>>, vector<1x8x32xf32>
    %139 = vector.shape_cast %138 : vector<1x8x32xf32> to vector<8x32xf32>
    %cst_141 = arith.constant dense<0.000000e+00> : vector<8x200xf32>
    %140 = tpu.matmul %139, %130, %cst_141 {dimension_numbers = #tpu.dot_dimension_numbers<[1], [0], [0], [1], [0, 0, 1, 1], [], []>} : vector<8x32xf32>, vector<32x200xf32>, vector<8x200xf32> -> vector<8x200xf32>
    %141 = arith.truncf %140 : vector<8x200xf32> to vector<8x200xbf16>
    %c1_142 = arith.constant 1 : index
    %c0_143 = arith.constant 0 : index
    %c0_144 = arith.constant 0 : index
    %142 = vector.load %arg13[%c1_142, %c0_143, %c0_144] : memref<4x200x500xbf16, #tpu.memory_space<vmem>>, vector<1x200x500xbf16>
    %143 = vector.shape_cast %142 : vector<1x200x500xbf16> to vector<200x500xbf16>
    %cst_145 = arith.constant dense<0.000000e+00> : vector<8x500xf32>
    %144 = tpu.matmul %141, %143, %cst_145 {dimension_numbers = #tpu.dot_dimension_numbers<[1], [0], [0], [1], [0, 0, 1, 1], [], []>} : vector<8x200xbf16>, vector<200x500xbf16>, vector<8x500xf32> -> vector<8x500xf32>
    %145 = arith.addf %137, %144 : vector<8x500xf32>
    %c2_146 = arith.constant 2 : index
    %c0_147 = arith.constant 0 : index
    %c0_148 = arith.constant 0 : index
    %146 = vector.load %arg12[%c2_146, %c0_147, %c0_148] : memref<4x8x32xf32, #tpu.memory_space<vmem>>, vector<1x8x32xf32>
    %147 = vector.shape_cast %146 : vector<1x8x32xf32> to vector<8x32xf32>
    %cst_149 = arith.constant dense<0.000000e+00> : vector<8x200xf32>
    %148 = tpu.matmul %147, %130, %cst_149 {dimension_numbers = #tpu.dot_dimension_numbers<[1], [0], [0], [1], [0, 0, 1, 1], [], []>} : vector<8x32xf32>, vector<32x200xf32>, vector<8x200xf32> -> vector<8x200xf32>
    %149 = arith.truncf %148 : vector<8x200xf32> to vector<8x200xbf16>
    %c2_150 = arith.constant 2 : index
    %c0_151 = arith.constant 0 : index
    %c0_152 = arith.constant 0 : index
    %150 = vector.load %arg13[%c2_150, %c0_151, %c0_152] : memref<4x200x500xbf16, #tpu.memory_space<vmem>>, vector<1x200x500xbf16>
    %151 = vector.shape_cast %150 : vector<1x200x500xbf16> to vector<200x500xbf16>
    %cst_153 = arith.constant dense<0.000000e+00> : vector<8x500xf32>
    %152 = tpu.matmul %149, %151, %cst_153 {dimension_numbers = #tpu.dot_dimension_numbers<[1], [0], [0], [1], [0, 0, 1, 1], [], []>} : vector<8x200xbf16>, vector<200x500xbf16>, vector<8x500xf32> -> vector<8x500xf32>
    %153 = arith.addf %145, %152 : vector<8x500xf32>
    %c3_154 = arith.constant 3 : index
    %c0_155 = arith.constant 0 : index
    %c0_156 = arith.constant 0 : index
    %154 = vector.load %arg12[%c3_154, %c0_155, %c0_156] : memref<4x8x32xf32, #tpu.memory_space<vmem>>, vector<1x8x32xf32>
    %155 = vector.shape_cast %154 : vector<1x8x32xf32> to vector<8x32xf32>
    %cst_157 = arith.constant dense<0.000000e+00> : vector<8x200xf32>
    %156 = tpu.matmul %155, %130, %cst_157 {dimension_numbers = #tpu.dot_dimension_numbers<[1], [0], [0], [1], [0, 0, 1, 1], [], []>} : vector<8x32xf32>, vector<32x200xf32>, vector<8x200xf32> -> vector<8x200xf32>
    %157 = arith.truncf %156 : vector<8x200xf32> to vector<8x200xbf16>
    %c3_158 = arith.constant 3 : index
    %c0_159 = arith.constant 0 : index
    %c0_160 = arith.constant 0 : index
    %158 = vector.load %arg13[%c3_158, %c0_159, %c0_160] : memref<4x200x500xbf16, #tpu.memory_space<vmem>>, vector<1x200x500xbf16>
    %159 = vector.shape_cast %158 : vector<1x200x500xbf16> to vector<200x500xbf16>
    %cst_161 = arith.constant dense<0.000000e+00> : vector<8x500xf32>
    %160 = tpu.matmul %157, %159, %cst_161 {dimension_numbers = #tpu.dot_dimension_numbers<[1], [0], [0], [1], [0, 0, 1, 1], [], []>} : vector<8x200xbf16>, vector<200x500xbf16>, vector<8x500xf32> -> vector<8x500xf32>
    %161 = arith.addf %153, %160 : vector<8x500xf32>
    %c0_162 = arith.constant 0 : index
    %c0_163 = arith.constant 0 : index
    %162 = vector.load %arg14[%c0_162, %c0_163] : memref<1x500xf32, #tpu.memory_space<vmem>>, vector<1x500xf32>
    %163 = vector.broadcast %162 : vector<1x500xf32> to vector<8x500xf32>
    %164 = arith.addf %161, %163 : vector<8x500xf32>
    %cst_164 = arith.constant 0.000000e+00 : f32
    %165 = vector.broadcast %cst_164 : f32 to vector<8x500xf32>
    %166 = arith.maximumf %164, %165 : vector<8x500xf32>
    %167 = arith.truncf %166 : vector<8x500xf32> to vector<8x500xbf16>
    %c0_165 = arith.constant 0 : index
    %c0_166 = arith.constant 0 : index
    %168 = vector.load %arg15[%c0_165, %c0_166] : memref<500x128xbf16, #tpu.memory_space<vmem>>, vector<500x128xbf16>
    %cst_167 = arith.constant dense<0.000000e+00> : vector<8x128xf32>
    %169 = tpu.matmul %167, %168, %cst_167 {dimension_numbers = #tpu.dot_dimension_numbers<[1], [0], [0], [1], [0, 0, 1, 1], [], []>} : vector<8x500xbf16>, vector<500x128xbf16>, vector<8x128xf32> -> vector<8x128xf32>
    %c0_168 = arith.constant 0 : index
    %c0_169 = arith.constant 0 : index
    %170 = vector.load %arg16[%c0_168, %c0_169] : memref<1x128xf32, #tpu.memory_space<vmem>>, vector<1x128xf32>
    %171 = vector.broadcast %170 : vector<1x128xf32> to vector<8x128xf32>
    %172 = arith.addf %169, %171 : vector<8x128xf32>
    %cst_170 = arith.constant dense<0xFF800000> : vector<8xf32>
    %173 = vector.multi_reduction <maximumf>, %172, %cst_170 [1] : vector<8x128xf32> to vector<8xf32>
    %174 = vector.shape_cast %173 : vector<8xf32> to vector<8x1xf32>
    %175 = vector.broadcast %174 : vector<8x1xf32> to vector<8x128xf32>
    %176 = arith.subf %172, %175 : vector<8x128xf32>
    %177 = math.exp %176 : vector<8x128xf32>
    %cst_171 = arith.constant dense<0.000000e+00> : vector<8xf32>
    %178 = vector.multi_reduction <add>, %177, %cst_171 [1] : vector<8x128xf32> to vector<8xf32>
    %179 = vector.shape_cast %178 : vector<8xf32> to vector<8x1xf32>
    %180 = math.log %179 : vector<8x1xf32>
    %181 = vector.broadcast %180 : vector<8x1xf32> to vector<8x128xf32>
    %182 = arith.subf %176, %181 : vector<8x128xf32>
    %c0_172 = arith.constant 0 : index
    %c0_173 = arith.constant 0 : index
    %183 = vector.load %arg17[%c0_172, %c0_173] : memref<8x128xf32, #tpu.memory_space<vmem>>, vector<8x128xf32>
    tpu.vector_store %arg17[%c0_172, %c0_173], %182 {strides = array<i32>} : memref<8x128xf32, #tpu.memory_space<vmem>>, vector<8x128xf32>,
    return
  }
  func.func @transform_0(%arg0: i32) -> (i32, i32) {
    %c0_i32 = arith.constant 0 : i32
    %c0_i32_0 = arith.constant 0 : i32
    return %arg0, %c0_i32 : i32, i32
  }
  func.func @transform_1(%arg0: i32) -> (i32, i32, i32) {
    %c0_i32 = arith.constant 0 : i32
    %c0_i32_0 = arith.constant 0 : i32
    %c0_i32_1 = arith.constant 0 : i32
    %c0_i32_2 = arith.constant 0 : i32
    return %c0_i32, %c0_i32_0, %c0_i32_1 : i32, i32, i32
  }
  func.func @transform_2(%arg0: i32) -> (i32, i32, i32) {
    %c0_i32 = arith.constant 0 : i32
    %c0_i32_0 = arith.constant 0 : i32
    %c0_i32_1 = arith.constant 0 : i32
    %c0_i32_2 = arith.constant 0 : i32
    return %c0_i32, %c0_i32_0, %c0_i32_1 : i32, i32, i32
  }
  func.func @transform_3(%arg0: i32) -> (i32, i32) {
    %c0_i32 = arith.constant 0 : i32
    %c0_i32_0 = arith.constant 0 : i32
    %c0_i32_1 = arith.constant 0 : i32
    return %c0_i32, %c0_i32_0 : i32, i32
  }
  func.func @transform_4(%arg0: i32) -> (i32, i32, i32) {
    %c0_i32 = arith.constant 0 : i32
    %c0_i32_0 = arith.constant 0 : i32
    %c0_i32_1 = arith.constant 0 : i32
    %c0_i32_2 = arith.constant 0 : i32
    return %c0_i32, %c0_i32_0, %c0_i32_1 : i32, i32, i32
  }
  func.func @transform_5(%arg0: i32) -> (i32, i32, i32) {
    %c0_i32 = arith.constant 0 : i32
    %c0_i32_0 = arith.constant 0 : i32
    %c0_i32_1 = arith.constant 0 : i32
    %c0_i32_2 = arith.constant 0 : i32
    return %c0_i32, %c0_i32_0, %c0_i32_1 : i32, i32, i32
  }
  func.func @transform_6(%arg0: i32) -> (i32, i32, i32) {
    %c0_i32 = arith.constant 0 : i32
    %c0_i32_0 = arith.constant 0 : i32
    %c0_i32_1 = arith.constant 0 : i32
    %c0_i32_2 = arith.constant 0 : i32
    return %c0_i32, %c0_i32_0, %c0_i32_1 : i32, i32, i32
  }
  func.func @transform_7(%arg0: i32) -> (i32, i32, i32) {
    %c0_i32 = arith.constant 0 : i32
    %c0_i32_0 = arith.constant 0 : i32
    %c0_i32_1 = arith.constant 0 : i32
    %c0_i32_2 = arith.constant 0 : i32
    return %c0_i32, %c0_i32_0, %c0_i32_1 : i32, i32, i32
  }
  func.func @transform_8(%arg0: i32) -> (i32, i32) {
    %c0_i32 = arith.constant 0 : i32
    %c0_i32_0 = arith.constant 0 : i32
    %c0_i32_1 = arith.constant 0 : i32
    return %c0_i32, %c0_i32_0 : i32, i32
  }
  func.func @transform_9(%arg0: i32) -> (i32, i32, i32) {
    %c0_i32 = arith.constant 0 : i32
    %c0_i32_0 = arith.constant 0 : i32
    %c0_i32_1 = arith.constant 0 : i32
    %c0_i32_2 = arith.constant 0 : i32
    return %c0_i32, %c0_i32_0, %c0_i32_1 : i32, i32, i32
  }
  func.func @transform_10(%arg0: i32) -> (i32, i32, i32) {
    %c0_i32 = arith.constant 0 : i32
    %c0_i32_0 = arith.constant 0 : i32
    %c0_i32_1 = arith.constant 0 : i32
    %c0_i32_2 = arith.constant 0 : i32
    return %c0_i32, %c0_i32_0, %c0_i32_1 : i32, i32, i32
  }
  func.func @transform_11(%arg0: i32) -> (i32, i32, i32) {
    %c0_i32 = arith.constant 0 : i32
    %c0_i32_0 = arith.constant 0 : i32
    %c0_i32_1 = arith.constant 0 : i32
    %c0_i32_2 = arith.constant 0 : i32
    return %c0_i32, %c0_i32_0, %c0_i32_1 : i32, i32, i32
  }
  func.func @transform_12(%arg0: i32) -> (i32, i32, i32) {
    %c0_i32 = arith.constant 0 : i32
    %c0_i32_0 = arith.constant 0 : i32
    %c0_i32_1 = arith.constant 0 : i32
    %c0_i32_2 = arith.constant 0 : i32
    return %c0_i32, %c0_i32_0, %c0_i32_1 : i32, i32, i32
  }
  func.func @transform_13(%arg0: i32) -> (i32, i32) {
    %c0_i32 = arith.constant 0 : i32
    %c0_i32_0 = arith.constant 0 : i32
    %c0_i32_1 = arith.constant 0 : i32
    return %c0_i32, %c0_i32_0 : i32, i32
  }
  func.func @transform_14(%arg0: i32) -> (i32, i32) {
    %c0_i32 = arith.constant 0 : i32
    %c0_i32_0 = arith.constant 0 : i32
    %c0_i32_1 = arith.constant 0 : i32
    return %c0_i32, %c0_i32_0 : i32, i32
  }
  func.func @transform_15(%arg0: i32) -> (i32, i32) {
    %c0_i32 = arith.constant 0 : i32
    %c0_i32_0 = arith.constant 0 : i32
    %c0_i32_1 = arith.constant 0 : i32
    return %c0_i32, %c0_i32_0 : i32, i32
  }
  func.func @transform_16(%arg0: i32) -> (i32, i32) {
    %c0_i32 = arith.constant 0 : i32
    %c0_i32_0 = arith.constant 0 : i32
    return %arg0, %c0_i32 : i32, i32
  }
}

</mosaic_0001>

<bundles_post_ra>
// kernel: mnist_net_forward.1
= control target key start
LH: loop header
LB: loop body
LE: loop exit
PB: predicated region body
PF: predicated region fallthrough
CT: control target
= control target key end

     0   :  { %s24347_s0 = inlined_call_operand.vmem [shape: f32[224,28], index: 0, kind: input, shape index: {}]   ;;  %s24348_s1 = inlined_call_operand.vmem [shape: f32[5,192,224], index: 1, kind: input, shape index: {}]   ;;  %s24349_s2 = inlined_call_operand.vmem [shape: bf16[5,28,480], index: 2, kind: input, shape index: {}]   ;;  %s24350_s3 = inlined_call_operand.vmem [shape: f32[1,480], index: 3, kind: input, shape index: {}]   ;;  %s24351_s4 = inlined_call_operand.vmem [shape: f32[2,480,240], index: 4, kind: input, shape index: {}]   ;;  %s24352_s5 = inlined_call_operand.vmem [shape: f32[2,96,192], index: 5, kind: input, shape index: {}]   ;;  %s24353_s6 = inlined_call_operand.vmem [shape: f32[5,64,96], index: 6, kind: input, shape index: {}]   ;;  %s24354_s7 = inlined_call_operand.vmem [shape: bf16[5,240,400], index: 7, kind: input, shape index: {}]   ;;  %s24355_s8 = inlined_call_operand.vmem [shape: f32[1,400], index: 8, kind: input, shape index: {}]   ;;  %s24356_s9 = inlined_call_operand.hbm [shape: f32[2,400,200], index: 9, kind: input, shape index: {}]   ;;  %s24357_s10 = inlined_call_operand.vmem [shape: f32[2,32,64], index: 10, kind: input, shape index: {}]   ;;  %s24358_s11 = inlined_call_operand.vmem [shape: f32[4,8,32], index: 11, kind: input, shape index: {}]   ;;  %s24359_s12 = inlined_call_operand.hbm [shape: bf16[4,200,500], index: 12, kind: input, shape index: {}]   ;;  %s24360_s13 = inlined_call_operand.vmem [shape: f32[1,500], index: 13, kind: input, shape index: {}]   ;;  %s24361_s14 = inlined_call_operand.vmem [shape: bf16[500,128], index: 14, kind: input, shape index: {}]   ;;  %s24362_s15 = inlined_call_operand.vmem [shape: f32[1,128], index: 15, kind: input, shape index: {}]   ;;  %s24363_s16 = inlined_call_operand.vmem [shape: f32[8,128], index: 16, kind: output, shape index: {}]  }
   0x1   :  { %24547 = sst [smem:[#allocation102_spill]] %s24347_s0 }
   0x2   :  { %21 = vsyncpa [#allocation3], 0 }
   0x3   :  { %22 = vsyncpa [#allocation5], 0  ;;  %s18353_s21 = smov [#allocation2]   ;;  %s18305_s25 = scalar_lea.hbm %s24356_s9, 25600 }
   0x4   :  { %s46_s22 = sshll.u32 %s18353_s21, 4  ;;  %p18306_p0 = scmp.ne.s32.totalorder %s24356_s9, %s18305_s25  ;;  %s47_s22 = int_to_ptr.vmem [resolvable:$true] %s46_s22 }
   0x5   :  { %p18309_p1 = scmp.lt.u32.totalorder %s18305_s25, %s24356_s9 }
   0x7   :  { %p18311_p2 = pnand %p18309_p1, %p18306_p0 }
   0x9   :  { %18314 = shalt.err (!%p18311_p2)
}
   0xa   :  { %s18315_s30 = scalar_lea.vmem %s47_s22, 25600  ;;  %p18320_p4 = scmp.lt.s32.totalorder %s47_s22, %s47_s22 }
   0xb   :  { %p18316_p3 = scmp.ne.s32.totalorder %s47_s22, %s18315_s30  ;;  %p18321_p5 = scmp.lt.s32.totalorder %s18315_s30, %s18315_s30 }
   0xd   :  { %p18322_p6 = por %p18321_p5, %p18320_p4 }
   0xf   :  { %p18323_p7 = pnand %p18322_p6, %p18316_p3 }
  0x11   :  { %18326 = shalt.err (!%p18323_p7)
}
  0x12   :  { %s18354_s0 = smov 256   ;;  %s18355_s17 = smov 16  }
  0x13   :  { %52 = dma.hbm_to_vmem [thread:$0]  %s24356_s9, 25600, %s47_s22, [#allocation3], %s18354_s0, %s18354_s0, %s18355_s17  }
  0x14   :  { %s18356_s20 = smov [#allocation4]   ;;  %s18327_s25 = scalar_lea.hbm %s24359_s12, 25600 }
  0x15   :  { %s62_s21 = sshll.u32 %s18356_s20, 4  ;;  %p18328_p8 = scmp.ne.s32.totalorder %s24359_s12, %s18327_s25  ;;  %s63_s21 = int_to_ptr.vmem [resolvable:$true] %s62_s21 }
  0x16   :  { %p18331_p9 = scmp.lt.u32.totalorder %s18327_s25, %s24359_s12 }
  0x18   :  { %p18333_p10 = pnand %p18331_p9, %p18328_p8 }
  0x1a   :  { %18336 = shalt.err (!%p18333_p10)
}
  0x1b   :  { %s18337_s30 = scalar_lea.vmem %s63_s21, 25600  ;;  %p18342_p12 = scmp.lt.s32.totalorder %s63_s21, %s63_s21 }
  0x1c   :  { %p18338_p11 = scmp.ne.s32.totalorder %s63_s21, %s18337_s30  ;;  %p18343_p13 = scmp.lt.s32.totalorder %s18337_s30, %s18337_s30 }
  0x1e   :  { %p18344_p0 = por %p18343_p13, %p18342_p12 }
  0x20   :  { %p18345_p1 = pnand %p18344_p0, %p18338_p11 }
  0x22   :  { %18348 = shalt.err (!%p18345_p1)
}
  0x23   :  { %68 = dma.hbm_to_vmem [thread:$0]  %s24359_s12, 25600, %s63_s21, [#allocation5], %s18354_s0, %s18354_s0, %s18355_s17  }
  0x24   :  { %18349 = dma.done.wait [#allocation3], 25600  }
  0x25   :  { %18350 = vsyncadd [#allocation3], 4294941696 }
  0x26   :  { %18351 = dma.done.wait [#allocation5], 25600  }
  0x27   :  { %18352 = vsyncadd [#allocation5], 4294941696  ;;  %v18357_v0 = vmov 0.0|0.0   ;;  %s24548_s20 = sld [smem:[#allocation102_spill]]  ;;  %vm158_vm0 = vcmask 785408   ;;  %v13582_v12 = vld [vmem:[%s24348_s1 + $0x188] sm:$0xff] }
  0x28   :  { %15350 = vmatprep.subr.bf16.mxu1 %v18357_v0  ;;  %15308 = vmatprep.subr.bf16.mxu0 %v18357_v0  ;;  %v111_v25 = vld [vmem:[%s24348_s1 + $0x8] sm:$0xff]  ;;  %v17456_v44 = vld [vmem:[%s24349_s2 + $0x44] ss:$16 sps:$4 sm:$0xff]   ;;  %v13584_v49 = vld [vmem:[%s24348_s1 + $0x198] sm:$0xff]  ;;  %vm836_vm1 = vcmask 1045504   ;;  %vm799_vm2 = vcmask 228352  }
  0x29   :  { %13629 = vmatprep.mubr.msk.f32.mxu1 %vm158_vm0, %v13582_v12  ;;  %13557 = vmatprep.mubr.msk.f32.mxu0 %vm158_vm0, %v111_v25  ;;  %v17462_v45 = vld [vmem:[%s24349_s2 + $0x4c] ss:$16 sps:$4 sm:$0xff]   ;;  %v13581_v47 = vld [vmem:[%s24348_s1 + $0x180] sm:$0xff]  ;;  %v17460_v52 = vld [vmem:[%s24349_s2 + $0x48] ss:$16 sps:$4 sm:$0xff]   ;;  %vm4222_vm3 = vcmask 523264  }
  0x2a   :  { %v110_v48 = vld [vmem:[%s24348_s1] sm:$0xff]  ;;  %v113_v50 = vld [vmem:[%s24348_s1 + $0x18] sm:$0xff]  ;;  %v13583_v55 = vld [vmem:[%s24348_s1 + $0x190] sm:$0xff]  ;;  %vm7077_vm4 = vcmask 916480   ;;  %vm10384_vm5 = vcmask 130048   ;;  %vm11247_vm6 = vcmask 261120  }
  0x2b   :  { %v17454_v51 = vld [vmem:[%s24349_s2 + $0x40] ss:$16 sps:$4 sm:$0xff]   ;;  %v17457_v53 = vld [vmem:[%s24349_s2 + $0x64] ss:$16 sps:$4 sm:$0x3f]   ;;  %v13586_v57 = vld [vmem:[%s24348_s1 + $0x1a8] sm:$0xff] }
  0x2c   :  { %v17459_v54 = vld [vmem:[%s24349_s2 + $0x60] ss:$16 sps:$4 sm:$0x3f]   ;;  %v115_v58 = vld [vmem:[%s24348_s1 + $0x28] sm:$0xff]  ;;  %v13588_v62 = vld [vmem:[%s24348_s1 + $0x1b8] sm:$0xff]  ;;  %vm11757_vm7 = vcmask 1043456  }
  0x2d   :  { %v82_v1 = vld [vmem:[%s24548_s20] sm:$0xff]  ;;  %v83_v2 = vld [vmem:[%s24548_s20 + $0x8] sm:$0xff]  ;;  %v84_v3 = vld [vmem:[%s24548_s20 + $0x10] sm:$0xff]  ;;  %v838_v61 = vsel %vm836_vm1, %v17459_v54, 0  ;;  %vm11753_vm8 = vcmask 588800   ;;  %vm13456_vm9 = vcmask 1041408  }
  0x2e   :  { %v18480_v4 = vpack.c.bf16 %v83_v2, %v82_v1  ;;  %v85_v5 = vld [vmem:[%s24548_s20 + $0x18] sm:$0xff]  ;;  %v86_v7 = vld [vmem:[%s24548_s20 + $0x20] sm:$0xff]  ;;  %v87_v8 = vld [vmem:[%s24548_s20 + $0x28] sm:$0xff]  ;;  %vm13452_vm10 = vcmask 949248  }
  0x2f   :  { %v18486_v6 = vpack.c.bf16 %v85_v5, %v84_v3  ;;  %v18498_v9 = vpack.c.bf16 %v87_v8, %v86_v7  ;;  %v88_v10 = vld [vmem:[%s24548_s20 + $0x30] sm:$0xff]  ;;  %v89_v11 = vld [vmem:[%s24548_s20 + $0x38] sm:$0xff]  ;;  %v90_v14 = vld [vmem:[%s24548_s20 + $0x40] sm:$0xff] }
  0x30   :  { %15352 = vmatpush1.bf16.msra.mxu1 %v18480_v4  ;;  %15310 = vmatpush1.bf16.msra.mxu0 %v18480_v4  ;;  %v18514_v13 = vpack.c.bf16 %v89_v11, %v88_v10  ;;  %v91_v15 = vld [vmem:[%s24548_s20 + $0x48] sm:$0xff]  ;;  %v92_v17 = vld [vmem:[%s24548_s20 + $0x50] sm:$0xff]  ;;  %v93_v18 = vld [vmem:[%s24548_s20 + $0x58] sm:$0xff] }
  0x31   :  { %15353 = vmatprep.subr.bf16.mxu1 %v18357_v0  ;;  %15311 = vmatprep.subr.bf16.mxu0 %v18357_v0  ;;  %v18526_v16 = vpack.c.bf16 %v91_v15, %v90_v14  ;;  %v18538_v19 = vpack.c.bf16 %v93_v18, %v92_v17  ;;  %v94_v20 = vld [vmem:[%s24548_s20 + $0x60] sm:$0xff]  ;;  %v95_v21 = vld [vmem:[%s24548_s20 + $0x68] sm:$0xff]  ;;  %v96_v23 = vld [vmem:[%s24548_s20 + $0x70] sm:$0xff] }
  0x32   :  { %v18550_v22 = vpack.c.bf16 %v95_v21, %v94_v20  ;;  %v97_v24 = vld [vmem:[%s24548_s20 + $0x78] sm:$0xff]  ;;  %v98_v27 = vld [vmem:[%s24548_s20 + $0x80] sm:$0xff]  ;;  %v99_v28 = vld [vmem:[%s24548_s20 + $0x88] sm:$0xff] }
  0x33   :  { %v18566_v26 = vpack.c.bf16 %v97_v24, %v96_v23  ;;  %v18578_v29 = vpack.c.bf16 %v99_v28, %v98_v27  ;;  %v100_v30 = vld [vmem:[%s24548_s20 + $0x90] sm:$0xff]  ;;  %v101_v31 = vld [vmem:[%s24548_s20 + $0x98] sm:$0xff]  ;;  %v102_v33 = vld [vmem:[%s24548_s20 + $0xa0] sm:$0xff] }
  0x34   :  { %15355 = vmatpush1.bf16.msra.mxu1 %v18486_v6  ;;  %15313 = vmatpush1.bf16.msra.mxu0 %v18486_v6  ;;  %v18590_v32 = vpack.c.bf16 %v101_v31, %v100_v30  ;;  %v103_v34 = vld [vmem:[%s24548_s20 + $0xa8] sm:$0xff]  ;;  %v104_v36 = vld [vmem:[%s24548_s20 + $0xb0] sm:$0xff]  ;;  %v105_v37 = vld [vmem:[%s24548_s20 + $0xb8] sm:$0xff] }
  0x35   :  { %15356 = vmatprep.subr.bf16.mxu1 %v18357_v0  ;;  %15314 = vmatprep.subr.bf16.mxu0 %v18357_v0  ;;  %v18602_v35 = vpack.c.bf16 %v103_v34, %v102_v33  ;;  %v18614_v38 = vpack.c.bf16 %v105_v37, %v104_v36  ;;  %v106_v39 = vld [vmem:[%s24548_s20 + $0xc0] sm:$0xff]  ;;  %v107_v40 = vld [vmem:[%s24548_s20 + $0xc8] sm:$0xff]  ;;  %v108_v41 = vld [vmem:[%s24548_s20 + $0xd0] sm:$0xff] }
  0x36   :  { %v109_v42 = vld [vmem:[%s24548_s20 + $0xd8] sm:$0xff]  ;;  %v18632_v43 = vpack.c.bf16 %v107_v40, %v106_v39  ;;  %v112_v56 = vld [vmem:[%s24348_s1 + $0x10] sm:$0xff]  ;;  %v13585_v59 = vld [vmem:[%s24348_s1 + $0x1a0] sm:$0xff] }
  0x37   :  { %v18644_v46 = vpack.c.bf16 %v109_v42, %v108_v41  ;;  %v114_v60 = vld [vmem:[%s24348_s1 + $0x20] sm:$0xff]  ;;  %v117_v63 = vld [vmem:[%s24348_s1 + $0x38] sm:$0xff]  ;;  %v13587_v1 = vld [vmem:[%s24348_s1 + $0x1b0] sm:$0xff] }
  0x38   :  { %15358 = vmatpush1.bf16.msra.mxu1 %v18498_v9  ;;  %15316 = vmatpush1.bf16.msra.mxu0 %v18498_v9  ;;  %v116_v2 = vld [vmem:[%s24348_s1 + $0x30] sm:$0xff]  ;;  %v13590_v3 = vld [vmem:[%s24348_s1 + $0x1c8] sm:$0xff]  ;;  %v13589_v7 = vld [vmem:[%s24348_s1 + $0x1c0] sm:$0xff] }
  0x39   :  { %15359 = vmatprep.subr.bf16.mxu1 %v18357_v0  ;;  %15317 = vmatprep.subr.bf16.mxu0 %v18357_v0  ;;  %v119_v5 = vld [vmem:[%s24348_s1 + $0x48] sm:$0xff]  ;;  %v118_v8 = vld [vmem:[%s24348_s1 + $0x40] sm:$0xff]  ;;  %v13592_v10 = vld [vmem:[%s24348_s1 + $0x1d8] sm:$0xff] }
  0x3a   :  { %v121_v11 = vld [vmem:[%s24348_s1 + $0x58] sm:$0xff]  ;;  %v13591_v12 = vld [vmem:[%s24348_s1 + $0x1d0] sm:$0xff]  ;;  %v13594_v15 = vld [vmem:[%s24348_s1 + $0x1e8] sm:$0xff] }
  0x3b   :  { %v120_v14 = vld [vmem:[%s24348_s1 + $0x50] sm:$0xff]  ;;  %v123_v17 = vld [vmem:[%s24348_s1 + $0x68] sm:$0xff]  ;;  %v13593_v18 = vld [vmem:[%s24348_s1 + $0x1e0] sm:$0xff] }
  0x3c   :  { %15361 = vmatpush1.bf16.msra.mxu1 %v18514_v13  ;;  %15319 = vmatpush1.bf16.msra.mxu0 %v18514_v13  ;;  %v122_v20 = vld [vmem:[%s24348_s1 + $0x60] sm:$0xff]  ;;  %v13596_v21 = vld [vmem:[%s24348_s1 + $0x1f8] sm:$0xff]  ;;  %v13595_v24 = vld [vmem:[%s24348_s1 + $0x1f0] sm:$0xff] }
  0x3d   :  { %15362 = vmatprep.subr.bf16.mxu1 %v18357_v0  ;;  %15320 = vmatprep.subr.bf16.mxu0 %v18357_v0  ;;  %v125_v23 = vld [vmem:[%s24348_s1 + $0x78] sm:$0xff]  ;;  %v124_v25 = vld [vmem:[%s24348_s1 + $0x70] sm:$0xff]  ;;  %v13598_v27 = vld [vmem:[%s24348_s1 + $0x208] sm:$0xff] }
  0x3e   :  { %v127_v28 = vld [vmem:[%s24348_s1 + $0x88] sm:$0xff]  ;;  %v13597_v30 = vld [vmem:[%s24348_s1 + $0x200] sm:$0xff]  ;;  %v13600_v33 = vld [vmem:[%s24348_s1 + $0x218] sm:$0xff] }
  0x3f   :  { %v126_v31 = vld [vmem:[%s24348_s1 + $0x80] sm:$0xff]  ;;  %v129_v34 = vld [vmem:[%s24348_s1 + $0x98] sm:$0xff]  ;;  %v13599_v36 = vld [vmem:[%s24348_s1 + $0x210] sm:$0xff] }
  0x40   :  { %15364 = vmatpush1.bf16.msra.mxu1 %v18526_v16  ;;  %15322 = vmatpush1.bf16.msra.mxu0 %v18526_v16  ;;  %v128_v37 = vld [vmem:[%s24348_s1 + $0x90] sm:$0xff]  ;;  %v13602_v39 = vld [vmem:[%s24348_s1 + $0x228] sm:$0xff]  ;;  %v13601_v41 = vld [vmem:[%s24348_s1 + $0x220] sm:$0xff] }
  0x41   :  { %15365 = vmatprep.subr.bf16.mxu1 %v18357_v0  ;;  %15323 = vmatprep.subr.bf16.mxu0 %v18357_v0  ;;  %v131_v40 = vld [vmem:[%s24348_s1 + $0xa8] sm:$0xff]  ;;  %v130_v42 = vld [vmem:[%s24348_s1 + $0xa0] sm:$0xff]  ;;  %v137_v54 = vld [vmem:[%s24348_s1 + $0xd8] sm:$0xff] }
  0x44   :  { %15367 = vmatpush1.bf16.msra.mxu1 %v18538_v19  ;;  %15325 = vmatpush1.bf16.msra.mxu0 %v18538_v19 }
  0x45   :  { %15368 = vmatprep.subr.bf16.mxu1 %v18357_v0  ;;  %15326 = vmatprep.subr.bf16.mxu0 %v18357_v0 }
  0x48   :  { %15370 = vmatpush1.bf16.msra.mxu1 %v18550_v22  ;;  %15328 = vmatpush1.bf16.msra.mxu0 %v18550_v22 }
  0x49   :  { %15371 = vmatprep.subr.bf16.mxu1 %v18357_v0  ;;  %15329 = vmatprep.subr.bf16.mxu0 %v18357_v0 }
  0x4c   :  { %15373 = vmatpush1.bf16.msra.mxu1 %v18566_v26  ;;  %15331 = vmatpush1.bf16.msra.mxu0 %v18566_v26 }
  0x4d   :  { %15374 = vmatprep.subr.bf16.mxu1 %v18357_v0  ;;  %15332 = vmatprep.subr.bf16.mxu0 %v18357_v0 }
  0x50   :  { %15376 = vmatpush1.bf16.msra.mxu1 %v18578_v29  ;;  %15334 = vmatpush1.bf16.msra.mxu0 %v18578_v29 }
  0x51   :  { %15377 = vmatprep.subr.bf16.mxu1 %v18357_v0  ;;  %15335 = vmatprep.subr.bf16.mxu0 %v18357_v0 }
  0x54   :  { %15379 = vmatpush1.bf16.msra.mxu1 %v18590_v32  ;;  %15337 = vmatpush1.bf16.msra.mxu0 %v18590_v32 }
  0x55   :  { %15380 = vmatprep.subr.bf16.mxu1 %v18357_v0  ;;  %15338 = vmatprep.subr.bf16.mxu0 %v18357_v0 }
  0x58   :  { %15382 = vmatpush1.bf16.msra.mxu1 %v18602_v35  ;;  %15340 = vmatpush1.bf16.msra.mxu0 %v18602_v35 }
  0x59   :  { %15383 = vmatprep.subr.bf16.mxu1 %v18357_v0  ;;  %15341 = vmatprep.subr.bf16.mxu0 %v18357_v0 }
  0x5c   :  { %15385 = vmatpush1.bf16.msra.mxu1 %v18614_v38  ;;  %15343 = vmatpush1.bf16.msra.mxu0 %v18614_v38 }
  0x5d   :  { %15386 = vmatprep.subr.bf16.mxu1 %v18357_v0  ;;  %15344 = vmatprep.subr.bf16.mxu0 %v18357_v0 }
  0x60   :  { %15388 = vmatpush1.bf16.msra.mxu1 %v18632_v43  ;;  %15346 = vmatpush1.bf16.msra.mxu0 %v18632_v43 }
  0x61   :  { %15389 = vmatprep.subr.bf16.mxu1 %v18357_v0  ;;  %15347 = vmatprep.subr.bf16.mxu0 %v18357_v0 }
  0x64   :  { %15391 = vmatpush1.bf16.msra.mxu1 %v18644_v46  ;;  %15349 = vmatpush1.bf16.msra.mxu0 %v18644_v46 }
  0x65   :  { %849 = vmatprep.subr.bf16.mxu0 %v17456_v44  ;;  %1002 = vmatprep.subr.bf16.mxu1 %v17462_v45  ;;  %v13604_v44 = vld [vmem:[%s24348_s1 + $0x238] sm:$0xff] }
  0x66   :  { %v133_v45 = vld [vmem:[%s24348_s1 + $0xb8] sm:$0xff] }
  0x67   :  { %622 = vmatmul.mubr.f32.vlgmr.msra.gmra.mrb[0].mxu1 %v13581_v47  ;;  %296 = vmatmul.mubr.f32.vlgmr.msra.gmra.mrb[0].mxu0 %v110_v48  ;;  %v13603_v47 = vld [vmem:[%s24348_s1 + $0x230] sm:$0xff] }
  0x68   :  { %13630 = vmatprep.mubr.msk.f32.mxu1 %vm158_vm0, %v13584_v49  ;;  %13558 = vmatprep.mubr.msk.f32.mxu0 %vm158_vm0, %v113_v50  ;;  %v132_v48 = vld [vmem:[%s24348_s1 + $0xb0] sm:$0xff]  ;;  %v13606_v49 = vld [vmem:[%s24348_s1 + $0x248] sm:$0xff] }
  0x69   :  { %850 = vmatpush1.bf16.msra.mxu0 %v17454_v51  ;;  %1003 = vmatpush1.bf16.msra.mxu1 %v17460_v52  ;;  %v135_v50 = vld [vmem:[%s24348_s1 + $0xc8] sm:$0xff]  ;;  %v13605_v51 = vld [vmem:[%s24348_s1 + $0x240] sm:$0xff] }
  0x6a   :  { %13669 = vmatprep.subr.msk.bf16.mxu0 %vm836_vm1, %v17457_v53  ;;  %v134_v52 = vld [vmem:[%s24348_s1 + $0xc0] sm:$0xff]  ;;  %v13608_v53 = vld [vmem:[%s24348_s1 + $0x258] sm:$0xff] }
  0x6b   :  { %627 = vmatmul.mubr.f32.gmra.mrb[2].mxu1 %v13583_v55  ;;  %301 = vmatmul.mubr.f32.gmra.mrb[2].mxu0 %v112_v56  ;;  %v13607_v55 = vld [vmem:[%s24348_s1 + $0x250] sm:$0xff] }
  0x6c   :  { %13631 = vmatprep.mubr.msk.f32.mxu1 %vm158_vm0, %v13586_v57  ;;  %13559 = vmatprep.mubr.msk.f32.mxu0 %vm158_vm0, %v115_v58  ;;  %v136_v56 = vld [vmem:[%s24348_s1 + $0xd0] sm:$0xff]  ;;  %v13610_v57 = vld [vmem:[%s24348_s1 + $0x268] sm:$0xff] }
  0x6d   :  { %852 = vmatpush1.bf16.msra.mxu0 %v838_v61  ;;  %v139_v58 = vld [vmem:[%s24348_s1 + $0xe8] sm:$0xff]  ;;  %v13612_v61 = vld [vmem:[%s24348_s1 + $0x278] sm:$0xff] }
  0x6f   :  { %632 = vmatmul.mubr.f32.gmra.mrb[4].mxu1 %v13585_v59  ;;  %306 = vmatmul.mubr.f32.gmra.mrb[4].mxu0 %v114_v60  ;;  %v13609_v59 = vld [vmem:[%s24348_s1 + $0x260] sm:$0xff] }
  0x70   :  { %13632 = vmatprep.mubr.msk.f32.mxu1 %vm158_vm0, %v13588_v62  ;;  %13560 = vmatprep.mubr.msk.f32.mxu0 %vm158_vm0, %v117_v63  ;;  %v138_v60 = vld [vmem:[%s24348_s1 + $0xe0] sm:$0xff]  ;;  %v141_v62 = vld [vmem:[%s24348_s1 + $0xf8] sm:$0xff]  ;;  %v13611_v63 = vld [vmem:[%s24348_s1 + $0x270] sm:$0xff] }
  0x73   :  { %637 = vmatmul.mubr.f32.gmra.mrb[6].mxu1 %v13587_v1  ;;  %311 = vmatmul.mubr.f32.gmra.mrb[6].mxu0 %v116_v2  ;;  %v140_v1 = vld [vmem:[%s24348_s1 + $0xf0] sm:$0xff]  ;;  %v13614_v2 = vld [vmem:[%s24348_s1 + $0x288] sm:$0xff] }
  0x74   :  { %13633 = vmatprep.mubr.msk.f32.mxu1 %vm158_vm0, %v13590_v3  ;;  %13561 = vmatprep.mubr.msk.f32.mxu0 %vm158_vm0, %v119_v5  ;;  %v143_v3 = vld [vmem:[%s24348_s1 + $0x108] sm:$0xff]  ;;  %v13613_v5 = vld [vmem:[%s24348_s1 + $0x280] sm:$0xff] }
  0x77   :  { %642 = vmatmul.mubr.f32.gmra.mrb[8].mxu1 %v13589_v7  ;;  %316 = vmatmul.mubr.f32.gmra.mrb[8].mxu0 %v118_v8  ;;  %v142_v7 = vld [vmem:[%s24348_s1 + $0x100] sm:$0xff]  ;;  %v13616_v8 = vld [vmem:[%s24348_s1 + $0x298] sm:$0xff] }
  0x78   :  { %13634 = vmatprep.mubr.msk.f32.mxu1 %vm158_vm0, %v13592_v10  ;;  %13562 = vmatprep.mubr.msk.f32.mxu0 %vm158_vm0, %v121_v11  ;;  %v145_v10 = vld [vmem:[%s24348_s1 + $0x118] sm:$0xff]  ;;  %v13615_v11 = vld [vmem:[%s24348_s1 + $0x290] sm:$0xff] }
  0x7b   :  { %647 = vmatmul.mubr.f32.gmra.mrb[10].mxu1 %v13591_v12  ;;  %321 = vmatmul.mubr.f32.gmra.mrb[10].mxu0 %v120_v14  ;;  %v144_v12 = vld [vmem:[%s24348_s1 + $0x110] sm:$0xff]  ;;  %v13618_v14 = vld [vmem:[%s24348_s1 + $0x2a8] sm:$0xff] }
  0x7c   :  { %13635 = vmatprep.mubr.msk.f32.mxu1 %vm158_vm0, %v13594_v15  ;;  %13563 = vmatprep.mubr.msk.f32.mxu0 %vm158_vm0, %v123_v17  ;;  %v147_v15 = vld [vmem:[%s24348_s1 + $0x128] sm:$0xff]  ;;  %v13617_v17 = vld [vmem:[%s24348_s1 + $0x2a0] sm:$0xff] }
  0x7f   :  { %652 = vmatmul.mubr.f32.gmra.mrb[12].mxu1 %v13593_v18  ;;  %326 = vmatmul.mubr.f32.gmra.mrb[12].mxu0 %v122_v20  ;;  %v146_v18 = vld [vmem:[%s24348_s1 + $0x120] sm:$0xff]  ;;  %v13620_v20 = vld [vmem:[%s24348_s1 + $0x2b8] sm:$0xff] }
  0x80   :  { %13636 = vmatprep.mubr.msk.f32.mxu1 %vm158_vm0, %v13596_v21  ;;  %13564 = vmatprep.mubr.msk.f32.mxu0 %vm158_vm0, %v125_v23  ;;  %v149_v21 = vld [vmem:[%s24348_s1 + $0x138] sm:$0xff]  ;;  %v13619_v23 = vld [vmem:[%s24348_s1 + $0x2b0] sm:$0xff] }
  0x83   :  { %657 = vmatmul.mubr.f32.gmra.mrb[14].mxu1 %v13595_v24  ;;  %331 = vmatmul.mubr.f32.gmra.mrb[14].mxu0 %v124_v25  ;;  %v148_v24 = vld [vmem:[%s24348_s1 + $0x130] sm:$0xff]  ;;  %v13622_v25 = vld [vmem:[%s24348_s1 + $0x2c8] sm:$0xff] }
  0x84   :  { %13637 = vmatprep.mubr.msk.f32.mxu1 %vm158_vm0, %v13598_v27  ;;  %13565 = vmatprep.mubr.msk.f32.mxu0 %vm158_vm0, %v127_v28  ;;  %v151_v27 = vld [vmem:[%s24348_s1 + $0x148] sm:$0xff]  ;;  %v13621_v28 = vld [vmem:[%s24348_s1 + $0x2c0] sm:$0xff] }
  0x87   :  { %662 = vmatmul.mubr.f32.gmra.mrb[16].mxu1 %v13597_v30  ;;  %336 = vmatmul.mubr.f32.gmra.mrb[16].mxu0 %v126_v31  ;;  %v150_v30 = vld [vmem:[%s24348_s1 + $0x140] sm:$0xff]  ;;  %v13624_v31 = vld [vmem:[%s24348_s1 + $0x2d8] sm:$0xff] }
  0x88   :  { %13638 = vmatprep.mubr.msk.f32.mxu1 %vm158_vm0, %v13600_v33  ;;  %13566 = vmatprep.mubr.msk.f32.mxu0 %vm158_vm0, %v129_v34  ;;  %v153_v33 = vld [vmem:[%s24348_s1 + $0x158] sm:$0xff]  ;;  %v13623_v34 = vld [vmem:[%s24348_s1 + $0x2d0] sm:$0xff] }
  0x8b   :  { %667 = vmatmul.mubr.f32.gmra.mrb[18].mxu1 %v13599_v36  ;;  %341 = vmatmul.mubr.f32.gmra.mrb[18].mxu0 %v128_v37  ;;  %v152_v36 = vld [vmem:[%s24348_s1 + $0x150] sm:$0xff]  ;;  %v13626_v37 = vld [vmem:[%s24348_s1 + $0x2e8] sm:$0xff] }
  0x8c   :  { %13639 = vmatprep.mubr.msk.f32.mxu1 %vm158_vm0, %v13602_v39  ;;  %13567 = vmatprep.mubr.msk.f32.mxu0 %vm158_vm0, %v131_v40  ;;  %v155_v39 = vld [vmem:[%s24348_s1 + $0x168] sm:$0xff]  ;;  %v13625_v40 = vld [vmem:[%s24348_s1 + $0x2e0] sm:$0xff] }
  0x8f   :  { %672 = vmatmul.mubr.f32.gmra.mrb[20].mxu1 %v13601_v41  ;;  %346 = vmatmul.mubr.f32.gmra.mrb[20].mxu0 %v130_v42  ;;  %v154_v41 = vld [vmem:[%s24348_s1 + $0x160] sm:$0xff]  ;;  %v13628_v42 = vld [vmem:[%s24348_s1 + $0x2f8] sm:$0xff] }
  0x90   :  { %13640 = vmatprep.mubr.msk.f32.mxu1 %vm158_vm0, %v13604_v44  ;;  %13568 = vmatprep.mubr.msk.f32.mxu0 %vm158_vm0, %v133_v45  ;;  %v157_v44 = vld [vmem:[%s24348_s1 + $0x178] sm:$0xff] }
  0x91   :  { %v17463_v45 = vld [vmem:[%s24349_s2 + $0x6c] ss:$16 sps:$4 sm:$0x3f]  }
  0x92   :  { %13682 = vmatprep.subr.msk.bf16.mxu1 %vm836_vm1, %v17463_v45 }
  0x93   :  { %677 = vmatmul.mubr.f32.gmra.mrb[22].mxu1 %v13603_v47  ;;  %351 = vmatmul.mubr.f32.gmra.mrb[22].mxu0 %v132_v48  ;;  %v17465_v47 = vld [vmem:[%s24349_s2 + $0x68] ss:$16 sps:$4 sm:$0x3f]  }
  0x94   :  { %13641 = vmatprep.mubr.msk.f32.mxu1 %vm158_vm0, %v13606_v49  ;;  %13569 = vmatprep.mubr.msk.f32.mxu0 %vm158_vm0, %v135_v50  ;;  %v844_v48 = vsel %vm836_vm1, %v17465_v47, 0  ;;  %v13627_v49 = vld [vmem:[%s24348_s1 + $0x2f0] sm:$0xff] }
  0x95   :  { %v156_v50 = vld [vmem:[%s24348_s1 + $0x170] sm:$0xff]  ;;  %1005 = vmatpush1.bf16.msra.mxu1 %v844_v48 }
  0x97   :  { %682 = vmatmul.mubr.f32.gmra.mrb[24].mxu1 %v13605_v51  ;;  %356 = vmatmul.mubr.f32.gmra.mrb[24].mxu0 %v134_v52  ;;  %v17468_v51 = vld [vmem:[%s24349_s2 + $0x4] ss:$16 sps:$4 sm:$0xff]   ;;  %v18358_v52 = vmov 0  }
  0x98   :  { %13642 = vmatprep.mubr.msk.f32.mxu1 %vm158_vm0, %v13608_v53  ;;  %13570 = vmatprep.mubr.msk.f32.mxu0 %vm158_vm0, %v137_v54  ;;  %v17474_v53 = vld [vmem:[%s24349_s2 + $0xc] ss:$16 sps:$4 sm:$0xff]  }
  0x99   :  { %1239 = vmatprep.subr.bf16.mxu0 %v17468_v51  ;;  %1392 = vmatprep.subr.bf16.mxu1 %v17474_v53 }
  0x9b   :  { %687 = vmatmul.mubr.f32.gmra.mrb[26].mxu1 %v13607_v55  ;;  %361 = vmatmul.mubr.f32.gmra.mrb[26].mxu0 %v136_v56 }
  0x9c   :  { %13643 = vmatprep.mubr.msk.f32.mxu1 %vm158_vm0, %v13610_v57  ;;  %13571 = vmatprep.mubr.msk.f32.mxu0 %vm158_vm0, %v139_v58  ;;  %v17466_v58 = vld [vmem:[%s24349_s2] ss:$16 sps:$4 sm:$0xff]  }
  0x9f   :  { %692 = vmatmul.mubr.f32.gmra.mrb[28].mxu1 %v13609_v59  ;;  %366 = vmatmul.mubr.f32.gmra.mrb[28].mxu0 %v138_v60  ;;  %v17469_v60 = vld [vmem:[%s24349_s2 + $0x24] ss:$16 sps:$4 sm:$0x3f]  }
  0xa0   :  { %13644 = vmatprep.mubr.msk.f32.mxu1 %vm158_vm0, %v13612_v61  ;;  %13572 = vmatprep.mubr.msk.f32.mxu0 %vm158_vm0, %v141_v62 }
  0xa3   :  { %697 = vmatmul.mubr.f32.gmra.mrb[30].mxu1 %v13611_v63  ;;  %371 = vmatmul.mubr.f32.gmra.mrb[30].mxu0 %v140_v1  ;;  %v17471_v1 = vld [vmem:[%s24349_s2 + $0x20] ss:$16 sps:$4 sm:$0x3f]  }
  0xa4   :  { %13645 = vmatprep.mubr.msk.f32.mxu1 %vm158_vm0, %v13614_v2  ;;  %13573 = vmatprep.mubr.msk.f32.mxu0 %vm158_vm0, %v143_v3 }
  0xa7   :  { %702 = vmatmul.mubr.f32.gmra.mrb[32].mxu1 %v13613_v5  ;;  %376 = vmatmul.mubr.f32.gmra.mrb[32].mxu0 %v142_v7  ;;  %v17472_v5 = vld [vmem:[%s24349_s2 + $0x8] ss:$16 sps:$4 sm:$0xff]   ;;  %v17475_v7 = vld [vmem:[%s24349_s2 + $0x2c] ss:$16 sps:$4 sm:$0x3f]  }
  0xa8   :  { %13646 = vmatprep.mubr.msk.f32.mxu1 %vm158_vm0, %v13616_v8  ;;  %13574 = vmatprep.mubr.msk.f32.mxu0 %vm158_vm0, %v145_v10  ;;  %v17477_v8 = vld [vmem:[%s24349_s2 + $0x28] ss:$16 sps:$4 sm:$0x3f]  }
  0xab   :  { %707 = vmatmul.mubr.f32.gmra.mrb[34].mxu1 %v13615_v11  ;;  %381 = vmatmul.mubr.f32.gmra.mrb[34].mxu0 %v144_v12 }
  0xac   :  { %13647 = vmatprep.mubr.msk.f32.mxu1 %vm158_vm0, %v13618_v14  ;;  %13575 = vmatprep.mubr.msk.f32.mxu0 %vm158_vm0, %v147_v15  ;;  %v1228_v14 = vsel %vm836_vm1, %v17471_v1, 0 }
  0xaf   :  { %712 = vmatmul.mubr.f32.gmra.mrb[36].mxu1 %v13617_v17  ;;  %386 = vmatmul.mubr.f32.gmra.mrb[36].mxu0 %v146_v18  ;;  %v1234_v17 = vsel %vm836_vm1, %v17477_v8, 0 }
  0xb0   :  { %13648 = vmatprep.mubr.msk.f32.mxu1 %vm158_vm0, %v13620_v20  ;;  %13576 = vmatprep.mubr.msk.f32.mxu0 %vm158_vm0, %v149_v21 }
  0xb3   :  { %717 = vmatmul.mubr.f32.gmra.mrb[38].mxu1 %v13619_v23  ;;  %391 = vmatmul.mubr.f32.gmra.mrb[38].mxu0 %v148_v24 }
  0xb4   :  { %13649 = vmatprep.mubr.msk.f32.mxu1 %vm158_vm0, %v13622_v25  ;;  %13577 = vmatprep.mubr.msk.f32.mxu0 %vm158_vm0, %v151_v27 }
  0xb7   :  { %722 = vmatmul.mubr.f32.gmra.mrb[40].mxu1 %v13621_v28  ;;  %396 = vmatmul.mubr.f32.gmra.mrb[40].mxu0 %v150_v30 }
  0xb8   :  { %13650 = vmatprep.mubr.msk.f32.mxu1 %vm158_vm0, %v13624_v31  ;;  %13578 = vmatprep.mubr.msk.f32.mxu0 %vm158_vm0, %v153_v33 }
  0xbb   :  { %727 = vmatmul.mubr.f32.gmra.mrb[42].mxu1 %v13623_v34  ;;  %401 = vmatmul.mubr.f32.gmra.mrb[42].mxu0 %v152_v36 }
  0xbc   :  { %13651 = vmatprep.mubr.msk.f32.mxu1 %vm158_vm0, %v13626_v37  ;;  %13579 = vmatprep.mubr.msk.f32.mxu0 %vm158_vm0, %v155_v39 }
  0xbf   :  { %732 = vmatmul.mubr.f32.gmra.mrb[44].mxu1 %v13625_v40  ;;  %406 = vmatmul.mubr.f32.gmra.mrb[44].mxu0 %v154_v41 }
  0xc0   :  { %13652 = vmatprep.mubr.msk.f32.mxu1 %vm158_vm0, %v13628_v42  ;;  %13580 = vmatprep.mubr.msk.f32.mxu0 %vm158_vm0, %v157_v44 }
  0xc3   :  { %737 = vmatmul.mubr.f32.gmra.mrb[46].mxu1 %v13627_v49  ;;  %411 = vmatmul.mubr.f32.gmra.mrb[46].mxu0 %v156_v50 }
  0xc4   :  { %881 = vmatprep.mubr.bf16.mxu0 %v18358_v52  ;;  %1034 = vmatprep.mubr.bf16.mxu1 %v18358_v52 }
 0x13a   :  { %v623_v54 = vpop.f32.mrb[0].mxu1  ;;  %v297_v55 = vpop.f32.mrb[0].mxu0 }
 0x13b   :  { %v625_v56 = vpop.f32.mrb[1].mxu1  ;;  %v299_v57 = vpop.f32.mrb[1].mxu0 }
 0x13e   :  { %v628_v59 = vpop.f32.mrb[2].mxu1  ;;  %v302_v61 = vpop.f32.mrb[2].mxu0 }
 0x13f   :  { %v742_v62 = vpack.c.bf16 %v628_v59, %v623_v54  ;;  %v630_v63 = vpop.f32.mrb[3].mxu1  ;;  %v19018_v2 = vpack.c.bf16 %v302_v61, %v297_v55  ;;  %v304_v3 = vpop.f32.mrb[3].mxu0 }
 0x141   :  { %13670 = vmatmul.mubr.msk.bf16.vlgmr.msra.gmra.mrb[48].mxu0 %vm799_vm2, %v742_v62  ;;  %13683 = vmatmul.mubr.msk.bf16.vlgmr.msra.gmra.mrb[48].mxu1 %vm799_vm2, %v742_v62 }
 0x142   :  { %v633_v10 = vpop.f32.mrb[4].mxu1  ;;  %1240 = vmatpush1.bf16.msra.mxu0 %v17466_v58  ;;  %891 = vmatprep.mubr.bf16.mxu0 %v18358_v52  ;;  %v307_v11 = vpop.f32.mrb[4].mxu0 }
 0x143   :  { %v635_v12 = vpop.f32.mrb[5].mxu1  ;;  %1044 = vmatprep.mubr.bf16.mxu1 %v18358_v52  ;;  %13703 = vmatprep.subr.msk.bf16.mxu0 %vm836_vm1, %v17469_v60  ;;  %v309_v15 = vpop.f32.mrb[5].mxu0 }
 0x144   :  { %1393 = vmatpush1.bf16.msra.mxu1 %v17472_v5 }
 0x145   :  { %13716 = vmatprep.subr.msk.bf16.mxu1 %vm836_vm1, %v17475_v7 }
 0x146   :  { %v638_v18 = vpop.f32.mrb[6].mxu1  ;;  %1242 = vmatpush1.bf16.msra.mxu0 %v1228_v14  ;;  %v312_v20 = vpop.f32.mrb[6].mxu0 }
 0x147   :  { %v743_v21 = vpack.c.bf16 %v638_v18, %v633_v10  ;;  %v640_v23 = vpop.f32.mrb[7].mxu1  ;;  %v19037_v24 = vpack.c.bf16 %v312_v20, %v307_v11  ;;  %15392 = vmatprep.subr.bf16.mxu0 %v18357_v0  ;;  %v314_v25 = vpop.f32.mrb[7].mxu0 }
 0x148   :  { %1395 = vmatpush1.bf16.msra.mxu1 %v1234_v17 }
 0x149   :  { %13671 = vmatmul.mubr.msk.bf16.gmra.mrb[52].mxu0 %vm799_vm2, %v743_v21  ;;  %13684 = vmatmul.mubr.msk.bf16.gmra.mrb[52].mxu1 %vm799_vm2, %v743_v21 }
 0x14a   :  { %v643_v27 = vpop.f32.mrb[8].mxu1  ;;  %901 = vmatprep.mubr.bf16.mxu0 %v18358_v52  ;;  %1054 = vmatprep.mubr.bf16.mxu1 %v18358_v52  ;;  %v317_v28 = vpop.f32.mrb[8].mxu0 }
 0x14b   :  { %v645_v30 = vpop.f32.mrb[9].mxu1  ;;  %v319_v31 = vpop.f32.mrb[9].mxu0 }
 0x14e   :  { %v648_v33 = vpop.f32.mrb[10].mxu1  ;;  %v322_v34 = vpop.f32.mrb[10].mxu0 }
 0x14f   :  { %v744_v36 = vpack.c.bf16 %v648_v33, %v643_v27  ;;  %v650_v37 = vpop.f32.mrb[11].mxu1  ;;  %v19044_v39 = vpack.c.bf16 %v322_v34, %v317_v28  ;;  %v324_v40 = vpop.f32.mrb[11].mxu0 }
 0x151   :  { %13672 = vmatmul.mubr.msk.bf16.gmra.mrb[56].mxu0 %vm799_vm2, %v744_v36  ;;  %13685 = vmatmul.mubr.msk.bf16.gmra.mrb[56].mxu1 %vm799_vm2, %v744_v36 }
 0x152   :  { %v653_v41 = vpop.f32.mrb[12].mxu1  ;;  %911 = vmatprep.mubr.bf16.mxu0 %v18358_v52  ;;  %1064 = vmatprep.mubr.bf16.mxu1 %v18358_v52  ;;  %v327_v42 = vpop.f32.mrb[12].mxu0 }
 0x153   :  { %v655_v44 = vpop.f32.mrb[13].mxu1  ;;  %v329_v45 = vpop.f32.mrb[13].mxu0 }
 0x156   :  { %v658_v47 = vpop.f32.mrb[14].mxu1  ;;  %v332_v48 = vpop.f32.mrb[14].mxu0 }
 0x157   :  { %v745_v49 = vpack.c.bf16 %v658_v47, %v653_v41  ;;  %v660_v50 = vpop.f32.mrb[15].mxu1  ;;  %v19050_v51 = vpack.c.bf16 %v332_v48, %v327_v42  ;;  %v334_v53 = vpop.f32.mrb[15].mxu0 }
 0x159   :  { %13673 = vmatmul.mubr.msk.bf16.gmra.mrb[60].mxu0 %vm799_vm2, %v745_v49  ;;  %13686 = vmatmul.mubr.msk.bf16.gmra.mrb[60].mxu1 %vm799_vm2, %v745_v49 }
 0x15a   :  { %v663_v54 = vpop.f32.mrb[16].mxu1  ;;  %921 = vmatprep.mubr.bf16.mxu0 %v18358_v52  ;;  %1074 = vmatprep.mubr.bf16.mxu1 %v18358_v52  ;;  %v337_v55 = vpop.f32.mrb[16].mxu0 }
 0x15b   :  { %v665_v56 = vpop.f32.mrb[17].mxu1  ;;  %v339_v57 = vpop.f32.mrb[17].mxu0 }
 0x15e   :  { %v668_v58 = vpop.f32.mrb[18].mxu1  ;;  %v342_v59 = vpop.f32.mrb[18].mxu0 }
 0x15f   :  { %v746_v60 = vpack.c.bf16 %v668_v58, %v663_v54  ;;  %v670_v61 = vpop.f32.mrb[19].mxu1  ;;  %v19056_v62 = vpack.c.bf16 %v342_v59, %v337_v55  ;;  %v344_v63 = vpop.f32.mrb[19].mxu0 }
 0x161   :  { %13674 = vmatmul.mubr.msk.bf16.gmra.mrb[64].mxu0 %vm799_vm2, %v746_v60  ;;  %13687 = vmatmul.mubr.msk.bf16.gmra.mrb[64].mxu1 %vm799_vm2, %v746_v60 }
 0x162   :  { %v673_v1 = vpop.f32.mrb[20].mxu1  ;;  %931 = vmatprep.mubr.bf16.mxu0 %v18358_v52  ;;  %1084 = vmatprep.mubr.bf16.mxu1 %v18358_v52  ;;  %v347_v3 = vpop.f32.mrb[20].mxu0 }
 0x163   :  { %v675_v5 = vpop.f32.mrb[21].mxu1  ;;  %v349_v7 = vpop.f32.mrb[21].mxu0 }
 0x166   :  { %v678_v8 = vpop.f32.mrb[22].mxu1  ;;  %v352_v10 = vpop.f32.mrb[22].mxu0 }
 0x167   :  { %v747_v11 = vpack.c.bf16 %v678_v8, %v673_v1  ;;  %v680_v12 = vpop.f32.mrb[23].mxu1  ;;  %v19062_v14 = vpack.c.bf16 %v352_v10, %v347_v3  ;;  %v354_v15 = vpop.f32.mrb[23].mxu0 }
 0x169   :  { %13675 = vmatmul.mubr.msk.bf16.gmra.mrb[68].mxu0 %vm799_vm2, %v747_v11  ;;  %13688 = vmatmul.mubr.msk.bf16.gmra.mrb[68].mxu1 %vm799_vm2, %v747_v11 }
 0x16a   :  { %v683_v17 = vpop.f32.mrb[24].mxu1  ;;  %941 = vmatprep.mubr.bf16.mxu0 %v18358_v52  ;;  %1094 = vmatprep.mubr.bf16.mxu1 %v18358_v52  ;;  %v357_v18 = vpop.f32.mrb[24].mxu0 }
 0x16b   :  { %v685_v20 = vpop.f32.mrb[25].mxu1  ;;  %v359_v21 = vpop.f32.mrb[25].mxu0 }
 0x16e   :  { %v688_v23 = vpop.f32.mrb[26].mxu1  ;;  %v362_v25 = vpop.f32.mrb[26].mxu0 }
 0x16f   :  { %v690_v27 = vpop.f32.mrb[27].mxu1  ;;  %v748_v28 = vpack.c.bf16 %v688_v23, %v683_v17  ;;  %v364_v30 = vpop.f32.mrb[27].mxu0  ;;  %v19068_v31 = vpack.c.bf16 %v362_v25, %v357_v18 }
 0x171   :  { %13676 = vmatmul.mubr.msk.bf16.gmra.mrb[72].mxu0 %vm799_vm2, %v748_v28  ;;  %13689 = vmatmul.mubr.msk.bf16.gmra.mrb[72].mxu1 %vm799_vm2, %v748_v28 }
 0x172   :  { %v693_v33 = vpop.f32.mrb[28].mxu1  ;;  %951 = vmatprep.mubr.bf16.mxu0 %v18358_v52  ;;  %1104 = vmatprep.mubr.bf16.mxu1 %v18358_v52  ;;  %v367_v34 = vpop.f32.mrb[28].mxu0 }
 0x173   :  { %v695_v36 = vpop.f32.mrb[29].mxu1  ;;  %v369_v37 = vpop.f32.mrb[29].mxu0 }
 0x176   :  { %v698_v40 = vpop.f32.mrb[30].mxu1  ;;  %v372_v41 = vpop.f32.mrb[30].mxu0 }
 0x177   :  { %v700_v42 = vpop.f32.mrb[31].mxu1  ;;  %v749_v44 = vpack.c.bf16 %v698_v40, %v693_v33  ;;  %v374_v45 = vpop.f32.mrb[31].mxu0  ;;  %v19074_v47 = vpack.c.bf16 %v372_v41, %v367_v34 }
 0x179   :  { %13677 = vmatmul.mubr.msk.bf16.gmra.mrb[76].mxu0 %vm799_vm2, %v749_v44  ;;  %13690 = vmatmul.mubr.msk.bf16.gmra.mrb[76].mxu1 %vm799_vm2, %v749_v44 }
 0x17a   :  { %v703_v48 = vpop.f32.mrb[32].mxu1  ;;  %961 = vmatprep.mubr.bf16.mxu0 %v18358_v52  ;;  %1114 = vmatprep.mubr.bf16.mxu1 %v18358_v52  ;;  %v377_v49 = vpop.f32.mrb[32].mxu0 }
 0x17b   :  { %v705_v50 = vpop.f32.mrb[33].mxu1  ;;  %v379_v53 = vpop.f32.mrb[33].mxu0 }
 0x17c   :  { %v13731_v50 = vld [vmem:[%s24348_s1 + $0x310] sm:$0xff]  ;;  %v13734_v53 = vld [vmem:[%s24348_s1 + $0x328] sm:$0xff] }
 0x17e   :  { %v708_v54 = vpop.f32.mrb[34].mxu1  ;;  %v382_v55 = vpop.f32.mrb[34].mxu0 }
 0x17f   :  { %v710_v56 = vpop.f32.mrb[35].mxu1  ;;  %v750_v57 = vpack.c.bf16 %v708_v54, %v703_v48  ;;  %v384_v58 = vpop.f32.mrb[35].mxu0  ;;  %v19080_v59 = vpack.c.bf16 %v382_v55, %v377_v49  ;;  %v17484_v48 = vld [vmem:[%s24349_s2 + $0x80] ss:$16 sps:$4 sm:$0xff]   ;;  %v13732_v49 = vld [vmem:[%s24348_s1 + $0x318] sm:$0xff] }
 0x180   :  { %v13733_v54 = vld [vmem:[%s24348_s1 + $0x320] sm:$0xff]  ;;  %v13736_v55 = vld [vmem:[%s24348_s1 + $0x338] sm:$0xff]  ;;  %v13735_v56 = vld [vmem:[%s24348_s1 + $0x330] sm:$0xff] }
 0x181   :  { %13678 = vmatmul.mubr.msk.bf16.gmra.mrb[80].mxu0 %vm799_vm2, %v750_v57  ;;  %13691 = vmatmul.mubr.msk.bf16.gmra.mrb[80].mxu1 %vm799_vm2, %v750_v57  ;;  %v13738_v57 = vld [vmem:[%s24348_s1 + $0x348] sm:$0xff]  ;;  %v13737_v58 = vld [vmem:[%s24348_s1 + $0x340] sm:$0xff] }
 0x182   :  { %v713_v60 = vpop.f32.mrb[36].mxu1  ;;  %971 = vmatprep.mubr.bf16.mxu0 %v18358_v52  ;;  %1124 = vmatprep.mubr.bf16.mxu1 %v18358_v52  ;;  %v387_v61 = vpop.f32.mrb[36].mxu0 }
 0x183   :  { %v715_v63 = vpop.f32.mrb[37].mxu1  ;;  %v389_v1 = vpop.f32.mrb[37].mxu0 }
 0x184   :  { %v13741_v63 = vld [vmem:[%s24348_s1 + $0x360] sm:$0xff]  ;;  %v13744_v1 = vld [vmem:[%s24348_s1 + $0x378] sm:$0xff] }
 0x186   :  { %v718_v3 = vpop.f32.mrb[38].mxu1  ;;  %v392_v5 = vpop.f32.mrb[38].mxu0 }
 0x187   :  { %v720_v7 = vpop.f32.mrb[39].mxu1  ;;  %v751_v8 = vpack.c.bf16 %v718_v3, %v713_v60  ;;  %v394_v10 = vpop.f32.mrb[39].mxu0  ;;  %v19086_v11 = vpack.c.bf16 %v392_v5, %v387_v61  ;;  %v13739_v60 = vld [vmem:[%s24348_s1 + $0x350] sm:$0xff]  ;;  %v13742_v61 = vld [vmem:[%s24348_s1 + $0x368] sm:$0xff] }
 0x188   :  { %v13743_v3 = vld [vmem:[%s24348_s1 + $0x370] sm:$0xff]  ;;  %v13746_v5 = vld [vmem:[%s24348_s1 + $0x388] sm:$0xff]  ;;  %v13745_v7 = vld [vmem:[%s24348_s1 + $0x380] sm:$0xff] }
 0x189   :  { %13679 = vmatmul.mubr.msk.bf16.gmra.mrb[84].mxu0 %vm799_vm2, %v751_v8  ;;  %13692 = vmatmul.mubr.msk.bf16.gmra.mrb[84].mxu1 %vm799_vm2, %v751_v8  ;;  %v13748_v8 = vld [vmem:[%s24348_s1 + $0x398] sm:$0xff]  ;;  %v13747_v10 = vld [vmem:[%s24348_s1 + $0x390] sm:$0xff] }
 0x18a   :  { %v723_v12 = vpop.f32.mrb[40].mxu1  ;;  %981 = vmatprep.mubr.bf16.mxu0 %v18358_v52  ;;  %1134 = vmatprep.mubr.bf16.mxu1 %v18358_v52  ;;  %v397_v15 = vpop.f32.mrb[40].mxu0 }
 0x18b   :  { %v725_v17 = vpop.f32.mrb[41].mxu1  ;;  %v399_v18 = vpop.f32.mrb[41].mxu0 }
 0x18c   :  { %v13751_v17 = vld [vmem:[%s24348_s1 + $0x3b0] sm:$0xff]  ;;  %v13754_v18 = vld [vmem:[%s24348_s1 + $0x3c8] sm:$0xff] }
 0x18e   :  { %v728_v20 = vpop.f32.mrb[42].mxu1  ;;  %v402_v21 = vpop.f32.mrb[42].mxu0 }
 0x18f   :  { %v752_v23 = vpack.c.bf16 %v728_v20, %v723_v12  ;;  %v730_v25 = vpop.f32.mrb[43].mxu1  ;;  %v19092_v27 = vpack.c.bf16 %v402_v21, %v397_v15  ;;  %v404_v28 = vpop.f32.mrb[43].mxu0  ;;  %v13749_v12 = vld [vmem:[%s24348_s1 + $0x3a0] sm:$0xff]  ;;  %v13752_v15 = vld [vmem:[%s24348_s1 + $0x3b8] sm:$0xff] }
 0x190   :  { %v13753_v20 = vld [vmem:[%s24348_s1 + $0x3c0] sm:$0xff]  ;;  %v13756_v21 = vld [vmem:[%s24348_s1 + $0x3d8] sm:$0xff]  ;;  %v13758_v25 = vld [vmem:[%s24348_s1 + $0x3e8] sm:$0xff] }
 0x191   :  { %13680 = vmatmul.mubr.msk.bf16.gmra.mrb[88].mxu0 %vm799_vm2, %v752_v23  ;;  %13693 = vmatmul.mubr.msk.bf16.gmra.mrb[88].mxu1 %vm799_vm2, %v752_v23  ;;  %v13755_v23 = vld [vmem:[%s24348_s1 + $0x3d0] sm:$0xff]  ;;  %v13760_v28 = vld [vmem:[%s24348_s1 + $0x3f8] sm:$0xff] }
 0x192   :  { %v733_v30 = vpop.f32.mrb[44].mxu1  ;;  %991 = vmatprep.mubr.bf16.mxu0 %v18358_v52  ;;  %1144 = vmatprep.mubr.bf16.mxu1 %v18358_v52  ;;  %v407_v33 = vpop.f32.mrb[44].mxu0 }
 0x193   :  { %v735_v34 = vpop.f32.mrb[45].mxu1  ;;  %v409_v36 = vpop.f32.mrb[45].mxu0 }
 0x194   :  { %v13761_v34 = vld [vmem:[%s24348_s1 + $0x400] sm:$0xff]  ;;  %v13764_v36 = vld [vmem:[%s24348_s1 + $0x418] sm:$0xff] }
 0x196   :  { %v738_v37 = vpop.f32.mrb[46].mxu1  ;;  %v412_v40 = vpop.f32.mrb[46].mxu0 }
 0x197   :  { %v753_v41 = vpack.c.bf16 %v738_v37, %v733_v30  ;;  %v740_v42 = vpop.f32.mrb[47].mxu1  ;;  %v19098_v44 = vpack.c.bf16 %v412_v40, %v407_v33  ;;  %v414_v45 = vpop.f32.mrb[47].mxu0  ;;  %v13759_v30 = vld [vmem:[%s24348_s1 + $0x3f0] sm:$0xff]  ;;  %v13762_v33 = vld [vmem:[%s24348_s1 + $0x408] sm:$0xff] }
 0x198   :  { %v13763_v37 = vld [vmem:[%s24348_s1 + $0x410] sm:$0xff]  ;;  %v13766_v40 = vld [vmem:[%s24348_s1 + $0x428] sm:$0xff]  ;;  %v13768_v42 = vld [vmem:[%s24348_s1 + $0x438] sm:$0xff] }
 0x199   :  { %13681 = vmatmul.mubr.msk.bf16.gmra.mrb[92].mxu0 %vm799_vm2, %v753_v41  ;;  %13694 = vmatmul.mubr.msk.bf16.gmra.mrb[92].mxu1 %vm799_vm2, %v753_v41  ;;  %v13765_v41 = vld [vmem:[%s24348_s1 + $0x420] sm:$0xff]  ;;  %v13770_v45 = vld [vmem:[%s24348_s1 + $0x448] sm:$0xff] }
 0x19a   :  { %1271 = vmatprep.mubr.bf16.mxu0 %v18358_v52  ;;  %1424 = vmatprep.mubr.bf16.mxu1 %v18358_v52 }
 0x1a1   :  { %13704 = vmatmul.mubr.msk.bf16.vlgmr.msra.gmra.mrb[48].mxu0 %vm799_vm2, %v19018_v2  ;;  %13717 = vmatmul.mubr.msk.bf16.vlgmr.msra.gmra.mrb[48].mxu1 %vm799_vm2, %v19018_v2  ;;  %v17478_v2 = vld [vmem:[%s24349_s2 + $0x88] ss:$16 sps:$4 sm:$0xff]  }
 0x1a2   :  { %15394 = vmatpush1.bf16.msra.mxu0 %v18480_v4  ;;  %1281 = vmatprep.mubr.bf16.mxu0 %v18358_v52 }
 0x1a3   :  { %1434 = vmatprep.mubr.bf16.mxu1 %v18358_v52  ;;  %15395 = vmatprep.subr.bf16.mxu0 %v18357_v0 }
 0x1a6   :  { %15397 = vmatpush1.bf16.msra.mxu0 %v18486_v6 }
 0x1a7   :  { %15398 = vmatprep.subr.bf16.mxu0 %v18357_v0 }
 0x1a9   :  { %13705 = vmatmul.mubr.msk.bf16.gmra.mrb[52].mxu0 %vm799_vm2, %v19037_v24  ;;  %13718 = vmatmul.mubr.msk.bf16.gmra.mrb[52].mxu1 %vm799_vm2, %v19037_v24  ;;  %v17480_v24 = vld [vmem:[%s24349_s2 + $0x8c] ss:$16 sps:$4 sm:$0xff]  }
 0x1aa   :  { %1291 = vmatprep.mubr.bf16.mxu0 %v18358_v52  ;;  %1444 = vmatprep.mubr.bf16.mxu1 %v18358_v52 }
 0x1ab   :  { %15400 = vmatpush1.bf16.msra.mxu0 %v18498_v9  ;;  %2109 = vmatprep.subr.bf16.mxu1 %v17480_v24  ;;  %v13772_v24 = vld [vmem:[%s24348_s1 + $0x458] sm:$0xff] }
 0x1ac   :  { %15401 = vmatprep.subr.bf16.mxu0 %v18357_v0  ;;  %2110 = vmatpush1.bf16.msra.mxu1 %v17478_v2  ;;  %v13769_v2 = vld [vmem:[%s24348_s1 + $0x440] sm:$0xff] }
 0x1af   :  { %15403 = vmatpush1.bf16.msra.mxu0 %v18514_v13 }
 0x1b0   :  { %15404 = vmatprep.subr.bf16.mxu0 %v18357_v0 }
 0x1b1   :  { %13706 = vmatmul.mubr.msk.bf16.gmra.mrb[56].mxu0 %vm799_vm2, %v19044_v39  ;;  %13719 = vmatmul.mubr.msk.bf16.gmra.mrb[56].mxu1 %vm799_vm2, %v19044_v39  ;;  %v17483_v39 = vld [vmem:[%s24349_s2 + $0xa8] ss:$16 sps:$4 sm:$0x3f]  }
 0x1b2   :  { %1301 = vmatprep.mubr.bf16.mxu0 %v18358_v52  ;;  %1454 = vmatprep.mubr.bf16.mxu1 %v18358_v52 }
 0x1b3   :  { %15406 = vmatpush1.bf16.msra.mxu0 %v18526_v16 }
 0x1b4   :  { %15407 = vmatprep.subr.bf16.mxu0 %v18357_v0 }
 0x1b7   :  { %15409 = vmatpush1.bf16.msra.mxu0 %v18538_v19 }
 0x1b8   :  { %15410 = vmatprep.subr.bf16.mxu0 %v18357_v0 }
 0x1b9   :  { %13707 = vmatmul.mubr.msk.bf16.gmra.mrb[60].mxu0 %vm799_vm2, %v19050_v51  ;;  %13720 = vmatmul.mubr.msk.bf16.gmra.mrb[60].mxu1 %vm799_vm2, %v19050_v51  ;;  %v17481_v51 = vld [vmem:[%s24349_s2 + $0xac] ss:$16 sps:$4 sm:$0x3f]  }
 0x1ba   :  { %1311 = vmatprep.mubr.bf16.mxu0 %v18358_v52  ;;  %1464 = vmatprep.mubr.bf16.mxu1 %v18358_v52 }
 0x1bb   :  { %15412 = vmatpush1.bf16.msra.mxu0 %v18550_v22  ;;  %13830 = vmatprep.subr.msk.bf16.mxu1 %vm836_vm1, %v17481_v51  ;;  %v13774_v51 = vld [vmem:[%s24348_s1 + $0x468] sm:$0xff] }
 0x1bc   :  { %15413 = vmatprep.subr.bf16.mxu0 %v18357_v0 }
 0x1bf   :  { %15415 = vmatpush1.bf16.msra.mxu0 %v18566_v26 }
 0x1c0   :  { %15416 = vmatprep.subr.bf16.mxu0 %v18357_v0 }
 0x1c1   :  { %13708 = vmatmul.mubr.msk.bf16.gmra.mrb[64].mxu0 %vm799_vm2, %v19056_v62  ;;  %13721 = vmatmul.mubr.msk.bf16.gmra.mrb[64].mxu1 %vm799_vm2, %v19056_v62  ;;  %v17486_v62 = vld [vmem:[%s24349_s2 + $0x84] ss:$16 sps:$4 sm:$0xff]  }
 0x1c2   :  { %1321 = vmatprep.mubr.bf16.mxu0 %v18358_v52  ;;  %1474 = vmatprep.mubr.bf16.mxu1 %v18358_v52 }
 0x1c3   :  { %15418 = vmatpush1.bf16.msra.mxu0 %v18578_v29 }
 0x1c4   :  { %15419 = vmatprep.subr.bf16.mxu0 %v18357_v0 }
 0x1c7   :  { %15421 = vmatpush1.bf16.msra.mxu0 %v18590_v32 }
 0x1c8   :  { %15422 = vmatprep.subr.bf16.mxu0 %v18357_v0 }
 0x1c9   :  { %13709 = vmatmul.mubr.msk.bf16.gmra.mrb[68].mxu0 %vm799_vm2, %v19062_v14  ;;  %13722 = vmatmul.mubr.msk.bf16.gmra.mrb[68].mxu1 %vm799_vm2, %v19062_v14  ;;  %v1951_v14 = vsel %vm836_vm1, %v17483_v39, 0  ;;  %v13771_v39 = vld [vmem:[%s24348_s1 + $0x450] sm:$0xff] }
 0x1ca   :  { %1331 = vmatprep.mubr.bf16.mxu0 %v18358_v52  ;;  %1484 = vmatprep.mubr.bf16.mxu1 %v18358_v52 }
 0x1cb   :  { %15424 = vmatpush1.bf16.msra.mxu0 %v18602_v35  ;;  %2112 = vmatpush1.bf16.msra.mxu1 %v1951_v14  ;;  %v17489_v14 = vld [vmem:[%s24349_s2 + $0xa0] ss:$16 sps:$4 sm:$0x3f]  }
 0x1cc   :  { %15425 = vmatprep.subr.bf16.mxu0 %v18357_v0  ;;  %15434 = vmatprep.subr.bf16.mxu1 %v18357_v0 }
 0x1cf   :  { %15427 = vmatpush1.bf16.msra.mxu0 %v18614_v38 }
 0x1d0   :  { %15428 = vmatprep.subr.bf16.mxu0 %v18357_v0 }
 0x1d1   :  { %13710 = vmatmul.mubr.msk.bf16.gmra.mrb[72].mxu0 %vm799_vm2, %v19068_v31  ;;  %13723 = vmatmul.mubr.msk.bf16.gmra.mrb[72].mxu1 %vm799_vm2, %v19068_v31  ;;  %v13730_v31 = vld [vmem:[%s24348_s1 + $0x308] sm:$0xff] }
 0x1d2   :  { %1341 = vmatprep.mubr.bf16.mxu0 %v18358_v52  ;;  %1494 = vmatprep.mubr.bf16.mxu1 %v18358_v52 }
 0x1d3   :  { %15430 = vmatpush1.bf16.msra.mxu0 %v18632_v43 }
 0x1d4   :  { %15431 = vmatprep.subr.bf16.mxu0 %v18357_v0 }
 0x1d7   :  { %15433 = vmatpush1.bf16.msra.mxu0 %v18644_v46 }
 0x1d8   :  { %1956 = vmatprep.subr.bf16.mxu0 %v17486_v62  ;;  %v17487_v62 = vld [vmem:[%s24349_s2 + $0xa4] ss:$16 sps:$4 sm:$0x3f]  }
 0x1d9   :  { %13711 = vmatmul.mubr.msk.bf16.gmra.mrb[76].mxu0 %vm799_vm2, %v19074_v47  ;;  %13724 = vmatmul.mubr.msk.bf16.gmra.mrb[76].mxu1 %vm799_vm2, %v19074_v47  ;;  %v13729_v47 = vld [vmem:[%s24348_s1 + $0x300] sm:$0xff] }
 0x1da   :  { %1351 = vmatprep.mubr.bf16.mxu0 %v18358_v52  ;;  %1504 = vmatprep.mubr.bf16.mxu1 %v18358_v52 }
 0x1e1   :  { %13712 = vmatmul.mubr.msk.bf16.gmra.mrb[80].mxu0 %vm799_vm2, %v19080_v59  ;;  %13725 = vmatmul.mubr.msk.bf16.gmra.mrb[80].mxu1 %vm799_vm2, %v19080_v59  ;;  %v13740_v59 = vld [vmem:[%s24348_s1 + $0x358] sm:$0xff] }
 0x1e2   :  { %1361 = vmatprep.mubr.bf16.mxu0 %v18358_v52  ;;  %1514 = vmatprep.mubr.bf16.mxu1 %v18358_v52 }
 0x1e9   :  { %13713 = vmatmul.mubr.msk.bf16.gmra.mrb[84].mxu0 %vm799_vm2, %v19086_v11  ;;  %13726 = vmatmul.mubr.msk.bf16.gmra.mrb[84].mxu1 %vm799_vm2, %v19086_v11  ;;  %v13750_v11 = vld [vmem:[%s24348_s1 + $0x3a8] sm:$0xff] }
 0x1ea   :  { %1371 = vmatprep.mubr.bf16.mxu0 %v18358_v52  ;;  %1524 = vmatprep.mubr.bf16.mxu1 %v18358_v52 }
 0x1f1   :  { %13714 = vmatmul.mubr.msk.bf16.gmra.mrb[88].mxu0 %vm799_vm2, %v19092_v27  ;;  %13727 = vmatmul.mubr.msk.bf16.gmra.mrb[88].mxu1 %vm799_vm2, %v19092_v27  ;;  %v13757_v27 = vld [vmem:[%s24348_s1 + $0x3e0] sm:$0xff] }
 0x1f2   :  { %1381 = vmatprep.mubr.bf16.mxu0 %v18358_v52  ;;  %1534 = vmatprep.mubr.bf16.mxu1 %v18358_v52 }
 0x1f9   :  { %13715 = vmatmul.mubr.msk.bf16.gmra.mrb[92].mxu0 %vm799_vm2, %v19098_v44  ;;  %13728 = vmatmul.mubr.msk.bf16.gmra.mrb[92].mxu1 %vm799_vm2, %v19098_v44  ;;  %v13767_v44 = vld [vmem:[%s24348_s1 + $0x430] sm:$0xff] }
 0x1fa   :  { %13777 = vmatprep.mubr.msk.f32.mxu0 %vm158_vm0, %v13730_v31  ;;  %2141 = vmatprep.mubr.bf16.mxu1 %v18358_v52  ;;  %v13773_v31 = vld [vmem:[%s24348_s1 + $0x460] sm:$0xff] }
 0x201   :  { %1731 = vmatmul.mubr.f32.vlgmr.msra.gmra.mrb[96].mxu0 %v13729_v47  ;;  %v13776_v47 = vld [vmem:[%s24348_s1 + $0x478] sm:$0xff] }
 0x202   :  { %13778 = vmatprep.mubr.msk.f32.mxu0 %vm158_vm0, %v13732_v49  ;;  %1957 = vmatpush1.bf16.msra.mxu0 %v17484_v48  ;;  %v1945_v48 = vsel %vm836_vm1, %v17489_v14, 0  ;;  %v13775_v49 = vld [vmem:[%s24348_s1 + $0x470] sm:$0xff] }
 0x203   :  { %13817 = vmatprep.subr.msk.bf16.mxu0 %vm836_vm1, %v17487_v62  ;;  %v17490_v62 = vld [vmem:[%s24349_s2 + $0xc0] ss:$16 sps:$4 sm:$0xff]   ;;  %v17492_v14 = vld [vmem:[%s24349_s2 + $0xc4] ss:$16 sps:$4 sm:$0xff]  }
 0x205   :  { %1736 = vmatmul.mubr.f32.gmra.mrb[98].mxu0 %v13731_v50 }
 0x206   :  { %13779 = vmatprep.mubr.msk.f32.mxu0 %vm158_vm0, %v13734_v53  ;;  %1959 = vmatpush1.bf16.msra.mxu0 %v1945_v48  ;;  %v17498_v48 = vld [vmem:[%s24349_s2 + $0xcc] ss:$16 sps:$4 sm:$0xff]  }
 0x207   :  { %2769 = vmatprep.subr.bf16.mxu0 %v17492_v14  ;;  %v13868_v14 = vld [vmem:[%s24348_s1 + $0x548] sm:$0xff] }
 0x209   :  { %1741 = vmatmul.mubr.f32.gmra.mrb[100].mxu0 %v13733_v54 }
 0x20a   :  { %13780 = vmatprep.mubr.msk.f32.mxu0 %vm158_vm0, %v13736_v55 }
 0x20d   :  { %1746 = vmatmul.mubr.f32.gmra.mrb[102].mxu0 %v13735_v56 }
 0x20e   :  { %13781 = vmatprep.mubr.msk.f32.mxu0 %vm158_vm0, %v13738_v57 }
 0x211   :  { %1751 = vmatmul.mubr.f32.gmra.mrb[104].mxu0 %v13737_v58 }
 0x212   :  { %13782 = vmatprep.mubr.msk.f32.mxu0 %vm158_vm0, %v13740_v59 }
 0x215   :  { %1756 = vmatmul.mubr.f32.gmra.mrb[106].mxu0 %v13739_v60 }
 0x216   :  { %13783 = vmatprep.mubr.msk.f32.mxu0 %vm158_vm0, %v13742_v61 }
 0x219   :  { %1761 = vmatmul.mubr.f32.gmra.mrb[108].mxu0 %v13741_v63 }
 0x21a   :  { %13784 = vmatprep.mubr.msk.f32.mxu0 %vm158_vm0, %v13744_v1 }
 0x21d   :  { %1766 = vmatmul.mubr.f32.gmra.mrb[110].mxu0 %v13743_v3 }
 0x21e   :  { %13785 = vmatprep.mubr.msk.f32.mxu0 %vm158_vm0, %v13746_v5 }
 0x221   :  { %1771 = vmatmul.mubr.f32.gmra.mrb[112].mxu0 %v13745_v7 }
 0x222   :  { %13786 = vmatprep.mubr.msk.f32.mxu0 %vm158_vm0, %v13748_v8 }
 0x225   :  { %1776 = vmatmul.mubr.f32.gmra.mrb[114].mxu0 %v13747_v10 }
 0x226   :  { %13787 = vmatprep.mubr.msk.f32.mxu0 %vm158_vm0, %v13750_v11 }
 0x229   :  { %1781 = vmatmul.mubr.f32.gmra.mrb[116].mxu0 %v13749_v12 }
 0x22a   :  { %13788 = vmatprep.mubr.msk.f32.mxu0 %vm158_vm0, %v13752_v15 }
 0x22d   :  { %1786 = vmatmul.mubr.f32.gmra.mrb[118].mxu0 %v13751_v17 }
 0x22e   :  { %13789 = vmatprep.mubr.msk.f32.mxu0 %vm158_vm0, %v13754_v18 }
 0x231   :  { %1791 = vmatmul.mubr.f32.gmra.mrb[120].mxu0 %v13753_v20 }
 0x232   :  { %13790 = vmatprep.mubr.msk.f32.mxu0 %vm158_vm0, %v13756_v21 }
 0x235   :  { %1796 = vmatmul.mubr.f32.gmra.mrb[122].mxu0 %v13755_v23 }
 0x236   :  { %13791 = vmatprep.mubr.msk.f32.mxu0 %vm158_vm0, %v13758_v25 }
 0x239   :  { %1801 = vmatmul.mubr.f32.gmra.mrb[124].mxu0 %v13757_v27 }
 0x23a   :  { %13792 = vmatprep.mubr.msk.f32.mxu0 %vm158_vm0, %v13760_v28 }
 0x23d   :  { %1806 = vmatmul.mubr.f32.gmra.mrb[126].mxu0 %v13759_v30 }
 0x23e   :  { %13793 = vmatprep.mubr.msk.f32.mxu0 %vm158_vm0, %v13762_v33 }
 0x241   :  { %1811 = vmatmul.mubr.f32.gmra.mrb[128].mxu0 %v13761_v34 }
 0x242   :  { %13794 = vmatprep.mubr.msk.f32.mxu0 %vm158_vm0, %v13764_v36 }
 0x245   :  { %1816 = vmatmul.mubr.f32.gmra.mrb[130].mxu0 %v13763_v37 }
 0x246   :  { %13795 = vmatprep.mubr.msk.f32.mxu0 %vm158_vm0, %v13766_v40 }
 0x249   :  { %1821 = vmatmul.mubr.f32.gmra.mrb[132].mxu0 %v13765_v41 }
 0x24a   :  { %13796 = vmatprep.mubr.msk.f32.mxu0 %vm158_vm0, %v13768_v42 }
 0x24d   :  { %1826 = vmatmul.mubr.f32.gmra.mrb[134].mxu0 %v13767_v44 }
 0x24e   :  { %13797 = vmatprep.mubr.msk.f32.mxu0 %vm158_vm0, %v13770_v45 }
 0x251   :  { %1831 = vmatmul.mubr.f32.gmra.mrb[136].mxu0 %v13769_v2 }
 0x252   :  { %13798 = vmatprep.mubr.msk.f32.mxu0 %vm158_vm0, %v13772_v24 }
 0x255   :  { %1836 = vmatmul.mubr.f32.gmra.mrb[138].mxu0 %v13771_v39 }
 0x256   :  { %13799 = vmatprep.mubr.msk.f32.mxu0 %vm158_vm0, %v13774_v51 }
 0x259   :  { %1841 = vmatmul.mubr.f32.gmra.mrb[140].mxu0 %v13773_v31 }
 0x25a   :  { %13800 = vmatprep.mubr.msk.f32.mxu0 %vm158_vm0, %v13776_v47  ;;  %v17493_v47 = vld [vmem:[%s24349_s2 + $0xe4] ss:$16 sps:$4 sm:$0x3f]  }
 0x25d   :  { %1846 = vmatmul.mubr.f32.gmra.mrb[142].mxu0 %v13775_v49 }
 0x25e   :  { %1988 = vmatprep.mubr.bf16.mxu0 %v18358_v52 }
 0x2d4   :  { %v1732_v50 = vpop.f32.mrb[96].mxu0 }
 0x2d5   :  { %v1734_v53 = vpop.f32.mrb[97].mxu0 }
 0x2d6   :  { %v17495_v53 = vld [vmem:[%s24349_s2 + $0xe0] ss:$16 sps:$4 sm:$0x3f]  }
 0x2d8   :  { %v1737_v54 = vpop.f32.mrb[98].mxu0 }
 0x2d9   :  { %v1851_v55 = vpack.c.bf16 %v1737_v54, %v1732_v50  ;;  %v1739_v56 = vpop.f32.mrb[99].mxu0  ;;  %v2758_v54 = vsel %vm836_vm1, %v17495_v53, 0  ;;  %v13874_v53 = vld [vmem:[%s24348_s1 + $0x578] sm:$0xff] }
 0x2db   :  { %13818 = vmatmul.mubr.msk.bf16.vlgmr.msra.gmra.mrb[48].mxu0 %vm799_vm2, %v1851_v55  ;;  %13831 = vmatmul.mubr.msk.bf16.vlgmr.msra.gmra.mrb[48].mxu1 %vm799_vm2, %v1851_v55 }
 0x2dc   :  { %v1742_v57 = vpop.f32.mrb[100].mxu0  ;;  %15436 = vmatpush1.bf16.msra.mxu1 %v18480_v4  ;;  %1998 = vmatprep.mubr.bf16.mxu0 %v18358_v52 }
 0x2dd   :  { %v1744_v58 = vpop.f32.mrb[101].mxu0  ;;  %2151 = vmatprep.mubr.bf16.mxu1 %v18358_v52  ;;  %15437 = vmatprep.subr.bf16.mxu1 %v18357_v0 }
 0x2de   :  { %2770 = vmatpush1.bf16.msra.mxu0 %v17490_v62  ;;  %v13865_v62 = vld [vmem:[%s24348_s1 + $0x530] sm:$0xff] }
 0x2df   :  { %13931 = vmatprep.subr.msk.bf16.mxu0 %vm836_vm1, %v17493_v47  ;;  %v13870_v47 = vld [vmem:[%s24348_s1 + $0x558] sm:$0xff] }
 0x2e0   :  { %v1747_v59 = vpop.f32.mrb[102].mxu0  ;;  %15439 = vmatpush1.bf16.msra.mxu1 %v18486_v6 }
 0x2e1   :  { %v1852_v60 = vpack.c.bf16 %v1747_v59, %v1742_v57  ;;  %v1749_v61 = vpop.f32.mrb[103].mxu0  ;;  %15440 = vmatprep.subr.bf16.mxu1 %v18357_v0 }
 0x2e2   :  { %2772 = vmatpush1.bf16.msra.mxu0 %v2758_v54  ;;  %v13873_v54 = vld [vmem:[%s24348_s1 + $0x570] sm:$0xff] }
 0x2e3   :  { %13819 = vmatmul.mubr.msk.bf16.gmra.mrb[52].mxu0 %vm799_vm2, %v1852_v60  ;;  %13832 = vmatmul.mubr.msk.bf16.gmra.mrb[52].mxu1 %vm799_vm2, %v1852_v60 }
 0x2e4   :  { %v1752_v63 = vpop.f32.mrb[104].mxu0  ;;  %2008 = vmatprep.mubr.bf16.mxu0 %v18358_v52  ;;  %2161 = vmatprep.mubr.bf16.mxu1 %v18358_v52 }
 0x2e5   :  { %v1754_v1 = vpop.f32.mrb[105].mxu0  ;;  %15442 = vmatpush1.bf16.msra.mxu1 %v18498_v9  ;;  %15476 = vmatprep.subr.bf16.mxu0 %v18357_v0 }
 0x2e6   :  { %15443 = vmatprep.subr.bf16.mxu1 %v18357_v0 }
 0x2e8   :  { %v1757_v3 = vpop.f32.mrb[106].mxu0 }
 0x2e9   :  { %v1853_v5 = vpack.c.bf16 %v1757_v3, %v1752_v63  ;;  %v1759_v7 = vpop.f32.mrb[107].mxu0  ;;  %15445 = vmatpush1.bf16.msra.mxu1 %v18514_v13 }
 0x2ea   :  { %15446 = vmatprep.subr.bf16.mxu1 %v18357_v0 }
 0x2eb   :  { %13820 = vmatmul.mubr.msk.bf16.gmra.mrb[56].mxu0 %vm799_vm2, %v1853_v5  ;;  %13833 = vmatmul.mubr.msk.bf16.gmra.mrb[56].mxu1 %vm799_vm2, %v1853_v5 }
 0x2ec   :  { %v1762_v8 = vpop.f32.mrb[108].mxu0  ;;  %2018 = vmatprep.mubr.bf16.mxu0 %v18358_v52  ;;  %2171 = vmatprep.mubr.bf16.mxu1 %v18358_v52 }
 0x2ed   :  { %v1764_v10 = vpop.f32.mrb[109].mxu0  ;;  %15448 = vmatpush1.bf16.msra.mxu1 %v18526_v16 }
 0x2ee   :  { %15449 = vmatprep.subr.bf16.mxu1 %v18357_v0 }
 0x2f0   :  { %v1767_v11 = vpop.f32.mrb[110].mxu0 }
 0x2f1   :  { %v1854_v12 = vpack.c.bf16 %v1767_v11, %v1762_v8  ;;  %v1769_v15 = vpop.f32.mrb[111].mxu0  ;;  %15451 = vmatpush1.bf16.msra.mxu1 %v18538_v19 }
 0x2f2   :  { %15452 = vmatprep.subr.bf16.mxu1 %v18357_v0  ;;  %v13843_v15 = vld [vmem:[%s24348_s1 + $0x480] sm:$0xff] }
 0x2f3   :  { %13821 = vmatmul.mubr.msk.bf16.gmra.mrb[60].mxu0 %vm799_vm2, %v1854_v12  ;;  %13834 = vmatmul.mubr.msk.bf16.gmra.mrb[60].mxu1 %vm799_vm2, %v1854_v12  ;;  %v13844_v12 = vld [vmem:[%s24348_s1 + $0x488] sm:$0xff] }
 0x2f4   :  { %v1772_v17 = vpop.f32.mrb[112].mxu0  ;;  %2028 = vmatprep.mubr.bf16.mxu0 %v18358_v52  ;;  %2181 = vmatprep.mubr.bf16.mxu1 %v18358_v52 }
 0x2f5   :  { %v1774_v18 = vpop.f32.mrb[113].mxu0  ;;  %15454 = vmatpush1.bf16.msra.mxu1 %v18550_v22 }
 0x2f6   :  { %15455 = vmatprep.subr.bf16.mxu1 %v18357_v0  ;;  %v13846_v18 = vld [vmem:[%s24348_s1 + $0x498] sm:$0xff] }
 0x2f8   :  { %v1777_v20 = vpop.f32.mrb[114].mxu0 }
 0x2f9   :  { %v1855_v21 = vpack.c.bf16 %v1777_v20, %v1772_v17  ;;  %v1779_v23 = vpop.f32.mrb[115].mxu0  ;;  %15457 = vmatpush1.bf16.msra.mxu1 %v18566_v26  ;;  %v17496_v17 = vld [vmem:[%s24349_s2 + $0xc8] ss:$16 sps:$4 sm:$0xff]   ;;  %v13845_v20 = vld [vmem:[%s24348_s1 + $0x490] sm:$0xff] }
 0x2fa   :  { %15458 = vmatprep.subr.bf16.mxu1 %v18357_v0  ;;  %v13847_v23 = vld [vmem:[%s24348_s1 + $0x4a0] sm:$0xff] }
 0x2fb   :  { %13822 = vmatmul.mubr.msk.bf16.gmra.mrb[64].mxu0 %vm799_vm2, %v1855_v21  ;;  %13835 = vmatmul.mubr.msk.bf16.gmra.mrb[64].mxu1 %vm799_vm2, %v1855_v21  ;;  %v13848_v21 = vld [vmem:[%s24348_s1 + $0x4a8] sm:$0xff] }
 0x2fc   :  { %v1782_v25 = vpop.f32.mrb[116].mxu0  ;;  %2038 = vmatprep.mubr.bf16.mxu0 %v18358_v52  ;;  %2191 = vmatprep.mubr.bf16.mxu1 %v18358_v52 }
 0x2fd   :  { %v1784_v27 = vpop.f32.mrb[117].mxu0  ;;  %15460 = vmatpush1.bf16.msra.mxu1 %v18578_v29 }
 0x2fe   :  { %15461 = vmatprep.subr.bf16.mxu1 %v18357_v0  ;;  %v13849_v27 = vld [vmem:[%s24348_s1 + $0x4b0] sm:$0xff] }
 0x300   :  { %v1787_v28 = vpop.f32.mrb[118].mxu0 }
 0x301   :  { %v1856_v30 = vpack.c.bf16 %v1787_v28, %v1782_v25  ;;  %v1789_v33 = vpop.f32.mrb[119].mxu0  ;;  %15463 = vmatpush1.bf16.msra.mxu1 %v18590_v32  ;;  %v13850_v25 = vld [vmem:[%s24348_s1 + $0x4b8] sm:$0xff]  ;;  %v13852_v28 = vld [vmem:[%s24348_s1 + $0x4c8] sm:$0xff] }
 0x302   :  { %15464 = vmatprep.subr.bf16.mxu1 %v18357_v0  ;;  %v13854_v33 = vld [vmem:[%s24348_s1 + $0x4d8] sm:$0xff] }
 0x303   :  { %13823 = vmatmul.mubr.msk.bf16.gmra.mrb[68].mxu0 %vm799_vm2, %v1856_v30  ;;  %13836 = vmatmul.mubr.msk.bf16.gmra.mrb[68].mxu1 %vm799_vm2, %v1856_v30  ;;  %v13851_v30 = vld [vmem:[%s24348_s1 + $0x4c0] sm:$0xff] }
 0x304   :  { %v1792_v34 = vpop.f32.mrb[120].mxu0  ;;  %2048 = vmatprep.mubr.bf16.mxu0 %v18358_v52  ;;  %2201 = vmatprep.mubr.bf16.mxu1 %v18358_v52 }
 0x305   :  { %v1794_v36 = vpop.f32.mrb[121].mxu0  ;;  %15466 = vmatpush1.bf16.msra.mxu1 %v18602_v35 }
 0x306   :  { %15467 = vmatprep.subr.bf16.mxu1 %v18357_v0  ;;  %v13856_v36 = vld [vmem:[%s24348_s1 + $0x4e8] sm:$0xff] }
 0x308   :  { %v1797_v37 = vpop.f32.mrb[122].mxu0 }
 0x309   :  { %v1857_v40 = vpack.c.bf16 %v1797_v37, %v1792_v34  ;;  %v1799_v41 = vpop.f32.mrb[123].mxu0  ;;  %15469 = vmatpush1.bf16.msra.mxu1 %v18614_v38  ;;  %v13853_v34 = vld [vmem:[%s24348_s1 + $0x4d0] sm:$0xff]  ;;  %v13855_v37 = vld [vmem:[%s24348_s1 + $0x4e0] sm:$0xff] }
 0x30a   :  { %15470 = vmatprep.subr.bf16.mxu1 %v18357_v0  ;;  %v13857_v41 = vld [vmem:[%s24348_s1 + $0x4f0] sm:$0xff] }
 0x30b   :  { %13824 = vmatmul.mubr.msk.bf16.gmra.mrb[72].mxu0 %vm799_vm2, %v1857_v40  ;;  %13837 = vmatmul.mubr.msk.bf16.gmra.mrb[72].mxu1 %vm799_vm2, %v1857_v40  ;;  %v13858_v40 = vld [vmem:[%s24348_s1 + $0x4f8] sm:$0xff] }
 0x30c   :  { %v1802_v42 = vpop.f32.mrb[124].mxu0  ;;  %2058 = vmatprep.mubr.bf16.mxu0 %v18358_v52  ;;  %2211 = vmatprep.mubr.bf16.mxu1 %v18358_v52 }
 0x30d   :  { %v1804_v44 = vpop.f32.mrb[125].mxu0  ;;  %15472 = vmatpush1.bf16.msra.mxu1 %v18632_v43 }
 0x30e   :  { %15473 = vmatprep.subr.bf16.mxu1 %v18357_v0  ;;  %v13859_v44 = vld [vmem:[%s24348_s1 + $0x500] sm:$0xff] }
 0x310   :  { %v1807_v45 = vpop.f32.mrb[126].mxu0 }
 0x311   :  { %v1858_v2 = vpack.c.bf16 %v1807_v45, %v1802_v42  ;;  %v1809_v24 = vpop.f32.mrb[127].mxu0  ;;  %15475 = vmatpush1.bf16.msra.mxu1 %v18644_v46  ;;  %v13860_v42 = vld [vmem:[%s24348_s1 + $0x508] sm:$0xff]  ;;  %v13862_v45 = vld [vmem:[%s24348_s1 + $0x518] sm:$0xff] }
 0x312   :  { %2922 = vmatprep.subr.bf16.mxu1 %v17498_v48  ;;  %v13864_v24 = vld [vmem:[%s24348_s1 + $0x528] sm:$0xff]  ;;  %v13869_v48 = vld [vmem:[%s24348_s1 + $0x550] sm:$0xff] }
 0x313   :  { %13825 = vmatmul.mubr.msk.bf16.gmra.mrb[76].mxu0 %vm799_vm2, %v1858_v2  ;;  %13838 = vmatmul.mubr.msk.bf16.gmra.mrb[76].mxu1 %vm799_vm2, %v1858_v2  ;;  %v13861_v2 = vld [vmem:[%s24348_s1 + $0x510] sm:$0xff] }
 0x314   :  { %v1812_v39 = vpop.f32.mrb[128].mxu0  ;;  %2068 = vmatprep.mubr.bf16.mxu0 %v18358_v52  ;;  %2221 = vmatprep.mubr.bf16.mxu1 %v18358_v52 }
 0x315   :  { %v1814_v51 = vpop.f32.mrb[129].mxu0 }
 0x316   :  { %v13866_v51 = vld [vmem:[%s24348_s1 + $0x538] sm:$0xff] }
 0x318   :  { %v1817_v31 = vpop.f32.mrb[130].mxu0 }
 0x319   :  { %v1859_v49 = vpack.c.bf16 %v1817_v31, %v1812_v39  ;;  %v1819_v50 = vpop.f32.mrb[131].mxu0  ;;  %v13863_v39 = vld [vmem:[%s24348_s1 + $0x520] sm:$0xff] }
 0x31a   :  { %v13867_v31 = vld [vmem:[%s24348_s1 + $0x540] sm:$0xff] }
 0x31b   :  { %13826 = vmatmul.mubr.msk.bf16.gmra.mrb[80].mxu0 %vm799_vm2, %v1859_v49  ;;  %13839 = vmatmul.mubr.msk.bf16.gmra.mrb[80].mxu1 %vm799_vm2, %v1859_v49  ;;  %v13872_v49 = vld [vmem:[%s24348_s1 + $0x568] sm:$0xff]  ;;  %v13871_v50 = vld [vmem:[%s24348_s1 + $0x560] sm:$0xff] }
 0x31c   :  { %v1822_v55 = vpop.f32.mrb[132].mxu0  ;;  %2078 = vmatprep.mubr.bf16.mxu0 %v18358_v52  ;;  %2231 = vmatprep.mubr.bf16.mxu1 %v18358_v52 }
 0x31d   :  { %v1824_v56 = vpop.f32.mrb[133].mxu0 }
 0x31e   :  { %v13875_v56 = vld [vmem:[%s24348_s1 + $0x580] sm:$0xff] }
 0x320   :  { %v1827_v57 = vpop.f32.mrb[134].mxu0 }
 0x321   :  { %v1860_v58 = vpack.c.bf16 %v1827_v57, %v1822_v55  ;;  %v1829_v59 = vpop.f32.mrb[135].mxu0  ;;  %v13876_v55 = vld [vmem:[%s24348_s1 + $0x588] sm:$0xff]  ;;  %v13878_v57 = vld [vmem:[%s24348_s1 + $0x598] sm:$0xff] }
 0x322   :  { %v13880_v59 = vld [vmem:[%s24348_s1 + $0x5a8] sm:$0xff] }
 0x323   :  { %13827 = vmatmul.mubr.msk.bf16.gmra.mrb[84].mxu0 %vm799_vm2, %v1860_v58  ;;  %13840 = vmatmul.mubr.msk.bf16.gmra.mrb[84].mxu1 %vm799_vm2, %v1860_v58  ;;  %v13877_v58 = vld [vmem:[%s24348_s1 + $0x590] sm:$0xff] }
 0x324   :  { %v1832_v60 = vpop.f32.mrb[136].mxu0  ;;  %2088 = vmatprep.mubr.bf16.mxu0 %v18358_v52  ;;  %2241 = vmatprep.mubr.bf16.mxu1 %v18358_v52 }
 0x325   :  { %v1834_v61 = vpop.f32.mrb[137].mxu0 }
 0x326   :  { %v13882_v61 = vld [vmem:[%s24348_s1 + $0x5b8] sm:$0xff] }
 0x328   :  { %v1837_v63 = vpop.f32.mrb[138].mxu0 }
 0x329   :  { %v1861_v1 = vpack.c.bf16 %v1837_v63, %v1832_v60  ;;  %v1839_v3 = vpop.f32.mrb[139].mxu0  ;;  %v13879_v60 = vld [vmem:[%s24348_s1 + $0x5a0] sm:$0xff]  ;;  %v13881_v63 = vld [vmem:[%s24348_s1 + $0x5b0] sm:$0xff] }
 0x32a   :  { %v13883_v3 = vld [vmem:[%s24348_s1 + $0x5c0] sm:$0xff] }
 0x32b   :  { %13828 = vmatmul.mubr.msk.bf16.gmra.mrb[88].mxu0 %vm799_vm2, %v1861_v1  ;;  %13841 = vmatmul.mubr.msk.bf16.gmra.mrb[88].mxu1 %vm799_vm2, %v1861_v1  ;;  %v13884_v1 = vld [vmem:[%s24348_s1 + $0x5c8] sm:$0xff] }
 0x32c   :  { %v1842_v5 = vpop.f32.mrb[140].mxu0  ;;  %2098 = vmatprep.mubr.bf16.mxu0 %v18358_v52  ;;  %2251 = vmatprep.mubr.bf16.mxu1 %v18358_v52 }
 0x32d   :  { %v1844_v7 = vpop.f32.mrb[141].mxu0 }
 0x32e   :  { %v13885_v7 = vld [vmem:[%s24348_s1 + $0x5d0] sm:$0xff] }
 0x330   :  { %v1847_v8 = vpop.f32.mrb[142].mxu0 }
 0x331   :  { %v1862_v10 = vpack.c.bf16 %v1847_v8, %v1842_v5  ;;  %v1849_v11 = vpop.f32.mrb[143].mxu0  ;;  %v13886_v5 = vld [vmem:[%s24348_s1 + $0x5d8] sm:$0xff]  ;;  %v13888_v8 = vld [vmem:[%s24348_s1 + $0x5e8] sm:$0xff] }
 0x332   :  { %v17501_v11 = vld [vmem:[%s24349_s2 + $0xe8] ss:$16 sps:$4 sm:$0x3f]  }
 0x333   :  { %13829 = vmatmul.mubr.msk.bf16.gmra.mrb[92].mxu0 %vm799_vm2, %v1862_v10  ;;  %13842 = vmatmul.mubr.msk.bf16.gmra.mrb[92].mxu1 %vm799_vm2, %v1862_v10  ;;  %v17499_v10 = vld [vmem:[%s24349_s2 + $0xec] ss:$16 sps:$4 sm:$0x3f]  }
 0x334   :  { %13891 = vmatprep.mubr.msk.f32.mxu1 %vm158_vm0, %v13844_v12  ;;  %2801 = vmatprep.mubr.bf16.mxu0 %v18358_v52  ;;  %v13887_v12 = vld [vmem:[%s24348_s1 + $0x5e0] sm:$0xff] }
 0x33b   :  { %2544 = vmatmul.mubr.f32.vlgmr.msra.gmra.mrb[96].mxu1 %v13843_v15  ;;  %v13890_v15 = vld [vmem:[%s24348_s1 + $0x5f8] sm:$0xff] }
 0x33c   :  { %13892 = vmatprep.mubr.msk.f32.mxu1 %vm158_vm0, %v13846_v18  ;;  %2923 = vmatpush1.bf16.msra.mxu1 %v17496_v17  ;;  %v2764_v17 = vsel %vm836_vm1, %v17501_v11, 0  ;;  %v13889_v18 = vld [vmem:[%s24348_s1 + $0x5f0] sm:$0xff] }
 0x33d   :  { %13944 = vmatprep.subr.msk.bf16.mxu1 %vm836_vm1, %v17499_v10 }
 0x33f   :  { %2549 = vmatmul.mubr.f32.gmra.mrb[98].mxu1 %v13845_v20 }
 0x340   :  { %13893 = vmatprep.mubr.msk.f32.mxu1 %vm158_vm0, %v13848_v21  ;;  %2925 = vmatpush1.bf16.msra.mxu1 %v2764_v17 }
 0x343   :  { %2554 = vmatmul.mubr.f32.gmra.mrb[100].mxu1 %v13847_v23 }
 0x344   :  { %13894 = vmatprep.mubr.msk.f32.mxu1 %vm158_vm0, %v13850_v25 }
 0x347   :  { %2559 = vmatmul.mubr.f32.gmra.mrb[102].mxu1 %v13849_v27 }
 0x348   :  { %13895 = vmatprep.mubr.msk.f32.mxu1 %vm158_vm0, %v13852_v28 }
 0x34b   :  { %2564 = vmatmul.mubr.f32.gmra.mrb[104].mxu1 %v13851_v30 }
 0x34c   :  { %13896 = vmatprep.mubr.msk.f32.mxu1 %vm158_vm0, %v13854_v33 }
 0x34f   :  { %2569 = vmatmul.mubr.f32.gmra.mrb[106].mxu1 %v13853_v34 }
 0x350   :  { %13897 = vmatprep.mubr.msk.f32.mxu1 %vm158_vm0, %v13856_v36 }
 0x353   :  { %2574 = vmatmul.mubr.f32.gmra.mrb[108].mxu1 %v13855_v37 }
 0x354   :  { %13898 = vmatprep.mubr.msk.f32.mxu1 %vm158_vm0, %v13858_v40 }
 0x357   :  { %2579 = vmatmul.mubr.f32.gmra.mrb[110].mxu1 %v13857_v41 }
 0x358   :  { %13899 = vmatprep.mubr.msk.f32.mxu1 %vm158_vm0, %v13860_v42 }
 0x35b   :  { %2584 = vmatmul.mubr.f32.gmra.mrb[112].mxu1 %v13859_v44 }
 0x35c   :  { %13900 = vmatprep.mubr.msk.f32.mxu1 %vm158_vm0, %v13862_v45 }
 0x35f   :  { %2589 = vmatmul.mubr.f32.gmra.mrb[114].mxu1 %v13861_v2 }
 0x360   :  { %13901 = vmatprep.mubr.msk.f32.mxu1 %vm158_vm0, %v13864_v24 }
 0x363   :  { %2594 = vmatmul.mubr.f32.gmra.mrb[116].mxu1 %v13863_v39 }
 0x364   :  { %13902 = vmatprep.mubr.msk.f32.mxu1 %vm158_vm0, %v13866_v51 }
 0x367   :  { %2599 = vmatmul.mubr.f32.gmra.mrb[118].mxu1 %v13865_v62 }
 0x368   :  { %13903 = vmatprep.mubr.msk.f32.mxu1 %vm158_vm0, %v13868_v14 }
 0x36b   :  { %2604 = vmatmul.mubr.f32.gmra.mrb[120].mxu1 %v13867_v31 }
 0x36c   :  { %13904 = vmatprep.mubr.msk.f32.mxu1 %vm158_vm0, %v13870_v47 }
 0x36f   :  { %2609 = vmatmul.mubr.f32.gmra.mrb[122].mxu1 %v13869_v48 }
 0x370   :  { %13905 = vmatprep.mubr.msk.f32.mxu1 %vm158_vm0, %v13872_v49 }
 0x373   :  { %2614 = vmatmul.mubr.f32.gmra.mrb[124].mxu1 %v13871_v50 }
 0x374   :  { %13906 = vmatprep.mubr.msk.f32.mxu1 %vm158_vm0, %v13874_v53 }
 0x377   :  { %2619 = vmatmul.mubr.f32.gmra.mrb[126].mxu1 %v13873_v54 }
 0x378   :  { %13907 = vmatprep.mubr.msk.f32.mxu1 %vm158_vm0, %v13876_v55 }
 0x37b   :  { %2624 = vmatmul.mubr.f32.gmra.mrb[128].mxu1 %v13875_v56  ;;  %v17510_v56 = vld [vmem:[%s24349_s2 + $0x10c] ss:$16 sps:$4 sm:$0xff]  }
 0x37c   :  { %13908 = vmatprep.mubr.msk.f32.mxu1 %vm158_vm0, %v13878_v57  ;;  %3735 = vmatprep.subr.bf16.mxu1 %v17510_v56  ;;  %v13998_v56 = vld [vmem:[%s24348_s1 + $0x748] sm:$0xff] }
 0x37f   :  { %2629 = vmatmul.mubr.f32.gmra.mrb[130].mxu1 %v13877_v58  ;;  %v17508_v58 = vld [vmem:[%s24349_s2 + $0x108] ss:$16 sps:$4 sm:$0xff]  }
 0x380   :  { %13909 = vmatprep.mubr.msk.f32.mxu1 %vm158_vm0, %v13880_v59 }
 0x383   :  { %2634 = vmatmul.mubr.f32.gmra.mrb[132].mxu1 %v13879_v60 }
 0x384   :  { %13910 = vmatprep.mubr.msk.f32.mxu1 %vm158_vm0, %v13882_v61 }
 0x387   :  { %2639 = vmatmul.mubr.f32.gmra.mrb[134].mxu1 %v13881_v63 }
 0x388   :  { %13911 = vmatprep.mubr.msk.f32.mxu1 %vm158_vm0, %v13884_v1 }
 0x38b   :  { %2644 = vmatmul.mubr.f32.gmra.mrb[136].mxu1 %v13883_v3 }
 0x38c   :  { %13912 = vmatprep.mubr.msk.f32.mxu1 %vm158_vm0, %v13886_v5 }
 0x38f   :  { %2649 = vmatmul.mubr.f32.gmra.mrb[138].mxu1 %v13885_v7 }
 0x390   :  { %13913 = vmatprep.mubr.msk.f32.mxu1 %vm158_vm0, %v13888_v8 }
 0x393   :  { %2654 = vmatmul.mubr.f32.gmra.mrb[140].mxu1 %v13887_v12 }
 0x394   :  { %13914 = vmatprep.mubr.msk.f32.mxu1 %vm158_vm0, %v13890_v15 }
 0x397   :  { %2659 = vmatmul.mubr.f32.gmra.mrb[142].mxu1 %v13889_v18 }
 0x398   :  { %2954 = vmatprep.mubr.bf16.mxu1 %v18358_v52 }
 0x40e   :  { %v2545_v20 = vpop.f32.mrb[96].mxu1 }
 0x40f   :  { %v2547_v21 = vpop.f32.mrb[97].mxu1 }
 0x410   :  { %v13957_v21 = vld [vmem:[%s24348_s1 + $0x600] sm:$0xff] }
 0x412   :  { %v2550_v23 = vpop.f32.mrb[98].mxu1 }
 0x413   :  { %v2664_v25 = vpack.c.bf16 %v2550_v23, %v2545_v20  ;;  %v2552_v27 = vpop.f32.mrb[99].mxu1  ;;  %v13958_v20 = vld [vmem:[%s24348_s1 + $0x608] sm:$0xff]  ;;  %v13960_v23 = vld [vmem:[%s24348_s1 + $0x618] sm:$0xff] }
 0x414   :  { %v17505_v27 = vld [vmem:[%s24349_s2 + $0x124] ss:$16 sps:$4 sm:$0x3f]  }
 0x415   :  { %13932 = vmatmul.mubr.msk.bf16.vlgmr.msra.gmra.mrb[48].mxu0 %vm799_vm2, %v2664_v25  ;;  %13945 = vmatmul.mubr.msk.bf16.vlgmr.msra.gmra.mrb[48].mxu1 %vm799_vm2, %v2664_v25  ;;  %v17502_v25 = vld [vmem:[%s24349_s2 + $0x100] ss:$16 sps:$4 sm:$0xff]  }
 0x416   :  { %v2555_v28 = vpop.f32.mrb[100].mxu1  ;;  %15478 = vmatpush1.bf16.msra.mxu0 %v18480_v4  ;;  %2811 = vmatprep.mubr.bf16.mxu0 %v18358_v52 }
 0x417   :  { %v2557_v30 = vpop.f32.mrb[101].mxu1  ;;  %2964 = vmatprep.mubr.bf16.mxu1 %v18358_v52  ;;  %15479 = vmatprep.subr.bf16.mxu0 %v18357_v0 }
 0x418   :  { %3736 = vmatpush1.bf16.msra.mxu1 %v17508_v58  ;;  %v13959_v30 = vld [vmem:[%s24348_s1 + $0x610] sm:$0xff] }
 0x419   :  { %v13999_v58 = vld [vmem:[%s24348_s1 + $0x750] sm:$0xff] }
 0x41a   :  { %v2560_v33 = vpop.f32.mrb[102].mxu1  ;;  %15481 = vmatpush1.bf16.msra.mxu0 %v18486_v6 }
 0x41b   :  { %v2665_v34 = vpack.c.bf16 %v2560_v33, %v2555_v28  ;;  %v2562_v36 = vpop.f32.mrb[103].mxu1  ;;  %15482 = vmatprep.subr.bf16.mxu0 %v18357_v0  ;;  %v17507_v28 = vld [vmem:[%s24349_s2 + $0x120] ss:$16 sps:$4 sm:$0x3f]   ;;  %v13962_v33 = vld [vmem:[%s24348_s1 + $0x628] sm:$0xff] }
 0x41c   :  { %v13961_v36 = vld [vmem:[%s24348_s1 + $0x620] sm:$0xff] }
 0x41d   :  { %13933 = vmatmul.mubr.msk.bf16.gmra.mrb[52].mxu0 %vm799_vm2, %v2665_v34  ;;  %13946 = vmatmul.mubr.msk.bf16.gmra.mrb[52].mxu1 %vm799_vm2, %v2665_v34  ;;  %v3571_v34 = vsel %vm836_vm1, %v17507_v28, 0 }
 0x41e   :  { %v2565_v37 = vpop.f32.mrb[104].mxu1  ;;  %2821 = vmatprep.mubr.bf16.mxu0 %v18358_v52  ;;  %2974 = vmatprep.mubr.bf16.mxu1 %v18358_v52 }
 0x41f   :  { %v2567_v4 = vpop.f32.mrb[105].mxu1  ;;  %15484 = vmatpush1.bf16.msra.mxu0 %v18498_v9 }
 0x420   :  { %15485 = vmatprep.subr.bf16.mxu0 %v18357_v0  ;;  %v13963_v4 = vld [vmem:[%s24348_s1 + $0x630] sm:$0xff] }
 0x422   :  { %v2570_v40 = vpop.f32.mrb[106].mxu1 }
 0x423   :  { %v2666_v6 = vpack.c.bf16 %v2570_v40, %v2565_v37  ;;  %v2572_v41 = vpop.f32.mrb[107].mxu1  ;;  %15487 = vmatpush1.bf16.msra.mxu0 %v18514_v13  ;;  %v13964_v37 = vld [vmem:[%s24348_s1 + $0x638] sm:$0xff]  ;;  %v13966_v40 = vld [vmem:[%s24348_s1 + $0x648] sm:$0xff] }
 0x424   :  { %15488 = vmatprep.subr.bf16.mxu0 %v18357_v0  ;;  %v13968_v41 = vld [vmem:[%s24348_s1 + $0x658] sm:$0xff] }
 0x425   :  { %13934 = vmatmul.mubr.msk.bf16.gmra.mrb[56].mxu0 %vm799_vm2, %v2666_v6  ;;  %13947 = vmatmul.mubr.msk.bf16.gmra.mrb[56].mxu1 %vm799_vm2, %v2666_v6  ;;  %v13965_v6 = vld [vmem:[%s24348_s1 + $0x640] sm:$0xff] }
 0x426   :  { %v2575_v42 = vpop.f32.mrb[108].mxu1  ;;  %2831 = vmatprep.mubr.bf16.mxu0 %v18358_v52  ;;  %2984 = vmatprep.mubr.bf16.mxu1 %v18358_v52 }
 0x427   :  { %v2577_v44 = vpop.f32.mrb[109].mxu1  ;;  %15490 = vmatpush1.bf16.msra.mxu0 %v18526_v16 }
 0x428   :  { %15491 = vmatprep.subr.bf16.mxu0 %v18357_v0  ;;  %v13970_v44 = vld [vmem:[%s24348_s1 + $0x668] sm:$0xff] }
 0x42a   :  { %v2580_v9 = vpop.f32.mrb[110].mxu1 }
 0x42b   :  { %v2667_v45 = vpack.c.bf16 %v2580_v9, %v2575_v42  ;;  %v2582_v2 = vpop.f32.mrb[111].mxu1  ;;  %15493 = vmatpush1.bf16.msra.mxu0 %v18538_v19  ;;  %v13967_v42 = vld [vmem:[%s24348_s1 + $0x650] sm:$0xff]  ;;  %v13969_v9 = vld [vmem:[%s24348_s1 + $0x660] sm:$0xff] }
 0x42c   :  { %15494 = vmatprep.subr.bf16.mxu0 %v18357_v0  ;;  %v13971_v2 = vld [vmem:[%s24348_s1 + $0x670] sm:$0xff] }
 0x42d   :  { %13935 = vmatmul.mubr.msk.bf16.gmra.mrb[60].mxu0 %vm799_vm2, %v2667_v45  ;;  %13948 = vmatmul.mubr.msk.bf16.gmra.mrb[60].mxu1 %vm799_vm2, %v2667_v45  ;;  %v13972_v45 = vld [vmem:[%s24348_s1 + $0x678] sm:$0xff] }
 0x42e   :  { %v2585_v13 = vpop.f32.mrb[112].mxu1  ;;  %2841 = vmatprep.mubr.bf16.mxu0 %v18358_v52  ;;  %2994 = vmatprep.mubr.bf16.mxu1 %v18358_v52 }
 0x42f   :  { %v2587_v24 = vpop.f32.mrb[113].mxu1  ;;  %15496 = vmatpush1.bf16.msra.mxu0 %v18550_v22 }
 0x430   :  { %15497 = vmatprep.subr.bf16.mxu0 %v18357_v0  ;;  %v13973_v24 = vld [vmem:[%s24348_s1 + $0x680] sm:$0xff] }
 0x432   :  { %v2590_v16 = vpop.f32.mrb[114].mxu1 }
 0x433   :  { %v2668_v39 = vpack.c.bf16 %v2590_v16, %v2585_v13  ;;  %v2592_v51 = vpop.f32.mrb[115].mxu1  ;;  %15499 = vmatpush1.bf16.msra.mxu0 %v18566_v26  ;;  %v13974_v13 = vld [vmem:[%s24348_s1 + $0x688] sm:$0xff]  ;;  %v13976_v16 = vld [vmem:[%s24348_s1 + $0x698] sm:$0xff] }
 0x434   :  { %15500 = vmatprep.subr.bf16.mxu0 %v18357_v0  ;;  %v13978_v51 = vld [vmem:[%s24348_s1 + $0x6a8] sm:$0xff] }
 0x435   :  { %13936 = vmatmul.mubr.msk.bf16.gmra.mrb[64].mxu0 %vm799_vm2, %v2668_v39  ;;  %13949 = vmatmul.mubr.msk.bf16.gmra.mrb[64].mxu1 %vm799_vm2, %v2668_v39  ;;  %v13975_v39 = vld [vmem:[%s24348_s1 + $0x690] sm:$0xff] }
 0x436   :  { %v2595_v19 = vpop.f32.mrb[116].mxu1  ;;  %2851 = vmatprep.mubr.bf16.mxu0 %v18358_v52  ;;  %3004 = vmatprep.mubr.bf16.mxu1 %v18358_v52 }
 0x437   :  { %v2597_v62 = vpop.f32.mrb[117].mxu1  ;;  %15502 = vmatpush1.bf16.msra.mxu0 %v18578_v29 }
 0x438   :  { %15503 = vmatprep.subr.bf16.mxu0 %v18357_v0  ;;  %v13980_v62 = vld [vmem:[%s24348_s1 + $0x6b8] sm:$0xff] }
 0x43a   :  { %v2600_v22 = vpop.f32.mrb[118].mxu1 }
 0x43b   :  { %v2669_v14 = vpack.c.bf16 %v2600_v22, %v2595_v19  ;;  %v2602_v31 = vpop.f32.mrb[119].mxu1  ;;  %15505 = vmatpush1.bf16.msra.mxu0 %v18590_v32  ;;  %v13977_v19 = vld [vmem:[%s24348_s1 + $0x6a0] sm:$0xff]  ;;  %v13979_v22 = vld [vmem:[%s24348_s1 + $0x6b0] sm:$0xff] }
 0x43c   :  { %15506 = vmatprep.subr.bf16.mxu0 %v18357_v0  ;;  %v13981_v31 = vld [vmem:[%s24348_s1 + $0x6c0] sm:$0xff] }
 0x43d   :  { %13937 = vmatmul.mubr.msk.bf16.gmra.mrb[68].mxu0 %vm799_vm2, %v2669_v14  ;;  %13950 = vmatmul.mubr.msk.bf16.gmra.mrb[68].mxu1 %vm799_vm2, %v2669_v14  ;;  %v13982_v14 = vld [vmem:[%s24348_s1 + $0x6c8] sm:$0xff] }
 0x43e   :  { %v2605_v26 = vpop.f32.mrb[120].mxu1  ;;  %2861 = vmatprep.mubr.bf16.mxu0 %v18358_v52  ;;  %3014 = vmatprep.mubr.bf16.mxu1 %v18358_v52 }
 0x43f   :  { %v2607_v47 = vpop.f32.mrb[121].mxu1  ;;  %15508 = vmatpush1.bf16.msra.mxu0 %v18602_v35 }
 0x440   :  { %15509 = vmatprep.subr.bf16.mxu0 %v18357_v0  ;;  %v13983_v47 = vld [vmem:[%s24348_s1 + $0x6d0] sm:$0xff] }
 0x442   :  { %v2610_v29 = vpop.f32.mrb[122].mxu1 }
 0x443   :  { %v2670_v48 = vpack.c.bf16 %v2610_v29, %v2605_v26  ;;  %v2612_v49 = vpop.f32.mrb[123].mxu1  ;;  %15511 = vmatpush1.bf16.msra.mxu0 %v18614_v38  ;;  %v13984_v26 = vld [vmem:[%s24348_s1 + $0x6d8] sm:$0xff]  ;;  %v13986_v29 = vld [vmem:[%s24348_s1 + $0x6e8] sm:$0xff] }
 0x444   :  { %15512 = vmatprep.subr.bf16.mxu0 %v18357_v0  ;;  %v13988_v49 = vld [vmem:[%s24348_s1 + $0x6f8] sm:$0xff] }
 0x445   :  { %13938 = vmatmul.mubr.msk.bf16.gmra.mrb[72].mxu0 %vm799_vm2, %v2670_v48  ;;  %13951 = vmatmul.mubr.msk.bf16.gmra.mrb[72].mxu1 %vm799_vm2, %v2670_v48  ;;  %v13985_v48 = vld [vmem:[%s24348_s1 + $0x6e0] sm:$0xff] }
 0x446   :  { %v2615_v32 = vpop.f32.mrb[124].mxu1  ;;  %2871 = vmatprep.mubr.bf16.mxu0 %v18358_v52  ;;  %3024 = vmatprep.mubr.bf16.mxu1 %v18358_v52 }
 0x447   :  { %v2617_v50 = vpop.f32.mrb[125].mxu1  ;;  %15514 = vmatpush1.bf16.msra.mxu0 %v18632_v43  ;;  %v17504_v43 = vld [vmem:[%s24349_s2 + $0x104] ss:$16 sps:$4 sm:$0xff]  }
 0x448   :  { %15515 = vmatprep.subr.bf16.mxu0 %v18357_v0  ;;  %v13990_v50 = vld [vmem:[%s24348_s1 + $0x708] sm:$0xff] }
 0x44a   :  { %v2620_v35 = vpop.f32.mrb[126].mxu1 }
 0x44b   :  { %v2671_v53 = vpack.c.bf16 %v2620_v35, %v2615_v32  ;;  %v2622_v54 = vpop.f32.mrb[127].mxu1  ;;  %15517 = vmatpush1.bf16.msra.mxu0 %v18644_v46  ;;  %v13987_v32 = vld [vmem:[%s24348_s1 + $0x6f0] sm:$0xff]  ;;  %v13989_v35 = vld [vmem:[%s24348_s1 + $0x700] sm:$0xff] }
 0x44c   :  { %3582 = vmatprep.subr.bf16.mxu0 %v17504_v43  ;;  %v13991_v54 = vld [vmem:[%s24348_s1 + $0x710] sm:$0xff]  ;;  %v13996_v43 = vld [vmem:[%s24348_s1 + $0x738] sm:$0xff] }
 0x44d   :  { %13939 = vmatmul.mubr.msk.bf16.gmra.mrb[76].mxu0 %vm799_vm2, %v2671_v53  ;;  %13952 = vmatmul.mubr.msk.bf16.gmra.mrb[76].mxu1 %vm799_vm2, %v2671_v53  ;;  %v13992_v53 = vld [vmem:[%s24348_s1 + $0x718] sm:$0xff] }
 0x44e   :  { %v2625_v38 = vpop.f32.mrb[128].mxu1  ;;  %2881 = vmatprep.mubr.bf16.mxu0 %v18358_v52  ;;  %3034 = vmatprep.mubr.bf16.mxu1 %v18358_v52 }
 0x44f   :  { %v2627_v55 = vpop.f32.mrb[129].mxu1 }
 0x450   :  { %v13993_v55 = vld [vmem:[%s24348_s1 + $0x720] sm:$0xff] }
 0x452   :  { %v2630_v0 = vpop.f32.mrb[130].mxu1 }
 0x453   :  { %v2672_v46 = vpack.c.bf16 %v2630_v0, %v2625_v38  ;;  %v2632_v57 = vpop.f32.mrb[131].mxu1  ;;  %v13994_v38 = vld [vmem:[%s24348_s1 + $0x728] sm:$0xff]  ;;  %v13995_v0 = vld [vmem:[%s24348_s1 + $0x730] sm:$0xff] }
 0x454   :  { %v14000_v57 = vld [vmem:[%s24348_s1 + $0x758] sm:$0xff] }
 0x455   :  { %13940 = vmatmul.mubr.msk.bf16.gmra.mrb[80].mxu0 %vm799_vm2, %v2672_v46  ;;  %13953 = vmatmul.mubr.msk.bf16.gmra.mrb[80].mxu1 %vm799_vm2, %v2672_v46  ;;  %v13997_v46 = vld [vmem:[%s24348_s1 + $0x740] sm:$0xff] }
 0x456   :  { %v2635_v59 = vpop.f32.mrb[132].mxu1  ;;  %2891 = vmatprep.mubr.bf16.mxu0 %v18358_v52  ;;  %3044 = vmatprep.mubr.bf16.mxu1 %v18358_v52 }
 0x457   :  { %v2637_v60 = vpop.f32.mrb[133].mxu1 }
 0x458   :  { %v17511_v60 = vld [vmem:[%s24349_s2 + $0x12c] ss:$16 sps:$4 sm:$0x3f]  }
 0x459   :  { %14058 = vmatprep.subr.msk.bf16.mxu1 %vm836_vm1, %v17511_v60 }
 0x45a   :  { %v2640_v61 = vpop.f32.mrb[134].mxu1 }
 0x45b   :  { %v2673_v63 = vpack.c.bf16 %v2640_v61, %v2635_v59  ;;  %v2642_v1 = vpop.f32.mrb[135].mxu1  ;;  %v14002_v59 = vld [vmem:[%s24348_s1 + $0x768] sm:$0xff] }
 0x45c   :  { %v17513_v61 = vld [vmem:[%s24349_s2 + $0x128] ss:$16 sps:$4 sm:$0x3f]  }
 0x45d   :  { %13941 = vmatmul.mubr.msk.bf16.gmra.mrb[84].mxu0 %vm799_vm2, %v2673_v63  ;;  %13954 = vmatmul.mubr.msk.bf16.gmra.mrb[84].mxu1 %vm799_vm2, %v2673_v63  ;;  %v14001_v63 = vld [vmem:[%s24348_s1 + $0x760] sm:$0xff]  ;;  %v14004_v1 = vld [vmem:[%s24348_s1 + $0x778] sm:$0xff] }
 0x45e   :  { %v2645_v3 = vpop.f32.mrb[136].mxu1  ;;  %2901 = vmatprep.mubr.bf16.mxu0 %v18358_v52  ;;  %3054 = vmatprep.mubr.bf16.mxu1 %v18358_v52 }
 0x45f   :  { %v2647_v5 = vpop.f32.mrb[137].mxu1 }
 0x460   :  { %v14003_v5 = vld [vmem:[%s24348_s1 + $0x770] sm:$0xff] }
 0x462   :  { %v2650_v7 = vpop.f32.mrb[138].mxu1 }
 0x463   :  { %v2674_v8 = vpack.c.bf16 %v2650_v7, %v2645_v3  ;;  %v2652_v10 = vpop.f32.mrb[139].mxu1  ;;  %v3577_v3 = vsel %vm836_vm1, %v17513_v61, 0 }
 0x464   :  { %3738 = vmatpush1.bf16.msra.mxu1 %v3577_v3  ;;  %v3986_v3 = vlaneseq }
 0x465   :  { %13942 = vmatmul.mubr.msk.bf16.gmra.mrb[88].mxu0 %vm799_vm2, %v2674_v8  ;;  %13955 = vmatmul.mubr.msk.bf16.gmra.mrb[88].mxu1 %vm799_vm2, %v2674_v8 }
 0x466   :  { %v2655_v11 = vpop.f32.mrb[140].mxu1  ;;  %2911 = vmatprep.mubr.bf16.mxu0 %v18358_v52  ;;  %3064 = vmatprep.mubr.bf16.mxu1 %v18358_v52 }
 0x467   :  { %v2657_v12 = vpop.f32.mrb[141].mxu1 }
 0x46a   :  { %v2660_v15 = vpop.f32.mrb[142].mxu1 }
 0x46b   :  { %v2675_v17 = vpack.c.bf16 %v2660_v15, %v2655_v11  ;;  %v2662_v18 = vpop.f32.mrb[143].mxu1 }
 0x46d   :  { %13943 = vmatmul.mubr.msk.bf16.gmra.mrb[92].mxu0 %vm799_vm2, %v2675_v17  ;;  %13956 = vmatmul.mubr.msk.bf16.gmra.mrb[92].mxu1 %vm799_vm2, %v2675_v17 }
 0x46e   :  { %14005 = vmatprep.mubr.msk.f32.mxu0 %vm158_vm0, %v13958_v20  ;;  %3767 = vmatprep.mubr.bf16.mxu1 %v18358_v52 }
 0x475   :  { %3357 = vmatmul.mubr.f32.vlgmr.msra.gmra.mrb[144].mxu0 %v13957_v21 }
 0x476   :  { %14006 = vmatprep.mubr.msk.f32.mxu0 %vm158_vm0, %v13960_v23  ;;  %3583 = vmatpush1.bf16.msra.mxu0 %v17502_v25 }
 0x477   :  { %14045 = vmatprep.subr.msk.bf16.mxu0 %vm836_vm1, %v17505_v27 }
 0x479   :  { %3362 = vmatmul.mubr.f32.gmra.mrb[146].mxu0 %v13959_v30 }
 0x47a   :  { %14007 = vmatprep.mubr.msk.f32.mxu0 %vm158_vm0, %v13962_v33  ;;  %3585 = vmatpush1.bf16.msra.mxu0 %v3571_v34 }
 0x47d   :  { %3367 = vmatmul.mubr.f32.gmra.mrb[148].mxu0 %v13961_v36 }
 0x47e   :  { %14008 = vmatprep.mubr.msk.f32.mxu0 %vm158_vm0, %v13964_v37 }
 0x481   :  { %3372 = vmatmul.mubr.f32.gmra.mrb[150].mxu0 %v13963_v4 }
 0x482   :  { %14009 = vmatprep.mubr.msk.f32.mxu0 %vm158_vm0, %v13966_v40 }
 0x485   :  { %3377 = vmatmul.mubr.f32.gmra.mrb[152].mxu0 %v13965_v6 }
 0x486   :  { %14010 = vmatprep.mubr.msk.f32.mxu0 %vm158_vm0, %v13968_v41 }
 0x489   :  { %3382 = vmatmul.mubr.f32.gmra.mrb[154].mxu0 %v13967_v42 }
 0x48a   :  { %14011 = vmatprep.mubr.msk.f32.mxu0 %vm158_vm0, %v13970_v44 }
 0x48d   :  { %3387 = vmatmul.mubr.f32.gmra.mrb[156].mxu0 %v13969_v9 }
 0x48e   :  { %14012 = vmatprep.mubr.msk.f32.mxu0 %vm158_vm0, %v13972_v45 }
 0x491   :  { %3392 = vmatmul.mubr.f32.gmra.mrb[158].mxu0 %v13971_v2 }
 0x492   :  { %14013 = vmatprep.mubr.msk.f32.mxu0 %vm158_vm0, %v13974_v13 }
 0x495   :  { %3397 = vmatmul.mubr.f32.gmra.mrb[160].mxu0 %v13973_v24 }
 0x496   :  { %14014 = vmatprep.mubr.msk.f32.mxu0 %vm158_vm0, %v13976_v16 }
 0x499   :  { %3402 = vmatmul.mubr.f32.gmra.mrb[162].mxu0 %v13975_v39 }
 0x49a   :  { %14015 = vmatprep.mubr.msk.f32.mxu0 %vm158_vm0, %v13978_v51 }
 0x49d   :  { %3407 = vmatmul.mubr.f32.gmra.mrb[164].mxu0 %v13977_v19 }
 0x49e   :  { %14016 = vmatprep.mubr.msk.f32.mxu0 %vm158_vm0, %v13980_v62 }
 0x4a1   :  { %3412 = vmatmul.mubr.f32.gmra.mrb[166].mxu0 %v13979_v22 }
 0x4a2   :  { %14017 = vmatprep.mubr.msk.f32.mxu0 %vm158_vm0, %v13982_v14 }
 0x4a5   :  { %3417 = vmatmul.mubr.f32.gmra.mrb[168].mxu0 %v13981_v31 }
 0x4a6   :  { %14018 = vmatprep.mubr.msk.f32.mxu0 %vm158_vm0, %v13984_v26 }
 0x4a9   :  { %3422 = vmatmul.mubr.f32.gmra.mrb[170].mxu0 %v13983_v47 }
 0x4aa   :  { %14019 = vmatprep.mubr.msk.f32.mxu0 %vm158_vm0, %v13986_v29 }
 0x4ad   :  { %3427 = vmatmul.mubr.f32.gmra.mrb[172].mxu0 %v13985_v48 }
 0x4ae   :  { %14020 = vmatprep.mubr.msk.f32.mxu0 %vm158_vm0, %v13988_v49 }
 0x4b1   :  { %3432 = vmatmul.mubr.f32.gmra.mrb[174].mxu0 %v13987_v32 }
 0x4b2   :  { %14021 = vmatprep.mubr.msk.f32.mxu0 %vm158_vm0, %v13990_v50 }
 0x4b5   :  { %3437 = vmatmul.mubr.f32.gmra.mrb[176].mxu0 %v13989_v35 }
 0x4b6   :  { %14022 = vmatprep.mubr.msk.f32.mxu0 %vm158_vm0, %v13992_v53 }
 0x4b9   :  { %3442 = vmatmul.mubr.f32.gmra.mrb[178].mxu0 %v13991_v54 }
 0x4ba   :  { %14023 = vmatprep.mubr.msk.f32.mxu0 %vm158_vm0, %v13994_v38 }
 0x4bd   :  { %3447 = vmatmul.mubr.f32.gmra.mrb[180].mxu0 %v13993_v55 }
 0x4be   :  { %14024 = vmatprep.mubr.msk.f32.mxu0 %vm158_vm0, %v13996_v43 }
 0x4c1   :  { %3452 = vmatmul.mubr.f32.gmra.mrb[182].mxu0 %v13995_v0 }
 0x4c2   :  { %14025 = vmatprep.mubr.msk.f32.mxu0 %vm158_vm0, %v13998_v56 }
 0x4c5   :  { %3457 = vmatmul.mubr.f32.gmra.mrb[184].mxu0 %v13997_v46 }
 0x4c6   :  { %14026 = vmatprep.mubr.msk.f32.mxu0 %vm158_vm0, %v14000_v57 }
 0x4c9   :  { %3462 = vmatmul.mubr.f32.gmra.mrb[186].mxu0 %v13999_v58 }
 0x4ca   :  { %14027 = vmatprep.mubr.msk.f32.mxu0 %vm158_vm0, %v14002_v59 }
 0x4cd   :  { %3467 = vmatmul.mubr.f32.gmra.mrb[188].mxu0 %v14001_v63 }
 0x4ce   :  { %14028 = vmatprep.mubr.msk.f32.mxu0 %vm158_vm0, %v14004_v1  ;;  %v4199_v1 = vld [vmem:[%s24352_s5 + $0x8] sm:$0xff] }
 0x4d1   :  { %3472 = vmatmul.mubr.f32.gmra.mrb[190].mxu0 %v14003_v5  ;;  %v3987_v5 = vshrl.u32 %v3986_v3, 7 }
 0x4d2   :  { %3614 = vmatprep.mubr.bf16.mxu0 %v18358_v52 }
 0x548   :  { %v3358_v7 = vpop.f32.mrb[144].mxu0 }
 0x549   :  { %v3360_v8 = vpop.f32.mrb[145].mxu0 }
 0x54a   :  { %v3984_v8 = vld [vmem:[%s24350_s3] sm:$0xf] }
 0x54c   :  { %v3363_v10 = vpop.f32.mrb[146].mxu0 }
 0x54d   :  { %v3477_v11 = vpack.c.bf16 %v3363_v10, %v3358_v7  ;;  %v3365_v12 = vpop.f32.mrb[147].mxu0  ;;  %v19993_v7 = vsub.s32 0, %v3987_v5  ;;  %v20000_v10 = vsub.s32 1, %v3987_v5 }
 0x54f   :  { %14046 = vmatmul.mubr.msk.bf16.vlgmr.msra.gmra.mrb[48].mxu0 %vm799_vm2, %v3477_v11  ;;  %14059 = vmatmul.mubr.msk.bf16.vlgmr.msra.gmra.mrb[48].mxu1 %vm799_vm2, %v3477_v11  ;;  %24549 = vst [vmem:[#allocation8_spill] sm:$0xff] %v19993_v7  ;;  %24551 = vst [vmem:[#allocation10_spill] sm:$0xff] %v20000_v10  ;;  %v20002_v11 = vsub.s32 3, %v3987_v5  ;;  %v20005_v12 = vrot.slane %v3984_v8, %v19993_v7  ;;  %v4885_v7 = vld [vmem:[%s24351_s4 + $0x88] sm:$0xff] }
 0x550   :  { %v3368_v15 = vpop.f32.mrb[148].mxu0  ;;  %3624 = vmatprep.mubr.bf16.mxu0 %v18358_v52  ;;  %3777 = vmatprep.mubr.bf16.mxu1 %v18358_v52 }
 0x551   :  { %v3370_v17 = vpop.f32.mrb[149].mxu0  ;;  %24552 = vst [vmem:[#allocation11_spill] sm:$0xff] %v20002_v11 }
 0x552   :  { %v20011_v17 = vrot.slane %v3984_v8, %v20000_v10  ;;  %v20422_v10 = vld [vmem:[%s24352_s5 + $0x138] sm:$0xff] }
 0x553   :  { %24570 = vst [vmem:[#allocation29_spill] sm:$0xff] %v20422_v10 }
 0x554   :  { %v3373_v18 = vpop.f32.mrb[150].mxu0 }
 0x555   :  { %v3478_v20 = vpack.c.bf16 %v3373_v18, %v3368_v15  ;;  %v3375_v21 = vpop.f32.mrb[151].mxu0  ;;  %v20014_v18 = vrot.slane %v3984_v8, %v20002_v11  ;;  %v20415_v11 = vld [vmem:[%s24352_s5 + $0x78] sm:$0xff] }
 0x557   :  { %14047 = vmatmul.mubr.msk.bf16.gmra.mrb[52].mxu0 %vm799_vm2, %v3478_v20  ;;  %14060 = vmatmul.mubr.msk.bf16.gmra.mrb[52].mxu1 %vm799_vm2, %v3478_v20 }
 0x558   :  { %v3378_v23 = vpop.f32.mrb[152].mxu0  ;;  %3634 = vmatprep.mubr.bf16.mxu0 %v18358_v52  ;;  %3787 = vmatprep.mubr.bf16.mxu1 %v18358_v52 }
 0x559   :  { %v3380_v25 = vpop.f32.mrb[153].mxu0 }
 0x55c   :  { %v3383_v27 = vpop.f32.mrb[154].mxu0 }
 0x55d   :  { %v3479_v28 = vpack.c.bf16 %v3383_v27, %v3378_v23  ;;  %v3385_v30 = vpop.f32.mrb[155].mxu0 }
 0x55f   :  { %14048 = vmatmul.mubr.msk.bf16.gmra.mrb[56].mxu0 %vm799_vm2, %v3479_v28  ;;  %14061 = vmatmul.mubr.msk.bf16.gmra.mrb[56].mxu1 %vm799_vm2, %v3479_v28 }
 0x560   :  { %v3388_v33 = vpop.f32.mrb[156].mxu0  ;;  %3644 = vmatprep.mubr.bf16.mxu0 %v18358_v52  ;;  %3797 = vmatprep.mubr.bf16.mxu1 %v18358_v52 }
 0x561   :  { %v3390_v34 = vpop.f32.mrb[157].mxu0 }
 0x564   :  { %v3393_v36 = vpop.f32.mrb[158].mxu0 }
 0x565   :  { %v3480_v37 = vpack.c.bf16 %v3393_v36, %v3388_v33  ;;  %v3395_v4 = vpop.f32.mrb[159].mxu0 }
 0x567   :  { %14049 = vmatmul.mubr.msk.bf16.gmra.mrb[60].mxu0 %vm799_vm2, %v3480_v37  ;;  %14062 = vmatmul.mubr.msk.bf16.gmra.mrb[60].mxu1 %vm799_vm2, %v3480_v37 }
 0x568   :  { %v3398_v40 = vpop.f32.mrb[160].mxu0  ;;  %3654 = vmatprep.mubr.bf16.mxu0 %v18358_v52  ;;  %3807 = vmatprep.mubr.bf16.mxu1 %v18358_v52 }
 0x569   :  { %v3400_v6 = vpop.f32.mrb[161].mxu0 }
 0x56c   :  { %v3403_v41 = vpop.f32.mrb[162].mxu0 }
 0x56d   :  { %v3481_v42 = vpack.c.bf16 %v3403_v41, %v3398_v40  ;;  %v3405_v44 = vpop.f32.mrb[163].mxu0 }
 0x56f   :  { %14050 = vmatmul.mubr.msk.bf16.gmra.mrb[64].mxu0 %vm799_vm2, %v3481_v42  ;;  %14063 = vmatmul.mubr.msk.bf16.gmra.mrb[64].mxu1 %vm799_vm2, %v3481_v42 }
 0x570   :  { %v3408_v9 = vpop.f32.mrb[164].mxu0  ;;  %3664 = vmatprep.mubr.bf16.mxu0 %v18358_v52  ;;  %3817 = vmatprep.mubr.bf16.mxu1 %v18358_v52 }
 0x571   :  { %v3410_v45 = vpop.f32.mrb[165].mxu0 }
 0x574   :  { %v3413_v2 = vpop.f32.mrb[166].mxu0 }
 0x575   :  { %v3482_v13 = vpack.c.bf16 %v3413_v2, %v3408_v9  ;;  %v3415_v24 = vpop.f32.mrb[167].mxu0 }
 0x577   :  { %14051 = vmatmul.mubr.msk.bf16.gmra.mrb[68].mxu0 %vm799_vm2, %v3482_v13  ;;  %14064 = vmatmul.mubr.msk.bf16.gmra.mrb[68].mxu1 %vm799_vm2, %v3482_v13 }
 0x578   :  { %v3418_v16 = vpop.f32.mrb[168].mxu0  ;;  %3674 = vmatprep.mubr.bf16.mxu0 %v18358_v52  ;;  %3827 = vmatprep.mubr.bf16.mxu1 %v18358_v52 }
 0x579   :  { %v3420_v39 = vpop.f32.mrb[169].mxu0 }
 0x57c   :  { %v3423_v51 = vpop.f32.mrb[170].mxu0 }
 0x57d   :  { %v3483_v19 = vpack.c.bf16 %v3423_v51, %v3418_v16  ;;  %v3425_v62 = vpop.f32.mrb[171].mxu0 }
 0x57f   :  { %14052 = vmatmul.mubr.msk.bf16.gmra.mrb[72].mxu0 %vm799_vm2, %v3483_v19  ;;  %14065 = vmatmul.mubr.msk.bf16.gmra.mrb[72].mxu1 %vm799_vm2, %v3483_v19 }
 0x580   :  { %v3428_v22 = vpop.f32.mrb[172].mxu0  ;;  %3684 = vmatprep.mubr.bf16.mxu0 %v18358_v52  ;;  %3837 = vmatprep.mubr.bf16.mxu1 %v18358_v52 }
 0x581   :  { %v3430_v14 = vpop.f32.mrb[173].mxu0 }
 0x584   :  { %v3433_v31 = vpop.f32.mrb[174].mxu0 }
 0x585   :  { %v3484_v26 = vpack.c.bf16 %v3433_v31, %v3428_v22  ;;  %v3435_v47 = vpop.f32.mrb[175].mxu0 }
 0x587   :  { %14053 = vmatmul.mubr.msk.bf16.gmra.mrb[76].mxu0 %vm799_vm2, %v3484_v26  ;;  %14066 = vmatmul.mubr.msk.bf16.gmra.mrb[76].mxu1 %vm799_vm2, %v3484_v26 }
 0x588   :  { %v3438_v29 = vpop.f32.mrb[176].mxu0  ;;  %3694 = vmatprep.mubr.bf16.mxu0 %v18358_v52  ;;  %3847 = vmatprep.mubr.bf16.mxu1 %v18358_v52 }
 0x589   :  { %v3440_v48 = vpop.f32.mrb[177].mxu0 }
 0x58c   :  { %v3443_v49 = vpop.f32.mrb[178].mxu0 }
 0x58d   :  { %v3485_v32 = vpack.c.bf16 %v3443_v49, %v3438_v29  ;;  %v3445_v50 = vpop.f32.mrb[179].mxu0 }
 0x58f   :  { %14054 = vmatmul.mubr.msk.bf16.gmra.mrb[80].mxu0 %vm799_vm2, %v3485_v32  ;;  %14067 = vmatmul.mubr.msk.bf16.gmra.mrb[80].mxu1 %vm799_vm2, %v3485_v32 }
 0x590   :  { %v3448_v35 = vpop.f32.mrb[180].mxu0  ;;  %3704 = vmatprep.mubr.bf16.mxu0 %v18358_v52  ;;  %3857 = vmatprep.mubr.bf16.mxu1 %v18358_v52 }
 0x591   :  { %v3450_v53 = vpop.f32.mrb[181].mxu0 }
 0x594   :  { %v3453_v54 = vpop.f32.mrb[182].mxu0 }
 0x595   :  { %v3486_v38 = vpack.c.bf16 %v3453_v54, %v3448_v35  ;;  %v3455_v55 = vpop.f32.mrb[183].mxu0 }
 0x597   :  { %14055 = vmatmul.mubr.msk.bf16.gmra.mrb[84].mxu0 %vm799_vm2, %v3486_v38  ;;  %14068 = vmatmul.mubr.msk.bf16.gmra.mrb[84].mxu1 %vm799_vm2, %v3486_v38 }
 0x598   :  { %v3458_v43 = vpop.f32.mrb[184].mxu0  ;;  %3714 = vmatprep.mubr.bf16.mxu0 %v18358_v52  ;;  %3867 = vmatprep.mubr.bf16.mxu1 %v18358_v52 }
 0x599   :  { %v3460_v0 = vpop.f32.mrb[185].mxu0 }
 0x59c   :  { %v3463_v56 = vpop.f32.mrb[186].mxu0 }
 0x59d   :  { %v3487_v46 = vpack.c.bf16 %v3463_v56, %v3458_v43  ;;  %v3465_v57 = vpop.f32.mrb[187].mxu0 }
 0x59f   :  { %14056 = vmatmul.mubr.msk.bf16.gmra.mrb[88].mxu0 %vm799_vm2, %v3487_v46  ;;  %14069 = vmatmul.mubr.msk.bf16.gmra.mrb[88].mxu1 %vm799_vm2, %v3487_v46 }
 0x5a0   :  { %v3468_v58 = vpop.f32.mrb[188].mxu0  ;;  %3724 = vmatprep.mubr.bf16.mxu0 %v18358_v52  ;;  %3877 = vmatprep.mubr.bf16.mxu1 %v18358_v52  ;;  %v19995_v52 = vsub.s32 2, %v3987_v5 }
 0x5a1   :  { %v3470_v59 = vpop.f32.mrb[189].mxu0 }
 0x5a2   :  { %24550 = vst [vmem:[#allocation9_spill] sm:$0xff] %v19995_v52  ;;  %v20008_v15 = vrot.slane %v3984_v8, %v19995_v52 }
 0x5a4   :  { %v3473_v60 = vpop.f32.mrb[190].mxu0 }
 0x5a5   :  { %v3488_v61 = vpack.c.bf16 %v3473_v60, %v3468_v58  ;;  %v3475_v63 = vpop.f32.mrb[191].mxu0 }
 0x5a7   :  { %14057 = vmatmul.mubr.msk.bf16.gmra.mrb[92].mxu0 %vm799_vm2, %v3488_v61  ;;  %14070 = vmatmul.mubr.msk.bf16.gmra.mrb[92].mxu1 %vm799_vm2, %v3488_v61 }
 0x5a8   :  { %14071 = vmatprep.mubr.msk.f32.mxu1 %vm4222_vm3, %v4199_v1 }
 0x622   :  { %v3616_v20 = vpop.f32.mrb[48].mxu0  ;;  %v3769_v21 = vpop.f32.mrb[48].mxu1 }
 0x623   :  { %v4006_v23 = vadd.f32 %v20005_v12, %v3616_v20  ;;  %v4008_v25 = vadd.f32 %v20008_v15, %v3769_v21  ;;  %v3618_v27 = vpop.f32.mrb[49].mxu0  ;;  %v3771_v28 = vpop.f32.mrb[49].mxu1 }
 0x624   :  { %v4007_v30 = vadd.f32 %v20011_v17, %v3618_v27  ;;  %v4009_v33 = vadd.f32 %v20014_v18, %v3771_v28  ;;  %v3620_v34 = vpop.f32.mrb[50].mxu0  ;;  %v3773_v36 = vpop.f32.mrb[50].mxu1 }
 0x625   :  { %v4010_v37 = vadd.f32 %v20005_v12, %v3620_v34  ;;  %v4012_v4 = vadd.f32 %v20008_v15, %v3773_v36  ;;  %v3622_v40 = vpop.f32.mrb[51].mxu0  ;;  %v3775_v6 = vpop.f32.mrb[51].mxu1  ;;  %v4102_v44 = vmax.f32 %v4006_v23, 0.0  ;;  %v4104_v9 = vmax.f32 %v4008_v25, 0.0 }
 0x626   :  { %v4011_v41 = vadd.f32 %v20011_v17, %v3622_v40  ;;  %v4013_v42 = vadd.f32 %v20014_v18, %v3775_v6  ;;  %v4103_v13 = vmax.f32 %v4007_v30, 0.0  ;;  %v4105_v24 = vmax.f32 %v4009_v33, 0.0 }
 0x627   :  { %v4106_v45 = vmax.f32 %v4010_v37, 0.0  ;;  %v4108_v2 = vmax.f32 %v4012_v4, 0.0 }
 0x628   :  { %v4107_v16 = vmax.f32 %v4011_v41, 0.0  ;;  %v4109_v39 = vmax.f32 %v4013_v42, 0.0 }
 0x629   :  { %v15520_v51 = vpack.c.bf16 %v4106_v45, %v4102_v44  ;;  %v20024_v19 = vpack.c.bf16 %v4108_v2, %v4104_v9 }
 0x62a   :  { %v15518_v62 = vpack.c.bf16 %v4107_v16, %v4103_v13  ;;  %v3626_v22 = vpop.f32.mrb[52].mxu0  ;;  %v3779_v14 = vpop.f32.mrb[52].mxu1  ;;  %v20026_v31 = vpack.c.bf16 %v4109_v39, %v4105_v24 }
 0x62b   :  { %v4014_v26 = vadd.f32 %v20005_v12, %v3626_v22  ;;  %v4016_v47 = vadd.f32 %v20008_v15, %v3779_v14  ;;  %v3628_v29 = vpop.f32.mrb[53].mxu0  ;;  %v3781_v48 = vpop.f32.mrb[53].mxu1 }
 0x62c   :  { %v4015_v49 = vadd.f32 %v20011_v17, %v3628_v29  ;;  %v4017_v32 = vadd.f32 %v20014_v18, %v3781_v48  ;;  %v3630_v50 = vpop.f32.mrb[54].mxu0  ;;  %v3783_v35 = vpop.f32.mrb[54].mxu1  ;;  %15519 = vmatprep.subr.bf16.mxu1 %v15518_v62  ;;  %15615 = vmatprep.subr.bf16.mxu0 %v15518_v62 }
 0x62d   :  { %v4018_v53 = vadd.f32 %v20005_v12, %v3630_v50  ;;  %v4020_v54 = vadd.f32 %v20008_v15, %v3783_v35  ;;  %v3632_v38 = vpop.f32.mrb[55].mxu0  ;;  %v3785_v55 = vpop.f32.mrb[55].mxu1  ;;  %15521 = vmatpush1.bf16.msra.mxu1 %v15520_v51  ;;  %15617 = vmatpush1.bf16.msra.mxu0 %v15520_v51  ;;  %v4110_v56 = vmax.f32 %v4014_v26, 0.0  ;;  %v4112_v46 = vmax.f32 %v4016_v47, 0.0 }
 0x62e   :  { %v4019_v43 = vadd.f32 %v20011_v17, %v3632_v38  ;;  %v4021_v0 = vadd.f32 %v20014_v18, %v3785_v55  ;;  %v4111_v59 = vmax.f32 %v4015_v49, 0.0  ;;  %v4113_v60 = vmax.f32 %v4017_v32, 0.0 }
 0x62f   :  { %v4114_v57 = vmax.f32 %v4018_v53, 0.0  ;;  %v4116_v58 = vmax.f32 %v4020_v54, 0.0 }
 0x630   :  { %v4115_v61 = vmax.f32 %v4019_v43, 0.0  ;;  %v4117_v63 = vmax.f32 %v4021_v0, 0.0 }
 0x631   :  { %v15524_v1 = vpack.c.bf16 %v4114_v57, %v4110_v56  ;;  %v20036_v3 = vpack.c.bf16 %v4116_v58, %v4112_v46 }
 0x632   :  { %v15522_v5 = vpack.c.bf16 %v4115_v61, %v4111_v59  ;;  %v3636_v8 = vpop.f32.mrb[56].mxu0  ;;  %v3789_v20 = vpop.f32.mrb[56].mxu1  ;;  %v20038_v21 = vpack.c.bf16 %v4117_v63, %v4113_v60 }
 0x633   :  { %v4022_v23 = vadd.f32 %v20005_v12, %v3636_v8  ;;  %v4024_v25 = vadd.f32 %v20008_v15, %v3789_v20  ;;  %v3638_v27 = vpop.f32.mrb[57].mxu0  ;;  %v3791_v28 = vpop.f32.mrb[57].mxu1 }
 0x634   :  { %v4023_v30 = vadd.f32 %v20011_v17, %v3638_v27  ;;  %v4025_v33 = vadd.f32 %v20014_v18, %v3791_v28  ;;  %v3640_v34 = vpop.f32.mrb[58].mxu0  ;;  %v3793_v36 = vpop.f32.mrb[58].mxu1  ;;  %15523 = vmatprep.subr.bf16.mxu1 %v15522_v5  ;;  %15619 = vmatprep.subr.bf16.mxu0 %v15522_v5 }
 0x635   :  { %v4026_v37 = vadd.f32 %v20005_v12, %v3640_v34  ;;  %v4028_v4 = vadd.f32 %v20008_v15, %v3793_v36  ;;  %v3642_v40 = vpop.f32.mrb[59].mxu0  ;;  %v3795_v6 = vpop.f32.mrb[59].mxu1  ;;  %15525 = vmatpush1.bf16.msra.mxu1 %v15524_v1  ;;  %15621 = vmatpush1.bf16.msra.mxu0 %v15524_v1  ;;  %v4118_v44 = vmax.f32 %v4022_v23, 0.0  ;;  %v4120_v9 = vmax.f32 %v4024_v25, 0.0 }
 0x636   :  { %v4027_v41 = vadd.f32 %v20011_v17, %v3642_v40  ;;  %v4029_v42 = vadd.f32 %v20014_v18, %v3795_v6  ;;  %v4119_v13 = vmax.f32 %v4023_v30, 0.0  ;;  %v4121_v24 = vmax.f32 %v4025_v33, 0.0 }
 0x637   :  { %v4122_v45 = vmax.f32 %v4026_v37, 0.0  ;;  %v4124_v2 = vmax.f32 %v4028_v4, 0.0 }
 0x638   :  { %v4123_v16 = vmax.f32 %v4027_v41, 0.0  ;;  %v4125_v39 = vmax.f32 %v4029_v42, 0.0 }
 0x639   :  { %v15528_v51 = vpack.c.bf16 %v4122_v45, %v4118_v44  ;;  %v20048_v62 = vpack.c.bf16 %v4124_v2, %v4120_v9 }
 0x63a   :  { %v15526_v22 = vpack.c.bf16 %v4123_v16, %v4119_v13  ;;  %v3646_v14 = vpop.f32.mrb[60].mxu0  ;;  %v3799_v26 = vpop.f32.mrb[60].mxu1  ;;  %v20050_v47 = vpack.c.bf16 %v4125_v39, %v4121_v24 }
 0x63b   :  { %v4030_v29 = vadd.f32 %v20005_v12, %v3646_v14  ;;  %v4032_v48 = vadd.f32 %v20008_v15, %v3799_v26  ;;  %v3648_v49 = vpop.f32.mrb[61].mxu0  ;;  %v3801_v32 = vpop.f32.mrb[61].mxu1 }
 0x63c   :  { %v4031_v50 = vadd.f32 %v20011_v17, %v3648_v49  ;;  %v4033_v35 = vadd.f32 %v20014_v18, %v3801_v32  ;;  %v3650_v53 = vpop.f32.mrb[62].mxu0  ;;  %v3803_v54 = vpop.f32.mrb[62].mxu1  ;;  %15527 = vmatprep.subr.bf16.mxu1 %v15526_v22  ;;  %15623 = vmatprep.subr.bf16.mxu0 %v15526_v22 }
 0x63d   :  { %v4034_v38 = vadd.f32 %v20005_v12, %v3650_v53  ;;  %v4036_v55 = vadd.f32 %v20008_v15, %v3803_v54  ;;  %v3652_v43 = vpop.f32.mrb[63].mxu0  ;;  %v3805_v0 = vpop.f32.mrb[63].mxu1  ;;  %15529 = vmatpush1.bf16.msra.mxu1 %v15528_v51  ;;  %15625 = vmatpush1.bf16.msra.mxu0 %v15528_v51  ;;  %v4126_v57 = vmax.f32 %v4030_v29, 0.0  ;;  %v4128_v58 = vmax.f32 %v4032_v48, 0.0 }
 0x63e   :  { %v4035_v56 = vadd.f32 %v20011_v17, %v3652_v43  ;;  %v4037_v46 = vadd.f32 %v20014_v18, %v3805_v0  ;;  %v4127_v61 = vmax.f32 %v4031_v50, 0.0  ;;  %v4129_v63 = vmax.f32 %v4033_v35, 0.0 }
 0x63f   :  { %v4130_v59 = vmax.f32 %v4034_v38, 0.0  ;;  %v4132_v60 = vmax.f32 %v4036_v55, 0.0 }
 0x640   :  { %v4131_v1 = vmax.f32 %v4035_v56, 0.0  ;;  %v4133_v5 = vmax.f32 %v4037_v46, 0.0 }
 0x641   :  { %v15532_v8 = vpack.c.bf16 %v4130_v59, %v4126_v57  ;;  %v20060_v20 = vpack.c.bf16 %v4132_v60, %v4128_v58 }
 0x642   :  { %v15530_v23 = vpack.c.bf16 %v4131_v1, %v4127_v61  ;;  %v3656_v25 = vpop.f32.mrb[64].mxu0  ;;  %v3809_v27 = vpop.f32.mrb[64].mxu1  ;;  %v20062_v28 = vpack.c.bf16 %v4133_v5, %v4129_v63 }
 0x643   :  { %v4038_v30 = vadd.f32 %v20005_v12, %v3656_v25  ;;  %v4040_v33 = vadd.f32 %v20008_v15, %v3809_v27  ;;  %v3658_v34 = vpop.f32.mrb[65].mxu0  ;;  %v3811_v36 = vpop.f32.mrb[65].mxu1 }
 0x644   :  { %v4039_v37 = vadd.f32 %v20011_v17, %v3658_v34  ;;  %v4041_v4 = vadd.f32 %v20014_v18, %v3811_v36  ;;  %v3660_v40 = vpop.f32.mrb[66].mxu0  ;;  %v3813_v6 = vpop.f32.mrb[66].mxu1  ;;  %15531 = vmatprep.subr.bf16.mxu1 %v15530_v23  ;;  %15627 = vmatprep.subr.bf16.mxu0 %v15530_v23 }
 0x645   :  { %v4042_v41 = vadd.f32 %v20005_v12, %v3660_v40  ;;  %v4044_v42 = vadd.f32 %v20008_v15, %v3813_v6  ;;  %v3662_v44 = vpop.f32.mrb[67].mxu0  ;;  %v3815_v9 = vpop.f32.mrb[67].mxu1  ;;  %15533 = vmatpush1.bf16.msra.mxu1 %v15532_v8  ;;  %15629 = vmatpush1.bf16.msra.mxu0 %v15532_v8  ;;  %v4134_v13 = vmax.f32 %v4038_v30, 0.0  ;;  %v4136_v24 = vmax.f32 %v4040_v33, 0.0 }
 0x646   :  { %v4043_v45 = vadd.f32 %v20011_v17, %v3662_v44  ;;  %v4045_v2 = vadd.f32 %v20014_v18, %v3815_v9  ;;  %v4135_v51 = vmax.f32 %v4039_v37, 0.0  ;;  %v4137_v22 = vmax.f32 %v4041_v4, 0.0 }
 0x647   :  { %v4138_v16 = vmax.f32 %v4042_v41, 0.0  ;;  %v4140_v39 = vmax.f32 %v4044_v42, 0.0 }
 0x648   :  { %v4139_v14 = vmax.f32 %v4043_v45, 0.0  ;;  %v4141_v26 = vmax.f32 %v4045_v2, 0.0 }
 0x649   :  { %v15536_v29 = vpack.c.bf16 %v4138_v16, %v4134_v13  ;;  %v20072_v48 = vpack.c.bf16 %v4140_v39, %v4136_v24 }
 0x64a   :  { %v15534_v49 = vpack.c.bf16 %v4139_v14, %v4135_v51  ;;  %v3666_v32 = vpop.f32.mrb[68].mxu0  ;;  %v3819_v50 = vpop.f32.mrb[68].mxu1  ;;  %v20074_v35 = vpack.c.bf16 %v4141_v26, %v4137_v22 }
 0x64b   :  { %v4046_v53 = vadd.f32 %v20005_v12, %v3666_v32  ;;  %v4048_v54 = vadd.f32 %v20008_v15, %v3819_v50  ;;  %v3668_v38 = vpop.f32.mrb[69].mxu0  ;;  %v3821_v55 = vpop.f32.mrb[69].mxu1 }
 0x64c   :  { %v4047_v43 = vadd.f32 %v20011_v17, %v3668_v38  ;;  %v4049_v0 = vadd.f32 %v20014_v18, %v3821_v55  ;;  %v3670_v56 = vpop.f32.mrb[70].mxu0  ;;  %v3823_v46 = vpop.f32.mrb[70].mxu1  ;;  %15535 = vmatprep.subr.bf16.mxu1 %v15534_v49  ;;  %15631 = vmatprep.subr.bf16.mxu0 %v15534_v49 }
 0x64d   :  { %v4050_v57 = vadd.f32 %v20005_v12, %v3670_v56  ;;  %v4052_v58 = vadd.f32 %v20008_v15, %v3823_v46  ;;  %v3672_v59 = vpop.f32.mrb[71].mxu0  ;;  %v3825_v60 = vpop.f32.mrb[71].mxu1  ;;  %15537 = vmatpush1.bf16.msra.mxu1 %v15536_v29  ;;  %15633 = vmatpush1.bf16.msra.mxu0 %v15536_v29  ;;  %v4142_v1 = vmax.f32 %v4046_v53, 0.0  ;;  %v4144_v5 = vmax.f32 %v4048_v54, 0.0 }
 0x64e   :  { %v4051_v61 = vadd.f32 %v20011_v17, %v3672_v59  ;;  %v4053_v63 = vadd.f32 %v20014_v18, %v3825_v60  ;;  %v4143_v25 = vmax.f32 %v4047_v43, 0.0  ;;  %v4145_v27 = vmax.f32 %v4049_v0, 0.0 }
 0x64f   :  { %v4146_v8 = vmax.f32 %v4050_v57, 0.0  ;;  %v4148_v23 = vmax.f32 %v4052_v58, 0.0 }
 0x650   :  { %v4147_v30 = vmax.f32 %v4051_v61, 0.0  ;;  %v4149_v33 = vmax.f32 %v4053_v63, 0.0 }
 0x651   :  { %v15540_v34 = vpack.c.bf16 %v4146_v8, %v4142_v1  ;;  %v20084_v36 = vpack.c.bf16 %v4148_v23, %v4144_v5 }
 0x652   :  { %v15538_v37 = vpack.c.bf16 %v4147_v30, %v4143_v25  ;;  %v3676_v4 = vpop.f32.mrb[72].mxu0  ;;  %v3829_v40 = vpop.f32.mrb[72].mxu1  ;;  %v20086_v6 = vpack.c.bf16 %v4149_v33, %v4145_v27 }
 0x653   :  { %v4054_v41 = vadd.f32 %v20005_v12, %v3676_v4  ;;  %v4056_v42 = vadd.f32 %v20008_v15, %v3829_v40  ;;  %v3678_v44 = vpop.f32.mrb[73].mxu0  ;;  %v3831_v9 = vpop.f32.mrb[73].mxu1 }
 0x654   :  { %v4055_v45 = vadd.f32 %v20011_v17, %v3678_v44  ;;  %v4057_v2 = vadd.f32 %v20014_v18, %v3831_v9  ;;  %v3680_v13 = vpop.f32.mrb[74].mxu0  ;;  %v3833_v24 = vpop.f32.mrb[74].mxu1  ;;  %15539 = vmatprep.subr.bf16.mxu1 %v15538_v37  ;;  %15635 = vmatprep.subr.bf16.mxu0 %v15538_v37 }
 0x655   :  { %v4058_v16 = vadd.f32 %v20005_v12, %v3680_v13  ;;  %v4060_v39 = vadd.f32 %v20008_v15, %v3833_v24  ;;  %v3682_v51 = vpop.f32.mrb[75].mxu0  ;;  %v3835_v22 = vpop.f32.mrb[75].mxu1  ;;  %15541 = vmatpush1.bf16.msra.mxu1 %v15540_v34  ;;  %15637 = vmatpush1.bf16.msra.mxu0 %v15540_v34  ;;  %v4150_v29 = vmax.f32 %v4054_v41, 0.0  ;;  %v4152_v49 = vmax.f32 %v4056_v42, 0.0 }
 0x656   :  { %v4059_v14 = vadd.f32 %v20011_v17, %v3682_v51  ;;  %v4061_v26 = vadd.f32 %v20014_v18, %v3835_v22  ;;  %v4151_v53 = vmax.f32 %v4055_v45, 0.0  ;;  %v4153_v54 = vmax.f32 %v4057_v2, 0.0 }
 0x657   :  { %v4154_v32 = vmax.f32 %v4058_v16, 0.0  ;;  %v4156_v50 = vmax.f32 %v4060_v39, 0.0 }
 0x658   :  { %v4155_v38 = vmax.f32 %v4059_v14, 0.0  ;;  %v4157_v55 = vmax.f32 %v4061_v26, 0.0 }
 0x659   :  { %v15544_v43 = vpack.c.bf16 %v4154_v32, %v4150_v29  ;;  %v20096_v0 = vpack.c.bf16 %v4156_v50, %v4152_v49 }
 0x65a   :  { %v15542_v56 = vpack.c.bf16 %v4155_v38, %v4151_v53  ;;  %v20098_v46 = vpack.c.bf16 %v4157_v55, %v4153_v54  ;;  %v3686_v57 = vpop.f32.mrb[76].mxu0  ;;  %v3839_v58 = vpop.f32.mrb[76].mxu1 }
 0x65b   :  { %v4062_v59 = vadd.f32 %v20005_v12, %v3686_v57  ;;  %v4064_v60 = vadd.f32 %v20008_v15, %v3839_v58  ;;  %v3688_v61 = vpop.f32.mrb[77].mxu0  ;;  %v3841_v63 = vpop.f32.mrb[77].mxu1  ;;  %v20121_v57 = vld [vmem:[%s24352_s5 + $0xc8] sm:$0xff] }
 0x65c   :  { %v4063_v1 = vadd.f32 %v20011_v17, %v3688_v61  ;;  %v4065_v5 = vadd.f32 %v20014_v18, %v3841_v63  ;;  %v3690_v8 = vpop.f32.mrb[78].mxu0  ;;  %v3843_v23 = vpop.f32.mrb[78].mxu1  ;;  %15543 = vmatprep.subr.bf16.mxu1 %v15542_v56  ;;  %15639 = vmatprep.subr.bf16.mxu0 %v15542_v56 }
 0x65d   :  { %v4066_v25 = vadd.f32 %v20005_v12, %v3690_v8  ;;  %v4068_v27 = vadd.f32 %v20008_v15, %v3843_v23  ;;  %v3692_v30 = vpop.f32.mrb[79].mxu0  ;;  %v3845_v33 = vpop.f32.mrb[79].mxu1  ;;  %15545 = vmatpush1.bf16.msra.mxu1 %v15544_v43  ;;  %15641 = vmatpush1.bf16.msra.mxu0 %v15544_v43  ;;  %v4158_v4 = vmax.f32 %v4062_v59, 0.0  ;;  %v4160_v40 = vmax.f32 %v4064_v60, 0.0 }
 0x65e   :  { %v4067_v34 = vadd.f32 %v20011_v17, %v3692_v30  ;;  %v4069_v37 = vadd.f32 %v20014_v18, %v3845_v33  ;;  %v4159_v44 = vmax.f32 %v4063_v1, 0.0  ;;  %v4161_v9 = vmax.f32 %v4065_v5, 0.0  ;;  %14119 = vmatprep.mubr.msk.f32.mxu0 %vm4222_vm3, %v20121_v57 }
 0x65f   :  { %v4162_v41 = vmax.f32 %v4066_v25, 0.0  ;;  %v4164_v42 = vmax.f32 %v4068_v27, 0.0 }
 0x660   :  { %v4163_v45 = vmax.f32 %v4067_v34, 0.0  ;;  %v4165_v2 = vmax.f32 %v4069_v37, 0.0 }
 0x661   :  { %v15548_v13 = vpack.c.bf16 %v4162_v41, %v4158_v4  ;;  %v20108_v24 = vpack.c.bf16 %v4164_v42, %v4160_v40 }
 0x662   :  { %v15546_v16 = vpack.c.bf16 %v4163_v45, %v4159_v44  ;;  %v20110_v39 = vpack.c.bf16 %v4165_v2, %v4161_v9  ;;  %v3696_v51 = vpop.f32.mrb[80].mxu0  ;;  %v3849_v22 = vpop.f32.mrb[80].mxu1 }
 0x663   :  { %v4070_v14 = vadd.f32 %v20005_v12, %v3696_v51  ;;  %v4072_v26 = vadd.f32 %v20008_v15, %v3849_v22  ;;  %v3698_v29 = vpop.f32.mrb[81].mxu0  ;;  %v3851_v49 = vpop.f32.mrb[81].mxu1 }
 0x664   :  { %v4071_v32 = vadd.f32 %v20011_v17, %v3698_v29  ;;  %v4073_v50 = vadd.f32 %v20014_v18, %v3851_v49  ;;  %v3700_v53 = vpop.f32.mrb[82].mxu0  ;;  %v3853_v54 = vpop.f32.mrb[82].mxu1  ;;  %15547 = vmatprep.subr.bf16.mxu1 %v15546_v16  ;;  %15643 = vmatprep.subr.bf16.mxu0 %v15546_v16 }
 0x665   :  { %v4074_v38 = vadd.f32 %v20005_v12, %v3700_v53  ;;  %v4076_v55 = vadd.f32 %v20008_v15, %v3853_v54  ;;  %v3702_v43 = vpop.f32.mrb[83].mxu0  ;;  %v3855_v56 = vpop.f32.mrb[83].mxu1  ;;  %15549 = vmatpush1.bf16.msra.mxu1 %v15548_v13  ;;  %15645 = vmatpush1.bf16.msra.mxu0 %v15548_v13  ;;  %v4166_v60 = vmax.f32 %v4070_v14, 0.0  ;;  %v4168_v61 = vmax.f32 %v4072_v26, 0.0 }
 0x666   :  { %v4075_v58 = vadd.f32 %v20011_v17, %v3702_v43  ;;  %v4077_v59 = vadd.f32 %v20014_v18, %v3855_v56  ;;  %v4167_v5 = vmax.f32 %v4071_v32, 0.0  ;;  %v4169_v8 = vmax.f32 %v4073_v50, 0.0 }
 0x667   :  { %v4170_v63 = vmax.f32 %v4074_v38, 0.0  ;;  %v4172_v1 = vmax.f32 %v4076_v55, 0.0 }
 0x668   :  { %v4171_v23 = vmax.f32 %v4075_v58, 0.0  ;;  %v4173_v25 = vmax.f32 %v4077_v59, 0.0 }
 0x669   :  { %v15552_v27 = vpack.c.bf16 %v4170_v63, %v4166_v60  ;;  %v20127_v30 = vpack.c.bf16 %v4172_v1, %v4168_v61 }
 0x66a   :  { %v15550_v33 = vpack.c.bf16 %v4171_v23, %v4167_v5  ;;  %v20129_v34 = vpack.c.bf16 %v4173_v25, %v4169_v8  ;;  %v3706_v37 = vpop.f32.mrb[84].mxu0  ;;  %v3859_v4 = vpop.f32.mrb[84].mxu1 }
 0x66b   :  { %v4078_v40 = vadd.f32 %v20005_v12, %v3706_v37  ;;  %v4080_v41 = vadd.f32 %v20008_v15, %v3859_v4  ;;  %v3708_v42 = vpop.f32.mrb[85].mxu0  ;;  %v3861_v44 = vpop.f32.mrb[85].mxu1 }
 0x66c   :  { %v4079_v9 = vadd.f32 %v20011_v17, %v3708_v42  ;;  %v4081_v45 = vadd.f32 %v20014_v18, %v3861_v44  ;;  %v3710_v2 = vpop.f32.mrb[86].mxu0  ;;  %v3863_v13 = vpop.f32.mrb[86].mxu1  ;;  %15551 = vmatprep.subr.bf16.mxu1 %v15550_v33  ;;  %15647 = vmatprep.subr.bf16.mxu0 %v15550_v33 }
 0x66d   :  { %v4082_v16 = vadd.f32 %v20005_v12, %v3710_v2  ;;  %v4084_v51 = vadd.f32 %v20008_v15, %v3863_v13  ;;  %v3712_v22 = vpop.f32.mrb[87].mxu0  ;;  %v3865_v14 = vpop.f32.mrb[87].mxu1  ;;  %15553 = vmatpush1.bf16.msra.mxu1 %v15552_v27  ;;  %15649 = vmatpush1.bf16.msra.mxu0 %v15552_v27  ;;  %v4174_v49 = vmax.f32 %v4078_v40, 0.0  ;;  %v4176_v32 = vmax.f32 %v4080_v41, 0.0 }
 0x66e   :  { %v4083_v26 = vadd.f32 %v20011_v17, %v3712_v22  ;;  %v4085_v29 = vadd.f32 %v20014_v18, %v3865_v14  ;;  %v4175_v54 = vmax.f32 %v4079_v9, 0.0  ;;  %v4177_v38 = vmax.f32 %v4081_v45, 0.0 }
 0x66f   :  { %v4178_v50 = vmax.f32 %v4082_v16, 0.0  ;;  %v4180_v53 = vmax.f32 %v4084_v51, 0.0 }
 0x670   :  { %v4179_v55 = vmax.f32 %v4083_v26, 0.0  ;;  %v4181_v43 = vmax.f32 %v4085_v29, 0.0 }
 0x671   :  { %v15556_v56 = vpack.c.bf16 %v4178_v50, %v4174_v49  ;;  %v20139_v58 = vpack.c.bf16 %v4180_v53, %v4176_v32 }
 0x672   :  { %v15554_v59 = vpack.c.bf16 %v4179_v55, %v4175_v54  ;;  %v20141_v60 = vpack.c.bf16 %v4181_v43, %v4177_v38  ;;  %v3716_v61 = vpop.f32.mrb[88].mxu0  ;;  %v3869_v63 = vpop.f32.mrb[88].mxu1 }
 0x673   :  { %v4086_v1 = vadd.f32 %v20005_v12, %v3716_v61  ;;  %v4088_v5 = vadd.f32 %v20008_v15, %v3869_v63  ;;  %v3718_v8 = vpop.f32.mrb[89].mxu0  ;;  %v3871_v23 = vpop.f32.mrb[89].mxu1 }
 0x674   :  { %v4087_v25 = vadd.f32 %v20011_v17, %v3718_v8  ;;  %v4089_v27 = vadd.f32 %v20014_v18, %v3871_v23  ;;  %v3720_v33 = vpop.f32.mrb[90].mxu0  ;;  %v3873_v37 = vpop.f32.mrb[90].mxu1  ;;  %15555 = vmatprep.subr.bf16.mxu1 %v15554_v59  ;;  %15651 = vmatprep.subr.bf16.mxu0 %v15554_v59 }
 0x675   :  { %v4090_v4 = vadd.f32 %v20005_v12, %v3720_v33  ;;  %v4092_v40 = vadd.f32 %v20008_v15, %v3873_v37  ;;  %v3722_v41 = vpop.f32.mrb[91].mxu0  ;;  %v3875_v42 = vpop.f32.mrb[91].mxu1  ;;  %15557 = vmatpush1.bf16.msra.mxu1 %v15556_v56  ;;  %15653 = vmatpush1.bf16.msra.mxu0 %v15556_v56  ;;  %v4182_v45 = vmax.f32 %v4086_v1, 0.0  ;;  %v4184_v2 = vmax.f32 %v4088_v5, 0.0 }
 0x676   :  { %v4091_v44 = vadd.f32 %v20011_v17, %v3722_v41  ;;  %v4093_v9 = vadd.f32 %v20014_v18, %v3875_v42  ;;  %v4183_v51 = vmax.f32 %v4087_v25, 0.0  ;;  %v4185_v22 = vmax.f32 %v4089_v27, 0.0  ;;  %v4869_v42 = vld [vmem:[%s24351_s4 + $0x8] sm:$0xff] }
 0x677   :  { %v4186_v13 = vmax.f32 %v4090_v4, 0.0  ;;  %v4188_v16 = vmax.f32 %v4092_v40, 0.0 }
 0x678   :  { %v4187_v14 = vmax.f32 %v4091_v44, 0.0  ;;  %v4189_v26 = vmax.f32 %v4093_v9, 0.0 }
 0x679   :  { %v15560_v29 = vpack.c.bf16 %v4186_v13, %v4182_v45  ;;  %v20151_v49 = vpack.c.bf16 %v4188_v16, %v4184_v2 }
 0x67a   :  { %v15558_v32 = vpack.c.bf16 %v4187_v14, %v4183_v51  ;;  %v20153_v50 = vpack.c.bf16 %v4189_v26, %v4185_v22  ;;  %v3726_v53 = vpop.f32.mrb[92].mxu0  ;;  %v3879_v54 = vpop.f32.mrb[92].mxu1  ;;  %v4868_v51 = vld [vmem:[%s24351_s4] sm:$0xff]  ;;  %v4870_v22 = vld [vmem:[%s24351_s4 + $0x10] sm:$0xff] }
 0x67b   :  { %v4094_v38 = vadd.f32 %v20005_v12, %v3726_v53  ;;  %v4096_v55 = vadd.f32 %v20008_v15, %v3879_v54  ;;  %v3728_v43 = vpop.f32.mrb[93].mxu0  ;;  %v3881_v56 = vpop.f32.mrb[93].mxu1  ;;  %v20184_v14 = vld [vmem:[%s24352_s5] sm:$0xff]  ;;  %v20203_v53 = vpack.c.bf16 %v4870_v22, %v4868_v51  ;;  %v4873_v54 = vld [vmem:[%s24351_s4 + $0x28] sm:$0xff] }
 0x67c   :  { %v4095_v59 = vadd.f32 %v20011_v17, %v3728_v43  ;;  %v4097_v61 = vadd.f32 %v20014_v18, %v3881_v56  ;;  %v3730_v63 = vpop.f32.mrb[94].mxu0  ;;  %v3883_v1 = vpop.f32.mrb[94].mxu1  ;;  %15559 = vmatprep.subr.bf16.mxu1 %v15558_v32  ;;  %15655 = vmatprep.subr.bf16.mxu0 %v15558_v32  ;;  %v20189_v26 = vld [vmem:[%s24352_s5 + $0xc0] sm:$0xff]  ;;  %v20201_v32 = vld [vmem:[%s24352_s5 + $0xd8] sm:$0xff]  ;;  %v20224_v43 = vld [vmem:[%s24352_s5 + $0xd0] sm:$0xff] }
 0x67d   :  { %v4098_v5 = vadd.f32 %v20005_v12, %v3730_v63  ;;  %v4100_v8 = vadd.f32 %v20008_v15, %v3883_v1  ;;  %v3732_v23 = vpop.f32.mrb[95].mxu0  ;;  %v3885_v25 = vpop.f32.mrb[95].mxu1  ;;  %15561 = vmatpush1.bf16.msra.mxu1 %v15560_v29  ;;  %15657 = vmatpush1.bf16.msra.mxu0 %v15560_v29  ;;  %v4190_v37 = vmax.f32 %v4094_v38, 0.0  ;;  %v4192_v4 = vmax.f32 %v4096_v55, 0.0  ;;  %v4871_v12 = vld [vmem:[%s24351_s4 + $0x18] sm:$0xff]  ;;  %24554 = vst [vmem:[#allocation13_spill] sm:$0xff] %v20203_v53 }
 0x67e   :  { %v4099_v27 = vadd.f32 %v20011_v17, %v3732_v23  ;;  %v4101_v33 = vadd.f32 %v20014_v18, %v3885_v25  ;;  %v4191_v15 = vmax.f32 %v4095_v59, 0.0  ;;  %v4193_v44 = vmax.f32 %v4097_v61, 0.0  ;;  %v20195_v29 = vld [vmem:[%s24352_s5 + $0x18] sm:$0xff]  ;;  %v20219_v55 = vld [vmem:[%s24352_s5 + $0x10] sm:$0xff]  ;;  %v20230_v56 = vld [vmem:[%s24352_s5 + $0x28] sm:$0xff] }
 0x67f   :  { %v4194_v40 = vmax.f32 %v4098_v5, 0.0  ;;  %v4196_v41 = vmax.f32 %v4100_v8, 0.0  ;;  %v20173_v16 = vpack.c.bf16 %v4871_v12, %v4869_v42  ;;  %v4875_v38 = vld [vmem:[%s24351_s4 + $0x38] sm:$0xff]  ;;  %v20237_v59 = vld [vmem:[%s24352_s5 + $0xe8] sm:$0xff]  ;;  %v4872_v63 = vld [vmem:[%s24351_s4 + $0x20] sm:$0xff] }
 0x680   :  { %v4195_v9 = vmax.f32 %v4099_v27, 0.0  ;;  %v4197_v45 = vmax.f32 %v4101_v33, 0.0  ;;  %24555 = vst [vmem:[#allocation14_spill] sm:$0xff] %v20237_v59  ;;  %v20240_v61 = vpack.c.bf16 %v4875_v38, %v4873_v54  ;;  %v4874_v1 = vld [vmem:[%s24351_s4 + $0x30] sm:$0xff]  ;;  %v20256_v5 = vld [vmem:[%s24352_s5 + $0x20] sm:$0xff]  ;;  %v20267_v23 = vld [vmem:[%s24352_s5 + $0x38] sm:$0xff] }
 0x681   :  { %v15564_v2 = vpack.c.bf16 %v4194_v40, %v4190_v37  ;;  %v20169_v17 = vpack.c.bf16 %v4196_v41, %v4192_v4  ;;  %24553 = vst [vmem:[#allocation12_spill] sm:$0xff] %v20173_v16  ;;  %v20261_v8 = vld [vmem:[%s24352_s5 + $0xe0] sm:$0xff]  ;;  %v20274_v25 = vld [vmem:[%s24352_s5 + $0xf8] sm:$0xff]  ;;  %v20277_v27 = vpack.c.bf16 %v4874_v1, %v4872_v63  ;;  %v4877_v33 = vld [vmem:[%s24351_s4 + $0x48] sm:$0xff] }
 0x682   :  { %v15562_v18 = vpack.c.bf16 %v4195_v9, %v4191_v15  ;;  %v20171_v13 = vpack.c.bf16 %v4197_v45, %v4193_v44  ;;  %24556 = vst [vmem:[#allocation15_spill] sm:$0xff] %v20240_v61  ;;  %24557 = vst [vmem:[#allocation16_spill] sm:$0xff] %v20261_v8  ;;  %v4879_v37 = vld [vmem:[%s24351_s4 + $0x58] sm:$0xff]  ;;  %v20293_v4 = vld [vmem:[%s24352_s5 + $0x30] sm:$0xff] }
 0x683   :  { %24558 = vst [vmem:[#allocation17_spill] sm:$0xff] %v20274_v25  ;;  %24559 = vst [vmem:[#allocation18_spill] sm:$0xff] %v20277_v27  ;;  %v20298_v40 = vld [vmem:[%s24352_s5 + $0xf0] sm:$0xff]  ;;  %v20304_v41 = vld [vmem:[%s24352_s5 + $0x48] sm:$0xff]  ;;  %v20314_v12 = vpack.c.bf16 %v4879_v37, %v4877_v33 }
 0x684   :  { %15563 = vmatprep.subr.bf16.mxu1 %v15562_v18  ;;  %15659 = vmatprep.subr.bf16.mxu0 %v15562_v18  ;;  %24560 = vst [vmem:[#allocation19_spill] sm:$0xff] %v20298_v40  ;;  %v20311_v42 = vld [vmem:[%s24352_s5 + $0x108] sm:$0xff]  ;;  %v4876_v15 = vld [vmem:[%s24351_s4 + $0x40] sm:$0xff]  ;;  %v4878_v44 = vld [vmem:[%s24351_s4 + $0x50] sm:$0xff] }
 0x685   :  { %15565 = vmatpush1.bf16.msra.mxu1 %v15564_v2  ;;  %15661 = vmatpush1.bf16.msra.mxu0 %v15564_v2  ;;  %24561 = vst [vmem:[#allocation20_spill] sm:$0xff] %v20311_v42  ;;  %24562 = vst [vmem:[#allocation21_spill] sm:$0xff] %v20314_v12  ;;  %v20330_v9 = vld [vmem:[%s24352_s5 + $0x40] sm:$0xff]  ;;  %v20341_v2 = vld [vmem:[%s24352_s5 + $0x58] sm:$0xff]  ;;  %v20351_v51 = vpack.c.bf16 %v4878_v44, %v4876_v15 }
 0x686   :  { %15567 = vmatprep.subr.bf16.mxu1 %v20026_v31  ;;  %15711 = vmatprep.subr.bf16.mxu0 %v20173_v16  ;;  %v20335_v45 = vld [vmem:[%s24352_s5 + $0x100] sm:$0xff]  ;;  %v20348_v18 = vld [vmem:[%s24352_s5 + $0x118] sm:$0xff]  ;;  %v4881_v22 = vld [vmem:[%s24351_s4 + $0x68] sm:$0xff] }
 0x687   :  { %24563 = vst [vmem:[#allocation22_spill] sm:$0xff] %v20335_v45  ;;  %24564 = vst [vmem:[#allocation23_spill] sm:$0xff] %v20348_v18  ;;  %v4883_v54 = vld [vmem:[%s24351_s4 + $0x78] sm:$0xff]  ;;  %v20367_v38 = vld [vmem:[%s24352_s5 + $0x50] sm:$0xff] }
 0x688   :  { %4324 = vmatmul.mubr.f32.vlgmr.msra.gmra.mrb[144].mxu1 %v20184_v14  ;;  %4659 = vmatmul.mubr.f32.vlgmr.msra.gmra.mrb[192].mxu0 %v20189_v26  ;;  %24565 = vst [vmem:[#allocation24_spill] sm:$0xff] %v20351_v51  ;;  %v20372_v63 = vld [vmem:[%s24352_s5 + $0x110] sm:$0xff]  ;;  %v20378_v1 = vld [vmem:[%s24352_s5 + $0x68] sm:$0xff]  ;;  %v20388_v37 = vpack.c.bf16 %v4883_v54, %v4881_v22  ;;  %v4880_v15 = vld [vmem:[%s24351_s4 + $0x60] sm:$0xff] }
 0x689   :  { %15569 = vmatpush1.bf16.msra.mxu1 %v20024_v19  ;;  %14072 = vmatprep.mubr.msk.f32.mxu1 %vm4222_vm3, %v20195_v29  ;;  %24566 = vst [vmem:[#allocation25_spill] sm:$0xff] %v20372_v63  ;;  %v20385_v33 = vld [vmem:[%s24352_s5 + $0x128] sm:$0xff]  ;;  %v4882_v44 = vld [vmem:[%s24351_s4 + $0x70] sm:$0xff]  ;;  %v20404_v22 = vld [vmem:[%s24352_s5 + $0x60] sm:$0xff] }
 0x68a   :  { %15571 = vmatprep.subr.bf16.mxu1 %v20038_v21  ;;  %14120 = vmatprep.mubr.msk.f32.mxu0 %vm4222_vm3, %v20201_v32  ;;  %24567 = vst [vmem:[#allocation26_spill] sm:$0xff] %v20385_v33  ;;  %24568 = vst [vmem:[#allocation27_spill] sm:$0xff] %v20388_v37  ;;  %v20409_v54 = vld [vmem:[%s24352_s5 + $0x120] sm:$0xff]  ;;  %v20425_v52 = vpack.c.bf16 %v4882_v44, %v4880_v15  ;;  %v20441_v15 = vld [vmem:[%s24352_s5 + $0x70] sm:$0xff] }
 0x68b   :  { %15713 = vmatpush1.bf16.msra.mxu0 %v20203_v53  ;;  %24569 = vst [vmem:[#allocation28_spill] sm:$0xff] %v20409_v54  ;;  %v20446_v44 = vld [vmem:[%s24352_s5 + $0x130] sm:$0xff]  ;;  %v20496_v16 = vld [vmem:[%s24352_s5 + $0x158] sm:$0xff] }
 0x68c   :  { %4330 = vmatmul.mubr.f32.gmra.mrb[146].mxu1 %v20219_v55  ;;  %4665 = vmatmul.mubr.f32.gmra.mrb[194].mxu0 %v20224_v43  ;;  %24571 = vst [vmem:[#allocation30_spill] sm:$0xff] %v20425_v52  ;;  %24572 = vst [vmem:[#allocation31_spill] sm:$0xff] %v20446_v44  ;;  %v4886_v53 = vld [vmem:[%s24351_s4 + $0x90] sm:$0xff] }
 0x68d   :  { %15573 = vmatpush1.bf16.msra.mxu1 %v20036_v3  ;;  %14073 = vmatprep.mubr.msk.f32.mxu1 %vm4222_vm3, %v20230_v56  ;;  %24576 = vst [vmem:[#allocation35_spill] sm:$0xff] %v20496_v16 }
 0x68e   :  { %15575 = vmatprep.subr.bf16.mxu1 %v20050_v47  ;;  %14121 = vmatprep.mubr.msk.f32.mxu0 %vm4222_vm3, %v20237_v59  ;;  %v4896_v59 = vld [vmem:[%s24351_s4 + $0xe0] sm:$0xff] }
 0x68f   :  { %15715 = vmatprep.subr.bf16.mxu0 %v20240_v61  ;;  %v4884_v61 = vld [vmem:[%s24351_s4 + $0x80] sm:$0xff] }
 0x690   :  { %4336 = vmatmul.mubr.f32.gmra.mrb[148].mxu1 %v20256_v5  ;;  %4671 = vmatmul.mubr.f32.gmra.mrb[196].mxu0 %v20261_v8 }
 0x691   :  { %15577 = vmatpush1.bf16.msra.mxu1 %v20048_v62  ;;  %14074 = vmatprep.mubr.msk.f32.mxu1 %vm4222_vm3, %v20267_v23 }
 0x692   :  { %15579 = vmatprep.subr.bf16.mxu1 %v20062_v28  ;;  %14122 = vmatprep.mubr.msk.f32.mxu0 %vm4222_vm3, %v20274_v25 }
 0x693   :  { %15717 = vmatpush1.bf16.msra.mxu0 %v20277_v27 }
 0x694   :  { %4342 = vmatmul.mubr.f32.gmra.mrb[150].mxu1 %v20293_v4  ;;  %4677 = vmatmul.mubr.f32.gmra.mrb[198].mxu0 %v20298_v40 }
 0x695   :  { %15581 = vmatpush1.bf16.msra.mxu1 %v20060_v20  ;;  %14075 = vmatprep.mubr.msk.f32.mxu1 %vm4222_vm3, %v20304_v41 }
 0x696   :  { %15583 = vmatprep.subr.bf16.mxu1 %v20074_v35  ;;  %14123 = vmatprep.mubr.msk.f32.mxu0 %vm4222_vm3, %v20311_v42  ;;  %v4899_v42 = vld [vmem:[%s24351_s4 + $0xf8] sm:$0xff] }
 0x697   :  { %15719 = vmatprep.subr.bf16.mxu0 %v20314_v12  ;;  %v20459_v12 = vld [vmem:[%s24352_s5 + $0x148] sm:$0xff] }
 0x698   :  { %4348 = vmatmul.mubr.f32.gmra.mrb[152].mxu1 %v20330_v9  ;;  %4683 = vmatmul.mubr.f32.gmra.mrb[200].mxu0 %v20335_v45  ;;  %24573 = vst [vmem:[#allocation32_spill] sm:$0xff] %v20459_v12  ;;  %v4895_v45 = vld [vmem:[%s24351_s4 + $0xd8] sm:$0xff] }
 0x699   :  { %15585 = vmatpush1.bf16.msra.mxu1 %v20072_v48  ;;  %14076 = vmatprep.mubr.msk.f32.mxu1 %vm4222_vm3, %v20341_v2 }
 0x69a   :  { %15587 = vmatprep.subr.bf16.mxu1 %v20086_v6  ;;  %14124 = vmatprep.mubr.msk.f32.mxu0 %vm4222_vm3, %v20348_v18  ;;  %v4893_v18 = vld [vmem:[%s24351_s4 + $0xc8] sm:$0xff] }
 0x69b   :  { %15721 = vmatpush1.bf16.msra.mxu0 %v20351_v51  ;;  %v4887_v51 = vld [vmem:[%s24351_s4 + $0x98] sm:$0xff]  ;;  %v20611_v40 = vpack.c.bf16 %v4895_v45, %v4893_v18  ;;  %v18304_v45 = vld [vmem:[%s24352_s5 + $0x8] sm:$0xff] }
 0x69c   :  { %4354 = vmatmul.mubr.f32.gmra.mrb[154].mxu1 %v20367_v38  ;;  %4689 = vmatmul.mubr.f32.gmra.mrb[202].mxu0 %v20372_v63  ;;  %v20462_v27 = vpack.c.bf16 %v4887_v51, %v4885_v7  ;;  %v20478_v7 = vld [vmem:[%s24352_s5 + $0x80] sm:$0xff]  ;;  %v4903_v18 = vld [vmem:[%s24351_s4 + $0x118] sm:$0xff] }
 0x69d   :  { %15589 = vmatpush1.bf16.msra.mxu1 %v20084_v36  ;;  %14077 = vmatprep.mubr.msk.f32.mxu1 %vm4222_vm3, %v20378_v1  ;;  %v20483_v51 = vld [vmem:[%s24352_s5 + $0x140] sm:$0xff] }
 0x69e   :  { %15591 = vmatprep.subr.bf16.mxu1 %v20098_v46  ;;  %14125 = vmatprep.mubr.msk.f32.mxu0 %vm4222_vm3, %v20385_v33  ;;  %24574 = vst [vmem:[#allocation33_spill] sm:$0xff] %v20462_v27  ;;  %24575 = vst [vmem:[#allocation34_spill] sm:$0xff] %v20483_v51  ;;  %v4888_v33 = vld [vmem:[%s24351_s4 + $0xa0] sm:$0xff] }
 0x69f   :  { %15723 = vmatprep.subr.bf16.mxu0 %v20388_v37  ;;  %v20452_v37 = vld [vmem:[%s24352_s5 + $0x88] sm:$0xff] }
 0x6a0   :  { %4360 = vmatmul.mubr.f32.gmra.mrb[156].mxu1 %v20404_v22  ;;  %4695 = vmatmul.mubr.f32.gmra.mrb[204].mxu0 %v20409_v54 }
 0x6a1   :  { %15593 = vmatpush1.bf16.msra.mxu1 %v20096_v0  ;;  %14078 = vmatprep.mubr.msk.f32.mxu1 %vm4222_vm3, %v20415_v11 }
 0x6a2   :  { %15595 = vmatprep.subr.bf16.mxu1 %v20110_v39  ;;  %14126 = vmatprep.mubr.msk.f32.mxu0 %vm4222_vm3, %v20422_v10  ;;  %v4889_v10 = vld [vmem:[%s24351_s4 + $0xa8] sm:$0xff] }
 0x6a3   :  { %15725 = vmatpush1.bf16.msra.mxu0 %v20425_v52  ;;  %v20489_v52 = vld [vmem:[%s24352_s5 + $0x98] sm:$0xff] }
 0x6a4   :  { %4366 = vmatmul.mubr.f32.gmra.mrb[158].mxu1 %v20441_v15  ;;  %4701 = vmatmul.mubr.f32.gmra.mrb[206].mxu0 %v20446_v44  ;;  %v20499_v44 = vpack.c.bf16 %v4886_v53, %v4884_v61  ;;  %v20515_v53 = vld [vmem:[%s24352_s5 + $0x90] sm:$0xff] }
 0x6a5   :  { %15597 = vmatpush1.bf16.msra.mxu1 %v20108_v24  ;;  %14079 = vmatprep.mubr.msk.f32.mxu1 %vm4222_vm3, %v20452_v37  ;;  %v20520_v61 = vld [vmem:[%s24352_s5 + $0x150] sm:$0xff] }
 0x6a6   :  { %15599 = vmatprep.subr.bf16.mxu1 %v20129_v34  ;;  %14127 = vmatprep.mubr.msk.f32.mxu0 %vm4222_vm3, %v20459_v12  ;;  %24577 = vst [vmem:[#allocation36_spill] sm:$0xff] %v20499_v44  ;;  %v4891_v12 = vld [vmem:[%s24351_s4 + $0xb8] sm:$0xff]  ;;  %24578 = vst [vmem:[#allocation37_spill] sm:$0xff] %v20520_v61 }
 0x6a7   :  { %15727 = vmatprep.subr.bf16.mxu0 %v20462_v27  ;;  %v20526_v27 = vld [vmem:[%s24352_s5 + $0xa8] sm:$0xff]  ;;  %v20536_v54 = vpack.c.bf16 %v4891_v12, %v4889_v10  ;;  %v20552_v10 = vld [vmem:[%s24352_s5 + $0xa0] sm:$0xff] }
 0x6a8   :  { %4372 = vmatmul.mubr.f32.gmra.mrb[160].mxu1 %v20478_v7  ;;  %4707 = vmatmul.mubr.f32.gmra.mrb[208].mxu0 %v20483_v51  ;;  %v20533_v51 = vld [vmem:[%s24352_s5 + $0x168] sm:$0xff]  ;;  %v20557_v12 = vld [vmem:[%s24352_s5 + $0x160] sm:$0xff] }
 0x6a9   :  { %15601 = vmatpush1.bf16.msra.mxu1 %v20127_v30  ;;  %14080 = vmatprep.mubr.msk.f32.mxu1 %vm4222_vm3, %v20489_v52  ;;  %24579 = vst [vmem:[#allocation38_spill] sm:$0xff] %v20533_v51  ;;  %24580 = vst [vmem:[#allocation39_spill] sm:$0xff] %v20536_v54 }
 0x6aa   :  { %15603 = vmatprep.subr.bf16.mxu1 %v20141_v60  ;;  %14128 = vmatprep.mubr.msk.f32.mxu0 %vm4222_vm3, %v20496_v16  ;;  %v4890_v16 = vld [vmem:[%s24351_s4 + $0xb0] sm:$0xff]  ;;  %24581 = vst [vmem:[#allocation40_spill] sm:$0xff] %v20557_v12 }
 0x6ab   :  { %15729 = vmatpush1.bf16.msra.mxu0 %v20499_v44  ;;  %v20563_v44 = vld [vmem:[%s24352_s5 + $0xb8] sm:$0xff]  ;;  %v20573_v63 = vpack.c.bf16 %v4890_v16, %v4888_v33  ;;  %v4892_v16 = vld [vmem:[%s24351_s4 + $0xc0] sm:$0xff]  ;;  %v4894_v33 = vld [vmem:[%s24351_s4 + $0xd0] sm:$0xff] }
 0x6ac   :  { %4378 = vmatmul.mubr.f32.gmra.mrb[162].mxu1 %v20515_v53  ;;  %4713 = vmatmul.mubr.f32.gmra.mrb[210].mxu0 %v20520_v61  ;;  %v20570_v61 = vld [vmem:[%s24352_s5 + $0x178] sm:$0xff]  ;;  %v20614_v25 = vpack.c.bf16 %v4894_v33, %v4892_v16  ;;  %v4900_v33 = vld [vmem:[%s24351_s4 + $0x100] sm:$0xff] }
 0x6ad   :  { %15605 = vmatpush1.bf16.msra.mxu1 %v20139_v58  ;;  %14081 = vmatprep.mubr.msk.f32.mxu1 %vm4222_vm3, %v20526_v27  ;;  %24582 = vst [vmem:[#allocation41_spill] sm:$0xff] %v20570_v61 }
 0x6ae   :  { %15607 = vmatprep.subr.bf16.mxu1 %v20153_v50  ;;  %14129 = vmatprep.mubr.msk.f32.mxu0 %vm4222_vm3, %v20533_v51  ;;  %v20585_v51 = vld [vmem:[%s24352_s5 + $0xb0] sm:$0xff] }
 0x6af   :  { %15731 = vmatprep.subr.bf16.mxu0 %v20536_v54  ;;  %v20600_v54 = vld [vmem:[%s24352_s5 + $0x170] sm:$0xff] }
 0x6b0   :  { %4384 = vmatmul.mubr.f32.gmra.mrb[164].mxu1 %v20552_v10  ;;  %4719 = vmatmul.mubr.f32.gmra.mrb[212].mxu0 %v20557_v12  ;;  %v4897_v12 = vld [vmem:[%s24351_s4 + $0xe8] sm:$0xff] }
 0x6b1   :  { %15609 = vmatpush1.bf16.msra.mxu1 %v20151_v49  ;;  %14082 = vmatprep.mubr.msk.f32.mxu1 %vm4222_vm3, %v20563_v44  ;;  %v20618_v8 = vpack.c.bf16 %v4899_v42, %v4897_v12  ;;  %v4901_v42 = vld [vmem:[%s24351_s4 + $0x108] sm:$0xff] }
 0x6b2   :  { %15611 = vmatprep.subr.bf16.mxu1 %v20171_v13  ;;  %14130 = vmatprep.mubr.msk.f32.mxu0 %vm4222_vm3, %v20570_v61  ;;  %v4898_v61 = vld [vmem:[%s24351_s4 + $0xf0] sm:$0xff]  ;;  %v20644_v16 = vpack.c.bf16 %v4903_v18, %v4901_v42 }
 0x6b3   :  { %15733 = vmatpush1.bf16.msra.mxu0 %v20573_v63  ;;  %v20640_v12 = vpack.c.bf16 %v4898_v61, %v4896_v59  ;;  %v4907_v59 = vld [vmem:[%s24351_s4 + $0x138] sm:$0xff]  ;;  %v4910_v18 = vld [vmem:[%s24351_s4 + $0x150] sm:$0xff] }
 0x6b4   :  { %4390 = vmatmul.mubr.f32.gmra.mrb[166].mxu1 %v20585_v51  ;;  %4725 = vmatmul.mubr.f32.gmra.mrb[214].mxu0 %v20600_v54 }
 0x6b5   :  { %15613 = vmatpush1.bf16.msra.mxu1 %v20169_v17  ;;  %14083 = vmatprep.mubr.msk.f32.mxu1 %vm4222_vm3, %v18304_v45  ;;  %v4906_v45 = vld [vmem:[%s24351_s4 + $0x130] sm:$0xff] }
 0x6b6   :  { %15663 = vmatprep.subr.bf16.mxu1 %v20026_v31  ;;  %15735 = vmatprep.subr.bf16.mxu0 %v20611_v40  ;;  %v4902_v31 = vld [vmem:[%s24351_s4 + $0x110] sm:$0xff] }
 0x6b7   :  { %15737 = vmatpush1.bf16.msra.mxu0 %v20614_v25  ;;  %v20663_v61 = vpack.c.bf16 %v4902_v31, %v4900_v33  ;;  %v4914_v31 = vld [vmem:[%s24351_s4 + $0x170] sm:$0xff] }
 0x6b8   :  { %4461 = vmatmul.mubr.f32.vlgmr.msra.gmra.mrb[168].mxu1 %v20184_v14  ;;  %15739 = vmatprep.subr.bf16.mxu0 %v20618_v8  ;;  %v4905_v14 = vld [vmem:[%s24351_s4 + $0x128] sm:$0xff] }
 0x6b9   :  { %15665 = vmatpush1.bf16.msra.mxu1 %v20024_v19  ;;  %14084 = vmatprep.mubr.msk.f32.mxu1 %vm4222_vm3, %v20195_v29  ;;  %v20667_v19 = vpack.c.bf16 %v4907_v59, %v4905_v14  ;;  %v4904_v29 = vld [vmem:[%s24351_s4 + $0x120] sm:$0xff]  ;;  %v4918_v59 = vld [vmem:[%s24351_s4 + $0x190] sm:$0xff] }
 0x6ba   :  { %15667 = vmatprep.subr.bf16.mxu1 %v20038_v21  ;;  %v4909_v21 = vld [vmem:[%s24351_s4 + $0x148] sm:$0xff]  ;;  %v20686_v42 = vpack.c.bf16 %v4906_v45, %v4904_v29  ;;  %v4922_v45 = vld [vmem:[%s24351_s4 + $0x1b0] sm:$0xff] }
 0x6bb   :  { %15741 = vmatpush1.bf16.msra.mxu0 %v20640_v12 }
 0x6bc   :  { %4467 = vmatmul.mubr.f32.gmra.mrb[170].mxu1 %v20219_v55  ;;  %15743 = vmatprep.subr.bf16.mxu0 %v20644_v16  ;;  %v4911_v55 = vld [vmem:[%s24351_s4 + $0x158] sm:$0xff] }
 0x6bd   :  { %15669 = vmatpush1.bf16.msra.mxu1 %v20036_v3  ;;  %14085 = vmatprep.mubr.msk.f32.mxu1 %vm4222_vm3, %v20230_v56  ;;  %v20690_v3 = vpack.c.bf16 %v4911_v55, %v4909_v21  ;;  %v4908_v56 = vld [vmem:[%s24351_s4 + $0x140] sm:$0xff]  ;;  %v4926_v55 = vld [vmem:[%s24351_s4 + $0x1d0] sm:$0xff] }
 0x6be   :  { %15671 = vmatprep.subr.bf16.mxu1 %v20050_v47  ;;  %v4913_v47 = vld [vmem:[%s24351_s4 + $0x168] sm:$0xff]  ;;  %v20709_v33 = vpack.c.bf16 %v4910_v18, %v4908_v56  ;;  %v4930_v18 = vld [vmem:[%s24351_s4 + $0x1f0] sm:$0xff] }
 0x6bf   :  { %15745 = vmatpush1.bf16.msra.mxu0 %v20663_v61 }
 0x6c0   :  { %4473 = vmatmul.mubr.f32.gmra.mrb[172].mxu1 %v20256_v5  ;;  %15747 = vmatprep.subr.bf16.mxu0 %v20667_v19  ;;  %v4915_v5 = vld [vmem:[%s24351_s4 + $0x178] sm:$0xff] }
 0x6c1   :  { %15673 = vmatpush1.bf16.msra.mxu1 %v20048_v62  ;;  %14086 = vmatprep.mubr.msk.f32.mxu1 %vm4222_vm3, %v20267_v23  ;;  %v20713_v62 = vpack.c.bf16 %v4915_v5, %v4913_v47  ;;  %v4912_v23 = vld [vmem:[%s24351_s4 + $0x160] sm:$0xff]  ;;  %v14165_v47 = vld [vmem:[%s24351_s4 + $0x410] sm:$0xff] }
 0x6c2   :  { %15675 = vmatprep.subr.bf16.mxu1 %v20062_v28  ;;  %v4917_v28 = vld [vmem:[%s24351_s4 + $0x188] sm:$0xff]  ;;  %v20732_v14 = vpack.c.bf16 %v4914_v31, %v4912_v23  ;;  %v24588_v23 = vld [vmem:[#allocation14_spill] sm:$0xff] }
 0x6c3   :  { %15749 = vmatpush1.bf16.msra.mxu0 %v20686_v42 }
 0x6c4   :  { %4479 = vmatmul.mubr.f32.gmra.mrb[174].mxu1 %v20293_v4  ;;  %15751 = vmatprep.subr.bf16.mxu0 %v20690_v3  ;;  %v4919_v4 = vld [vmem:[%s24351_s4 + $0x198] sm:$0xff] }
 0x6c5   :  { %15677 = vmatpush1.bf16.msra.mxu1 %v20060_v20  ;;  %14087 = vmatprep.mubr.msk.f32.mxu1 %vm4222_vm3, %v20304_v41  ;;  %v20736_v20 = vpack.c.bf16 %v4919_v4, %v4917_v28  ;;  %v4916_v41 = vld [vmem:[%s24351_s4 + $0x180] sm:$0xff]  ;;  %v14169_v4 = vld [vmem:[%s24351_s4 + $0x430] sm:$0xff] }
 0x6c6   :  { %15679 = vmatprep.subr.bf16.mxu1 %v20074_v35  ;;  %v4921_v35 = vld [vmem:[%s24351_s4 + $0x1a8] sm:$0xff]  ;;  %v20755_v29 = vpack.c.bf16 %v4918_v59, %v4916_v41  ;;  %v14167_v28 = vld [vmem:[%s24351_s4 + $0x420] sm:$0xff]  ;;  %v14174_v41 = vld [vmem:[%s24351_s4 + $0x458] sm:$0xff] }
 0x6c7   :  { %15753 = vmatpush1.bf16.msra.mxu0 %v20709_v33  ;;  %v24589_v59 = vld [vmem:[#allocation16_spill] sm:$0xff] }
 0x6c8   :  { %4485 = vmatmul.mubr.f32.gmra.mrb[176].mxu1 %v20330_v9  ;;  %15755 = vmatprep.subr.bf16.mxu0 %v20713_v62  ;;  %v4923_v9 = vld [vmem:[%s24351_s4 + $0x1b8] sm:$0xff] }
 0x6c9   :  { %15681 = vmatpush1.bf16.msra.mxu1 %v20072_v48  ;;  %14088 = vmatprep.mubr.msk.f32.mxu1 %vm4222_vm3, %v20341_v2  ;;  %v20759_v48 = vpack.c.bf16 %v4923_v9, %v4921_v35  ;;  %v4920_v2 = vld [vmem:[%s24351_s4 + $0x1a0] sm:$0xff]  ;;  %v20931_v35 = vpack.c.bf16 %v14169_v4, %v14167_v28  ;;  %v24590_v9 = vld [vmem:[#allocation17_spill] sm:$0xff]  ;;  %v14190_v4 = vld [vmem:[%s24351_s4 + $0x4d8] sm:$0xff] }
 0x6ca   :  { %15683 = vmatprep.subr.bf16.mxu1 %v20086_v6  ;;  %v4925_v6 = vld [vmem:[%s24351_s4 + $0x1c8] sm:$0xff]  ;;  %v20778_v21 = vpack.c.bf16 %v4922_v45, %v4920_v2  ;;  %v14171_v45 = vld [vmem:[%s24351_s4 + $0x440] sm:$0xff] }
 0x6cb   :  { %15757 = vmatpush1.bf16.msra.mxu0 %v20732_v14  ;;  %v14188_v28 = vld [vmem:[%s24351_s4 + $0x4c8] sm:$0xff] }
 0x6cc   :  { %4491 = vmatmul.mubr.f32.gmra.mrb[178].mxu1 %v20367_v38  ;;  %15759 = vmatprep.subr.bf16.mxu0 %v20736_v20  ;;  %v4927_v38 = vld [vmem:[%s24351_s4 + $0x1d8] sm:$0xff] }
 0x6cd   :  { %15685 = vmatpush1.bf16.msra.mxu1 %v20084_v36  ;;  %14089 = vmatprep.mubr.msk.f32.mxu1 %vm4222_vm3, %v20378_v1  ;;  %v20782_v36 = vpack.c.bf16 %v4927_v38, %v4925_v6  ;;  %v4924_v1 = vld [vmem:[%s24351_s4 + $0x1c0] sm:$0xff]  ;;  %v14173_v6 = vld [vmem:[%s24351_s4 + $0x450] sm:$0xff]  ;;  %v14176_v38 = vld [vmem:[%s24351_s4 + $0x468] sm:$0xff] }
 0x6ce   :  { %15687 = vmatprep.subr.bf16.mxu1 %v20098_v46  ;;  %v4929_v46 = vld [vmem:[%s24351_s4 + $0x1e8] sm:$0xff]  ;;  %v20801_v56 = vpack.c.bf16 %v4926_v55, %v4924_v1  ;;  %v14178_v1 = vld [vmem:[%s24351_s4 + $0x478] sm:$0xff] }
 0x6cf   :  { %15761 = vmatpush1.bf16.msra.mxu0 %v20755_v29  ;;  %24583 = vst [vmem:[#allocation42_spill] sm:$0xff] %v20782_v36  ;;  %v24591_v55 = vld [vmem:[#allocation19_spill] sm:$0xff] }
 0x6d0   :  { %4497 = vmatmul.mubr.f32.gmra.mrb[180].mxu1 %v20404_v22  ;;  %15763 = vmatprep.subr.bf16.mxu0 %v20759_v48  ;;  %v4931_v22 = vld [vmem:[%s24351_s4 + $0x1f8] sm:$0xff]  ;;  %24584 = vst [vmem:[#allocation43_spill] sm:$0xff] %v20801_v56 }
 0x6d1   :  { %15689 = vmatpush1.bf16.msra.mxu1 %v20096_v0  ;;  %14090 = vmatprep.mubr.msk.f32.mxu1 %vm4222_vm3, %v20415_v11  ;;  %v20805_v0 = vpack.c.bf16 %v4931_v22, %v4929_v46  ;;  %v4928_v11 = vld [vmem:[%s24351_s4 + $0x1e0] sm:$0xff]  ;;  %v20952_v46 = vpack.c.bf16 %v14173_v6, %v14171_v45  ;;  %v14189_v6 = vld [vmem:[%s24351_s4 + $0x4d0] sm:$0xff] }
 0x6d2   :  { %15691 = vmatprep.subr.bf16.mxu1 %v20110_v39  ;;  %v20818_v39 = vpack.c.bf16 %v4930_v18, %v4928_v11  ;;  %v24592_v22 = vld [vmem:[#allocation20_spill] sm:$0xff]  ;;  %v20957_v11 = vpack.c.bf16 %v14178_v1, %v14176_v38  ;;  %v14192_v38 = vld [vmem:[%s24351_s4 + $0x4e8] sm:$0xff]  ;;  %v14194_v1 = vld [vmem:[%s24351_s4 + $0x4f8] sm:$0xff] }
 0x6d3   :  { %15765 = vmatpush1.bf16.msra.mxu0 %v20778_v21  ;;  %24585 = vst [vmem:[#allocation44_spill] sm:$0xff] %v20805_v0  ;;  %v14175_v18 = vld [vmem:[%s24351_s4 + $0x460] sm:$0xff] }
 0x6d4   :  { %4503 = vmatmul.mubr.f32.gmra.mrb[182].mxu1 %v20441_v15  ;;  %15767 = vmatprep.subr.bf16.mxu0 %v20782_v36  ;;  %24586 = vst [vmem:[#allocation45_spill] sm:$0xff] %v20818_v39  ;;  %v14187_v45 = vld [vmem:[%s24351_s4 + $0x4c0] sm:$0xff]  ;;  %v4942_v36 = vld [vmem:[%s24351_s4 + $0x250] sm:$0xff] }
 0x6d5   :  { %15693 = vmatpush1.bf16.msra.mxu1 %v20108_v24  ;;  %14091 = vmatprep.mubr.msk.f32.mxu1 %vm4222_vm3, %v20452_v37  ;;  %v4933_v24 = vld [vmem:[%s24351_s4 + $0x208] sm:$0xff] }
 0x6d6   :  { %15695 = vmatprep.subr.bf16.mxu1 %v20129_v34  ;;  %v4935_v34 = vld [vmem:[%s24351_s4 + $0x218] sm:$0xff] }
 0x6d7   :  { %15769 = vmatpush1.bf16.msra.mxu0 %v20801_v56  ;;  %v20833_v37 = vpack.c.bf16 %v4935_v34, %v4933_v24  ;;  %v14177_v24 = vld [vmem:[%s24351_s4 + $0x470] sm:$0xff]  ;;  %v14180_v34 = vld [vmem:[%s24351_s4 + $0x488] sm:$0xff] }
 0x6d8   :  { %4509 = vmatmul.mubr.f32.gmra.mrb[184].mxu1 %v20478_v7  ;;  %15771 = vmatprep.subr.bf16.mxu0 %v20805_v0  ;;  %v14161_v7 = vld [vmem:[%s24351_s4 + $0x3f0] sm:$0xff] }
 0x6d9   :  { %15697 = vmatpush1.bf16.msra.mxu1 %v20127_v30  ;;  %14092 = vmatprep.mubr.msk.f32.mxu1 %vm4222_vm3, %v20489_v52  ;;  %24587 = vst [vmem:[#allocation46_spill] sm:$0xff] %v20833_v37  ;;  %v14156_v52 = vld [vmem:[%s24351_s4 + $0x3c8] sm:$0xff]  ;;  %v14158_v30 = vld [vmem:[%s24351_s4 + $0x3d8] sm:$0xff] }
 0x6da   :  { %15699 = vmatprep.subr.bf16.mxu1 %v20141_v60  ;;  %v14155_v60 = vld [vmem:[%s24351_s4 + $0x3c0] sm:$0xff] }
 0x6db   :  { %15773 = vmatpush1.bf16.msra.mxu0 %v20818_v39  ;;  %v4938_v39 = vld [vmem:[%s24351_s4 + $0x230] sm:$0xff] }
 0x6dc   :  { %4515 = vmatmul.mubr.f32.gmra.mrb[186].mxu1 %v20515_v53  ;;  %15775 = vmatprep.subr.bf16.mxu0 %v20833_v37 }
 0x6dd   :  { %15701 = vmatpush1.bf16.msra.mxu1 %v20139_v58  ;;  %14093 = vmatprep.mubr.msk.f32.mxu1 %vm4222_vm3, %v20526_v27  ;;  %v20852_v58 = vpack.c.bf16 %v14158_v30, %v14156_v52  ;;  %v14160_v27 = vld [vmem:[%s24351_s4 + $0x3e8] sm:$0xff]  ;;  %v14182_v52 = vld [vmem:[%s24351_s4 + $0x498] sm:$0xff]  ;;  %v24593_v30 = vld [vmem:[#allocation22_spill] sm:$0xff] }
 0x6de   :  { %15703 = vmatprep.subr.bf16.mxu1 %v20153_v50  ;;  %v14157_v50 = vld [vmem:[%s24351_s4 + $0x3d0] sm:$0xff] }
 0x6e0   :  { %4521 = vmatmul.mubr.f32.gmra.mrb[188].mxu1 %v20552_v10  ;;  %v14163_v10 = vld [vmem:[%s24351_s4 + $0x400] sm:$0xff] }
 0x6e1   :  { %15705 = vmatpush1.bf16.msra.mxu1 %v20151_v49  ;;  %14094 = vmatprep.mubr.msk.f32.mxu1 %vm4222_vm3, %v20563_v44  ;;  %v14162_v49 = vld [vmem:[%s24351_s4 + $0x3f8] sm:$0xff]  ;;  %v14159_v44 = vld [vmem:[%s24351_s4 + $0x3e0] sm:$0xff]  ;;  %v20910_v5 = vpack.c.bf16 %v14165_v47, %v14163_v10  ;;  %v24596_v47 = vld [vmem:[#allocation26_spill] sm:$0xff] }
 0x6e2   :  { %15707 = vmatprep.subr.bf16.mxu1 %v20171_v13  ;;  %v20870_v13 = vpack.c.bf16 %v14157_v50, %v14155_v60  ;;  %v20873_v15 = vpack.c.bf16 %v14162_v49, %v14160_v27  ;;  %v20973_v60 = vpack.c.bf16 %v14177_v24, %v14175_v18  ;;  %v24594_v50 = vld [vmem:[#allocation23_spill] sm:$0xff]  ;;  %v20978_v27 = vpack.c.bf16 %v14182_v52, %v14180_v34  ;;  %v14179_v49 = vld [vmem:[%s24351_s4 + $0x480] sm:$0xff]  ;;  %v14193_v52 = vld [vmem:[%s24351_s4 + $0x4f0] sm:$0xff] }
 0x6e3   :  { %v24600_v18 = vld [vmem:[#allocation32_spill] sm:$0xff]  ;;  %v21041_v24 = vpack.c.bf16 %v14194_v1, %v14192_v38  ;;  %v14204_v38 = vld [vmem:[%s24351_s4 + $0x548] sm:$0xff]  ;;  %v14206_v1 = vld [vmem:[%s24351_s4 + $0x558] sm:$0xff] }
 0x6e4   :  { %4527 = vmatmul.mubr.f32.gmra.mrb[190].mxu1 %v20585_v51  ;;  %v20889_v51 = vpack.c.bf16 %v14161_v7, %v14159_v44  ;;  %v14181_v44 = vld [vmem:[%s24351_s4 + $0x490] sm:$0xff]  ;;  %v14184_v7 = vld [vmem:[%s24351_s4 + $0x4a8] sm:$0xff]  ;;  %v14191_v34 = vld [vmem:[%s24351_s4 + $0x4e0] sm:$0xff] }
 0x6e5   :  { %15709 = vmatpush1.bf16.msra.mxu1 %v20169_v17  ;;  %14131 = vmatprep.mubr.msk.f32.mxu1 %vm4222_vm3, %v20121_v57  ;;  %v14164_v17 = vld [vmem:[%s24351_s4 + $0x408] sm:$0xff]  ;;  %v14166_v57 = vld [vmem:[%s24351_s4 + $0x418] sm:$0xff]  ;;  %v20994_v10 = vpack.c.bf16 %v14181_v44, %v14179_v49  ;;  %v24601_v49 = vld [vmem:[#allocation34_spill] sm:$0xff]  ;;  %v21057_v44 = vpack.c.bf16 %v14193_v52, %v14191_v34  ;;  %v21104_v52 = vpack.c.bf16 %v14206_v1, %v14204_v38 }
 0x6e6   :  { %15831 = vmatprep.subr.bf16.mxu1 %v20852_v58  ;;  %v20894_v53 = vpack.c.bf16 %v14166_v57, %v14164_v17  ;;  %v14186_v17 = vld [vmem:[%s24351_s4 + $0x4b8] sm:$0xff]  ;;  %v24595_v57 = vld [vmem:[#allocation25_spill] sm:$0xff]  ;;  %v14213_v38 = vld [vmem:[%s24351_s4 + $0x590] sm:$0xff] }
 0x6e7   :  { %v24606_v34 = vld [vmem:[#allocation41_spill] sm:$0xff] }
 0x6e8   :  { %4796 = vmatmul.mubr.f32.vlgmr.msra.gmra.mrb[192].mxu1 %v20189_v26  ;;  %v14168_v26 = vld [vmem:[%s24351_s4 + $0x428] sm:$0xff] }
 0x6e9   :  { %15833 = vmatpush1.bf16.msra.mxu1 %v20870_v13  ;;  %14132 = vmatprep.mubr.msk.f32.mxu1 %vm4222_vm3, %v20201_v32  ;;  %v14170_v32 = vld [vmem:[%s24351_s4 + $0x438] sm:$0xff]  ;;  %v14216_v1 = vld [vmem:[%s24351_s4 + $0x5a8] sm:$0xff] }
 0x6ea   :  { %15835 = vmatprep.subr.bf16.mxu1 %v20873_v15  ;;  %v20915_v31 = vpack.c.bf16 %v14170_v32, %v14168_v26  ;;  %v20999_v26 = vpack.c.bf16 %v14186_v17, %v14184_v7  ;;  %v14183_v32 = vld [vmem:[%s24351_s4 + $0x4a0] sm:$0xff]  ;;  %v24602_v7 = vld [vmem:[#allocation35_spill] sm:$0xff] }
 0x6ec   :  { %4802 = vmatmul.mubr.f32.gmra.mrb[194].mxu1 %v20224_v43  ;;  %v14172_v43 = vld [vmem:[%s24351_s4 + $0x448] sm:$0xff] }
 0x6ed   :  { %15837 = vmatpush1.bf16.msra.mxu1 %v20889_v51  ;;  %14133 = vmatprep.mubr.msk.f32.mxu1 %vm4222_vm3, %v24588_v23  ;;  %v20936_v2 = vpack.c.bf16 %v14174_v41, %v14172_v43  ;;  %v14185_v23 = vld [vmem:[%s24351_s4 + $0x4b0] sm:$0xff]  ;;  %v24597_v43 = vld [vmem:[#allocation28_spill] sm:$0xff] }
 0x6ee   :  { %15839 = vmatprep.subr.bf16.mxu1 %v20894_v53  ;;  %v21015_v41 = vpack.c.bf16 %v14185_v23, %v14183_v32  ;;  %v14200_v32 = vld [vmem:[%s24351_s4 + $0x528] sm:$0xff]  ;;  %v14202_v23 = vld [vmem:[%s24351_s4 + $0x538] sm:$0xff] }
 0x6f0   :  { %4808 = vmatmul.mubr.f32.gmra.mrb[196].mxu1 %v24589_v59  ;;  %v24598_v59 = vld [vmem:[#allocation29_spill] sm:$0xff] }
 0x6f1   :  { %15841 = vmatpush1.bf16.msra.mxu1 %v20910_v5  ;;  %14134 = vmatprep.mubr.msk.f32.mxu1 %vm4222_vm3, %v24590_v9  ;;  %v21020_v9 = vpack.c.bf16 %v14190_v4, %v14188_v28  ;;  %v24603_v28 = vld [vmem:[#allocation37_spill] sm:$0xff] }
 0x6f2   :  { %15843 = vmatprep.subr.bf16.mxu1 %v20915_v31 }
 0x6f4   :  { %4814 = vmatmul.mubr.f32.gmra.mrb[198].mxu1 %v24591_v55  ;;  %v24599_v55 = vld [vmem:[#allocation31_spill] sm:$0xff] }
 0x6f5   :  { %15845 = vmatpush1.bf16.msra.mxu1 %v20931_v35  ;;  %14135 = vmatprep.mubr.msk.f32.mxu1 %vm4222_vm3, %v24592_v22  ;;  %v21036_v22 = vpack.c.bf16 %v14189_v6, %v14187_v45  ;;  %v14199_v45 = vld [vmem:[%s24351_s4 + $0x520] sm:$0xff]  ;;  %v14201_v6 = vld [vmem:[%s24351_s4 + $0x530] sm:$0xff] }
 0x6f6   :  { %15847 = vmatprep.subr.bf16.mxu1 %v20936_v2 }
 0x6f8   :  { %4820 = vmatmul.mubr.f32.gmra.mrb[200].mxu1 %v24593_v30  ;;  %v14196_v30 = vld [vmem:[%s24351_s4 + $0x508] sm:$0xff] }
 0x6f9   :  { %15849 = vmatpush1.bf16.msra.mxu1 %v20952_v46  ;;  %14136 = vmatprep.mubr.msk.f32.mxu1 %vm4222_vm3, %v24594_v50  ;;  %v14198_v50 = vld [vmem:[%s24351_s4 + $0x518] sm:$0xff] }
 0x6fa   :  { %15851 = vmatprep.subr.bf16.mxu1 %v20957_v11  ;;  %v21062_v17 = vpack.c.bf16 %v14198_v50, %v14196_v30  ;;  %v14203_v30 = vld [vmem:[%s24351_s4 + $0x540] sm:$0xff]  ;;  %v14205_v50 = vld [vmem:[%s24351_s4 + $0x550] sm:$0xff] }
 0x6fc   :  { %4826 = vmatmul.mubr.f32.gmra.mrb[202].mxu1 %v24595_v57  ;;  %v14195_v57 = vld [vmem:[%s24351_s4 + $0x500] sm:$0xff] }
 0x6fd   :  { %15853 = vmatpush1.bf16.msra.mxu1 %v20973_v60  ;;  %14137 = vmatprep.mubr.msk.f32.mxu1 %vm4222_vm3, %v24596_v47  ;;  %v14197_v47 = vld [vmem:[%s24351_s4 + $0x510] sm:$0xff] }
 0x6fe   :  { %15855 = vmatprep.subr.bf16.mxu1 %v20978_v27  ;;  %v21078_v4 = vpack.c.bf16 %v14197_v47, %v14195_v57  ;;  %v21120_v57 = vpack.c.bf16 %v14205_v50, %v14203_v30  ;;  %v14215_v50 = vld [vmem:[%s24351_s4 + $0x5a0] sm:$0xff] }
 0x700   :  { %4832 = vmatmul.mubr.f32.gmra.mrb[204].mxu1 %v24597_v43  ;;  %v24604_v43 = vld [vmem:[#allocation38_spill] sm:$0xff] }
 0x701   :  { %15857 = vmatpush1.bf16.msra.mxu1 %v20994_v10  ;;  %14138 = vmatprep.mubr.msk.f32.mxu1 %vm4222_vm3, %v24598_v59  ;;  %v21083_v59 = vpack.c.bf16 %v14202_v23, %v14200_v32  ;;  %v14207_v32 = vld [vmem:[%s24351_s4 + $0x560] sm:$0xff]  ;;  %v14209_v23 = vld [vmem:[%s24351_s4 + $0x570] sm:$0xff] }
 0x702   :  { %15859 = vmatprep.subr.bf16.mxu1 %v20999_v26 }
 0x704   :  { %4838 = vmatmul.mubr.f32.gmra.mrb[206].mxu1 %v24599_v55  ;;  %v24605_v55 = vld [vmem:[#allocation40_spill] sm:$0xff] }
 0x705   :  { %15861 = vmatpush1.bf16.msra.mxu1 %v21015_v41  ;;  %14139 = vmatprep.mubr.msk.f32.mxu1 %vm4222_vm3, %v24600_v18  ;;  %v21099_v18 = vpack.c.bf16 %v14201_v6, %v14199_v45  ;;  %v14211_v6 = vld [vmem:[%s24351_s4 + $0x580] sm:$0xff] }
 0x706   :  { %15863 = vmatprep.subr.bf16.mxu1 %v21020_v9 }
 0x708   :  { %4844 = vmatmul.mubr.f32.gmra.mrb[208].mxu1 %v24601_v49  ;;  %v14208_v49 = vld [vmem:[%s24351_s4 + $0x568] sm:$0xff] }
 0x709   :  { %15865 = vmatpush1.bf16.msra.mxu1 %v21036_v22  ;;  %14140 = vmatprep.mubr.msk.f32.mxu1 %vm4222_vm3, %v24602_v7  ;;  %v14210_v7 = vld [vmem:[%s24351_s4 + $0x578] sm:$0xff] }
 0x70a   :  { %15867 = vmatprep.subr.bf16.mxu1 %v21041_v24  ;;  %v21123_v47 = vpack.c.bf16 %v14210_v7, %v14208_v49  ;;  %v14217_v49 = vld [vmem:[%s24351_s4 + $0x5b0] sm:$0xff]  ;;  %v14220_v7 = vld [vmem:[%s24351_s4 + $0x5c8] sm:$0xff] }
 0x70c   :  { %4850 = vmatmul.mubr.f32.gmra.mrb[210].mxu1 %v24603_v28  ;;  %v14214_v28 = vld [vmem:[%s24351_s4 + $0x598] sm:$0xff] }
 0x70d   :  { %15869 = vmatpush1.bf16.msra.mxu1 %v21057_v44  ;;  %14141 = vmatprep.mubr.msk.f32.mxu1 %vm4222_vm3, %v24604_v43  ;;  %v21138_v43 = vpack.c.bf16 %v14209_v23, %v14207_v32  ;;  %v14222_v32 = vld [vmem:[%s24351_s4 + $0x5d8] sm:$0xff]  ;;  %v21174_v23 = vpack.c.bf16 %v14217_v49, %v14215_v50  ;;  %v14224_v49 = vld [vmem:[%s24351_s4 + $0x5e8] sm:$0xff] }
 0x70e   :  { %15871 = vmatprep.subr.bf16.mxu1 %v21062_v17  ;;  %v4939_v50 = vld [vmem:[%s24351_s4 + $0x238] sm:$0xff] }
 0x70f   :  { %24607 = vst [vmem:[#allocation14_spill] sm:$0xff] %v21138_v43  ;;  %24611 = vst [vmem:[#allocation20_spill] sm:$0xff] %v21174_v23 }
 0x710   :  { %4856 = vmatmul.mubr.f32.gmra.mrb[212].mxu1 %v24605_v55  ;;  %v14218_v55 = vld [vmem:[%s24351_s4 + $0x5b8] sm:$0xff] }
 0x711   :  { %15873 = vmatpush1.bf16.msra.mxu1 %v21078_v4  ;;  %14142 = vmatprep.mubr.msk.f32.mxu1 %vm4222_vm3, %v24606_v34  ;;  %v21156_v34 = vpack.c.bf16 %v14213_v38, %v14211_v6  ;;  %v21159_v30 = vpack.c.bf16 %v14218_v55, %v14216_v1  ;;  %v4934_v6 = vld [vmem:[%s24351_s4 + $0x210] sm:$0xff]  ;;  %v14219_v38 = vld [vmem:[%s24351_s4 + $0x5c0] sm:$0xff]  ;;  %v4937_v55 = vld [vmem:[%s24351_s4 + $0x228] sm:$0xff] }
 0x712   :  { %15875 = vmatprep.subr.bf16.mxu1 %v21083_v59  ;;  %v14221_v1 = vld [vmem:[%s24351_s4 + $0x5d0] sm:$0xff] }
 0x713   :  { %24609 = vst [vmem:[#allocation17_spill] sm:$0xff] %v21156_v34  ;;  %24610 = vst [vmem:[#allocation19_spill] sm:$0xff] %v21159_v30  ;;  %v21207_v37 = vpack.c.bf16 %v14221_v1, %v14219_v38  ;;  %v4941_v38 = vld [vmem:[%s24351_s4 + $0x248] sm:$0xff] }
 0x714   :  { %4862 = vmatmul.mubr.f32.gmra.mrb[214].mxu1 %v20600_v54  ;;  %v14212_v54 = vld [vmem:[%s24351_s4 + $0x588] sm:$0xff] }
 0x715   :  { %15877 = vmatpush1.bf16.msra.mxu1 %v21099_v18  ;;  %v21141_v45 = vpack.c.bf16 %v14214_v28, %v14212_v54  ;;  %v21177_v54 = vpack.c.bf16 %v14222_v32, %v14220_v7  ;;  %v4932_v28 = vld [vmem:[%s24351_s4 + $0x200] sm:$0xff]  ;;  %v14226_v7 = vld [vmem:[%s24351_s4 + $0x5f8] sm:$0xff]  ;;  %24614 = vst [vmem:[#allocation25_spill] sm:$0xff] %v21207_v37 }
 0x716   :  { %15879 = vmatprep.subr.bf16.mxu1 %v21104_v52  ;;  %v21219_v56 = vpack.c.bf16 %v14226_v7, %v14224_v49  ;;  %v14230_v49 = vld [vmem:[%s24351_s4 + $0x618] sm:$0xff] }
 0x717   :  { %24608 = vst [vmem:[#allocation16_spill] sm:$0xff] %v21141_v45  ;;  %24612 = vst [vmem:[#allocation22_spill] sm:$0xff] %v21177_v54 }
 0x718   :  { %24617 = vst [vmem:[#allocation29_spill] sm:$0xff] %v21219_v56 }
 0x719   :  { %15881 = vmatpush1.bf16.msra.mxu1 %v21120_v57 }
 0x71a   :  { %15883 = vmatprep.subr.bf16.mxu1 %v21123_v47 }
 0x71d   :  { %15885 = vmatpush1.bf16.msra.mxu1 %v21138_v43 }
 0x71e   :  { %15887 = vmatprep.subr.bf16.mxu1 %v21141_v45  ;;  %v4940_v45 = vld [vmem:[%s24351_s4 + $0x240] sm:$0xff] }
 0x721   :  { %15889 = vmatpush1.bf16.msra.mxu1 %v21156_v34  ;;  %v21217_v34 = vpack.c.bf16 %v4939_v50, %v4937_v55  ;;  %v4943_v55 = vld [vmem:[%s24351_s4 + $0x258] sm:$0xff]  ;;  %v14228_v50 = vld [vmem:[%s24351_s4 + $0x608] sm:$0xff] }
 0x722   :  { %15891 = vmatprep.subr.bf16.mxu1 %v21159_v30 }
 0x723   :  { %24616 = vst [vmem:[#allocation28_spill] sm:$0xff] %v21217_v34 }
 0x725   :  { %15893 = vmatpush1.bf16.msra.mxu1 %v21174_v23  ;;  %v4936_v23 = vld [vmem:[%s24351_s4 + $0x220] sm:$0xff] }
 0x726   :  { %15895 = vmatprep.subr.bf16.mxu1 %v21177_v54  ;;  %v21205_v54 = vpack.c.bf16 %v4934_v6, %v4932_v28  ;;  %v14223_v28 = vld [vmem:[%s24351_s4 + $0x5e0] sm:$0xff]  ;;  %v14225_v6 = vld [vmem:[%s24351_s4 + $0x5f0] sm:$0xff]  ;;  %v21243_v7 = vpack.c.bf16 %v4938_v39, %v4936_v23  ;;  %v21259_v39 = vpack.c.bf16 %v14230_v49, %v14228_v50  ;;  %v14234_v50 = vld [vmem:[%s24351_s4 + $0x638] sm:$0xff]  ;;  %v21283_v49 = vpack.c.bf16 %v4942_v36, %v4940_v45 }
 0x728   :  { %24613 = vst [vmem:[#allocation23_spill] sm:$0xff] %v21205_v54  ;;  %24618 = vst [vmem:[#allocation31_spill] sm:$0xff] %v21243_v7 }
 0x729   :  { %24622 = vst [vmem:[#allocation37_spill] sm:$0xff] %v21259_v39  ;;  %24624 = vst [vmem:[#allocation40_spill] sm:$0xff] %v21283_v49 }
 0x75b   :  { %v4325_v32 = vpop.f32.mrb[144].mxu1  ;;  %v21215_v30 = vpop.f32.mrb[192].mxu0 }
 0x75c   :  { %24615 = vst [vmem:[#allocation26_spill] sm:$0xff] %v21215_v30  ;;  %v4327_v0 = vpop.f32.mrb[145].mxu1  ;;  %v21230_v1 = vpop.f32.mrb[193].mxu0 }
 0x75d   :  { %5088 = vmatprep.mubr.f32.mxu0 %v4327_v0  ;;  %5483 = vmatprep.mubr.f32.mxu1 %v4327_v0  ;;  %v21245_v0 = vpack.c.bf16 %v14225_v6, %v14223_v28  ;;  %v14227_v28 = vld [vmem:[%s24351_s4 + $0x600] sm:$0xff]  ;;  %v14229_v6 = vld [vmem:[%s24351_s4 + $0x610] sm:$0xff] }
 0x75e   :  { %5089 = vmatmul.mubr.f32.vlgmr.msra.gmra.mrb[216].mxu0 %v4325_v32  ;;  %5484 = vmatmul.mubr.f32.vlgmr.msra.gmra.mrb[216].mxu1 %v4325_v32  ;;  %v21257_v32 = vpack.c.bf16 %v4943_v55, %v4941_v38  ;;  %v4947_v38 = vld [vmem:[%s24351_s4 + $0x278] sm:$0xff]  ;;  %v14232_v55 = vld [vmem:[%s24351_s4 + $0x628] sm:$0xff] }
 0x75f   :  { %15777 = vmatpush1.bf16.msra.mxu0 %v21205_v54  ;;  %15897 = vmatpush1.bf16.msra.mxu1 %v21207_v37  ;;  %24619 = vst [vmem:[#allocation32_spill] sm:$0xff] %v21245_v0  ;;  %v4331_v30 = vpop.f32.mrb[146].mxu1  ;;  %v21253_v43 = vpop.f32.mrb[194].mxu0  ;;  %v4946_v37 = vld [vmem:[%s24351_s4 + $0x270] sm:$0xff]  ;;  %v21299_v36 = vpack.c.bf16 %v14234_v50, %v14232_v55  ;;  %v14238_v55 = vld [vmem:[%s24351_s4 + $0x658] sm:$0xff] }
 0x760   :  { %24620 = vst [vmem:[#allocation34_spill] sm:$0xff] %v21253_v43  ;;  %15779 = vmatprep.subr.bf16.mxu0 %v21217_v34  ;;  %15899 = vmatprep.subr.bf16.mxu1 %v21219_v56  ;;  %24621 = vst [vmem:[#allocation35_spill] sm:$0xff] %v21257_v32  ;;  %v4333_v23 = vpop.f32.mrb[147].mxu1  ;;  %v4945_v43 = vld [vmem:[%s24351_s4 + $0x268] sm:$0xff]  ;;  %v21270_v34 = vpop.f32.mrb[195].mxu0 }
 0x761   :  { %24623 = vst [vmem:[#allocation38_spill] sm:$0xff] %v21270_v34  ;;  %5094 = vmatprep.mubr.f32.mxu0 %v4333_v23  ;;  %5489 = vmatprep.mubr.f32.mxu1 %v4333_v23  ;;  %v21285_v23 = vpack.c.bf16 %v14229_v6, %v14227_v28  ;;  %v4944_v34 = vld [vmem:[%s24351_s4 + $0x260] sm:$0xff]  ;;  %24628 = vst [vmem:[#allocation49_spill] sm:$0xff] %v21299_v36  ;;  %v14233_v6 = vld [vmem:[%s24351_s4 + $0x630] sm:$0xff] }
 0x762   :  { %5095 = vmatmul.mubr.f32.gmra.mrb[218].mxu0 %v4331_v30  ;;  %5490 = vmatmul.mubr.f32.gmra.mrb[218].mxu1 %v4331_v30  ;;  %v21297_v30 = vpack.c.bf16 %v4947_v38, %v4945_v43  ;;  %v14231_v28 = vld [vmem:[%s24351_s4 + $0x620] sm:$0xff]  ;;  %v4951_v43 = vld [vmem:[%s24351_s4 + $0x298] sm:$0xff]  ;;  %v14236_v38 = vld [vmem:[%s24351_s4 + $0x648] sm:$0xff]  ;;  %v21323_v50 = vpack.c.bf16 %v4946_v37, %v4944_v34 }
 0x763   :  { %15781 = vmatpush1.bf16.msra.mxu0 %v21243_v7  ;;  %15901 = vmatpush1.bf16.msra.mxu1 %v21245_v0  ;;  %24625 = vst [vmem:[#allocation41_spill] sm:$0xff] %v21285_v23  ;;  %v4337_v56 = vpop.f32.mrb[148].mxu1  ;;  %v21293_v54 = vpop.f32.mrb[196].mxu0  ;;  %v4950_v0 = vld [vmem:[%s24351_s4 + $0x290] sm:$0xff]  ;;  %v21339_v37 = vpack.c.bf16 %v14238_v55, %v14236_v38  ;;  %v14242_v38 = vld [vmem:[%s24351_s4 + $0x678] sm:$0xff] }
 0x764   :  { %24626 = vst [vmem:[#allocation47_spill] sm:$0xff] %v21293_v54  ;;  %15783 = vmatprep.subr.bf16.mxu0 %v21257_v32  ;;  %15903 = vmatprep.subr.bf16.mxu1 %v21259_v39  ;;  %24627 = vst [vmem:[#allocation48_spill] sm:$0xff] %v21297_v30  ;;  %v4339_v45 = vpop.f32.mrb[149].mxu1  ;;  %v4949_v54 = vld [vmem:[%s24351_s4 + $0x288] sm:$0xff]  ;;  %v21310_v32 = vpop.f32.mrb[197].mxu0 }
 0x765   :  { %24629 = vst [vmem:[#allocation50_spill] sm:$0xff] %v21310_v32  ;;  %5100 = vmatprep.mubr.f32.mxu0 %v4339_v45  ;;  %5495 = vmatprep.mubr.f32.mxu1 %v4339_v45  ;;  %24630 = vst [vmem:[#allocation51_spill] sm:$0xff] %v21323_v50  ;;  %v21325_v45 = vpack.c.bf16 %v14233_v6, %v14231_v28  ;;  %v4948_v32 = vld [vmem:[%s24351_s4 + $0x280] sm:$0xff]  ;;  %v14237_v6 = vld [vmem:[%s24351_s4 + $0x650] sm:$0xff] }
 0x766   :  { %5101 = vmatmul.mubr.f32.gmra.mrb[220].mxu0 %v4337_v56  ;;  %5496 = vmatmul.mubr.f32.gmra.mrb[220].mxu1 %v4337_v56  ;;  %v21337_v56 = vpack.c.bf16 %v4951_v43, %v4949_v54  ;;  %24634 = vst [vmem:[#allocation55_spill] sm:$0xff] %v21339_v37  ;;  %v14235_v28 = vld [vmem:[%s24351_s4 + $0x640] sm:$0xff]  ;;  %v4955_v54 = vld [vmem:[%s24351_s4 + $0x2b8] sm:$0xff]  ;;  %v14240_v43 = vld [vmem:[%s24351_s4 + $0x668] sm:$0xff]  ;;  %v21363_v55 = vpack.c.bf16 %v4950_v0, %v4948_v32 }
 0x767   :  { %15785 = vmatpush1.bf16.msra.mxu0 %v21283_v49  ;;  %15905 = vmatpush1.bf16.msra.mxu1 %v21285_v23  ;;  %24631 = vst [vmem:[#allocation52_spill] sm:$0xff] %v21325_v45  ;;  %v4343_v39 = vpop.f32.mrb[150].mxu1  ;;  %v21333_v7 = vpop.f32.mrb[198].mxu0  ;;  %v4954_v23 = vld [vmem:[%s24351_s4 + $0x2b0] sm:$0xff]  ;;  %v21379_v0 = vpack.c.bf16 %v14242_v38, %v14240_v43  ;;  %v14246_v43 = vld [vmem:[%s24351_s4 + $0x698] sm:$0xff] }
 0x768   :  { %24632 = vst [vmem:[#allocation53_spill] sm:$0xff] %v21333_v7  ;;  %15787 = vmatprep.subr.bf16.mxu0 %v21297_v30  ;;  %15907 = vmatprep.subr.bf16.mxu1 %v21299_v36  ;;  %24633 = vst [vmem:[#allocation54_spill] sm:$0xff] %v21337_v56  ;;  %v4345_v34 = vpop.f32.mrb[151].mxu1  ;;  %v4953_v7 = vld [vmem:[%s24351_s4 + $0x2a8] sm:$0xff]  ;;  %v21350_v30 = vpop.f32.mrb[199].mxu0 }
 0x769   :  { %24635 = vst [vmem:[#allocation56_spill] sm:$0xff] %v21350_v30  ;;  %5106 = vmatprep.mubr.f32.mxu0 %v4345_v34  ;;  %5501 = vmatprep.mubr.f32.mxu1 %v4345_v34  ;;  %24636 = vst [vmem:[#allocation57_spill] sm:$0xff] %v21363_v55  ;;  %v21365_v34 = vpack.c.bf16 %v14237_v6, %v14235_v28  ;;  %v4952_v30 = vld [vmem:[%s24351_s4 + $0x2a0] sm:$0xff]  ;;  %v14241_v6 = vld [vmem:[%s24351_s4 + $0x670] sm:$0xff] }
 0x76a   :  { %5107 = vmatmul.mubr.f32.gmra.mrb[222].mxu0 %v4343_v39  ;;  %5502 = vmatmul.mubr.f32.gmra.mrb[222].mxu1 %v4343_v39  ;;  %v21377_v39 = vpack.c.bf16 %v4955_v54, %v4953_v7  ;;  %24640 = vst [vmem:[#allocation61_spill] sm:$0xff] %v21379_v0  ;;  %v14239_v28 = vld [vmem:[%s24351_s4 + $0x660] sm:$0xff]  ;;  %v4959_v7 = vld [vmem:[%s24351_s4 + $0x2d8] sm:$0xff]  ;;  %v14244_v54 = vld [vmem:[%s24351_s4 + $0x688] sm:$0xff]  ;;  %v21403_v38 = vpack.c.bf16 %v4954_v23, %v4952_v30 }
 0x76b   :  { %15789 = vmatpush1.bf16.msra.mxu0 %v21323_v50  ;;  %15909 = vmatpush1.bf16.msra.mxu1 %v21325_v45  ;;  %24637 = vst [vmem:[#allocation58_spill] sm:$0xff] %v21365_v34  ;;  %v4349_v36 = vpop.f32.mrb[152].mxu1  ;;  %v21373_v49 = vpop.f32.mrb[200].mxu0  ;;  %v4958_v45 = vld [vmem:[%s24351_s4 + $0x2d0] sm:$0xff]  ;;  %v21419_v23 = vpack.c.bf16 %v14246_v43, %v14244_v54  ;;  %v14250_v54 = vld [vmem:[%s24351_s4 + $0x6b8] sm:$0xff] }
 0x76c   :  { %24638 = vst [vmem:[#allocation59_spill] sm:$0xff] %v21373_v49  ;;  %15791 = vmatprep.subr.bf16.mxu0 %v21337_v56  ;;  %15911 = vmatprep.subr.bf16.mxu1 %v21339_v37  ;;  %24639 = vst [vmem:[#allocation60_spill] sm:$0xff] %v21377_v39  ;;  %v4351_v32 = vpop.f32.mrb[153].mxu1  ;;  %v4957_v49 = vld [vmem:[%s24351_s4 + $0x2c8] sm:$0xff]  ;;  %v21390_v56 = vpop.f32.mrb[201].mxu0 }
 0x76d   :  { %24641 = vst [vmem:[#allocation62_spill] sm:$0xff] %v21390_v56  ;;  %5112 = vmatprep.mubr.f32.mxu0 %v4351_v32  ;;  %5507 = vmatprep.mubr.f32.mxu1 %v4351_v32  ;;  %24642 = vst [vmem:[#allocation63_spill] sm:$0xff] %v21403_v38  ;;  %v21405_v32 = vpack.c.bf16 %v14241_v6, %v14239_v28  ;;  %v4956_v56 = vld [vmem:[%s24351_s4 + $0x2c0] sm:$0xff]  ;;  %v14245_v6 = vld [vmem:[%s24351_s4 + $0x690] sm:$0xff] }
 0x76e   :  { %5113 = vmatmul.mubr.f32.gmra.mrb[224].mxu0 %v4349_v36  ;;  %5508 = vmatmul.mubr.f32.gmra.mrb[224].mxu1 %v4349_v36  ;;  %v21417_v36 = vpack.c.bf16 %v4959_v7, %v4957_v49  ;;  %24646 = vst [vmem:[#allocation67_spill] sm:$0xff] %v21419_v23  ;;  %v14243_v28 = vld [vmem:[%s24351_s4 + $0x680] sm:$0xff]  ;;  %v4963_v49 = vld [vmem:[%s24351_s4 + $0x2f8] sm:$0xff]  ;;  %v14248_v7 = vld [vmem:[%s24351_s4 + $0x6a8] sm:$0xff]  ;;  %v21443_v43 = vpack.c.bf16 %v4958_v45, %v4956_v56 }
 0x76f   :  { %15793 = vmatpush1.bf16.msra.mxu0 %v21363_v55  ;;  %15913 = vmatpush1.bf16.msra.mxu1 %v21365_v34  ;;  %24643 = vst [vmem:[#allocation64_spill] sm:$0xff] %v21405_v32  ;;  %v4355_v37 = vpop.f32.mrb[154].mxu1  ;;  %v21413_v50 = vpop.f32.mrb[202].mxu0  ;;  %v4962_v34 = vld [vmem:[%s24351_s4 + $0x2f0] sm:$0xff]  ;;  %v21459_v45 = vpack.c.bf16 %v14250_v54, %v14248_v7  ;;  %v14254_v7 = vld [vmem:[%s24351_s4 + $0x6d8] sm:$0xff] }
 0x770   :  { %24644 = vst [vmem:[#allocation65_spill] sm:$0xff] %v21413_v50  ;;  %15795 = vmatprep.subr.bf16.mxu0 %v21377_v39  ;;  %15915 = vmatprep.subr.bf16.mxu1 %v21379_v0  ;;  %24645 = vst [vmem:[#allocation66_spill] sm:$0xff] %v21417_v36  ;;  %v4357_v30 = vpop.f32.mrb[155].mxu1  ;;  %v4961_v50 = vld [vmem:[%s24351_s4 + $0x2e8] sm:$0xff]  ;;  %v21430_v39 = vpop.f32.mrb[203].mxu0 }
 0x771   :  { %24647 = vst [vmem:[#allocation68_spill] sm:$0xff] %v21430_v39  ;;  %5118 = vmatprep.mubr.f32.mxu0 %v4357_v30  ;;  %5513 = vmatprep.mubr.f32.mxu1 %v4357_v30  ;;  %24648 = vst [vmem:[#allocation69_spill] sm:$0xff] %v21443_v43  ;;  %v21445_v30 = vpack.c.bf16 %v14245_v6, %v14243_v28  ;;  %v4960_v39 = vld [vmem:[%s24351_s4 + $0x2e0] sm:$0xff]  ;;  %v14249_v6 = vld [vmem:[%s24351_s4 + $0x6b0] sm:$0xff] }
 0x772   :  { %5119 = vmatmul.mubr.f32.gmra.mrb[226].mxu0 %v4355_v37  ;;  %5514 = vmatmul.mubr.f32.gmra.mrb[226].mxu1 %v4355_v37  ;;  %v21457_v37 = vpack.c.bf16 %v4963_v49, %v4961_v50  ;;  %24652 = vst [vmem:[#allocation73_spill] sm:$0xff] %v21459_v45  ;;  %v14247_v28 = vld [vmem:[%s24351_s4 + $0x6a0] sm:$0xff]  ;;  %v4967_v50 = vld [vmem:[%s24351_s4 + $0x318] sm:$0xff]  ;;  %v14252_v49 = vld [vmem:[%s24351_s4 + $0x6c8] sm:$0xff]  ;;  %v21483_v54 = vpack.c.bf16 %v4962_v34, %v4960_v39 }
 0x773   :  { %15797 = vmatpush1.bf16.msra.mxu0 %v21403_v38  ;;  %15917 = vmatpush1.bf16.msra.mxu1 %v21405_v32  ;;  %24649 = vst [vmem:[#allocation70_spill] sm:$0xff] %v21445_v30  ;;  %v4361_v0 = vpop.f32.mrb[156].mxu1  ;;  %v21453_v55 = vpop.f32.mrb[204].mxu0  ;;  %v4966_v32 = vld [vmem:[%s24351_s4 + $0x310] sm:$0xff]  ;;  %v21499_v34 = vpack.c.bf16 %v14254_v7, %v14252_v49  ;;  %v14258_v49 = vld [vmem:[%s24351_s4 + $0x6f8] sm:$0xff] }
 0x774   :  { %24650 = vst [vmem:[#allocation71_spill] sm:$0xff] %v21453_v55  ;;  %15799 = vmatprep.subr.bf16.mxu0 %v21417_v36  ;;  %15919 = vmatprep.subr.bf16.mxu1 %v21419_v23  ;;  %24651 = vst [vmem:[#allocation72_spill] sm:$0xff] %v21457_v37  ;;  %v4363_v56 = vpop.f32.mrb[157].mxu1  ;;  %v4965_v55 = vld [vmem:[%s24351_s4 + $0x308] sm:$0xff]  ;;  %v21470_v36 = vpop.f32.mrb[205].mxu0 }
 0x775   :  { %24653 = vst [vmem:[#allocation74_spill] sm:$0xff] %v21470_v36  ;;  %5124 = vmatprep.mubr.f32.mxu0 %v4363_v56  ;;  %5519 = vmatprep.mubr.f32.mxu1 %v4363_v56  ;;  %24654 = vst [vmem:[#allocation75_spill] sm:$0xff] %v21483_v54  ;;  %v21485_v56 = vpack.c.bf16 %v14249_v6, %v14247_v28  ;;  %v4964_v36 = vld [vmem:[%s24351_s4 + $0x300] sm:$0xff]  ;;  %v14253_v6 = vld [vmem:[%s24351_s4 + $0x6d0] sm:$0xff] }
 0x776   :  { %5125 = vmatmul.mubr.f32.gmra.mrb[228].mxu0 %v4361_v0  ;;  %5520 = vmatmul.mubr.f32.gmra.mrb[228].mxu1 %v4361_v0  ;;  %v21497_v0 = vpack.c.bf16 %v4967_v50, %v4965_v55  ;;  %24658 = vst [vmem:[#allocation79_spill] sm:$0xff] %v21499_v34  ;;  %v14251_v28 = vld [vmem:[%s24351_s4 + $0x6c0] sm:$0xff]  ;;  %v4971_v55 = vld [vmem:[%s24351_s4 + $0x338] sm:$0xff]  ;;  %v14256_v50 = vld [vmem:[%s24351_s4 + $0x6e8] sm:$0xff]  ;;  %v21523_v7 = vpack.c.bf16 %v4966_v32, %v4964_v36 }
 0x777   :  { %15801 = vmatpush1.bf16.msra.mxu0 %v21443_v43  ;;  %15921 = vmatpush1.bf16.msra.mxu1 %v21445_v30  ;;  %24655 = vst [vmem:[#allocation76_spill] sm:$0xff] %v21485_v56  ;;  %v4367_v23 = vpop.f32.mrb[158].mxu1  ;;  %v21493_v38 = vpop.f32.mrb[206].mxu0  ;;  %v4970_v30 = vld [vmem:[%s24351_s4 + $0x330] sm:$0xff]  ;;  %v21539_v32 = vpack.c.bf16 %v14258_v49, %v14256_v50  ;;  %v14262_v50 = vld [vmem:[%s24351_s4 + $0x718] sm:$0xff] }
 0x778   :  { %24656 = vst [vmem:[#allocation77_spill] sm:$0xff] %v21493_v38  ;;  %15803 = vmatprep.subr.bf16.mxu0 %v21457_v37  ;;  %15923 = vmatprep.subr.bf16.mxu1 %v21459_v45  ;;  %24657 = vst [vmem:[#allocation78_spill] sm:$0xff] %v21497_v0  ;;  %v4369_v39 = vpop.f32.mrb[159].mxu1  ;;  %v4969_v38 = vld [vmem:[%s24351_s4 + $0x328] sm:$0xff]  ;;  %v21510_v37 = vpop.f32.mrb[207].mxu0 }
 0x779   :  { %24659 = vst [vmem:[#allocation80_spill] sm:$0xff] %v21510_v37  ;;  %5130 = vmatprep.mubr.f32.mxu0 %v4369_v39  ;;  %5525 = vmatprep.mubr.f32.mxu1 %v4369_v39  ;;  %24660 = vst [vmem:[#allocation81_spill] sm:$0xff] %v21523_v7  ;;  %v21525_v39 = vpack.c.bf16 %v14253_v6, %v14251_v28  ;;  %v4968_v37 = vld [vmem:[%s24351_s4 + $0x320] sm:$0xff]  ;;  %v14257_v6 = vld [vmem:[%s24351_s4 + $0x6f0] sm:$0xff] }
 0x77a   :  { %5131 = vmatmul.mubr.f32.gmra.mrb[230].mxu0 %v4367_v23  ;;  %5526 = vmatmul.mubr.f32.gmra.mrb[230].mxu1 %v4367_v23  ;;  %v21537_v23 = vpack.c.bf16 %v4971_v55, %v4969_v38  ;;  %24664 = vst [vmem:[#allocation85_spill] sm:$0xff] %v21539_v32  ;;  %v14255_v28 = vld [vmem:[%s24351_s4 + $0x6e0] sm:$0xff]  ;;  %v4975_v38 = vld [vmem:[%s24351_s4 + $0x358] sm:$0xff]  ;;  %v14260_v55 = vld [vmem:[%s24351_s4 + $0x708] sm:$0xff]  ;;  %v21563_v49 = vpack.c.bf16 %v4970_v30, %v4968_v37 }
 0x77b   :  { %15805 = vmatpush1.bf16.msra.mxu0 %v21483_v54  ;;  %15925 = vmatpush1.bf16.msra.mxu1 %v21485_v56  ;;  %24661 = vst [vmem:[#allocation82_spill] sm:$0xff] %v21525_v39  ;;  %v4373_v45 = vpop.f32.mrb[160].mxu1  ;;  %v21533_v43 = vpop.f32.mrb[208].mxu0  ;;  %v4974_v56 = vld [vmem:[%s24351_s4 + $0x350] sm:$0xff]  ;;  %v21579_v30 = vpack.c.bf16 %v14262_v50, %v14260_v55  ;;  %v14266_v55 = vld [vmem:[%s24351_s4 + $0x738] sm:$0xff] }
 0x77c   :  { %24662 = vst [vmem:[#allocation83_spill] sm:$0xff] %v21533_v43  ;;  %15807 = vmatprep.subr.bf16.mxu0 %v21497_v0  ;;  %15927 = vmatprep.subr.bf16.mxu1 %v21499_v34  ;;  %24663 = vst [vmem:[#allocation84_spill] sm:$0xff] %v21537_v23  ;;  %v4375_v36 = vpop.f32.mrb[161].mxu1  ;;  %v4973_v43 = vld [vmem:[%s24351_s4 + $0x348] sm:$0xff]  ;;  %v21550_v0 = vpop.f32.mrb[209].mxu0 }
 0x77d   :  { %24665 = vst [vmem:[#allocation86_spill] sm:$0xff] %v21550_v0  ;;  %5136 = vmatprep.mubr.f32.mxu0 %v4375_v36  ;;  %5531 = vmatprep.mubr.f32.mxu1 %v4375_v36  ;;  %24666 = vst [vmem:[#allocation87_spill] sm:$0xff] %v21563_v49  ;;  %v21565_v36 = vpack.c.bf16 %v14257_v6, %v14255_v28  ;;  %v4972_v0 = vld [vmem:[%s24351_s4 + $0x340] sm:$0xff]  ;;  %v14261_v6 = vld [vmem:[%s24351_s4 + $0x710] sm:$0xff] }
 0x77e   :  { %5137 = vmatmul.mubr.f32.gmra.mrb[232].mxu0 %v4373_v45  ;;  %5532 = vmatmul.mubr.f32.gmra.mrb[232].mxu1 %v4373_v45  ;;  %v21577_v45 = vpack.c.bf16 %v4975_v38, %v4973_v43  ;;  %24670 = vst [vmem:[#allocation91_spill] sm:$0xff] %v21579_v30  ;;  %v14259_v28 = vld [vmem:[%s24351_s4 + $0x700] sm:$0xff]  ;;  %v4979_v43 = vld [vmem:[%s24351_s4 + $0x378] sm:$0xff]  ;;  %v14264_v38 = vld [vmem:[%s24351_s4 + $0x728] sm:$0xff]  ;;  %v21603_v50 = vpack.c.bf16 %v4974_v56, %v4972_v0 }
 0x77f   :  { %15809 = vmatpush1.bf16.msra.mxu0 %v21523_v7  ;;  %15929 = vmatpush1.bf16.msra.mxu1 %v21525_v39  ;;  %24667 = vst [vmem:[#allocation88_spill] sm:$0xff] %v21565_v36  ;;  %v4379_v34 = vpop.f32.mrb[162].mxu1  ;;  %v21573_v54 = vpop.f32.mrb[210].mxu0  ;;  %v4978_v39 = vld [vmem:[%s24351_s4 + $0x370] sm:$0xff]  ;;  %v21619_v56 = vpack.c.bf16 %v14266_v55, %v14264_v38  ;;  %v14270_v38 = vld [vmem:[%s24351_s4 + $0x758] sm:$0xff] }
 0x780   :  { %24668 = vst [vmem:[#allocation89_spill] sm:$0xff] %v21573_v54  ;;  %15811 = vmatprep.subr.bf16.mxu0 %v21537_v23  ;;  %15931 = vmatprep.subr.bf16.mxu1 %v21539_v32  ;;  %24669 = vst [vmem:[#allocation90_spill] sm:$0xff] %v21577_v45  ;;  %v4381_v37 = vpop.f32.mrb[163].mxu1  ;;  %v4977_v54 = vld [vmem:[%s24351_s4 + $0x368] sm:$0xff]  ;;  %v21590_v23 = vpop.f32.mrb[211].mxu0 }
 0x781   :  { %24671 = vst [vmem:[#allocation92_spill] sm:$0xff] %v21590_v23  ;;  %5142 = vmatprep.mubr.f32.mxu0 %v4381_v37  ;;  %5537 = vmatprep.mubr.f32.mxu1 %v4381_v37  ;;  %v21605_v37 = vpack.c.bf16 %v14261_v6, %v14259_v28  ;;  %v4976_v23 = vld [vmem:[%s24351_s4 + $0x360] sm:$0xff]  ;;  %24675 = vst [vmem:[#allocation96_spill] sm:$0xff] %v21619_v56  ;;  %v14265_v6 = vld [vmem:[%s24351_s4 + $0x730] sm:$0xff] }
 0x782   :  { %5143 = vmatmul.mubr.f32.gmra.mrb[234].mxu0 %v4379_v34  ;;  %5538 = vmatmul.mubr.f32.gmra.mrb[234].mxu1 %v4379_v34  ;;  %v21617_v34 = vpack.c.bf16 %v4979_v43, %v4977_v54  ;;  %v14263_v28 = vld [vmem:[%s24351_s4 + $0x720] sm:$0xff]  ;;  %v4983_v54 = vld [vmem:[%s24351_s4 + $0x398] sm:$0xff]  ;;  %v14268_v43 = vld [vmem:[%s24351_s4 + $0x748] sm:$0xff]  ;;  %v21643_v55 = vpack.c.bf16 %v4978_v39, %v4976_v23 }
 0x783   :  { %15813 = vmatpush1.bf16.msra.mxu0 %v21563_v49  ;;  %15933 = vmatpush1.bf16.msra.mxu1 %v21565_v36  ;;  %24672 = vst [vmem:[#allocation93_spill] sm:$0xff] %v21605_v37  ;;  %v4385_v32 = vpop.f32.mrb[164].mxu1  ;;  %v21613_v7 = vpop.f32.mrb[212].mxu0  ;;  %v4982_v36 = vld [vmem:[%s24351_s4 + $0x390] sm:$0xff]  ;;  %v21659_v39 = vpack.c.bf16 %v14270_v38, %v14268_v43  ;;  %v14274_v43 = vld [vmem:[%s24351_s4 + $0x778] sm:$0xff] }
 0x784   :  { %24673 = vst [vmem:[#allocation94_spill] sm:$0xff] %v21613_v7  ;;  %15815 = vmatprep.subr.bf16.mxu0 %v21577_v45  ;;  %15935 = vmatprep.subr.bf16.mxu1 %v21579_v30  ;;  %24674 = vst [vmem:[#allocation95_spill] sm:$0xff] %v21617_v34  ;;  %v4387_v0 = vpop.f32.mrb[165].mxu1  ;;  %v4981_v7 = vld [vmem:[%s24351_s4 + $0x388] sm:$0xff]  ;;  %v21630_v45 = vpop.f32.mrb[213].mxu0 }
 0x785   :  { %24676 = vst [vmem:[#allocation97_spill] sm:$0xff] %v21630_v45  ;;  %5148 = vmatprep.mubr.f32.mxu0 %v4387_v0  ;;  %5543 = vmatprep.mubr.f32.mxu1 %v4387_v0  ;;  %v21645_v0 = vpack.c.bf16 %v14265_v6, %v14263_v28  ;;  %v4980_v45 = vld [vmem:[%s24351_s4 + $0x380] sm:$0xff]  ;;  %24678 = vst [vmem:[#allocation99_spill] sm:$0xff] %v21659_v39  ;;  %v14269_v6 = vld [vmem:[%s24351_s4 + $0x750] sm:$0xff] }
 0x786   :  { %5149 = vmatmul.mubr.f32.gmra.mrb[236].mxu0 %v4385_v32  ;;  %5544 = vmatmul.mubr.f32.gmra.mrb[236].mxu1 %v4385_v32  ;;  %v21657_v32 = vpack.c.bf16 %v4983_v54, %v4981_v7  ;;  %v14267_v28 = vld [vmem:[%s24351_s4 + $0x740] sm:$0xff]  ;;  %v4987_v7 = vld [vmem:[%s24351_s4 + $0x3b8] sm:$0xff]  ;;  %v14272_v54 = vld [vmem:[%s24351_s4 + $0x768] sm:$0xff]  ;;  %v21683_v38 = vpack.c.bf16 %v4982_v36, %v4980_v45 }
 0x787   :  { %15817 = vmatpush1.bf16.msra.mxu0 %v21603_v50  ;;  %15937 = vmatpush1.bf16.msra.mxu1 %v21605_v37  ;;  %v4391_v30 = vpop.f32.mrb[166].mxu1  ;;  %v21653_v49 = vpop.f32.mrb[214].mxu0  ;;  %v4986_v36 = vld [vmem:[%s24351_s4 + $0x3b0] sm:$0xff]  ;;  %v14271_v45 = vld [vmem:[%s24351_s4 + $0x760] sm:$0xff] }
 0x788   :  { %24677 = vst [vmem:[#allocation98_spill] sm:$0xff] %v21653_v49  ;;  %15819 = vmatprep.subr.bf16.mxu0 %v21617_v34  ;;  %15939 = vmatprep.subr.bf16.mxu1 %v21619_v56  ;;  %v4393_v23 = vpop.f32.mrb[167].mxu1  ;;  %v4985_v49 = vld [vmem:[%s24351_s4 + $0x3a8] sm:$0xff]  ;;  %v21670_v34 = vpop.f32.mrb[215].mxu0 }
 0x789   :  { %24679 = vst [vmem:[#allocation100_spill] sm:$0xff] %v21670_v34  ;;  %5154 = vmatprep.mubr.f32.mxu0 %v4393_v23  ;;  %5549 = vmatprep.mubr.f32.mxu1 %v4393_v23  ;;  %v21685_v23 = vpack.c.bf16 %v14269_v6, %v14267_v28  ;;  %v4984_v34 = vld [vmem:[%s24351_s4 + $0x3a0] sm:$0xff]  ;;  %v21692_v37 = vpack.c.bf16 %v4987_v7, %v4985_v49  ;;  %v14273_v28 = vld [vmem:[%s24351_s4 + $0x770] sm:$0xff] }
 0x78a   :  { %5155 = vmatmul.mubr.f32.gmra.mrb[238].mxu0 %v4391_v30  ;;  %5550 = vmatmul.mubr.f32.gmra.mrb[238].mxu1 %v4391_v30  ;;  %v21694_v30 = vpack.c.bf16 %v14274_v43, %v14272_v54  ;;  %v21709_v49 = vpack.c.bf16 %v4986_v36, %v4984_v34  ;;  %v21711_v7 = vpack.c.bf16 %v14273_v28, %v14271_v45  ;;  %v24682_v34 = vld [vmem:[#allocation13_spill] sm:$0xff]  ;;  %v24683_v28 = vld [vmem:[#allocation15_spill] sm:$0xff] }
 0x78b   :  { %15821 = vmatpush1.bf16.msra.mxu0 %v21643_v55  ;;  %15941 = vmatpush1.bf16.msra.mxu1 %v21645_v0  ;;  %24680 = vst [vmem:[#allocation101_spill] sm:$0xff] %v21685_v23  ;;  %v4462_v56 = vpop.f32.mrb[168].mxu1 }
 0x78c   :  { %15823 = vmatprep.subr.bf16.mxu0 %v21657_v32  ;;  %15943 = vmatprep.subr.bf16.mxu1 %v21659_v39  ;;  %v4464_v6 = vpop.f32.mrb[169].mxu1 }
 0x78d   :  { %14143 = vmatprep.mubr.msk.f32.mxu0 %vm158_vm0, %v4464_v6  ;;  %14275 = vmatprep.mubr.msk.f32.mxu1 %vm158_vm0, %v4464_v6  ;;  %v24681_v6 = vld [vmem:[#allocation12_spill] sm:$0xff] }
 0x78f   :  { %15825 = vmatpush1.bf16.msra.mxu0 %v21683_v38  ;;  %15945 = vmatpush1.bf16.msra.mxu1 %v21685_v23  ;;  %v4468_v54 = vpop.f32.mrb[170].mxu1 }
 0x790   :  { %15827 = vmatprep.subr.bf16.mxu0 %v21692_v37  ;;  %15947 = vmatprep.subr.bf16.mxu1 %v21694_v30  ;;  %v4470_v43 = vpop.f32.mrb[171].mxu1 }
 0x793   :  { %15829 = vmatpush1.bf16.msra.mxu0 %v21709_v49  ;;  %15949 = vmatpush1.bf16.msra.mxu1 %v21711_v7  ;;  %v4474_v39 = vpop.f32.mrb[172].mxu1 }
 0x794   :  { %15951 = vmatprep.subr.bf16.mxu0 %v24681_v6  ;;  %16071 = vmatprep.subr.bf16.mxu1 %v20852_v58  ;;  %v4476_v23 = vpop.f32.mrb[173].mxu1  ;;  %v24684_v58 = vld [vmem:[#allocation18_spill] sm:$0xff]  ;;  %v24685_v6 = vld [vmem:[#allocation21_spill] sm:$0xff] }
 0x796   :  { %5226 = vmatmul.mubr.f32.vlgmr.msra.gmra.mrb[216].mxu0 %v4462_v56  ;;  %5621 = vmatmul.mubr.f32.vlgmr.msra.gmra.mrb[216].mxu1 %v4462_v56 }
 0x797   :  { %15953 = vmatpush1.bf16.msra.mxu0 %v24682_v34  ;;  %16073 = vmatpush1.bf16.msra.mxu1 %v20870_v13  ;;  %v4480_v36 = vpop.f32.mrb[174].mxu1  ;;  %v24690_v34 = vld [vmem:[#allocation36_spill] sm:$0xff] }
 0x798   :  { %14144 = vmatprep.mubr.msk.f32.mxu0 %vm158_vm0, %v4470_v43  ;;  %14276 = vmatprep.mubr.msk.f32.mxu1 %vm158_vm0, %v4470_v43  ;;  %v4482_v45 = vpop.f32.mrb[175].mxu1  ;;  %v24686_v43 = vld [vmem:[#allocation24_spill] sm:$0xff] }
 0x799   :  { %15955 = vmatprep.subr.bf16.mxu0 %v24683_v28  ;;  %16075 = vmatprep.subr.bf16.mxu1 %v20873_v15 }
 0x79a   :  { %5232 = vmatmul.mubr.f32.gmra.mrb[218].mxu0 %v4468_v54  ;;  %5627 = vmatmul.mubr.f32.gmra.mrb[218].mxu1 %v4468_v54  ;;  %v24687_v54 = vld [vmem:[#allocation27_spill] sm:$0xff] }
 0x79b   :  { %15957 = vmatpush1.bf16.msra.mxu0 %v24684_v58  ;;  %16077 = vmatpush1.bf16.msra.mxu1 %v20889_v51  ;;  %v4486_v56 = vpop.f32.mrb[176].mxu1  ;;  %v24707_v58 = vld [vmem:[#allocation28_spill] sm:$0xff] }
 0x79c   :  { %14145 = vmatprep.mubr.msk.f32.mxu0 %vm158_vm0, %v4476_v23  ;;  %14277 = vmatprep.mubr.msk.f32.mxu1 %vm158_vm0, %v4476_v23  ;;  %v4488_v13 = vpop.f32.mrb[177].mxu1  ;;  %v24688_v23 = vld [vmem:[#allocation30_spill] sm:$0xff] }
 0x79d   :  { %15959 = vmatprep.subr.bf16.mxu0 %v24685_v6  ;;  %16079 = vmatprep.subr.bf16.mxu1 %v20894_v53  ;;  %v24710_v6 = vld [vmem:[#allocation31_spill] sm:$0xff] }
 0x79e   :  { %5238 = vmatmul.mubr.f32.gmra.mrb[220].mxu0 %v4474_v39  ;;  %5633 = vmatmul.mubr.f32.gmra.mrb[220].mxu1 %v4474_v39  ;;  %v24689_v39 = vld [vmem:[#allocation33_spill] sm:$0xff] }
 0x79f   :  { %15961 = vmatpush1.bf16.msra.mxu0 %v24686_v43  ;;  %16081 = vmatpush1.bf16.msra.mxu1 %v20910_v5  ;;  %v4492_v15 = vpop.f32.mrb[178].mxu1  ;;  %v24711_v43 = vld [vmem:[#allocation32_spill] sm:$0xff] }
 0x7a0   :  { %14146 = vmatprep.mubr.msk.f32.mxu0 %vm158_vm0, %v4482_v45  ;;  %14278 = vmatprep.mubr.msk.f32.mxu1 %vm158_vm0, %v4482_v45  ;;  %v4494_v51 = vpop.f32.mrb[179].mxu1  ;;  %v24706_v45 = vld [vmem:[#allocation38_spill] sm:$0xff] }
 0x7a1   :  { %15963 = vmatprep.subr.bf16.mxu0 %v24687_v54  ;;  %16083 = vmatprep.subr.bf16.mxu1 %v20915_v31 }
 0x7a2   :  { %5244 = vmatmul.mubr.f32.gmra.mrb[222].mxu0 %v4480_v36  ;;  %5639 = vmatmul.mubr.f32.gmra.mrb[222].mxu1 %v4480_v36  ;;  %v24691_v36 = vld [vmem:[#allocation39_spill] sm:$0xff] }
 0x7a3   :  { %15965 = vmatpush1.bf16.msra.mxu0 %v24688_v23  ;;  %16085 = vmatpush1.bf16.msra.mxu1 %v20931_v35  ;;  %v4498_v53 = vpop.f32.mrb[180].mxu1  ;;  %v24713_v23 = vld [vmem:[#allocation35_spill] sm:$0xff] }
 0x7a4   :  { %14147 = vmatprep.mubr.msk.f32.mxu0 %vm158_vm0, %v4488_v13  ;;  %14279 = vmatprep.mubr.msk.f32.mxu1 %vm158_vm0, %v4488_v13  ;;  %v4500_v5 = vpop.f32.mrb[181].mxu1  ;;  %v24709_v13 = vld [vmem:[#allocation34_spill] sm:$0xff] }
 0x7a5   :  { %15967 = vmatprep.subr.bf16.mxu0 %v24689_v39  ;;  %16087 = vmatprep.subr.bf16.mxu1 %v20936_v2  ;;  %v24716_v39 = vld [vmem:[#allocation40_spill] sm:$0xff] }
 0x7a6   :  { %5250 = vmatmul.mubr.f32.gmra.mrb[224].mxu0 %v4486_v56  ;;  %5645 = vmatmul.mubr.f32.gmra.mrb[224].mxu1 %v4486_v56  ;;  %v24708_v56 = vld [vmem:[#allocation29_spill] sm:$0xff] }
 0x7a7   :  { %15969 = vmatpush1.bf16.msra.mxu0 %v24690_v34  ;;  %16089 = vmatpush1.bf16.msra.mxu1 %v20952_v46  ;;  %v4504_v31 = vpop.f32.mrb[182].mxu1  ;;  %v24717_v34 = vld [vmem:[#allocation41_spill] sm:$0xff] }
 0x7a8   :  { %14148 = vmatprep.mubr.msk.f32.mxu0 %vm158_vm0, %v4494_v51  ;;  %14280 = vmatprep.mubr.msk.f32.mxu1 %vm158_vm0, %v4494_v51  ;;  %v4506_v35 = vpop.f32.mrb[183].mxu1  ;;  %v24712_v51 = vld [vmem:[#allocation50_spill] sm:$0xff] }
 0x7a9   :  { %15971 = vmatprep.subr.bf16.mxu0 %v24691_v36  ;;  %16091 = vmatprep.subr.bf16.mxu1 %v20957_v11 }
 0x7aa   :  { %5256 = vmatmul.mubr.f32.gmra.mrb[226].mxu0 %v4492_v15  ;;  %5651 = vmatmul.mubr.f32.gmra.mrb[226].mxu1 %v4492_v15 }
 0x7ab   :  { %15973 = vmatpush1.bf16.msra.mxu0 %v20573_v63  ;;  %16093 = vmatpush1.bf16.msra.mxu1 %v20973_v60  ;;  %v4510_v2 = vpop.f32.mrb[184].mxu1 }
 0x7ac   :  { %14149 = vmatprep.mubr.msk.f32.mxu0 %vm158_vm0, %v4500_v5  ;;  %14281 = vmatprep.mubr.msk.f32.mxu1 %vm158_vm0, %v4500_v5  ;;  %v4512_v46 = vpop.f32.mrb[185].mxu1  ;;  %v24715_v5 = vld [vmem:[#allocation47_spill] sm:$0xff] }
 0x7ad   :  { %15975 = vmatprep.subr.bf16.mxu0 %v20611_v40  ;;  %16095 = vmatprep.subr.bf16.mxu1 %v20978_v27  ;;  %v24693_v27 = vld [vmem:[#allocation42_spill] sm:$0xff] }
 0x7ae   :  { %5262 = vmatmul.mubr.f32.gmra.mrb[228].mxu0 %v4498_v53  ;;  %5657 = vmatmul.mubr.f32.gmra.mrb[228].mxu1 %v4498_v53  ;;  %v24714_v53 = vld [vmem:[#allocation37_spill] sm:$0xff] }
 0x7af   :  { %15977 = vmatpush1.bf16.msra.mxu0 %v20614_v25  ;;  %16097 = vmatpush1.bf16.msra.mxu1 %v20994_v10  ;;  %v4516_v11 = vpop.f32.mrb[186].mxu1  ;;  %v24694_v10 = vld [vmem:[#allocation16_spill] sm:$0xff] }
 0x7b0   :  { %14150 = vmatprep.mubr.msk.f32.mxu0 %vm158_vm0, %v4506_v35  ;;  %14282 = vmatprep.mubr.msk.f32.mxu1 %vm158_vm0, %v4506_v35  ;;  %v4518_v63 = vpop.f32.mrb[187].mxu1  ;;  %v24718_v35 = vld [vmem:[#allocation56_spill] sm:$0xff] }
 0x7b1   :  { %15979 = vmatprep.subr.bf16.mxu0 %v20618_v8  ;;  %16099 = vmatprep.subr.bf16.mxu1 %v20999_v26  ;;  %v24695_v26 = vld [vmem:[#allocation43_spill] sm:$0xff] }
 0x7b2   :  { %5268 = vmatmul.mubr.f32.gmra.mrb[230].mxu0 %v4504_v31  ;;  %5663 = vmatmul.mubr.f32.gmra.mrb[230].mxu1 %v4504_v31 }
 0x7b3   :  { %15981 = vmatpush1.bf16.msra.mxu0 %v20640_v12  ;;  %16101 = vmatpush1.bf16.msra.mxu1 %v21015_v41  ;;  %v4522_v40 = vpop.f32.mrb[188].mxu1  ;;  %v24696_v41 = vld [vmem:[#allocation17_spill] sm:$0xff] }
 0x7b4   :  { %14151 = vmatprep.mubr.msk.f32.mxu0 %vm158_vm0, %v4512_v46  ;;  %14283 = vmatprep.mubr.msk.f32.mxu1 %vm158_vm0, %v4512_v46  ;;  %v4524_v25 = vpop.f32.mrb[189].mxu1  ;;  %v24720_v46 = vld [vmem:[#allocation49_spill] sm:$0xff] }
 0x7b5   :  { %15983 = vmatprep.subr.bf16.mxu0 %v20644_v16  ;;  %16103 = vmatprep.subr.bf16.mxu1 %v21020_v9  ;;  %v24697_v9 = vld [vmem:[#allocation44_spill] sm:$0xff] }
 0x7b6   :  { %5274 = vmatmul.mubr.f32.gmra.mrb[232].mxu0 %v4510_v2  ;;  %5669 = vmatmul.mubr.f32.gmra.mrb[232].mxu1 %v4510_v2  ;;  %v24719_v2 = vld [vmem:[#allocation48_spill] sm:$0xff] }
 0x7b7   :  { %15985 = vmatpush1.bf16.msra.mxu0 %v20663_v61  ;;  %16105 = vmatpush1.bf16.msra.mxu1 %v21036_v22  ;;  %v4528_v8 = vpop.f32.mrb[190].mxu1  ;;  %v24698_v22 = vld [vmem:[#allocation19_spill] sm:$0xff] }
 0x7b8   :  { %14152 = vmatprep.mubr.msk.f32.mxu0 %vm158_vm0, %v4518_v63  ;;  %14284 = vmatprep.mubr.msk.f32.mxu1 %vm158_vm0, %v4518_v63  ;;  %v4530_v12 = vpop.f32.mrb[191].mxu1  ;;  %v24722_v63 = vld [vmem:[#allocation51_spill] sm:$0xff] }
 0x7b9   :  { %15987 = vmatprep.subr.bf16.mxu0 %v20667_v19  ;;  %16107 = vmatprep.subr.bf16.mxu1 %v21041_v24  ;;  %v24699_v24 = vld [vmem:[#allocation45_spill] sm:$0xff] }
 0x7ba   :  { %5280 = vmatmul.mubr.f32.gmra.mrb[234].mxu0 %v4516_v11  ;;  %5675 = vmatmul.mubr.f32.gmra.mrb[234].mxu1 %v4516_v11  ;;  %v24721_v11 = vld [vmem:[#allocation53_spill] sm:$0xff] }
 0x7bb   :  { %15989 = vmatpush1.bf16.msra.mxu0 %v20686_v42  ;;  %16109 = vmatpush1.bf16.msra.mxu1 %v21057_v44  ;;  %v21775_v16 = vpop.f32.mrb[192].mxu1  ;;  %v24700_v44 = vld [vmem:[#allocation20_spill] sm:$0xff] }
 0x7bc   :  { %14153 = vmatprep.mubr.msk.f32.mxu0 %vm158_vm0, %v4524_v25  ;;  %14285 = vmatprep.mubr.msk.f32.mxu1 %vm158_vm0, %v4524_v25  ;;  %v21779_v61 = vpop.f32.mrb[193].mxu1 }
 0x7bd   :  { %15991 = vmatprep.subr.bf16.mxu0 %v20690_v3  ;;  %16111 = vmatprep.subr.bf16.mxu1 %v21062_v17 }
 0x7be   :  { %5286 = vmatmul.mubr.f32.gmra.mrb[236].mxu0 %v4522_v40  ;;  %5681 = vmatmul.mubr.f32.gmra.mrb[236].mxu1 %v4522_v40  ;;  %v24723_v40 = vld [vmem:[#allocation52_spill] sm:$0xff] }
 0x7bf   :  { %15993 = vmatpush1.bf16.msra.mxu0 %v20709_v33  ;;  %16113 = vmatpush1.bf16.msra.mxu1 %v21078_v4  ;;  %v21785_v19 = vpop.f32.mrb[194].mxu1  ;;  %v24701_v4 = vld [vmem:[#allocation46_spill] sm:$0xff] }
 0x7c0   :  { %14154 = vmatprep.mubr.msk.f32.mxu0 %vm158_vm0, %v4530_v12  ;;  %14286 = vmatprep.mubr.msk.f32.mxu1 %vm158_vm0, %v4530_v12  ;;  %v21789_v42 = vpop.f32.mrb[195].mxu1 }
 0x7c1   :  { %15995 = vmatprep.subr.bf16.mxu0 %v20713_v62  ;;  %16115 = vmatprep.subr.bf16.mxu1 %v21083_v59  ;;  %v24702_v59 = vld [vmem:[#allocation22_spill] sm:$0xff] }
 0x7c2   :  { %5292 = vmatmul.mubr.f32.gmra.mrb[238].mxu0 %v4528_v8  ;;  %5687 = vmatmul.mubr.f32.gmra.mrb[238].mxu1 %v4528_v8  ;;  %v24724_v8 = vld [vmem:[#allocation62_spill] sm:$0xff] }
 0x7c3   :  { %15997 = vmatpush1.bf16.msra.mxu0 %v20732_v14  ;;  %16117 = vmatpush1.bf16.msra.mxu1 %v21099_v18  ;;  %v21795_v3 = vpop.f32.mrb[196].mxu1 }
 0x7c4   :  { %15999 = vmatprep.subr.bf16.mxu0 %v20736_v20  ;;  %16119 = vmatprep.subr.bf16.mxu1 %v21104_v52  ;;  %v21799_v33 = vpop.f32.mrb[197].mxu1  ;;  %v24692_v20 = vld [vmem:[#allocation14_spill] sm:$0xff] }
 0x7c5   :  { %5817 = vmatprep.mubr.f32.mxu0 %v21230_v1  ;;  %6091 = vmatprep.mubr.f32.mxu1 %v21230_v1  ;;  %v24703_v52 = vld [vmem:[#allocation26_spill] sm:$0xff] }
 0x7c7   :  { %16001 = vmatpush1.bf16.msra.mxu0 %v20755_v29  ;;  %16121 = vmatpush1.bf16.msra.mxu1 %v21120_v57  ;;  %v21805_v62 = vpop.f32.mrb[198].mxu1  ;;  %v24704_v57 = vld [vmem:[#allocation23_spill] sm:$0xff] }
 0x7c8   :  { %16003 = vmatprep.subr.bf16.mxu0 %v20759_v48  ;;  %16123 = vmatprep.subr.bf16.mxu1 %v21123_v47  ;;  %v21809_v14 = vpop.f32.mrb[199].mxu1  ;;  %v24705_v47 = vld [vmem:[#allocation25_spill] sm:$0xff] }
 0x7cb   :  { %16005 = vmatpush1.bf16.msra.mxu0 %v20778_v21  ;;  %16125 = vmatpush1.bf16.msra.mxu1 %v24692_v20  ;;  %v21813_v60 = vpop.f32.mrb[200].mxu1  ;;  %v24725_v20 = vld [vmem:[#allocation54_spill] sm:$0xff] }
 0x7cc   :  { %16007 = vmatprep.subr.bf16.mxu0 %v24693_v27  ;;  %16127 = vmatprep.subr.bf16.mxu1 %v24694_v10  ;;  %v21817_v29 = vpop.f32.mrb[201].mxu1  ;;  %v24726_v27 = vld [vmem:[#allocation55_spill] sm:$0xff] }
 0x7cd   :  { %v24727_v10 = vld [vmem:[#allocation59_spill] sm:$0xff] }
 0x7cf   :  { %16009 = vmatpush1.bf16.msra.mxu0 %v24695_v26  ;;  %16129 = vmatpush1.bf16.msra.mxu1 %v24696_v41  ;;  %v21821_v48 = vpop.f32.mrb[202].mxu1  ;;  %v24728_v26 = vld [vmem:[#allocation57_spill] sm:$0xff]  ;;  %v24729_v41 = vld [vmem:[#allocation58_spill] sm:$0xff] }
 0x7d0   :  { %16011 = vmatprep.subr.bf16.mxu0 %v24697_v9  ;;  %16131 = vmatprep.subr.bf16.mxu1 %v24698_v22  ;;  %v21825_v21 = vpop.f32.mrb[203].mxu1  ;;  %v24730_v22 = vld [vmem:[#allocation68_spill] sm:$0xff] }
 0x7d3   :  { %16013 = vmatpush1.bf16.msra.mxu0 %v24699_v24  ;;  %16133 = vmatpush1.bf16.msra.mxu1 %v24700_v44  ;;  %v21829_v17 = vpop.f32.mrb[204].mxu1  ;;  %v24731_v44 = vld [vmem:[#allocation60_spill] sm:$0xff] }
 0x7d4   :  { %16015 = vmatprep.subr.bf16.mxu0 %v24701_v4  ;;  %16135 = vmatprep.subr.bf16.mxu1 %v24702_v59  ;;  %v21833_v18 = vpop.f32.mrb[205].mxu1  ;;  %v24732_v4 = vld [vmem:[#allocation61_spill] sm:$0xff] }
 0x7d5   :  { %v24733_v59 = vld [vmem:[#allocation65_spill] sm:$0xff] }
 0x7d6   :  { %5818 = vmatmul.mubr.f32.vlgmr.msra.gmra.mrb[240].mxu0 %v24703_v52  ;;  %6092 = vmatmul.mubr.f32.vlgmr.msra.gmra.mrb[240].mxu1 %v24703_v52  ;;  %v24734_v52 = vld [vmem:[#allocation63_spill] sm:$0xff] }
 0x7d7   :  { %16017 = vmatpush1.bf16.msra.mxu0 %v24704_v57  ;;  %16137 = vmatpush1.bf16.msra.mxu1 %v24705_v47  ;;  %v21839_v1 = vpop.f32.mrb[206].mxu1  ;;  %v24735_v57 = vld [vmem:[#allocation64_spill] sm:$0xff]  ;;  %v24736_v47 = vld [vmem:[#allocation74_spill] sm:$0xff] }
 0x7d8   :  { %5823 = vmatprep.mubr.f32.mxu0 %v24706_v45  ;;  %6097 = vmatprep.mubr.f32.mxu1 %v24706_v45  ;;  %v21843_v28 = vpop.f32.mrb[207].mxu1  ;;  %v24737_v45 = vld [vmem:[#allocation66_spill] sm:$0xff] }
 0x7d9   :  { %16019 = vmatprep.subr.bf16.mxu0 %v24707_v58  ;;  %16139 = vmatprep.subr.bf16.mxu1 %v24708_v56  ;;  %v24738_v58 = vld [vmem:[#allocation67_spill] sm:$0xff] }
 0x7da   :  { %5824 = vmatmul.mubr.f32.gmra.mrb[242].mxu0 %v24709_v13  ;;  %6098 = vmatmul.mubr.f32.gmra.mrb[242].mxu1 %v24709_v13  ;;  %v24739_v56 = vld [vmem:[#allocation71_spill] sm:$0xff]  ;;  %v24740_v13 = vld [vmem:[#allocation69_spill] sm:$0xff] }
 0x7db   :  { %16021 = vmatpush1.bf16.msra.mxu0 %v24710_v6  ;;  %16141 = vmatpush1.bf16.msra.mxu1 %v24711_v43  ;;  %v21851_v15 = vpop.f32.mrb[208].mxu1  ;;  %v24741_v6 = vld [vmem:[#allocation70_spill] sm:$0xff]  ;;  %v24742_v43 = vld [vmem:[#allocation80_spill] sm:$0xff] }
 0x7dc   :  { %5829 = vmatprep.mubr.f32.mxu0 %v24712_v51  ;;  %6103 = vmatprep.mubr.f32.mxu1 %v24712_v51  ;;  %v21855_v54 = vpop.f32.mrb[209].mxu1  ;;  %v24743_v51 = vld [vmem:[#allocation72_spill] sm:$0xff] }
 0x7dd   :  { %16023 = vmatprep.subr.bf16.mxu0 %v24713_v23  ;;  %16143 = vmatprep.subr.bf16.mxu1 %v24714_v53  ;;  %v24744_v23 = vld [vmem:[#allocation73_spill] sm:$0xff] }
 0x7de   :  { %5830 = vmatmul.mubr.f32.gmra.mrb[244].mxu0 %v24715_v5  ;;  %6104 = vmatmul.mubr.f32.gmra.mrb[244].mxu1 %v24715_v5  ;;  %v24745_v53 = vld [vmem:[#allocation77_spill] sm:$0xff]  ;;  %v24746_v5 = vld [vmem:[#allocation75_spill] sm:$0xff] }
 0x7df   :  { %16025 = vmatpush1.bf16.msra.mxu0 %v24716_v39  ;;  %16145 = vmatpush1.bf16.msra.mxu1 %v24717_v34  ;;  %v21863_v31 = vpop.f32.mrb[210].mxu1  ;;  %v24747_v39 = vld [vmem:[#allocation76_spill] sm:$0xff]  ;;  %v24748_v34 = vld [vmem:[#allocation86_spill] sm:$0xff] }
 0x7e0   :  { %5835 = vmatprep.mubr.f32.mxu0 %v24718_v35  ;;  %6109 = vmatprep.mubr.f32.mxu1 %v24718_v35  ;;  %v21867_v36 = vpop.f32.mrb[211].mxu1  ;;  %v24749_v35 = vld [vmem:[#allocation78_spill] sm:$0xff] }
 0x7e1   :  { %16027 = vmatprep.subr.bf16.mxu0 %v24719_v2  ;;  %16147 = vmatprep.subr.bf16.mxu1 %v24720_v46  ;;  %v24750_v2 = vld [vmem:[#allocation79_spill] sm:$0xff] }
 0x7e2   :  { %5836 = vmatmul.mubr.f32.gmra.mrb[246].mxu0 %v24721_v11  ;;  %6110 = vmatmul.mubr.f32.gmra.mrb[246].mxu1 %v24721_v11  ;;  %v24751_v46 = vld [vmem:[#allocation83_spill] sm:$0xff]  ;;  %v24752_v11 = vld [vmem:[#allocation81_spill] sm:$0xff] }
 0x7e3   :  { %16029 = vmatpush1.bf16.msra.mxu0 %v24722_v63  ;;  %16149 = vmatpush1.bf16.msra.mxu1 %v24723_v40  ;;  %v21875_v25 = vpop.f32.mrb[212].mxu1  ;;  %v24753_v63 = vld [vmem:[#allocation82_spill] sm:$0xff]  ;;  %v24754_v40 = vld [vmem:[#allocation92_spill] sm:$0xff] }
 0x7e4   :  { %5841 = vmatprep.mubr.f32.mxu0 %v24724_v8  ;;  %6115 = vmatprep.mubr.f32.mxu1 %v24724_v8  ;;  %v21879_v12 = vpop.f32.mrb[213].mxu1  ;;  %v24755_v8 = vld [vmem:[#allocation84_spill] sm:$0xff] }
 0x7e5   :  { %16031 = vmatprep.subr.bf16.mxu0 %v24725_v20  ;;  %16151 = vmatprep.subr.bf16.mxu1 %v24726_v27  ;;  %v24756_v20 = vld [vmem:[#allocation85_spill] sm:$0xff] }
 0x7e6   :  { %5842 = vmatmul.mubr.f32.gmra.mrb[248].mxu0 %v24727_v10  ;;  %6116 = vmatmul.mubr.f32.gmra.mrb[248].mxu1 %v24727_v10  ;;  %v24757_v27 = vld [vmem:[#allocation89_spill] sm:$0xff]  ;;  %v24758_v10 = vld [vmem:[#allocation87_spill] sm:$0xff] }
 0x7e7   :  { %16033 = vmatpush1.bf16.msra.mxu0 %v24728_v26  ;;  %16153 = vmatpush1.bf16.msra.mxu1 %v24729_v41  ;;  %v21887_v9 = vpop.f32.mrb[214].mxu1  ;;  %v24759_v26 = vld [vmem:[#allocation88_spill] sm:$0xff]  ;;  %v24760_v41 = vld [vmem:[#allocation97_spill] sm:$0xff] }
 0x7e8   :  { %5847 = vmatprep.mubr.f32.mxu0 %v24730_v22  ;;  %6121 = vmatprep.mubr.f32.mxu1 %v24730_v22  ;;  %v21891_v24 = vpop.f32.mrb[215].mxu1  ;;  %v24761_v22 = vld [vmem:[#allocation90_spill] sm:$0xff] }
 0x7e9   :  { %16035 = vmatprep.subr.bf16.mxu0 %v24731_v44  ;;  %16155 = vmatprep.subr.bf16.mxu1 %v24732_v4  ;;  %v24762_v44 = vld [vmem:[#allocation91_spill] sm:$0xff]  ;;  %v24763_v4 = vld [vmem:[#allocation94_spill] sm:$0xff] }
 0x7ea   :  { %5848 = vmatmul.mubr.f32.gmra.mrb[250].mxu0 %v24733_v59  ;;  %6122 = vmatmul.mubr.f32.gmra.mrb[250].mxu1 %v24733_v59  ;;  %v24764_v59 = vld [vmem:[#allocation93_spill] sm:$0xff] }
 0x7eb   :  { %16037 = vmatpush1.bf16.msra.mxu0 %v24734_v52  ;;  %16157 = vmatpush1.bf16.msra.mxu1 %v24735_v57  ;;  %v24765_v52 = vld [vmem:[#allocation100_spill] sm:$0xff]  ;;  %v24766_v57 = vld [vmem:[#allocation95_spill] sm:$0xff] }
 0x7ec   :  { %5853 = vmatprep.mubr.f32.mxu0 %v24736_v47  ;;  %6127 = vmatprep.mubr.f32.mxu1 %v24736_v47  ;;  %v24767_v47 = vld [vmem:[#allocation96_spill] sm:$0xff] }
 0x7ed   :  { %16039 = vmatprep.subr.bf16.mxu0 %v24737_v45  ;;  %16159 = vmatprep.subr.bf16.mxu1 %v24738_v58  ;;  %v24768_v45 = vld [vmem:[#allocation98_spill] sm:$0xff]  ;;  %v24770_v58 = vld [vmem:[#allocation101_spill] sm:$0xff] }
 0x7ee   :  { %5854 = vmatmul.mubr.f32.gmra.mrb[252].mxu0 %v24739_v56  ;;  %6128 = vmatmul.mubr.f32.gmra.mrb[252].mxu1 %v24739_v56 }
 0x7ef   :  { %16041 = vmatpush1.bf16.msra.mxu0 %v24740_v13  ;;  %16161 = vmatpush1.bf16.msra.mxu1 %v24741_v6 }
 0x7f0   :  { %5859 = vmatprep.mubr.f32.mxu0 %v24742_v43  ;;  %6133 = vmatprep.mubr.f32.mxu1 %v24742_v43 }
 0x7f1   :  { %16043 = vmatprep.subr.bf16.mxu0 %v24743_v51  ;;  %16163 = vmatprep.subr.bf16.mxu1 %v24744_v23 }
 0x7f2   :  { %5860 = vmatmul.mubr.f32.gmra.mrb[254].mxu0 %v24745_v53  ;;  %6134 = vmatmul.mubr.f32.gmra.mrb[254].mxu1 %v24745_v53  ;;  %v24482_v53 = vmov 0.0  }
 0x7f3   :  { %16045 = vmatpush1.bf16.msra.mxu0 %v24746_v5  ;;  %16165 = vmatpush1.bf16.msra.mxu1 %v24747_v39 }
 0x7f4   :  { %5865 = vmatprep.mubr.f32.mxu0 %v24748_v34  ;;  %6139 = vmatprep.mubr.f32.mxu1 %v24748_v34 }
 0x7f5   :  { %16047 = vmatprep.subr.bf16.mxu0 %v24749_v35  ;;  %16167 = vmatprep.subr.bf16.mxu1 %v24750_v2 }
 0x7f6   :  { %5866 = vmatmul.mubr.f32.gmra.mrb[0].mxu0 %v24751_v46  ;;  %6140 = vmatmul.mubr.f32.gmra.mrb[0].mxu1 %v24751_v46 }
 0x7f7   :  { %16049 = vmatpush1.bf16.msra.mxu0 %v24752_v11  ;;  %16169 = vmatpush1.bf16.msra.mxu1 %v24753_v63 }
 0x7f8   :  { %5871 = vmatprep.mubr.f32.mxu0 %v24754_v40  ;;  %6145 = vmatprep.mubr.f32.mxu1 %v24754_v40 }
 0x7f9   :  { %16051 = vmatprep.subr.bf16.mxu0 %v24755_v8  ;;  %16171 = vmatprep.subr.bf16.mxu1 %v24756_v20 }
 0x7fa   :  { %5872 = vmatmul.mubr.f32.gmra.mrb[2].mxu0 %v24757_v27  ;;  %6146 = vmatmul.mubr.f32.gmra.mrb[2].mxu1 %v24757_v27 }
 0x7fb   :  { %16053 = vmatpush1.bf16.msra.mxu0 %v24758_v10  ;;  %16173 = vmatpush1.bf16.msra.mxu1 %v24759_v26 }
 0x7fc   :  { %5877 = vmatprep.mubr.f32.mxu0 %v24760_v41  ;;  %6151 = vmatprep.mubr.f32.mxu1 %v24760_v41 }
 0x7fd   :  { %16055 = vmatprep.subr.bf16.mxu0 %v24761_v22  ;;  %16175 = vmatprep.subr.bf16.mxu1 %v24762_v44 }
 0x7fe   :  { %5878 = vmatmul.mubr.f32.gmra.mrb[4].mxu0 %v24763_v4  ;;  %6152 = vmatmul.mubr.f32.gmra.mrb[4].mxu1 %v24763_v4 }
 0x7ff   :  { %16057 = vmatpush1.bf16.msra.mxu0 %v21603_v50  ;;  %16177 = vmatpush1.bf16.msra.mxu1 %v24764_v59  ;;  %v24769_v50 = vld [vmem:[#allocation99_spill] sm:$0xff] }
 0x800   :  { %5883 = vmatprep.mubr.f32.mxu0 %v24765_v52  ;;  %6157 = vmatprep.mubr.f32.mxu1 %v24765_v52 }
 0x801   :  { %16059 = vmatprep.subr.bf16.mxu0 %v24766_v57  ;;  %16179 = vmatprep.subr.bf16.mxu1 %v24767_v47 }
 0x802   :  { %5884 = vmatmul.mubr.f32.gmra.mrb[6].mxu0 %v24768_v45  ;;  %6158 = vmatmul.mubr.f32.gmra.mrb[6].mxu1 %v24768_v45 }
 0x803   :  { %16061 = vmatpush1.bf16.msra.mxu0 %v21643_v55  ;;  %14287 = vmatprep.mubr.msk.f32.mxu0 %vm158_vm0, %v21779_v61 }
 0x804   :  { %16181 = vmatpush1.bf16.msra.mxu1 %v21645_v0  ;;  %14299 = vmatprep.mubr.msk.f32.mxu1 %vm158_vm0, %v21779_v61 }
 0x805   :  { %16063 = vmatprep.subr.bf16.mxu0 %v21657_v32  ;;  %16183 = vmatprep.subr.bf16.mxu1 %v24769_v50 }
 0x807   :  { %16065 = vmatpush1.bf16.msra.mxu0 %v21683_v38 }
 0x808   :  { %16185 = vmatpush1.bf16.msra.mxu1 %v24770_v58  ;;  %16067 = vmatprep.subr.bf16.mxu0 %v21692_v37 }
 0x809   :  { %16187 = vmatprep.subr.bf16.mxu1 %v21694_v30 }
 0x80b   :  { %16069 = vmatpush1.bf16.msra.mxu0 %v21709_v49 }
 0x80c   :  { %16189 = vmatpush1.bf16.msra.mxu1 %v21711_v7 }
 0x80e   :  { %5955 = vmatmul.mubr.f32.vlgmr.msra.gmra.mrb[240].mxu0 %v21775_v16 }
 0x80f   :  { %6229 = vmatmul.mubr.f32.vlgmr.msra.gmra.mrb[240].mxu1 %v21775_v16  ;;  %14288 = vmatprep.mubr.msk.f32.mxu0 %vm158_vm0, %v21789_v42 }
 0x810   :  { %14300 = vmatprep.mubr.msk.f32.mxu1 %vm158_vm0, %v21789_v42 }
 0x812   :  { %5961 = vmatmul.mubr.f32.gmra.mrb[242].mxu0 %v21785_v19 }
 0x813   :  { %6235 = vmatmul.mubr.f32.gmra.mrb[242].mxu1 %v21785_v19  ;;  %14289 = vmatprep.mubr.msk.f32.mxu0 %vm158_vm0, %v21799_v33 }
 0x814   :  { %14301 = vmatprep.mubr.msk.f32.mxu1 %vm158_vm0, %v21799_v33 }
 0x816   :  { %5967 = vmatmul.mubr.f32.gmra.mrb[244].mxu0 %v21795_v3 }
 0x817   :  { %6241 = vmatmul.mubr.f32.gmra.mrb[244].mxu1 %v21795_v3  ;;  %14290 = vmatprep.mubr.msk.f32.mxu0 %vm158_vm0, %v21809_v14 }
 0x818   :  { %14302 = vmatprep.mubr.msk.f32.mxu1 %vm158_vm0, %v21809_v14 }
 0x81a   :  { %5973 = vmatmul.mubr.f32.gmra.mrb[246].mxu0 %v21805_v62 }
 0x81b   :  { %6247 = vmatmul.mubr.f32.gmra.mrb[246].mxu1 %v21805_v62  ;;  %14291 = vmatprep.mubr.msk.f32.mxu0 %vm158_vm0, %v21817_v29 }
 0x81c   :  { %14303 = vmatprep.mubr.msk.f32.mxu1 %vm158_vm0, %v21817_v29 }
 0x81e   :  { %5979 = vmatmul.mubr.f32.gmra.mrb[248].mxu0 %v21813_v60 }
 0x81f   :  { %6253 = vmatmul.mubr.f32.gmra.mrb[248].mxu1 %v21813_v60  ;;  %14292 = vmatprep.mubr.msk.f32.mxu0 %vm158_vm0, %v21825_v21 }
 0x820   :  { %14304 = vmatprep.mubr.msk.f32.mxu1 %vm158_vm0, %v21825_v21 }
 0x822   :  { %5985 = vmatmul.mubr.f32.gmra.mrb[250].mxu0 %v21821_v48 }
 0x823   :  { %6259 = vmatmul.mubr.f32.gmra.mrb[250].mxu1 %v21821_v48  ;;  %14293 = vmatprep.mubr.msk.f32.mxu0 %vm158_vm0, %v21833_v18 }
 0x824   :  { %14305 = vmatprep.mubr.msk.f32.mxu1 %vm158_vm0, %v21833_v18 }
 0x826   :  { %5991 = vmatmul.mubr.f32.gmra.mrb[252].mxu0 %v21829_v17 }
 0x827   :  { %6265 = vmatmul.mubr.f32.gmra.mrb[252].mxu1 %v21829_v17  ;;  %14294 = vmatprep.mubr.msk.f32.mxu0 %vm158_vm0, %v21843_v28 }
 0x828   :  { %14306 = vmatprep.mubr.msk.f32.mxu1 %vm158_vm0, %v21843_v28 }
 0x82a   :  { %5997 = vmatmul.mubr.f32.gmra.mrb[254].mxu0 %v21839_v1 }
 0x82b   :  { %6271 = vmatmul.mubr.f32.gmra.mrb[254].mxu1 %v21839_v1  ;;  %14295 = vmatprep.mubr.msk.f32.mxu0 %vm158_vm0, %v21855_v54 }
 0x82c   :  { %14307 = vmatprep.mubr.msk.f32.mxu1 %vm158_vm0, %v21855_v54 }
 0x82e   :  { %6003 = vmatmul.mubr.f32.gmra.mrb[0].mxu0 %v21851_v15 }
 0x82f   :  { %6277 = vmatmul.mubr.f32.gmra.mrb[0].mxu1 %v21851_v15  ;;  %14296 = vmatprep.mubr.msk.f32.mxu0 %vm158_vm0, %v21867_v36 }
 0x830   :  { %14308 = vmatprep.mubr.msk.f32.mxu1 %vm158_vm0, %v21867_v36 }
 0x832   :  { %6009 = vmatmul.mubr.f32.gmra.mrb[2].mxu0 %v21863_v31 }
 0x833   :  { %6283 = vmatmul.mubr.f32.gmra.mrb[2].mxu1 %v21863_v31  ;;  %14297 = vmatprep.mubr.msk.f32.mxu0 %vm158_vm0, %v21879_v12 }
 0x834   :  { %14309 = vmatprep.mubr.msk.f32.mxu1 %vm158_vm0, %v21879_v12 }
 0x836   :  { %6015 = vmatmul.mubr.f32.gmra.mrb[4].mxu0 %v21875_v25 }
 0x837   :  { %6289 = vmatmul.mubr.f32.gmra.mrb[4].mxu1 %v21875_v25  ;;  %14298 = vmatprep.mubr.msk.f32.mxu0 %vm158_vm0, %v21891_v24 }
 0x838   :  { %14310 = vmatprep.mubr.msk.f32.mxu1 %vm158_vm0, %v21891_v24 }
 0x83a   :  { %6021 = vmatmul.mubr.f32.gmra.mrb[6].mxu0 %v21887_v9 }
 0x83b   :  { %6295 = vmatmul.mubr.f32.gmra.mrb[6].mxu1 %v21887_v9  ;;  %6445 = vmatprep.mubr.f32.mxu0 %v24482_v53 }
 0x83c   :  { %6659 = vmatprep.mubr.f32.mxu1 %v24482_v53 }
 0x869   :  { %v22027_v37 = vpop.f32.mrb[216].mxu0  ;;  %v22029_v55 = vpop.f32.mrb[216].mxu1 }
 0x86a   :  { %v5693_v0 = vmax.f32 %v22027_v37, %v22029_v55  ;;  %v22033_v32 = vpop.f32.mrb[217].mxu0  ;;  %v22035_v38 = vpop.f32.mrb[217].mxu1 }
 0x86b   :  { %v5694_v30 = vmax.f32 %v22033_v32, %v22035_v38 }
 0x86d   :  { %v22039_v49 = vpop.f32.mrb[218].mxu0  ;;  %v22041_v7 = vpop.f32.mrb[218].mxu1 }
 0x86e   :  { %v22045_v61 = vpop.f32.mrb[219].mxu0  ;;  %v22047_v19 = vpop.f32.mrb[219].mxu1 }
 0x871   :  { %v22051_v3 = vpop.f32.mrb[220].mxu0  ;;  %v22053_v33 = vpop.f32.mrb[220].mxu1 }
 0x872   :  { %v22057_v14 = vpop.f32.mrb[221].mxu0  ;;  %v22059_v60 = vpop.f32.mrb[221].mxu1 }
 0x875   :  { %v22063_v48 = vpop.f32.mrb[222].mxu0  ;;  %v22065_v21 = vpop.f32.mrb[222].mxu1 }
 0x876   :  { %v22069_v18 = vpop.f32.mrb[223].mxu0  ;;  %v22071_v1 = vpop.f32.mrb[223].mxu1 }
 0x879   :  { %v22075_v15 = vpop.f32.mrb[224].mxu0  ;;  %v22077_v54 = vpop.f32.mrb[224].mxu1 }
 0x87a   :  { %v22081_v36 = vpop.f32.mrb[225].mxu0  ;;  %v22083_v25 = vpop.f32.mrb[225].mxu1 }
 0x87d   :  { %v22087_v9 = vpop.f32.mrb[226].mxu0  ;;  %v22089_v24 = vpop.f32.mrb[226].mxu1 }
 0x87e   :  { %v22093_v13 = vpop.f32.mrb[227].mxu0  ;;  %v22095_v6 = vpop.f32.mrb[227].mxu1 }
 0x881   :  { %v22099_v51 = vpop.f32.mrb[228].mxu0  ;;  %v22101_v23 = vpop.f32.mrb[228].mxu1 }
 0x882   :  { %v22105_v5 = vpop.f32.mrb[229].mxu0  ;;  %v22107_v39 = vpop.f32.mrb[229].mxu1 }
 0x885   :  { %v22111_v35 = vpop.f32.mrb[230].mxu0  ;;  %v22113_v2 = vpop.f32.mrb[230].mxu1 }
 0x886   :  { %v22117_v11 = vpop.f32.mrb[231].mxu0  ;;  %v22119_v63 = vpop.f32.mrb[231].mxu1 }
 0x889   :  { %v22123_v8 = vpop.f32.mrb[232].mxu0  ;;  %v22125_v20 = vpop.f32.mrb[232].mxu1 }
 0x88a   :  { %v22129_v10 = vpop.f32.mrb[233].mxu0  ;;  %v22131_v26 = vpop.f32.mrb[233].mxu1 }
 0x88d   :  { %v22135_v22 = vpop.f32.mrb[234].mxu0  ;;  %v22137_v44 = vpop.f32.mrb[234].mxu1 }
 0x88e   :  { %v22141_v59 = vpop.f32.mrb[235].mxu0  ;;  %v22143_v52 = vpop.f32.mrb[235].mxu1 }
 0x891   :  { %v22147_v47 = vpop.f32.mrb[236].mxu0  ;;  %v22149_v45 = vpop.f32.mrb[236].mxu1 }
 0x892   :  { %v22153_v58 = vpop.f32.mrb[237].mxu0  ;;  %v22155_v41 = vpop.f32.mrb[237].mxu1 }
 0x895   :  { %v22159_v27 = vpop.f32.mrb[238].mxu0  ;;  %v22161_v40 = vpop.f32.mrb[238].mxu1 }
 0x896   :  { %v22165_v46 = vpop.f32.mrb[239].mxu0  ;;  %v22167_v34 = vpop.f32.mrb[239].mxu1 }
 0x897   :  { %24771 = vst [vmem:[#allocation12_spill] sm:$0xff] %v22167_v34  ;;  %v24772_v34 = vmax.f32 %v22039_v49, %v22041_v7  ;;  %v24775_v7 = vmax.f32 %v22057_v14, %v22059_v60  ;;  %v24777_v14 = vmax.f32 %v22069_v18, %v22071_v1 }
 0x8e1   :  { %v5956_v4 = vpop.f32.mrb[240].mxu0 }
 0x8e2   :  { %v6230_v43 = vpop.f32.mrb[240].mxu1  ;;  %v5958_v56 = vpop.f32.mrb[241].mxu0 }
 0x8e3   :  { %v6301_v12 = vmax.f32 %v5956_v4, %v6230_v43  ;;  %v6232_v31 = vpop.f32.mrb[241].mxu1 }
 0x8e4   :  { %v6302_v28 = vmax.f32 %v5958_v56, %v6232_v31  ;;  %v24773_v31 = vmax.f32 %v22045_v61, %v22047_v19 }
 0x8e5   :  { %v6325_v57 = vmax.f32 %v5693_v0, %v6301_v12  ;;  %v5962_v17 = vpop.f32.mrb[242].mxu0 }
 0x8e6   :  { %v6326_v50 = vmax.f32 %v5694_v30, %v6302_v28  ;;  %v6236_v29 = vpop.f32.mrb[242].mxu1  ;;  %v5964_v62 = vpop.f32.mrb[243].mxu0 }
 0x8e7   :  { %v6303_v42 = vmax.f32 %v5962_v17, %v6236_v29  ;;  %v6238_v16 = vpop.f32.mrb[243].mxu1 }
 0x8e8   :  { %v6304_v53 = vmax.f32 %v5964_v62, %v6238_v16  ;;  %v24774_v16 = vmax.f32 %v22051_v3, %v22053_v33  ;;  %v24776_v3 = vmax.f32 %v22063_v48, %v22065_v21  ;;  %v24779_v21 = vmax.f32 %v22081_v36, %v22083_v25 }
 0x8e9   :  { %v6327_v43 = vmax.f32 %v24772_v34, %v6303_v42  ;;  %v5968_v4 = vpop.f32.mrb[244].mxu0  ;;  %v24781_v36 = vmax.f32 %v22093_v13, %v22095_v6 }
 0x8ea   :  { %v6328_v37 = vmax.f32 %v24773_v31, %v6304_v53  ;;  %v6242_v55 = vpop.f32.mrb[244].mxu1  ;;  %v5970_v0 = vpop.f32.mrb[245].mxu0 }
 0x8eb   :  { %v22185_v12 = vpack.c.bf16 %v6327_v43, %v6325_v57  ;;  %v6305_v32 = vmax.f32 %v5968_v4, %v6242_v55  ;;  %v6244_v38 = vpop.f32.mrb[245].mxu1  ;;  %v24778_v55 = vmax.f32 %v22075_v15, %v22077_v54  ;;  %v24780_v15 = vmax.f32 %v22087_v9, %v22089_v24 }
 0x8ec   :  { %v22187_v30 = vpack.c.bf16 %v6328_v37, %v6326_v50  ;;  %v6306_v29 = vmax.f32 %v5970_v0, %v6244_v38  ;;  %v24783_v24 = vmax.f32 %v22105_v5, %v22107_v39  ;;  %v24785_v5 = vmax.f32 %v22117_v11, %v22119_v63 }
 0x8ed   :  { %v6329_v62 = vmax.f32 %v24774_v16, %v6305_v32  ;;  %v5974_v49 = vpop.f32.mrb[246].mxu0 }
 0x8ee   :  { %v6330_v42 = vmax.f32 %v24775_v7, %v6306_v29  ;;  %v6248_v61 = vpop.f32.mrb[246].mxu1  ;;  %16191 = vmatprep.subr.bf16.mxu0 %v22187_v30  ;;  %16215 = vmatprep.subr.bf16.mxu1 %v22187_v30  ;;  %v5976_v19 = vpop.f32.mrb[247].mxu0 }
 0x8ef   :  { %v6307_v17 = vmax.f32 %v5974_v49, %v6248_v61  ;;  %v6250_v28 = vpop.f32.mrb[247].mxu1  ;;  %16193 = vmatpush1.bf16.msra.mxu0 %v22185_v12  ;;  %16217 = vmatpush1.bf16.msra.mxu1 %v22185_v12 }
 0x8f0   :  { %v6308_v56 = vmax.f32 %v5976_v19, %v6250_v28 }
 0x8f1   :  { %v6331_v33 = vmax.f32 %v24776_v3, %v6307_v17  ;;  %v5980_v53 = vpop.f32.mrb[248].mxu0 }
 0x8f2   :  { %v6332_v60 = vmax.f32 %v24777_v14, %v6308_v56  ;;  %v6254_v34 = vpop.f32.mrb[248].mxu1  ;;  %v5982_v57 = vpop.f32.mrb[249].mxu0  ;;  %v24782_v56 = vmax.f32 %v22099_v51, %v22101_v23  ;;  %v24784_v51 = vmax.f32 %v22111_v35, %v22113_v2  ;;  %v24787_v2 = vmax.f32 %v22129_v10, %v22131_v26 }
 0x8f3   :  { %v22205_v50 = vpack.c.bf16 %v6331_v33, %v6329_v62  ;;  %v6309_v43 = vmax.f32 %v5980_v53, %v6254_v34  ;;  %v6256_v4 = vpop.f32.mrb[249].mxu1  ;;  %v24789_v10 = vmax.f32 %v22141_v59, %v22143_v52 }
 0x8f4   :  { %v22207_v31 = vpack.c.bf16 %v6332_v60, %v6330_v42  ;;  %v6310_v37 = vmax.f32 %v5982_v57, %v6256_v4 }
 0x8f5   :  { %v6333_v0 = vmax.f32 %v24778_v55, %v6309_v43  ;;  %v5986_v48 = vpop.f32.mrb[250].mxu0 }
 0x8f6   :  { %v6334_v32 = vmax.f32 %v24779_v21, %v6310_v37  ;;  %v6260_v18 = vpop.f32.mrb[250].mxu1  ;;  %16195 = vmatprep.subr.bf16.mxu0 %v22207_v31  ;;  %16219 = vmatprep.subr.bf16.mxu1 %v22207_v31  ;;  %v5988_v1 = vpop.f32.mrb[251].mxu0  ;;  %v24786_v21 = vmax.f32 %v22123_v8, %v22125_v20  ;;  %v24788_v8 = vmax.f32 %v22135_v22, %v22137_v44 }
 0x8f7   :  { %v6311_v38 = vmax.f32 %v5986_v48, %v6260_v18  ;;  %v6262_v29 = vpop.f32.mrb[251].mxu1  ;;  %16197 = vmatpush1.bf16.msra.mxu0 %v22205_v50  ;;  %16221 = vmatpush1.bf16.msra.mxu1 %v22205_v50  ;;  %v24791_v44 = vmax.f32 %v22153_v58, %v22155_v41  ;;  %v24793_v41 = vld [vmem:[#allocation12_spill] sm:$0xff] }
 0x8f8   :  { %v6312_v16 = vmax.f32 %v5988_v1, %v6262_v29  ;;  %v24794_v58 = vmax.f32 %v22165_v46, %v24793_v41  ;;  %v14319_v46 = vld [vmem:[%s24353_s6 + $0x40] sm:$0xff] }
 0x8f9   :  { %v6335_v54 = vmax.f32 %v24780_v15, %v6311_v38  ;;  %v5992_v62 = vpop.f32.mrb[252].mxu0  ;;  %v17564_v41 = vld [vmem:[%s24354_s7 + $0x2e4] ss:$16 sps:$4 sm:$0xff]  }
 0x8fa   :  { %v6336_v25 = vmax.f32 %v24781_v36, %v6312_v16  ;;  %v6266_v49 = vpop.f32.mrb[252].mxu1  ;;  %v5994_v7 = vpop.f32.mrb[253].mxu0 }
 0x8fb   :  { %v22225_v42 = vpack.c.bf16 %v6335_v54, %v6333_v0  ;;  %v6313_v61 = vmax.f32 %v5992_v62, %v6266_v49  ;;  %v6268_v19 = vpop.f32.mrb[253].mxu1 }
 0x8fc   :  { %v22227_v17 = vpack.c.bf16 %v6336_v25, %v6334_v32  ;;  %v6314_v28 = vmax.f32 %v5994_v7, %v6268_v19 }
 0x8fd   :  { %v6337_v3 = vmax.f32 %v24782_v56, %v6313_v61  ;;  %v5998_v9 = vpop.f32.mrb[254].mxu0  ;;  %v24790_v61 = vmax.f32 %v22147_v47, %v22149_v45  ;;  %v24792_v47 = vmax.f32 %v22159_v27, %v22161_v40  ;;  %v6349_v40 = vld [vmem:[%s24353_s6] sm:$0xff] }
 0x8fe   :  { %v6338_v33 = vmax.f32 %v24783_v24, %v6314_v28  ;;  %v6272_v13 = vpop.f32.mrb[254].mxu1  ;;  %16199 = vmatprep.subr.bf16.mxu0 %v22227_v17  ;;  %16223 = vmatprep.subr.bf16.mxu1 %v22227_v17  ;;  %v6000_v6 = vpop.f32.mrb[255].mxu0  ;;  %v17514_v27 = vld [vmem:[%s24354_s7 + $0x1e0] ss:$16 sps:$4 sm:$0xff]  }
 0x8ff   :  { %v6315_v53 = vmax.f32 %v5998_v9, %v6272_v13  ;;  %v6274_v14 = vpop.f32.mrb[255].mxu1  ;;  %16201 = vmatpush1.bf16.msra.mxu0 %v22225_v42  ;;  %16225 = vmatpush1.bf16.msra.mxu1 %v22225_v42 }
 0x900   :  { %v6316_v60 = vmax.f32 %v6000_v6, %v6274_v14  ;;  %v17516_v6 = vld [vmem:[%s24354_s7 + $0x1e4] ss:$16 sps:$4 sm:$0xff]   ;;  %v17517_v14 = vld [vmem:[%s24354_s7 + $0x1e8] ss:$16 sps:$4 sm:$0xff]  }
 0x901   :  { %v6339_v23 = vmax.f32 %v24784_v51, %v6315_v53  ;;  %v6004_v34 = vpop.f32.mrb[0].mxu0  ;;  %v17519_v53 = vld [vmem:[%s24354_s7 + $0x1ec] ss:$16 sps:$4 sm:$0xff]  }
 0x902   :  { %v6340_v39 = vmax.f32 %v24785_v5, %v6316_v60  ;;  %v6278_v57 = vpop.f32.mrb[0].mxu1  ;;  %v6006_v43 = vpop.f32.mrb[1].mxu0  ;;  %v17522_v60 = vld [vmem:[%s24354_s7 + $0x204] ss:$16 sps:$4 sm:$0xff]   ;;  %v17525_v51 = vld [vmem:[%s24354_s7 + $0x20c] ss:$16 sps:$4 sm:$0xff]  }
 0x903   :  { %v22245_v4 = vpack.c.bf16 %v6339_v23, %v6337_v3  ;;  %v6317_v37 = vmax.f32 %v6004_v34, %v6278_v57  ;;  %v6280_v55 = vpop.f32.mrb[1].mxu1  ;;  %v24795_v23 = vmov 0.0   ;;  %v14320_v34 = vld [vmem:[%s24353_s6 + $0x48] sm:$0xff] }
 0x904   :  { %v22247_v0 = vpack.c.bf16 %v6340_v39, %v6338_v33  ;;  %v6318_v48 = vmax.f32 %v6006_v43, %v6280_v55  ;;  %v6350_v5 = vld [vmem:[%s24353_s6 + $0x8] sm:$0xff]  ;;  %v17520_v39 = vld [vmem:[%s24354_s7 + $0x200] ss:$16 sps:$4 sm:$0xff]   ;;  %v17528_v43 = vld [vmem:[%s24354_s7 + $0x224] ss:$16 sps:$4 sm:$0xff]  }
 0x905   :  { %v6341_v32 = vmax.f32 %v24786_v21, %v6317_v37  ;;  %v6010_v35 = vpop.f32.mrb[2].mxu0  ;;  %v17523_v57 = vld [vmem:[%s24354_s7 + $0x208] ss:$16 sps:$4 sm:$0xff]   ;;  %v17531_v37 = vld [vmem:[%s24354_s7 + $0x22c] ss:$16 sps:$4 sm:$0xff]   ;;  %v14321_v55 = vld [vmem:[%s24353_s6 + $0x50] sm:$0xff] }
 0x906   :  { %v6342_v18 = vmax.f32 %v24787_v2, %v6318_v48  ;;  %v6284_v11 = vpop.f32.mrb[2].mxu1  ;;  %16203 = vmatprep.subr.bf16.mxu0 %v22247_v0  ;;  %16227 = vmatprep.subr.bf16.mxu1 %v22247_v0  ;;  %v6012_v63 = vpop.f32.mrb[3].mxu0  ;;  %v6351_v48 = vld [vmem:[%s24353_s6 + $0x10] sm:$0xff]  ;;  %v17537_v2 = vld [vmem:[%s24354_s7 + $0x24c] ss:$16 sps:$4 sm:$0xff]  }
 0x907   :  { %v6319_v1 = vmax.f32 %v6010_v35, %v6284_v11  ;;  %v6286_v38 = vpop.f32.mrb[3].mxu1  ;;  %16205 = vmatpush1.bf16.msra.mxu0 %v22245_v4  ;;  %16229 = vmatpush1.bf16.msra.mxu1 %v22245_v4  ;;  %v17526_v21 = vld [vmem:[%s24354_s7 + $0x220] ss:$16 sps:$4 sm:$0xff]   ;;  %v17534_v35 = vld [vmem:[%s24354_s7 + $0x244] ss:$16 sps:$4 sm:$0xff]   ;;  %v6352_v11 = vld [vmem:[%s24353_s6 + $0x18] sm:$0xff] }
 0x908   :  { %v6320_v29 = vmax.f32 %v6012_v63, %v6286_v38  ;;  %v17532_v63 = vld [vmem:[%s24354_s7 + $0x240] ss:$16 sps:$4 sm:$0xff]   ;;  %v17540_v38 = vld [vmem:[%s24354_s7 + $0x264] ss:$16 sps:$4 sm:$0xff]  }
 0x909   :  { %v6343_v20 = vmax.f32 %v24788_v8, %v6319_v1  ;;  %v6016_v16 = vpop.f32.mrb[4].mxu0  ;;  %v17535_v1 = vld [vmem:[%s24354_s7 + $0x248] ss:$16 sps:$4 sm:$0xff]   ;;  %v14323_v8 = vld [vmem:[%s24353_s6 + $0x60] sm:$0xff] }
 0x90a   :  { %v6344_v26 = vmax.f32 %v24789_v10, %v6320_v29  ;;  %v6290_v15 = vpop.f32.mrb[4].mxu1  ;;  %v6018_v54 = vpop.f32.mrb[5].mxu0  ;;  %v17543_v29 = vld [vmem:[%s24354_s7 + $0x26c] ss:$16 sps:$4 sm:$0xff]   ;;  %v17541_v10 = vld [vmem:[%s24354_s7 + $0x268] ss:$16 sps:$4 sm:$0xff]  }
 0x90b   :  { %v22265_v62 = vpack.c.bf16 %v6343_v20, %v6341_v32  ;;  %v6321_v36 = vmax.f32 %v6016_v16, %v6290_v15  ;;  %v6292_v25 = vpop.f32.mrb[5].mxu1  ;;  %v17529_v32 = vld [vmem:[%s24354_s7 + $0x228] ss:$16 sps:$4 sm:$0xff]   ;;  %v6353_v20 = vld [vmem:[%s24353_s6 + $0x20] sm:$0xff]  ;;  %v17549_v15 = vld [vmem:[%s24354_s7 + $0x28c] ss:$16 sps:$4 sm:$0xff]  }
 0x90c   :  { %v22267_v49 = vpack.c.bf16 %v6344_v26, %v6342_v18  ;;  %v6322_v7 = vmax.f32 %v6018_v54, %v6292_v25  ;;  %v14322_v18 = vld [vmem:[%s24353_s6 + $0x58] sm:$0xff]  ;;  %v17538_v16 = vld [vmem:[%s24354_s7 + $0x260] ss:$16 sps:$4 sm:$0xff]   ;;  %v17546_v26 = vld [vmem:[%s24354_s7 + $0x284] ss:$16 sps:$4 sm:$0xff]  }
 0x90d   :  { %v6345_v19 = vmax.f32 %v24790_v61, %v6321_v36  ;;  %v6022_v22 = vpop.f32.mrb[6].mxu0  ;;  %v14324_v54 = vld [vmem:[%s24353_s6 + $0x68] sm:$0xff]  ;;  %v17544_v25 = vld [vmem:[%s24354_s7 + $0x280] ss:$16 sps:$4 sm:$0xff]   ;;  %v17552_v61 = vld [vmem:[%s24354_s7 + $0x2a4] ss:$16 sps:$4 sm:$0xff]  }
 0x90e   :  { %v6346_v28 = vmax.f32 %v24791_v44, %v6322_v7  ;;  %v6296_v59 = vpop.f32.mrb[6].mxu1  ;;  %16207 = vmatprep.subr.bf16.mxu0 %v22267_v49  ;;  %16231 = vmatprep.subr.bf16.mxu1 %v22267_v49  ;;  %v6024_v52 = vpop.f32.mrb[7].mxu0  ;;  %v6354_v36 = vld [vmem:[%s24353_s6 + $0x28] sm:$0xff]  ;;  %v6355_v44 = vld [vmem:[%s24353_s6 + $0x30] sm:$0xff] }
 0x90f   :  { %v6323_v56 = vmax.f32 %v6022_v22, %v6296_v59  ;;  %v6298_v3 = vpop.f32.mrb[7].mxu1  ;;  %16209 = vmatpush1.bf16.msra.mxu0 %v22265_v62  ;;  %16233 = vmatpush1.bf16.msra.mxu1 %v22265_v62  ;;  %v17547_v7 = vld [vmem:[%s24354_s7 + $0x288] ss:$16 sps:$4 sm:$0xff]   ;;  %v14325_v22 = vld [vmem:[%s24353_s6 + $0x70] sm:$0xff] }
 0x910   :  { %v6324_v9 = vmax.f32 %v6024_v52, %v6298_v3  ;;  %v17553_v59 = vld [vmem:[%s24354_s7 + $0x2a8] ss:$16 sps:$4 sm:$0xff]   ;;  %v17558_v52 = vld [vmem:[%s24354_s7 + $0x2c4] ss:$16 sps:$4 sm:$0xff]  }
 0x911   :  { %v6347_v45 = vmax.f32 %v24792_v47, %v6323_v56  ;;  %v17561_v56 = vld [vmem:[%s24354_s7 + $0x2cc] ss:$16 sps:$4 sm:$0xff]   ;;  %v17556_v47 = vld [vmem:[%s24354_s7 + $0x2c0] ss:$16 sps:$4 sm:$0xff]  }
 0x912   :  { %v6348_v24 = vmax.f32 %v24794_v58, %v6324_v9  ;;  %v14326_v3 = vld [vmem:[%s24353_s6 + $0x78] sm:$0xff] }
 0x913   :  { %v22285_v33 = vpack.c.bf16 %v6347_v45, %v6345_v19  ;;  %v17555_v19 = vld [vmem:[%s24354_s7 + $0x2ac] ss:$16 sps:$4 sm:$0xff]   ;;  %v17559_v45 = vld [vmem:[%s24354_s7 + $0x2c8] ss:$16 sps:$4 sm:$0xff]  }
 0x914   :  { %v22287_v13 = vpack.c.bf16 %v6348_v24, %v6346_v28  ;;  %v17550_v28 = vld [vmem:[%s24354_s7 + $0x2a0] ss:$16 sps:$4 sm:$0xff]   ;;  %v6356_v9 = vld [vmem:[%s24353_s6 + $0x38] sm:$0xff] }
 0x915   :  { %v17567_v58 = vld [vmem:[%s24354_s7 + $0x2ec] ss:$16 sps:$4 sm:$0xff]   ;;  %v17562_v24 = vld [vmem:[%s24354_s7 + $0x2e0] ss:$16 sps:$4 sm:$0xff]  }
 0x916   :  { %16211 = vmatprep.subr.bf16.mxu0 %v22287_v13  ;;  %16235 = vmatprep.subr.bf16.mxu1 %v22287_v13 }
 0x917   :  { %16213 = vmatpush1.bf16.msra.mxu0 %v22285_v33  ;;  %16237 = vmatpush1.bf16.msra.mxu1 %v22285_v33 }
 0x918   :  { %7090 = vmatprep.subr.bf16.mxu0 %v17516_v6  ;;  %7163 = vmatprep.subr.bf16.mxu1 %v17519_v53  ;;  %v17565_v6 = vld [vmem:[%s24354_s7 + $0x2e8] ss:$16 sps:$4 sm:$0xff]   ;;  %v17570_v53 = vld [vmem:[%s24354_s7 + $0x304] ss:$16 sps:$4 sm:$0xff]  }
 0x91a   :  { %14327 = vmatmul.mubr.msk.f32.vlgmr.msra.gmra.mrb[8].mxu1 %vm158_vm0, %v14319_v46  ;;  %14311 = vmatmul.mubr.msk.f32.vlgmr.msra.gmra.mrb[8].mxu0 %vm158_vm0, %v6349_v40  ;;  %v17573_v46 = vld [vmem:[%s24354_s7 + $0x30c] ss:$16 sps:$4 sm:$0xff]   ;;  %v17568_v40 = vld [vmem:[%s24354_s7 + $0x300] ss:$16 sps:$4 sm:$0xff]  }
 0x91b   :  { %6665 = vmatprep.mubr.f32.mxu1 %v24795_v23  ;;  %6451 = vmatprep.mubr.f32.mxu0 %v24795_v23 }
 0x91c   :  { %7091 = vmatpush1.bf16.msra.mxu0 %v17514_v27  ;;  %7164 = vmatpush1.bf16.msra.mxu1 %v17517_v14  ;;  %v17571_v27 = vld [vmem:[%s24354_s7 + $0x308] ss:$16 sps:$4 sm:$0xff]   ;;  %v17576_v14 = vld [vmem:[%s24354_s7 + $0x324] ss:$16 sps:$4 sm:$0xff]  }
 0x91d   :  { %7092 = vmatprep.subr.bf16.mxu0 %v17522_v60  ;;  %7165 = vmatprep.subr.bf16.mxu1 %v17525_v51  ;;  %v17579_v60 = vld [vmem:[%s24354_s7 + $0x32c] ss:$16 sps:$4 sm:$0xff]   ;;  %v17574_v51 = vld [vmem:[%s24354_s7 + $0x320] ss:$16 sps:$4 sm:$0xff]  }
 0x91e   :  { %14328 = vmatmul.mubr.msk.f32.gmra.mrb[10].mxu1 %vm158_vm0, %v14320_v34  ;;  %14312 = vmatmul.mubr.msk.f32.gmra.mrb[10].mxu0 %vm158_vm0, %v6350_v5  ;;  %v17577_v34 = vld [vmem:[%s24354_s7 + $0x328] ss:$16 sps:$4 sm:$0xff]   ;;  %v17582_v5 = vld [vmem:[%s24354_s7 + $0x344] ss:$16 sps:$4 sm:$0xff]  }
 0x91f   :  { %6671 = vmatprep.mubr.f32.mxu1 %v24795_v23  ;;  %6457 = vmatprep.mubr.f32.mxu0 %v24795_v23 }
 0x920   :  { %7093 = vmatpush1.bf16.msra.mxu0 %v17520_v39  ;;  %7166 = vmatpush1.bf16.msra.mxu1 %v17523_v57  ;;  %v17585_v39 = vld [vmem:[%s24354_s7 + $0x34c] ss:$16 sps:$4 sm:$0xff]   ;;  %v17580_v57 = vld [vmem:[%s24354_s7 + $0x340] ss:$16 sps:$4 sm:$0xff]  }
 0x921   :  { %7094 = vmatprep.subr.bf16.mxu0 %v17528_v43  ;;  %7167 = vmatprep.subr.bf16.mxu1 %v17531_v37  ;;  %v17583_v43 = vld [vmem:[%s24354_s7 + $0x348] ss:$16 sps:$4 sm:$0xff]   ;;  %v17588_v37 = vld [vmem:[%s24354_s7 + $0x364] ss:$16 sps:$4 sm:$0xff]  }
 0x922   :  { %14329 = vmatmul.mubr.msk.f32.gmra.mrb[12].mxu1 %vm158_vm0, %v14321_v55  ;;  %14313 = vmatmul.mubr.msk.f32.gmra.mrb[12].mxu0 %vm158_vm0, %v6351_v48  ;;  %v17591_v55 = vld [vmem:[%s24354_s7 + $0x36c] ss:$16 sps:$4 sm:$0xff]   ;;  %v17586_v48 = vld [vmem:[%s24354_s7 + $0x360] ss:$16 sps:$4 sm:$0xff]  }
 0x923   :  { %6677 = vmatprep.mubr.f32.mxu1 %v24795_v23  ;;  %6463 = vmatprep.mubr.f32.mxu0 %v24795_v23 }
 0x924   :  { %7095 = vmatpush1.bf16.msra.mxu0 %v17526_v21  ;;  %7168 = vmatpush1.bf16.msra.mxu1 %v17529_v32  ;;  %v17589_v21 = vld [vmem:[%s24354_s7 + $0x368] ss:$16 sps:$4 sm:$0xff]   ;;  %v17594_v32 = vld [vmem:[%s24354_s7 + $0x384] ss:$16 sps:$4 sm:$0xff]  }
 0x925   :  { %7096 = vmatprep.subr.bf16.mxu0 %v17534_v35  ;;  %7169 = vmatprep.subr.bf16.mxu1 %v17537_v2  ;;  %v17597_v35 = vld [vmem:[%s24354_s7 + $0x38c] ss:$16 sps:$4 sm:$0xff]   ;;  %v17592_v2 = vld [vmem:[%s24354_s7 + $0x380] ss:$16 sps:$4 sm:$0xff]  }
 0x926   :  { %14330 = vmatmul.mubr.msk.f32.gmra.mrb[14].mxu1 %vm158_vm0, %v14322_v18  ;;  %14314 = vmatmul.mubr.msk.f32.gmra.mrb[14].mxu0 %vm158_vm0, %v6352_v11  ;;  %v17595_v18 = vld [vmem:[%s24354_s7 + $0x388] ss:$16 sps:$4 sm:$0xff]   ;;  %v17600_v11 = vld [vmem:[%s24354_s7 + $0x3a4] ss:$16 sps:$4 sm:$0xff]  }
 0x927   :  { %6683 = vmatprep.mubr.f32.mxu1 %v24795_v23  ;;  %6469 = vmatprep.mubr.f32.mxu0 %v24795_v23 }
 0x928   :  { %7097 = vmatpush1.bf16.msra.mxu0 %v17532_v63  ;;  %7170 = vmatpush1.bf16.msra.mxu1 %v17535_v1  ;;  %v17603_v63 = vld [vmem:[%s24354_s7 + $0x3ac] ss:$16 sps:$4 sm:$0xff]   ;;  %v17598_v1 = vld [vmem:[%s24354_s7 + $0x3a0] ss:$16 sps:$4 sm:$0xff]  }
 0x929   :  { %7098 = vmatprep.subr.bf16.mxu0 %v17540_v38  ;;  %7171 = vmatprep.subr.bf16.mxu1 %v17543_v29  ;;  %v17601_v38 = vld [vmem:[%s24354_s7 + $0x3a8] ss:$16 sps:$4 sm:$0xff]   ;;  %v17606_v29 = vld [vmem:[%s24354_s7 + $0x4] ss:$16 sps:$4 sm:$0xff]  }
 0x92a   :  { %14331 = vmatmul.mubr.msk.f32.gmra.mrb[16].mxu1 %vm158_vm0, %v14323_v8  ;;  %14315 = vmatmul.mubr.msk.f32.gmra.mrb[16].mxu0 %vm158_vm0, %v6353_v20  ;;  %v17609_v8 = vld [vmem:[%s24354_s7 + $0xc] ss:$16 sps:$4 sm:$0xff]  }
 0x92b   :  { %6689 = vmatprep.mubr.f32.mxu1 %v24795_v23  ;;  %6475 = vmatprep.mubr.f32.mxu0 %v24795_v23 }
 0x92c   :  { %7099 = vmatpush1.bf16.msra.mxu0 %v17538_v16  ;;  %7172 = vmatpush1.bf16.msra.mxu1 %v17541_v10 }
 0x92d   :  { %7100 = vmatprep.subr.bf16.mxu0 %v17546_v26  ;;  %7173 = vmatprep.subr.bf16.mxu1 %v17549_v15 }
 0x92e   :  { %14332 = vmatmul.mubr.msk.f32.gmra.mrb[18].mxu1 %vm158_vm0, %v14324_v54  ;;  %14316 = vmatmul.mubr.msk.f32.gmra.mrb[18].mxu0 %vm158_vm0, %v6354_v36 }
 0x92f   :  { %6695 = vmatprep.mubr.f32.mxu1 %v24795_v23  ;;  %6481 = vmatprep.mubr.f32.mxu0 %v24795_v23 }
 0x930   :  { %7101 = vmatpush1.bf16.msra.mxu0 %v17544_v25  ;;  %7174 = vmatpush1.bf16.msra.mxu1 %v17547_v7 }
 0x931   :  { %7102 = vmatprep.subr.bf16.mxu0 %v17552_v61  ;;  %7175 = vmatprep.subr.bf16.mxu1 %v17555_v19 }
 0x932   :  { %14333 = vmatmul.mubr.msk.f32.gmra.mrb[20].mxu1 %vm158_vm0, %v14325_v22  ;;  %14317 = vmatmul.mubr.msk.f32.gmra.mrb[20].mxu0 %vm158_vm0, %v6355_v44  ;;  %v17604_v22 = vld [vmem:[%s24354_s7] ss:$16 sps:$4 sm:$0xff]   ;;  %v17607_v44 = vld [vmem:[%s24354_s7 + $0x8] ss:$16 sps:$4 sm:$0xff]  }
 0x933   :  { %6701 = vmatprep.mubr.f32.mxu1 %v24795_v23  ;;  %6487 = vmatprep.mubr.f32.mxu0 %v24795_v23 }
 0x934   :  { %7103 = vmatpush1.bf16.msra.mxu0 %v17550_v28  ;;  %7176 = vmatpush1.bf16.msra.mxu1 %v17553_v59  ;;  %v17612_v59 = vld [vmem:[%s24354_s7 + $0x24] ss:$16 sps:$4 sm:$0xff]  }
 0x935   :  { %7104 = vmatprep.subr.bf16.mxu0 %v17558_v52  ;;  %7177 = vmatprep.subr.bf16.mxu1 %v17561_v56  ;;  %v17615_v52 = vld [vmem:[%s24354_s7 + $0x2c] ss:$16 sps:$4 sm:$0xff]  }
 0x936   :  { %14334 = vmatmul.mubr.msk.f32.gmra.mrb[22].mxu1 %vm158_vm0, %v14326_v3  ;;  %14318 = vmatmul.mubr.msk.f32.gmra.mrb[22].mxu0 %vm158_vm0, %v6356_v9 }
 0x938   :  { %7105 = vmatpush1.bf16.msra.mxu0 %v17556_v47  ;;  %7178 = vmatpush1.bf16.msra.mxu1 %v17559_v45  ;;  %v17610_v45 = vld [vmem:[%s24354_s7 + $0x20] ss:$16 sps:$4 sm:$0xff]  }
 0x939   :  { %7106 = vmatprep.subr.bf16.mxu0 %v17564_v41  ;;  %7179 = vmatprep.subr.bf16.mxu1 %v17567_v58  ;;  %v17613_v41 = vld [vmem:[%s24354_s7 + $0x28] ss:$16 sps:$4 sm:$0xff]   ;;  %v17618_v58 = vld [vmem:[%s24354_s7 + $0x44] ss:$16 sps:$4 sm:$0xff]  }
 0x93c   :  { %7107 = vmatpush1.bf16.msra.mxu0 %v17562_v24  ;;  %7180 = vmatpush1.bf16.msra.mxu1 %v17565_v6  ;;  %v17621_v24 = vld [vmem:[%s24354_s7 + $0x4c] ss:$16 sps:$4 sm:$0xff]  }
 0x93d   :  { %7108 = vmatprep.subr.bf16.mxu0 %v17570_v53  ;;  %7181 = vmatprep.subr.bf16.mxu1 %v17573_v46 }
 0x940   :  { %7109 = vmatpush1.bf16.msra.mxu0 %v17568_v40  ;;  %7182 = vmatpush1.bf16.msra.mxu1 %v17571_v27 }
 0x941   :  { %7110 = vmatprep.subr.bf16.mxu0 %v17576_v14  ;;  %7183 = vmatprep.subr.bf16.mxu1 %v17579_v60  ;;  %v17616_v60 = vld [vmem:[%s24354_s7 + $0x40] ss:$16 sps:$4 sm:$0xff]  }
 0x944   :  { %7111 = vmatpush1.bf16.msra.mxu0 %v17574_v51  ;;  %7184 = vmatpush1.bf16.msra.mxu1 %v17577_v34  ;;  %v17619_v51 = vld [vmem:[%s24354_s7 + $0x48] ss:$16 sps:$4 sm:$0xff]  }
 0x945   :  { %7112 = vmatprep.subr.bf16.mxu0 %v17582_v5  ;;  %7185 = vmatprep.subr.bf16.mxu1 %v17585_v39  ;;  %v17624_v39 = vld [vmem:[%s24354_s7 + $0x64] ss:$16 sps:$4 sm:$0xff]  }
 0x948   :  { %7113 = vmatpush1.bf16.msra.mxu0 %v17580_v57  ;;  %7186 = vmatpush1.bf16.msra.mxu1 %v17583_v43  ;;  %v17627_v57 = vld [vmem:[%s24354_s7 + $0x6c] ss:$16 sps:$4 sm:$0xff]  }
 0x949   :  { %7114 = vmatprep.subr.bf16.mxu0 %v17588_v37  ;;  %7187 = vmatprep.subr.bf16.mxu1 %v17591_v55 }
 0x94c   :  { %7115 = vmatpush1.bf16.msra.mxu0 %v17586_v48  ;;  %7188 = vmatpush1.bf16.msra.mxu1 %v17589_v21  ;;  %v17622_v21 = vld [vmem:[%s24354_s7 + $0x60] ss:$16 sps:$4 sm:$0xff]  }
 0x94d   :  { %7116 = vmatprep.subr.bf16.mxu0 %v17594_v32  ;;  %7189 = vmatprep.subr.bf16.mxu1 %v17597_v35  ;;  %v17625_v32 = vld [vmem:[%s24354_s7 + $0x68] ss:$16 sps:$4 sm:$0xff]   ;;  %v17630_v35 = vld [vmem:[%s24354_s7 + $0x84] ss:$16 sps:$4 sm:$0xff]  }
 0x950   :  { %7117 = vmatpush1.bf16.msra.mxu0 %v17592_v2  ;;  %7190 = vmatpush1.bf16.msra.mxu1 %v17595_v18  ;;  %v17633_v2 = vld [vmem:[%s24354_s7 + $0x8c] ss:$16 sps:$4 sm:$0xff]  }
 0x951   :  { %7118 = vmatprep.subr.bf16.mxu0 %v17600_v11  ;;  %7191 = vmatprep.subr.bf16.mxu1 %v17603_v63 }
 0x954   :  { %7119 = vmatpush1.bf16.msra.mxu0 %v17598_v1  ;;  %7192 = vmatpush1.bf16.msra.mxu1 %v17601_v38 }
 0x955   :  { %7548 = vmatprep.subr.bf16.mxu0 %v17606_v29  ;;  %7621 = vmatprep.subr.bf16.mxu1 %v17609_v8  ;;  %v17628_v8 = vld [vmem:[%s24354_s7 + $0x80] ss:$16 sps:$4 sm:$0xff]  }
 0x9ed   :  { %v6661_v20 = vpop.f32.mrb[8].mxu1  ;;  %v6447_v16 = vpop.f32.mrb[8].mxu0 }
 0x9ee   :  { %v6663_v10 = vpop.f32.mrb[9].mxu1  ;;  %v6449_v26 = vpop.f32.mrb[9].mxu0 }
 0x9f1   :  { %v6667_v15 = vpop.f32.mrb[10].mxu1  ;;  %v6453_v54 = vpop.f32.mrb[10].mxu0 }
 0x9f2   :  { %v6708_v36 = vpack.c.bf16 %v6667_v15, %v6661_v20  ;;  %v6669_v25 = vpop.f32.mrb[11].mxu1  ;;  %v22557_v7 = vpack.c.bf16 %v6453_v54, %v6447_v16  ;;  %v6455_v61 = vpop.f32.mrb[11].mxu0  ;;  %v17631_v20 = vld [vmem:[%s24354_s7 + $0x88] ss:$16 sps:$4 sm:$0xff]   ;;  %v17639_v15 = vld [vmem:[%s24354_s7 + $0xac] ss:$16 sps:$4 sm:$0xff]  }
 0x9f3   :  { %v6709_v19 = vpack.c.bf16 %v6669_v25, %v6663_v10  ;;  %v22565_v28 = vpack.c.bf16 %v6455_v61, %v6449_v26  ;;  %v17636_v26 = vld [vmem:[%s24354_s7 + $0xa4] ss:$16 sps:$4 sm:$0xff]  }
 0x9f5   :  { %14455 = vmatprep.mubr.msk.bf16.mxu0 %vm7077_vm4, %v6709_v19  ;;  %14459 = vmatprep.mubr.msk.bf16.mxu1 %vm7077_vm4, %v6709_v19  ;;  %v6673_v56 = vpop.f32.mrb[12].mxu1  ;;  %v6459_v3 = vpop.f32.mrb[12].mxu0  ;;  %v17634_v19 = vld [vmem:[%s24354_s7 + $0xa0] ss:$16 sps:$4 sm:$0xff]  }
 0x9f6   :  { %7123 = vmatmul.mubr.bf16.vlgmr.msra.gmra.mrb[24].mxu0 %v6708_v36  ;;  %7196 = vmatmul.mubr.bf16.vlgmr.msra.gmra.mrb[24].mxu1 %v6708_v36  ;;  %v6675_v9 = vpop.f32.mrb[13].mxu1  ;;  %v6461_v47 = vpop.f32.mrb[13].mxu0 }
 0x9f7   :  { %7549 = vmatpush1.bf16.msra.mxu0 %v17604_v22  ;;  %7622 = vmatpush1.bf16.msra.mxu1 %v17607_v44  ;;  %v17637_v22 = vld [vmem:[%s24354_s7 + $0xa8] ss:$16 sps:$4 sm:$0xff]   ;;  %v17642_v44 = vld [vmem:[%s24354_s7 + $0xc4] ss:$16 sps:$4 sm:$0xff]  }
 0x9f8   :  { %7550 = vmatprep.subr.bf16.mxu0 %v17612_v59  ;;  %7623 = vmatprep.subr.bf16.mxu1 %v17615_v52  ;;  %v17645_v59 = vld [vmem:[%s24354_s7 + $0xcc] ss:$16 sps:$4 sm:$0xff]  }
 0x9f9   :  { %v6679_v6 = vpop.f32.mrb[14].mxu1  ;;  %v6465_v53 = vpop.f32.mrb[14].mxu0 }
 0x9fa   :  { %v6710_v46 = vpack.c.bf16 %v6679_v6, %v6673_v56  ;;  %v6681_v40 = vpop.f32.mrb[15].mxu1  ;;  %v22587_v27 = vpack.c.bf16 %v6465_v53, %v6459_v3  ;;  %v6467_v14 = vpop.f32.mrb[15].mxu0  ;;  %v17648_v53 = vld [vmem:[%s24354_s7 + $0xe4] ss:$16 sps:$4 sm:$0xff]  }
 0x9fb   :  { %7551 = vmatpush1.bf16.msra.mxu0 %v17610_v45  ;;  %7624 = vmatpush1.bf16.msra.mxu1 %v17613_v41  ;;  %v6711_v34 = vpack.c.bf16 %v6681_v40, %v6675_v9  ;;  %v22595_v5 = vpack.c.bf16 %v6467_v14, %v6461_v47  ;;  %v17640_v41 = vld [vmem:[%s24354_s7 + $0xc0] ss:$16 sps:$4 sm:$0xff]   ;;  %v17649_v14 = vld [vmem:[%s24354_s7 + $0xe8] ss:$16 sps:$4 sm:$0xff]  }
 0x9fc   :  { %7552 = vmatprep.subr.bf16.mxu0 %v17618_v58  ;;  %7625 = vmatprep.subr.bf16.mxu1 %v17621_v24  ;;  %v17643_v58 = vld [vmem:[%s24354_s7 + $0xc8] ss:$16 sps:$4 sm:$0xff]   ;;  %v17646_v40 = vld [vmem:[%s24354_s7 + $0xe0] ss:$16 sps:$4 sm:$0xff]  }
 0x9fd   :  { %14456 = vmatprep.mubr.msk.bf16.mxu0 %vm7077_vm4, %v6711_v34  ;;  %14460 = vmatprep.mubr.msk.bf16.mxu1 %vm7077_vm4, %v6711_v34  ;;  %v6685_v43 = vpop.f32.mrb[16].mxu1  ;;  %v6471_v37 = vpop.f32.mrb[16].mxu0  ;;  %v17652_v34 = vld [vmem:[%s24354_s7 + $0x100] ss:$16 sps:$4 sm:$0xff]  }
 0x9fe   :  { %7133 = vmatmul.mubr.bf16.gmra.mrb[28].mxu0 %v6710_v46  ;;  %7206 = vmatmul.mubr.bf16.gmra.mrb[28].mxu1 %v6710_v46  ;;  %v6687_v55 = vpop.f32.mrb[17].mxu1  ;;  %v6473_v48 = vpop.f32.mrb[17].mxu0  ;;  %v17651_v46 = vld [vmem:[%s24354_s7 + $0xec] ss:$16 sps:$4 sm:$0xff]  }
 0x9ff   :  { %7553 = vmatpush1.bf16.msra.mxu0 %v17616_v60  ;;  %7626 = vmatpush1.bf16.msra.mxu1 %v17619_v51  ;;  %v17654_v60 = vld [vmem:[%s24354_s7 + $0x104] ss:$16 sps:$4 sm:$0xff]   ;;  %v17657_v51 = vld [vmem:[%s24354_s7 + $0x10c] ss:$16 sps:$4 sm:$0xff]  }
 0xa00   :  { %7554 = vmatprep.subr.bf16.mxu0 %v17624_v39  ;;  %7627 = vmatprep.subr.bf16.mxu1 %v17627_v57  ;;  %v17655_v39 = vld [vmem:[%s24354_s7 + $0x108] ss:$16 sps:$4 sm:$0xff]   ;;  %v17660_v57 = vld [vmem:[%s24354_s7 + $0x124] ss:$16 sps:$4 sm:$0xff]  }
 0xa01   :  { %v6691_v18 = vpop.f32.mrb[18].mxu1  ;;  %v6477_v11 = vpop.f32.mrb[18].mxu0 }
 0xa02   :  { %v6712_v63 = vpack.c.bf16 %v6691_v18, %v6685_v43  ;;  %v6693_v1 = vpop.f32.mrb[19].mxu1  ;;  %v22617_v38 = vpack.c.bf16 %v6477_v11, %v6471_v37  ;;  %v6479_v29 = vpop.f32.mrb[19].mxu0  ;;  %v17658_v43 = vld [vmem:[%s24354_s7 + $0x120] ss:$16 sps:$4 sm:$0xff]   ;;  %v17661_v37 = vld [vmem:[%s24354_s7 + $0x128] ss:$16 sps:$4 sm:$0xff]  }
 0xa03   :  { %7555 = vmatpush1.bf16.msra.mxu0 %v17622_v21  ;;  %7628 = vmatpush1.bf16.msra.mxu1 %v17625_v32  ;;  %v6713_v16 = vpack.c.bf16 %v6693_v1, %v6687_v55  ;;  %v22625_v10 = vpack.c.bf16 %v6479_v29, %v6473_v48  ;;  %v17666_v55 = vld [vmem:[%s24354_s7 + $0x144] ss:$16 sps:$4 sm:$0xff]   ;;  %v17669_v48 = vld [vmem:[%s24354_s7 + $0x14c] ss:$16 sps:$4 sm:$0xff]   ;;  %v17664_v21 = vld [vmem:[%s24354_s7 + $0x140] ss:$16 sps:$4 sm:$0xff]  }
 0xa04   :  { %7556 = vmatprep.subr.bf16.mxu0 %v17630_v35  ;;  %7629 = vmatprep.subr.bf16.mxu1 %v17633_v2  ;;  %v17667_v32 = vld [vmem:[%s24354_s7 + $0x148] ss:$16 sps:$4 sm:$0xff]   ;;  %v17672_v35 = vld [vmem:[%s24354_s7 + $0x164] ss:$16 sps:$4 sm:$0xff]   ;;  %v17675_v2 = vld [vmem:[%s24354_s7 + $0x16c] ss:$16 sps:$4 sm:$0xff]  }
 0xa05   :  { %14457 = vmatprep.mubr.msk.bf16.mxu0 %vm7077_vm4, %v6713_v16  ;;  %14461 = vmatprep.mubr.msk.bf16.mxu1 %vm7077_vm4, %v6713_v16  ;;  %v6697_v54 = vpop.f32.mrb[20].mxu1  ;;  %v6483_v36 = vpop.f32.mrb[20].mxu0  ;;  %v17670_v18 = vld [vmem:[%s24354_s7 + $0x160] ss:$16 sps:$4 sm:$0xff]   ;;  %v17673_v11 = vld [vmem:[%s24354_s7 + $0x168] ss:$16 sps:$4 sm:$0xff]  }
 0xa06   :  { %7143 = vmatmul.mubr.bf16.gmra.mrb[32].mxu0 %v6712_v63  ;;  %7216 = vmatmul.mubr.bf16.gmra.mrb[32].mxu1 %v6712_v63  ;;  %v6699_v25 = vpop.f32.mrb[21].mxu1  ;;  %v6485_v61 = vpop.f32.mrb[21].mxu0  ;;  %v17678_v63 = vld [vmem:[%s24354_s7 + $0x184] ss:$16 sps:$4 sm:$0xff]   ;;  %v17681_v1 = vld [vmem:[%s24354_s7 + $0x18c] ss:$16 sps:$4 sm:$0xff]  }
 0xa07   :  { %7557 = vmatpush1.bf16.msra.mxu0 %v17628_v8  ;;  %7630 = vmatpush1.bf16.msra.mxu1 %v17631_v20  ;;  %v17676_v29 = vld [vmem:[%s24354_s7 + $0x180] ss:$16 sps:$4 sm:$0xff]   ;;  %v17679_v8 = vld [vmem:[%s24354_s7 + $0x188] ss:$16 sps:$4 sm:$0xff]   ;;  %v17684_v20 = vld [vmem:[%s24354_s7 + $0x1a4] ss:$16 sps:$4 sm:$0xff]  }
 0xa08   :  { %7558 = vmatprep.subr.bf16.mxu0 %v17636_v26  ;;  %7631 = vmatprep.subr.bf16.mxu1 %v17639_v15  ;;  %v17687_v16 = vld [vmem:[%s24354_s7 + $0x1ac] ss:$16 sps:$4 sm:$0xff]   ;;  %v17682_v26 = vld [vmem:[%s24354_s7 + $0x1a0] ss:$16 sps:$4 sm:$0xff]   ;;  %v17685_v15 = vld [vmem:[%s24354_s7 + $0x1a8] ss:$16 sps:$4 sm:$0xff]  }
 0xa09   :  { %v6703_v52 = vpop.f32.mrb[22].mxu1  ;;  %v6489_v56 = vpop.f32.mrb[22].mxu0 }
 0xa0a   :  { %v6714_v3 = vpack.c.bf16 %v6703_v52, %v6697_v54  ;;  %v6705_v9 = vpop.f32.mrb[23].mxu1  ;;  %v22647_v47 = vpack.c.bf16 %v6489_v56, %v6483_v36  ;;  %v6491_v45 = vpop.f32.mrb[23].mxu0  ;;  %v17690_v54 = vld [vmem:[%s24354_s7 + $0x1c4] ss:$16 sps:$4 sm:$0xff]   ;;  %v17693_v36 = vld [vmem:[%s24354_s7 + $0x1cc] ss:$16 sps:$4 sm:$0xff]  }
 0xa0b   :  { %7559 = vmatpush1.bf16.msra.mxu0 %v17634_v19  ;;  %7632 = vmatpush1.bf16.msra.mxu1 %v17637_v22  ;;  %v6715_v24 = vpack.c.bf16 %v6705_v9, %v6699_v25  ;;  %v22655_v6 = vpack.c.bf16 %v6491_v45, %v6485_v61  ;;  %v17688_v25 = vld [vmem:[%s24354_s7 + $0x1c0] ss:$16 sps:$4 sm:$0xff]   ;;  %v17691_v61 = vld [vmem:[%s24354_s7 + $0x1c8] ss:$16 sps:$4 sm:$0xff]   ;;  %v17696_v19 = vld [vmem:[%s24354_s7 + $0x3cc] ss:$16 sps:$4 sm:$0xff]  }
 0xa0c   :  { %7560 = vmatprep.subr.bf16.mxu0 %v17642_v44  ;;  %7633 = vmatprep.subr.bf16.mxu1 %v17645_v59  ;;  %v17694_v22 = vld [vmem:[%s24354_s7 + $0x3c8] ss:$16 sps:$4 sm:$0xff]   ;;  %v17699_v44 = vld [vmem:[%s24354_s7 + $0x3ec] ss:$16 sps:$4 sm:$0xff]  }
 0xa0d   :  { %14458 = vmatprep.mubr.msk.bf16.mxu0 %vm7077_vm4, %v6715_v24  ;;  %14462 = vmatprep.mubr.msk.bf16.mxu1 %vm7077_vm4, %v6715_v24  ;;  %v17697_v59 = vld [vmem:[%s24354_s7 + $0x3e8] ss:$16 sps:$4 sm:$0xff]   ;;  %v17702_v52 = vld [vmem:[%s24354_s7 + $0x40c] ss:$16 sps:$4 sm:$0xff]  }
 0xa0e   :  { %7153 = vmatmul.mubr.bf16.gmra.mrb[36].mxu0 %v6714_v3  ;;  %7226 = vmatmul.mubr.bf16.gmra.mrb[36].mxu1 %v6714_v3  ;;  %v17703_v56 = vld [vmem:[%s24354_s7 + $0x428] ss:$16 sps:$4 sm:$0xff]   ;;  %v17708_v3 = vld [vmem:[%s24354_s7 + $0x44c] ss:$16 sps:$4 sm:$0xff]  }
 0xa0f   :  { %7561 = vmatpush1.bf16.msra.mxu0 %v17640_v41  ;;  %7634 = vmatpush1.bf16.msra.mxu1 %v17643_v58  ;;  %v17709_v9 = vld [vmem:[%s24354_s7 + $0x468] ss:$16 sps:$4 sm:$0xff]   ;;  %v17714_v45 = vld [vmem:[%s24354_s7 + $0x48c] ss:$16 sps:$4 sm:$0xff]  }
 0xa10   :  { %7562 = vmatprep.subr.bf16.mxu0 %v17648_v53  ;;  %7635 = vmatprep.subr.bf16.mxu1 %v17651_v46  ;;  %v17712_v41 = vld [vmem:[%s24354_s7 + $0x488] ss:$16 sps:$4 sm:$0xff]   ;;  %v17717_v58 = vld [vmem:[%s24354_s7 + $0x4ac] ss:$16 sps:$4 sm:$0xff]   ;;  %v14531_v53 = vld [vmem:[%s24353_s6 + $0x80] sm:$0xff] }
 0xa11   :  { %14523 = vmatprep.mubr.msk.bf16.mxu0 %vm7077_vm4, %v22565_v28  ;;  %14527 = vmatprep.mubr.msk.bf16.mxu1 %vm7077_vm4, %v22565_v28  ;;  %v17663_v28 = vld [vmem:[%s24354_s7 + $0x12c] ss:$16 sps:$4 sm:$0xff]   ;;  %v17715_v24 = vld [vmem:[%s24354_s7 + $0x4a8] ss:$16 sps:$4 sm:$0xff]  }
 0xa12   :  { %v17723_v46 = vld [vmem:[%s24354_s7 + $0x4ec] ss:$16 sps:$4 sm:$0xff]  }
 0xa13   :  { %7563 = vmatpush1.bf16.msra.mxu0 %v17646_v40  ;;  %7636 = vmatpush1.bf16.msra.mxu1 %v17649_v14  ;;  %v17739_v40 = vld [vmem:[%s24354_s7 + $0x3c0] ss:$16 sps:$4 sm:$0xff]   ;;  %v17744_v14 = vld [vmem:[%s24354_s7 + $0x3e4] ss:$16 sps:$4 sm:$0xff]  }
 0xa14   :  { %7564 = vmatprep.subr.bf16.mxu0 %v17654_v60  ;;  %7637 = vmatprep.subr.bf16.mxu1 %v17657_v51  ;;  %v14532_v60 = vld [vmem:[%s24353_s6 + $0x88] sm:$0xff] }
 0xa15   :  { %v17721_v51 = vld [vmem:[%s24354_s7 + $0x4e8] ss:$16 sps:$4 sm:$0xff]  }
 0xa17   :  { %7565 = vmatpush1.bf16.msra.mxu0 %v17652_v34  ;;  %7638 = vmatpush1.bf16.msra.mxu1 %v17655_v39  ;;  %v17726_v34 = vld [vmem:[%s24354_s7 + $0x50c] ss:$16 sps:$4 sm:$0xff]   ;;  %v17742_v39 = vld [vmem:[%s24354_s7 + $0x3e0] ss:$16 sps:$4 sm:$0xff]  }
 0xa18   :  { %7566 = vmatprep.subr.bf16.mxu0 %v17660_v57  ;;  %7639 = vmatprep.subr.bf16.mxu1 %v17663_v28  ;;  %v17747_v57 = vld [vmem:[%s24354_s7 + $0x404] ss:$16 sps:$4 sm:$0xff]  }
 0xa19   :  { %v14533_v28 = vld [vmem:[%s24353_s6 + $0x90] sm:$0xff] }
 0xa1b   :  { %7567 = vmatpush1.bf16.msra.mxu0 %v17658_v43  ;;  %7640 = vmatpush1.bf16.msra.mxu1 %v17661_v37  ;;  %v17724_v43 = vld [vmem:[%s24354_s7 + $0x508] ss:$16 sps:$4 sm:$0xff]   ;;  %v17729_v37 = vld [vmem:[%s24354_s7 + $0x52c] ss:$16 sps:$4 sm:$0xff]  }
 0xa1c   :  { %7568 = vmatprep.subr.bf16.mxu0 %v17666_v55  ;;  %7641 = vmatprep.subr.bf16.mxu1 %v17669_v48  ;;  %v17745_v55 = vld [vmem:[%s24354_s7 + $0x400] ss:$16 sps:$4 sm:$0xff]   ;;  %v17750_v48 = vld [vmem:[%s24354_s7 + $0x424] ss:$16 sps:$4 sm:$0xff]  }
 0xa1f   :  { %7569 = vmatpush1.bf16.msra.mxu0 %v17664_v21  ;;  %7642 = vmatpush1.bf16.msra.mxu1 %v17667_v32  ;;  %v14534_v21 = vld [vmem:[%s24353_s6 + $0x98] sm:$0xff] }
 0xa20   :  { %7570 = vmatprep.subr.bf16.mxu0 %v17672_v35  ;;  %7643 = vmatprep.subr.bf16.mxu1 %v17675_v2  ;;  %v17727_v32 = vld [vmem:[%s24354_s7 + $0x528] ss:$16 sps:$4 sm:$0xff]   ;;  %v17732_v35 = vld [vmem:[%s24354_s7 + $0x54c] ss:$16 sps:$4 sm:$0xff]   ;;  %v17748_v2 = vld [vmem:[%s24354_s7 + $0x420] ss:$16 sps:$4 sm:$0xff]  }
 0xa23   :  { %7571 = vmatpush1.bf16.msra.mxu0 %v17670_v18  ;;  %7644 = vmatpush1.bf16.msra.mxu1 %v17673_v11  ;;  %v17753_v18 = vld [vmem:[%s24354_s7 + $0x444] ss:$16 sps:$4 sm:$0xff]  }
 0xa24   :  { %7572 = vmatprep.subr.bf16.mxu0 %v17678_v63  ;;  %7645 = vmatprep.subr.bf16.mxu1 %v17681_v1  ;;  %v14535_v11 = vld [vmem:[%s24353_s6 + $0xa0] sm:$0xff]  ;;  %v17730_v63 = vld [vmem:[%s24354_s7 + $0x548] ss:$16 sps:$4 sm:$0xff]   ;;  %v17735_v1 = vld [vmem:[%s24354_s7 + $0x56c] ss:$16 sps:$4 sm:$0xff]  }
 0xa27   :  { %7573 = vmatpush1.bf16.msra.mxu0 %v17676_v29  ;;  %7646 = vmatpush1.bf16.msra.mxu1 %v17679_v8  ;;  %v17751_v29 = vld [vmem:[%s24354_s7 + $0x440] ss:$16 sps:$4 sm:$0xff]   ;;  %v17756_v8 = vld [vmem:[%s24354_s7 + $0x464] ss:$16 sps:$4 sm:$0xff]  }
 0xa28   :  { %7574 = vmatprep.subr.bf16.mxu0 %v17684_v20  ;;  %7647 = vmatprep.subr.bf16.mxu1 %v17687_v16  ;;  %v14536_v20 = vld [vmem:[%s24353_s6 + $0xa8] sm:$0xff] }
 0xa29   :  { %v17733_v16 = vld [vmem:[%s24354_s7 + $0x568] ss:$16 sps:$4 sm:$0xff]  }
 0xa2b   :  { %7575 = vmatpush1.bf16.msra.mxu0 %v17682_v26  ;;  %7648 = vmatpush1.bf16.msra.mxu1 %v17685_v15  ;;  %v17738_v26 = vld [vmem:[%s24354_s7 + $0x58c] ss:$16 sps:$4 sm:$0xff]   ;;  %v17754_v15 = vld [vmem:[%s24354_s7 + $0x460] ss:$16 sps:$4 sm:$0xff]  }
 0xa2c   :  { %7576 = vmatprep.subr.bf16.mxu0 %v17690_v54  ;;  %7649 = vmatprep.subr.bf16.mxu1 %v17693_v36  ;;  %v17759_v54 = vld [vmem:[%s24354_s7 + $0x484] ss:$16 sps:$4 sm:$0xff]  }
 0xa2d   :  { %v14537_v36 = vld [vmem:[%s24353_s6 + $0xb0] sm:$0xff] }
 0xa2f   :  { %7577 = vmatpush1.bf16.msra.mxu0 %v17688_v25  ;;  %7650 = vmatpush1.bf16.msra.mxu1 %v17691_v61  ;;  %v17736_v25 = vld [vmem:[%s24354_s7 + $0x588] ss:$16 sps:$4 sm:$0xff]   ;;  %v17757_v61 = vld [vmem:[%s24354_s7 + $0x480] ss:$16 sps:$4 sm:$0xff]  }
 0xa30   :  { %16239 = vmatprep.subr.bf16.mxu0 %v22187_v30  ;;  %8294 = vmatprep.subr.bf16.mxu1 %v17696_v19  ;;  %v17762_v19 = vld [vmem:[%s24354_s7 + $0x4a4] ss:$16 sps:$4 sm:$0xff]  }
 0xa32   :  { %7581 = vmatmul.mubr.bf16.vlgmr.msra.gmra.mrb[24].mxu0 %v22557_v7  ;;  %7654 = vmatmul.mubr.bf16.vlgmr.msra.gmra.mrb[24].mxu1 %v22557_v7  ;;  %v17700_v7 = vld [vmem:[%s24354_s7 + $0x408] ss:$16 sps:$4 sm:$0xff]  }
 0xa33   :  { %16241 = vmatpush1.bf16.msra.mxu0 %v22185_v12  ;;  %8295 = vmatpush1.bf16.msra.mxu1 %v17694_v22  ;;  %v14538_v22 = vld [vmem:[%s24353_s6 + $0xb8] sm:$0xff] }
 0xa34   :  { %14524 = vmatprep.mubr.msk.bf16.mxu0 %vm7077_vm4, %v22595_v5  ;;  %14528 = vmatprep.mubr.msk.bf16.mxu1 %vm7077_vm4, %v22595_v5  ;;  %v17705_v5 = vld [vmem:[%s24354_s7 + $0x42c] ss:$16 sps:$4 sm:$0xff]  }
 0xa35   :  { %16243 = vmatprep.subr.bf16.mxu0 %v22207_v31  ;;  %8296 = vmatprep.subr.bf16.mxu1 %v17699_v44  ;;  %v17760_v44 = vld [vmem:[%s24354_s7 + $0x4a0] ss:$16 sps:$4 sm:$0xff]  }
 0xa37   :  { %16245 = vmatpush1.bf16.msra.mxu0 %v22205_v50  ;;  %8297 = vmatpush1.bf16.msra.mxu1 %v17697_v59  ;;  %v17765_v59 = vld [vmem:[%s24354_s7 + $0x4c4] ss:$16 sps:$4 sm:$0xff]  }
 0xa38   :  { %16247 = vmatprep.subr.bf16.mxu0 %v22227_v17  ;;  %8298 = vmatprep.subr.bf16.mxu1 %v17702_v52  ;;  %v17763_v52 = vld [vmem:[%s24354_s7 + $0x4c0] ss:$16 sps:$4 sm:$0xff]  }
 0xa3a   :  { %7591 = vmatmul.mubr.bf16.gmra.mrb[28].mxu0 %v22587_v27  ;;  %7664 = vmatmul.mubr.bf16.gmra.mrb[28].mxu1 %v22587_v27  ;;  %v17706_v27 = vld [vmem:[%s24354_s7 + $0x448] ss:$16 sps:$4 sm:$0xff]  }
 0xa3b   :  { %16249 = vmatpush1.bf16.msra.mxu0 %v22225_v42  ;;  %8299 = vmatpush1.bf16.msra.mxu1 %v17700_v7  ;;  %v17768_v7 = vld [vmem:[%s24354_s7 + $0x4e4] ss:$16 sps:$4 sm:$0xff]  }
 0xa3c   :  { %14525 = vmatprep.mubr.msk.bf16.mxu0 %vm7077_vm4, %v22625_v10  ;;  %14529 = vmatprep.mubr.msk.bf16.mxu1 %vm7077_vm4, %v22625_v10  ;;  %v17711_v10 = vld [vmem:[%s24354_s7 + $0x46c] ss:$16 sps:$4 sm:$0xff]  }
 0xa3d   :  { %16251 = vmatprep.subr.bf16.mxu0 %v22247_v0  ;;  %8300 = vmatprep.subr.bf16.mxu1 %v17705_v5  ;;  %v17766_v5 = vld [vmem:[%s24354_s7 + $0x4e0] ss:$16 sps:$4 sm:$0xff]  }
 0xa3f   :  { %16253 = vmatpush1.bf16.msra.mxu0 %v22245_v4  ;;  %8301 = vmatpush1.bf16.msra.mxu1 %v17703_v56  ;;  %v17771_v56 = vld [vmem:[%s24354_s7 + $0x504] ss:$16 sps:$4 sm:$0xff]  }
 0xa40   :  { %16255 = vmatprep.subr.bf16.mxu0 %v22267_v49  ;;  %8302 = vmatprep.subr.bf16.mxu1 %v17708_v3  ;;  %v17769_v3 = vld [vmem:[%s24354_s7 + $0x500] ss:$16 sps:$4 sm:$0xff]  }
 0xa42   :  { %7601 = vmatmul.mubr.bf16.gmra.mrb[32].mxu0 %v22617_v38  ;;  %7674 = vmatmul.mubr.bf16.gmra.mrb[32].mxu1 %v22617_v38  ;;  %v17741_v38 = vld [vmem:[%s24354_s7 + $0x3c4] ss:$16 sps:$4 sm:$0xff]  }
 0xa43   :  { %16257 = vmatpush1.bf16.msra.mxu0 %v22265_v62  ;;  %8303 = vmatpush1.bf16.msra.mxu1 %v17706_v27  ;;  %v17774_v27 = vld [vmem:[%s24354_s7 + $0x524] ss:$16 sps:$4 sm:$0xff]  }
 0xa44   :  { %14526 = vmatprep.mubr.msk.bf16.mxu0 %vm7077_vm4, %v22655_v6  ;;  %14530 = vmatprep.mubr.msk.bf16.mxu1 %vm7077_vm4, %v22655_v6  ;;  %v17720_v6 = vld [vmem:[%s24354_s7 + $0x4cc] ss:$16 sps:$4 sm:$0xff]  }
 0xa45   :  { %16259 = vmatprep.subr.bf16.mxu0 %v22287_v13  ;;  %8304 = vmatprep.subr.bf16.mxu1 %v17711_v10  ;;  %v17772_v10 = vld [vmem:[%s24354_s7 + $0x520] ss:$16 sps:$4 sm:$0xff]  }
 0xa47   :  { %16261 = vmatpush1.bf16.msra.mxu0 %v22285_v33  ;;  %8305 = vmatpush1.bf16.msra.mxu1 %v17709_v9  ;;  %v17777_v9 = vld [vmem:[%s24354_s7 + $0x544] ss:$16 sps:$4 sm:$0xff]  }
 0xa48   :  { %8306 = vmatprep.subr.bf16.mxu1 %v17714_v45  ;;  %8221 = vmatprep.subr.bf16.mxu0 %v17741_v38  ;;  %v17775_v45 = vld [vmem:[%s24354_s7 + $0x540] ss:$16 sps:$4 sm:$0xff]   ;;  %v17780_v38 = vld [vmem:[%s24354_s7 + $0x564] ss:$16 sps:$4 sm:$0xff]  }
 0xa4a   :  { %7611 = vmatmul.mubr.bf16.gmra.mrb[36].mxu0 %v22647_v47  ;;  %7684 = vmatmul.mubr.bf16.gmra.mrb[36].mxu1 %v22647_v47  ;;  %v17718_v47 = vld [vmem:[%s24354_s7 + $0x4c8] ss:$16 sps:$4 sm:$0xff]  }
 0xa4b   :  { %8307 = vmatpush1.bf16.msra.mxu1 %v17712_v41  ;;  %7791 = vmatprep.mubr.f32.mxu0 %v24795_v23  ;;  %v17778_v41 = vld [vmem:[%s24354_s7 + $0x560] ss:$16 sps:$4 sm:$0xff]  }
 0xa4c   :  { %8308 = vmatprep.subr.bf16.mxu1 %v17717_v58  ;;  %v17783_v58 = vld [vmem:[%s24354_s7 + $0x584] ss:$16 sps:$4 sm:$0xff]  }
 0xa4f   :  { %8309 = vmatpush1.bf16.msra.mxu1 %v17715_v24  ;;  %v17781_v24 = vld [vmem:[%s24354_s7 + $0x580] ss:$16 sps:$4 sm:$0xff]  }
 0xa50   :  { %8310 = vmatprep.subr.bf16.mxu1 %v17720_v6  ;;  %v17786_v6 = vld [vmem:[%s24354_s7 + $0x5a4] ss:$16 sps:$4 sm:$0xff]  }
 0xa52   :  { %14539 = vmatmul.mubr.msk.f32.vlgmr.msra.gmra.mrb[40].mxu0 %vm158_vm0, %v14531_v53 }
 0xa53   :  { %8311 = vmatpush1.bf16.msra.mxu1 %v17718_v47  ;;  %7797 = vmatprep.mubr.f32.mxu0 %v24795_v23 }
 0xa54   :  { %8312 = vmatprep.subr.bf16.mxu1 %v17723_v46  ;;  %8222 = vmatpush1.bf16.msra.mxu0 %v17739_v40 }
 0xa55   :  { %8223 = vmatprep.subr.bf16.mxu0 %v17744_v14 }
 0xa56   :  { %14540 = vmatmul.mubr.msk.f32.gmra.mrb[42].mxu0 %vm158_vm0, %v14532_v60 }
 0xa57   :  { %8313 = vmatpush1.bf16.msra.mxu1 %v17721_v51  ;;  %7803 = vmatprep.mubr.f32.mxu0 %v24795_v23  ;;  %v17784_v51 = vld [vmem:[%s24354_s7 + $0x5a0] ss:$16 sps:$4 sm:$0xff]  }
 0xa58   :  { %8314 = vmatprep.subr.bf16.mxu1 %v17726_v34  ;;  %8224 = vmatpush1.bf16.msra.mxu0 %v17742_v39  ;;  %v17789_v34 = vld [vmem:[%s24354_s7 + $0x5c4] ss:$16 sps:$4 sm:$0xff]  }
 0xa59   :  { %8225 = vmatprep.subr.bf16.mxu0 %v17747_v57 }
 0xa5a   :  { %14541 = vmatmul.mubr.msk.f32.gmra.mrb[44].mxu0 %vm158_vm0, %v14533_v28  ;;  %v17787_v28 = vld [vmem:[%s24354_s7 + $0x5c0] ss:$16 sps:$4 sm:$0xff]  }
 0xa5b   :  { %8315 = vmatpush1.bf16.msra.mxu1 %v17724_v43  ;;  %7809 = vmatprep.mubr.f32.mxu0 %v24795_v23  ;;  %v17792_v43 = vld [vmem:[%s24354_s7 + $0x5e4] ss:$16 sps:$4 sm:$0xff]  }
 0xa5c   :  { %8316 = vmatprep.subr.bf16.mxu1 %v17729_v37  ;;  %8226 = vmatpush1.bf16.msra.mxu0 %v17745_v55 }
 0xa5d   :  { %8227 = vmatprep.subr.bf16.mxu0 %v17750_v48 }
 0xa5e   :  { %14542 = vmatmul.mubr.msk.f32.gmra.mrb[46].mxu0 %vm158_vm0, %v14534_v21 }
 0xa5f   :  { %8317 = vmatpush1.bf16.msra.mxu1 %v17727_v32  ;;  %7815 = vmatprep.mubr.f32.mxu0 %v24795_v23  ;;  %v17790_v32 = vld [vmem:[%s24354_s7 + $0x5e0] ss:$16 sps:$4 sm:$0xff]  }
 0xa60   :  { %8318 = vmatprep.subr.bf16.mxu1 %v17732_v35  ;;  %8228 = vmatpush1.bf16.msra.mxu0 %v17748_v2  ;;  %v17795_v35 = vld [vmem:[%s24354_s7 + $0x604] ss:$16 sps:$4 sm:$0xff]  }
 0xa61   :  { %8229 = vmatprep.subr.bf16.mxu0 %v17753_v18 }
 0xa62   :  { %14543 = vmatmul.mubr.msk.f32.gmra.mrb[96].mxu0 %vm158_vm0, %v14535_v11  ;;  %v17793_v11 = vld [vmem:[%s24354_s7 + $0x600] ss:$16 sps:$4 sm:$0xff]  }
 0xa63   :  { %8319 = vmatpush1.bf16.msra.mxu1 %v17730_v63  ;;  %7821 = vmatprep.mubr.f32.mxu0 %v24795_v23  ;;  %v17798_v63 = vld [vmem:[%s24354_s7 + $0x624] ss:$16 sps:$4 sm:$0xff]  }
 0xa64   :  { %8320 = vmatprep.subr.bf16.mxu1 %v17735_v1  ;;  %8230 = vmatpush1.bf16.msra.mxu0 %v17751_v29 }
 0xa65   :  { %8231 = vmatprep.subr.bf16.mxu0 %v17756_v8 }
 0xa66   :  { %14544 = vmatmul.mubr.msk.f32.gmra.mrb[98].mxu0 %vm158_vm0, %v14536_v20 }
 0xa67   :  { %8321 = vmatpush1.bf16.msra.mxu1 %v17733_v16  ;;  %7827 = vmatprep.mubr.f32.mxu0 %v24795_v23  ;;  %v17796_v16 = vld [vmem:[%s24354_s7 + $0x620] ss:$16 sps:$4 sm:$0xff]  }
 0xa68   :  { %8322 = vmatprep.subr.bf16.mxu1 %v17738_v26  ;;  %8232 = vmatpush1.bf16.msra.mxu0 %v17754_v15  ;;  %v17801_v26 = vld [vmem:[%s24354_s7 + $0x644] ss:$16 sps:$4 sm:$0xff]  }
 0xa69   :  { %8233 = vmatprep.subr.bf16.mxu0 %v17759_v54 }
 0xa6a   :  { %14545 = vmatmul.mubr.msk.f32.gmra.mrb[100].mxu0 %vm158_vm0, %v14537_v36  ;;  %v17799_v36 = vld [vmem:[%s24354_s7 + $0x640] ss:$16 sps:$4 sm:$0xff]  }
 0xa6b   :  { %8323 = vmatpush1.bf16.msra.mxu1 %v17736_v25  ;;  %7833 = vmatprep.mubr.f32.mxu0 %v24795_v23  ;;  %v17804_v25 = vld [vmem:[%s24354_s7 + $0x664] ss:$16 sps:$4 sm:$0xff]  }
 0xa6c   :  { %16263 = vmatprep.subr.bf16.mxu1 %v22187_v30  ;;  %8234 = vmatpush1.bf16.msra.mxu0 %v17757_v61  ;;  %v17831_v61 = vld [vmem:[%s24354_s7 + $0x5ac] ss:$16 sps:$4 sm:$0xff]  }
 0xa6d   :  { %8235 = vmatprep.subr.bf16.mxu0 %v17762_v19 }
 0xa6e   :  { %14546 = vmatmul.mubr.msk.f32.gmra.mrb[102].mxu0 %vm158_vm0, %v14538_v22 }
 0xa70   :  { %8236 = vmatpush1.bf16.msra.mxu0 %v17760_v44 }
 0xa71   :  { %8237 = vmatprep.subr.bf16.mxu0 %v17765_v59 }
 0xa74   :  { %8238 = vmatpush1.bf16.msra.mxu0 %v17763_v52  ;;  %v17802_v52 = vld [vmem:[%s24354_s7 + $0x660] ss:$16 sps:$4 sm:$0xff]  }
 0xa75   :  { %8239 = vmatprep.subr.bf16.mxu0 %v17768_v7  ;;  %v17807_v7 = vld [vmem:[%s24354_s7 + $0x684] ss:$16 sps:$4 sm:$0xff]  }
 0xa78   :  { %8240 = vmatpush1.bf16.msra.mxu0 %v17766_v5  ;;  %v17805_v5 = vld [vmem:[%s24354_s7 + $0x680] ss:$16 sps:$4 sm:$0xff]  }
 0xa79   :  { %8241 = vmatprep.subr.bf16.mxu0 %v17771_v56  ;;  %v17810_v56 = vld [vmem:[%s24354_s7 + $0x6a4] ss:$16 sps:$4 sm:$0xff]  }
 0xa7c   :  { %8242 = vmatpush1.bf16.msra.mxu0 %v17769_v3  ;;  %v17808_v3 = vld [vmem:[%s24354_s7 + $0x6a0] ss:$16 sps:$4 sm:$0xff]  }
 0xa7d   :  { %8243 = vmatprep.subr.bf16.mxu0 %v17774_v27  ;;  %v14675_v27 = vld [vmem:[%s24353_s6 + $0xc0] sm:$0xff] }
 0xa80   :  { %8244 = vmatpush1.bf16.msra.mxu0 %v17772_v10  ;;  %v17813_v10 = vld [vmem:[%s24354_s7 + $0x6c4] ss:$16 sps:$4 sm:$0xff]  }
 0xa81   :  { %8245 = vmatprep.subr.bf16.mxu0 %v17777_v9  ;;  %v17829_v9 = vld [vmem:[%s24354_s7 + $0x5a8] ss:$16 sps:$4 sm:$0xff]  }
 0xa84   :  { %8246 = vmatpush1.bf16.msra.mxu0 %v17775_v45  ;;  %v17834_v45 = vld [vmem:[%s24354_s7 + $0x5cc] ss:$16 sps:$4 sm:$0xff]  }
 0xa85   :  { %8247 = vmatprep.subr.bf16.mxu0 %v17780_v38  ;;  %v17811_v38 = vld [vmem:[%s24354_s7 + $0x6c0] ss:$16 sps:$4 sm:$0xff]  }
 0xa88   :  { %8248 = vmatpush1.bf16.msra.mxu0 %v17778_v41  ;;  %v14676_v41 = vld [vmem:[%s24353_s6 + $0xc8] sm:$0xff] }
 0xa89   :  { %8249 = vmatprep.subr.bf16.mxu0 %v17783_v58  ;;  %v17816_v58 = vld [vmem:[%s24354_s7 + $0x6e4] ss:$16 sps:$4 sm:$0xff]  }
 0xa8c   :  { %8250 = vmatpush1.bf16.msra.mxu0 %v17781_v24  ;;  %v17832_v24 = vld [vmem:[%s24354_s7 + $0x5c8] ss:$16 sps:$4 sm:$0xff]  }
 0xa8d   :  { %8926 = vmatprep.subr.bf16.mxu0 %v17786_v6  ;;  %v17837_v6 = vld [vmem:[%s24354_s7 + $0x5ec] ss:$16 sps:$4 sm:$0xff]  }
 0xb25   :  { %v7793_v53 = vpop.f32.mrb[40].mxu0 }
 0xb26   :  { %v7795_v47 = vpop.f32.mrb[41].mxu0 }
 0xb29   :  { %v7799_v46 = vpop.f32.mrb[42].mxu0 }
 0xb2a   :  { %v7840_v40 = vpack.c.bf16 %v7799_v46, %v7793_v53  ;;  %v7801_v14 = vpop.f32.mrb[43].mxu0  ;;  %v17814_v53 = vld [vmem:[%s24354_s7 + $0x6e0] ss:$16 sps:$4 sm:$0xff]   ;;  %v17819_v46 = vld [vmem:[%s24354_s7 + $0x704] ss:$16 sps:$4 sm:$0xff]  }
 0xb2b   :  { %v7841_v60 = vpack.c.bf16 %v7801_v14, %v7795_v47  ;;  %v14677_v47 = vld [vmem:[%s24353_s6 + $0xd0] sm:$0xff]  ;;  %v17840_v14 = vld [vmem:[%s24354_s7 + $0x60c] ss:$16 sps:$4 sm:$0xff]  }
 0xb2d   :  { %v7805_v39 = vpop.f32.mrb[44].mxu0  ;;  %14667 = vmatprep.mubr.msk.bf16.mxu0 %vm7077_vm4, %v7841_v60  ;;  %14671 = vmatprep.mubr.msk.bf16.mxu1 %vm7077_vm4, %v7841_v60  ;;  %v17817_v60 = vld [vmem:[%s24354_s7 + $0x700] ss:$16 sps:$4 sm:$0xff]  }
 0xb2e   :  { %v7807_v57 = vpop.f32.mrb[45].mxu0  ;;  %8254 = vmatmul.mubr.bf16.vlgmr.msra.gmra.mrb[24].mxu0 %v7840_v40  ;;  %8327 = vmatmul.mubr.bf16.vlgmr.msra.gmra.mrb[24].mxu1 %v7840_v40  ;;  %v17835_v40 = vld [vmem:[%s24354_s7 + $0x5e8] ss:$16 sps:$4 sm:$0xff]  }
 0xb2f   :  { %16265 = vmatpush1.bf16.msra.mxu1 %v22185_v12  ;;  %8927 = vmatpush1.bf16.msra.mxu0 %v17784_v51  ;;  %v14678_v51 = vld [vmem:[%s24353_s6 + $0xd8] sm:$0xff] }
 0xb30   :  { %16267 = vmatprep.subr.bf16.mxu1 %v22207_v31  ;;  %8928 = vmatprep.subr.bf16.mxu0 %v17789_v34  ;;  %v17822_v34 = vld [vmem:[%s24354_s7 + $0x724] ss:$16 sps:$4 sm:$0xff]  }
 0xb31   :  { %v7811_v37 = vpop.f32.mrb[46].mxu0 }
 0xb32   :  { %v7842_v55 = vpack.c.bf16 %v7811_v37, %v7805_v39  ;;  %v7813_v48 = vpop.f32.mrb[47].mxu0  ;;  %v17838_v39 = vld [vmem:[%s24354_s7 + $0x608] ss:$16 sps:$4 sm:$0xff]   ;;  %v17825_v37 = vld [vmem:[%s24354_s7 + $0x744] ss:$16 sps:$4 sm:$0xff]  }
 0xb33   :  { %v7843_v21 = vpack.c.bf16 %v7813_v48, %v7807_v57  ;;  %16269 = vmatpush1.bf16.msra.mxu1 %v22205_v50  ;;  %8929 = vmatpush1.bf16.msra.mxu0 %v17787_v28  ;;  %v17843_v57 = vld [vmem:[%s24354_s7 + $0x62c] ss:$16 sps:$4 sm:$0xff]   ;;  %v17820_v28 = vld [vmem:[%s24354_s7 + $0x720] ss:$16 sps:$4 sm:$0xff]  }
 0xb34   :  { %16271 = vmatprep.subr.bf16.mxu1 %v22227_v17  ;;  %8930 = vmatprep.subr.bf16.mxu0 %v17792_v43  ;;  %v14679_v43 = vld [vmem:[%s24353_s6 + $0xe0] sm:$0xff]  ;;  %v17846_v48 = vld [vmem:[%s24354_s7 + $0x64c] ss:$16 sps:$4 sm:$0xff]  }
 0xb35   :  { %v7817_v2 = vpop.f32.mrb[96].mxu0  ;;  %14668 = vmatprep.mubr.msk.bf16.mxu0 %vm7077_vm4, %v7843_v21  ;;  %14672 = vmatprep.mubr.msk.bf16.mxu1 %vm7077_vm4, %v7843_v21  ;;  %v17823_v21 = vld [vmem:[%s24354_s7 + $0x740] ss:$16 sps:$4 sm:$0xff]  }
 0xb36   :  { %v7819_v18 = vpop.f32.mrb[97].mxu0  ;;  %8264 = vmatmul.mubr.bf16.gmra.mrb[28].mxu0 %v7842_v55  ;;  %8337 = vmatmul.mubr.bf16.gmra.mrb[28].mxu1 %v7842_v55  ;;  %v17841_v55 = vld [vmem:[%s24354_s7 + $0x628] ss:$16 sps:$4 sm:$0xff]  }
 0xb37   :  { %16273 = vmatpush1.bf16.msra.mxu1 %v22225_v42  ;;  %8931 = vmatpush1.bf16.msra.mxu0 %v17790_v32  ;;  %v14680_v32 = vld [vmem:[%s24353_s6 + $0xe8] sm:$0xff] }
 0xb38   :  { %16275 = vmatprep.subr.bf16.mxu1 %v22247_v0  ;;  %8932 = vmatprep.subr.bf16.mxu0 %v17795_v35  ;;  %v17828_v35 = vld [vmem:[%s24354_s7 + $0x764] ss:$16 sps:$4 sm:$0xff]  }
 0xb39   :  { %v7823_v1 = vpop.f32.mrb[98].mxu0 }
 0xb3a   :  { %v7844_v29 = vpack.c.bf16 %v7823_v1, %v7817_v2  ;;  %v7825_v8 = vpop.f32.mrb[99].mxu0  ;;  %v17844_v2 = vld [vmem:[%s24354_s7 + $0x648] ss:$16 sps:$4 sm:$0xff]  }
 0xb3b   :  { %v7845_v20 = vpack.c.bf16 %v7825_v8, %v7819_v18  ;;  %16277 = vmatpush1.bf16.msra.mxu1 %v22245_v4  ;;  %8933 = vmatpush1.bf16.msra.mxu0 %v17793_v11  ;;  %v17849_v18 = vld [vmem:[%s24354_s7 + $0x66c] ss:$16 sps:$4 sm:$0xff]   ;;  %v17826_v11 = vld [vmem:[%s24354_s7 + $0x760] ss:$16 sps:$4 sm:$0xff]   ;;  %v17847_v1 = vld [vmem:[%s24354_s7 + $0x668] ss:$16 sps:$4 sm:$0xff]  }
 0xb3c   :  { %16279 = vmatprep.subr.bf16.mxu1 %v22267_v49  ;;  %8934 = vmatprep.subr.bf16.mxu0 %v17798_v63  ;;  %v14681_v63 = vld [vmem:[%s24353_s6 + $0xf0] sm:$0xff]  ;;  %v14682_v8 = vld [vmem:[%s24353_s6 + $0xf8] sm:$0xff] }
 0xb3d   :  { %v7829_v15 = vpop.f32.mrb[100].mxu0  ;;  %14669 = vmatprep.mubr.msk.bf16.mxu0 %vm7077_vm4, %v7845_v20  ;;  %14673 = vmatprep.mubr.msk.bf16.mxu1 %vm7077_vm4, %v7845_v20  ;;  %v17850_v20 = vld [vmem:[%s24354_s7 + $0x688] ss:$16 sps:$4 sm:$0xff]  }
 0xb3e   :  { %v7831_v54 = vpop.f32.mrb[101].mxu0  ;;  %8274 = vmatmul.mubr.bf16.gmra.mrb[32].mxu0 %v7844_v29  ;;  %8347 = vmatmul.mubr.bf16.gmra.mrb[32].mxu1 %v7844_v29  ;;  %v17852_v29 = vld [vmem:[%s24354_s7 + $0x68c] ss:$16 sps:$4 sm:$0xff]  }
 0xb3f   :  { %16281 = vmatpush1.bf16.msra.mxu1 %v22265_v62  ;;  %8935 = vmatpush1.bf16.msra.mxu0 %v17796_v16  ;;  %v17855_v16 = vld [vmem:[%s24354_s7 + $0x6ac] ss:$16 sps:$4 sm:$0xff]  }
 0xb40   :  { %16283 = vmatprep.subr.bf16.mxu1 %v22287_v13  ;;  %8936 = vmatprep.subr.bf16.mxu0 %v17801_v26  ;;  %v17853_v26 = vld [vmem:[%s24354_s7 + $0x6a8] ss:$16 sps:$4 sm:$0xff]  }
 0xb41   :  { %v7835_v19 = vpop.f32.mrb[102].mxu0 }
 0xb42   :  { %v7846_v22 = vpack.c.bf16 %v7835_v19, %v7829_v15  ;;  %v7837_v44 = vpop.f32.mrb[103].mxu0  ;;  %v17856_v15 = vld [vmem:[%s24354_s7 + $0x6c8] ss:$16 sps:$4 sm:$0xff]   ;;  %v17867_v19 = vld [vmem:[%s24354_s7 + $0x72c] ss:$16 sps:$4 sm:$0xff]  }
 0xb43   :  { %v7847_v59 = vpack.c.bf16 %v7837_v44, %v7831_v54  ;;  %16285 = vmatpush1.bf16.msra.mxu1 %v22285_v33  ;;  %8937 = vmatpush1.bf16.msra.mxu0 %v17799_v36  ;;  %v17861_v54 = vld [vmem:[%s24354_s7 + $0x6ec] ss:$16 sps:$4 sm:$0xff]   ;;  %v17859_v36 = vld [vmem:[%s24354_s7 + $0x6e8] ss:$16 sps:$4 sm:$0xff]  }
 0xb44   :  { %8938 = vmatprep.subr.bf16.mxu0 %v17804_v25  ;;  %8999 = vmatprep.subr.bf16.mxu1 %v17831_v61  ;;  %v17864_v25 = vld [vmem:[%s24354_s7 + $0x70c] ss:$16 sps:$4 sm:$0xff]   ;;  %v17862_v61 = vld [vmem:[%s24354_s7 + $0x708] ss:$16 sps:$4 sm:$0xff]  }
 0xb45   :  { %14670 = vmatprep.mubr.msk.bf16.mxu0 %vm7077_vm4, %v7847_v59  ;;  %14674 = vmatprep.mubr.msk.bf16.mxu1 %vm7077_vm4, %v7847_v59  ;;  %v17870_v44 = vld [vmem:[%s24354_s7 + $0x74c] ss:$16 sps:$4 sm:$0xff]   ;;  %v17868_v59 = vld [vmem:[%s24354_s7 + $0x748] ss:$16 sps:$4 sm:$0xff]  }
 0xb46   :  { %8284 = vmatmul.mubr.bf16.gmra.mrb[36].mxu0 %v7846_v22  ;;  %8357 = vmatmul.mubr.bf16.gmra.mrb[36].mxu1 %v7846_v22  ;;  %v17865_v22 = vld [vmem:[%s24354_s7 + $0x728] ss:$16 sps:$4 sm:$0xff]  }
 0xb47   :  { %8939 = vmatpush1.bf16.msra.mxu0 %v17802_v52  ;;  %8496 = vmatprep.mubr.f32.mxu1 %v24795_v23  ;;  %v17873_v52 = vld [vmem:[%s24354_s7 + $0x76c] ss:$16 sps:$4 sm:$0xff]  }
 0xb48   :  { %8940 = vmatprep.subr.bf16.mxu0 %v17807_v7  ;;  %v17871_v7 = vld [vmem:[%s24354_s7 + $0x768] ss:$16 sps:$4 sm:$0xff]  }
 0xb4b   :  { %8941 = vmatpush1.bf16.msra.mxu0 %v17805_v5  ;;  %v17879_v5 = vld [vmem:[%s24354_s7 + $0x78c] ss:$16 sps:$4 sm:$0xff]  }
 0xb4c   :  { %8942 = vmatprep.subr.bf16.mxu0 %v17810_v56 }
 0xb4e   :  { %14683 = vmatmul.mubr.msk.f32.vlgmr.msra.gmra.mrb[40].mxu1 %vm158_vm0, %v14675_v27 }
 0xb4f   :  { %8943 = vmatpush1.bf16.msra.mxu0 %v17808_v3  ;;  %8502 = vmatprep.mubr.f32.mxu1 %v24795_v23 }
 0xb50   :  { %8944 = vmatprep.subr.bf16.mxu0 %v17813_v10  ;;  %9000 = vmatpush1.bf16.msra.mxu1 %v17829_v9 }
 0xb51   :  { %9001 = vmatprep.subr.bf16.mxu1 %v17834_v45 }
 0xb52   :  { %14684 = vmatmul.mubr.msk.f32.gmra.mrb[42].mxu1 %vm158_vm0, %v14676_v41  ;;  %v17885_v41 = vld [vmem:[%s24354_s7 + $0x7ac] ss:$16 sps:$4 sm:$0xff]  }
 0xb53   :  { %8945 = vmatpush1.bf16.msra.mxu0 %v17811_v38  ;;  %8508 = vmatprep.mubr.f32.mxu1 %v24795_v23  ;;  %v17877_v38 = vld [vmem:[%s24354_s7 + $0x788] ss:$16 sps:$4 sm:$0xff]  }
 0xb54   :  { %8946 = vmatprep.subr.bf16.mxu0 %v17816_v58  ;;  %9002 = vmatpush1.bf16.msra.mxu1 %v17832_v24 }
 0xb55   :  { %9003 = vmatprep.subr.bf16.mxu1 %v17837_v6  ;;  %v17883_v6 = vld [vmem:[%s24354_s7 + $0x7a8] ss:$16 sps:$4 sm:$0xff]  }
 0xb56   :  { %14685 = vmatmul.mubr.msk.f32.gmra.mrb[44].mxu1 %vm158_vm0, %v14677_v47 }
 0xb57   :  { %8947 = vmatpush1.bf16.msra.mxu0 %v17814_v53  ;;  %8514 = vmatprep.mubr.f32.mxu1 %v24795_v23  ;;  %v17891_v53 = vld [vmem:[%s24354_s7 + $0x7cc] ss:$16 sps:$4 sm:$0xff]  }
 0xb58   :  { %8948 = vmatprep.subr.bf16.mxu0 %v17819_v46  ;;  %9004 = vmatpush1.bf16.msra.mxu1 %v17835_v40 }
 0xb59   :  { %9005 = vmatprep.subr.bf16.mxu1 %v17840_v14 }
 0xb5a   :  { %14686 = vmatmul.mubr.msk.f32.gmra.mrb[46].mxu1 %vm158_vm0, %v14678_v51 }
 0xb5b   :  { %8949 = vmatpush1.bf16.msra.mxu0 %v17817_v60  ;;  %8520 = vmatprep.mubr.f32.mxu1 %v24795_v23 }
 0xb5c   :  { %8950 = vmatprep.subr.bf16.mxu0 %v17822_v34  ;;  %9006 = vmatpush1.bf16.msra.mxu1 %v17838_v39 }
 0xb5d   :  { %9007 = vmatprep.subr.bf16.mxu1 %v17843_v57 }
 0xb5e   :  { %14687 = vmatmul.mubr.msk.f32.gmra.mrb[96].mxu1 %vm158_vm0, %v14679_v43 }
 0xb5f   :  { %8951 = vmatpush1.bf16.msra.mxu0 %v17820_v28  ;;  %8526 = vmatprep.mubr.f32.mxu1 %v24795_v23 }
 0xb60   :  { %8952 = vmatprep.subr.bf16.mxu0 %v17825_v37  ;;  %9008 = vmatpush1.bf16.msra.mxu1 %v17841_v55  ;;  %v17915_v55 = vld [vmem:[%s24354_s7 + $0x84c] ss:$16 sps:$4 sm:$0xff]  }
 0xb61   :  { %9009 = vmatprep.subr.bf16.mxu1 %v17846_v48 }
 0xb62   :  { %14688 = vmatmul.mubr.msk.f32.gmra.mrb[98].mxu1 %vm158_vm0, %v14680_v32 }
 0xb63   :  { %8953 = vmatpush1.bf16.msra.mxu0 %v17823_v21  ;;  %8532 = vmatprep.mubr.f32.mxu1 %v24795_v23 }
 0xb64   :  { %8954 = vmatprep.subr.bf16.mxu0 %v17828_v35  ;;  %9010 = vmatpush1.bf16.msra.mxu1 %v17844_v2  ;;  %v17921_v35 = vld [vmem:[%s24354_s7 + $0x86c] ss:$16 sps:$4 sm:$0xff]  }
 0xb65   :  { %9011 = vmatprep.subr.bf16.mxu1 %v17849_v18  ;;  %v17927_v2 = vld [vmem:[%s24354_s7 + $0x88c] ss:$16 sps:$4 sm:$0xff]   ;;  %v14819_v18 = vld [vmem:[%s24353_s6 + $0x100] sm:$0xff] }
 0xb66   :  { %14689 = vmatmul.mubr.msk.f32.gmra.mrb[100].mxu1 %vm158_vm0, %v14681_v63  ;;  %v17882_v63 = vld [vmem:[%s24354_s7 + $0x7a4] ss:$16 sps:$4 sm:$0xff]  }
 0xb67   :  { %8955 = vmatpush1.bf16.msra.mxu0 %v17826_v11  ;;  %8538 = vmatprep.mubr.f32.mxu1 %v24795_v23  ;;  %v17874_v11 = vld [vmem:[%s24354_s7 + $0x780] ss:$16 sps:$4 sm:$0xff]  }
 0xb68   :  { %16287 = vmatprep.subr.bf16.mxu0 %v22187_v30  ;;  %9012 = vmatpush1.bf16.msra.mxu1 %v17847_v1  ;;  %v17858_v30 = vld [vmem:[%s24354_s7 + $0x6cc] ss:$16 sps:$4 sm:$0xff]   ;;  %v17925_v1 = vld [vmem:[%s24354_s7 + $0x888] ss:$16 sps:$4 sm:$0xff]  }
 0xb69   :  { %9013 = vmatprep.subr.bf16.mxu1 %v17852_v29  ;;  %v17933_v29 = vld [vmem:[%s24354_s7 + $0x8ac] ss:$16 sps:$4 sm:$0xff]  }
 0xb6a   :  { %14690 = vmatmul.mubr.msk.f32.gmra.mrb[102].mxu1 %vm158_vm0, %v14682_v8  ;;  %v14820_v8 = vld [vmem:[%s24353_s6 + $0x108] sm:$0xff] }
 0xb6c   :  { %9014 = vmatpush1.bf16.msra.mxu1 %v17850_v20  ;;  %v17880_v20 = vld [vmem:[%s24354_s7 + $0x7a0] ss:$16 sps:$4 sm:$0xff]  }
 0xb6d   :  { %9015 = vmatprep.subr.bf16.mxu1 %v17855_v16  ;;  %v17888_v16 = vld [vmem:[%s24354_s7 + $0x7c4] ss:$16 sps:$4 sm:$0xff]  }
 0xb70   :  { %9016 = vmatpush1.bf16.msra.mxu1 %v17853_v26  ;;  %v17931_v26 = vld [vmem:[%s24354_s7 + $0x8a8] ss:$16 sps:$4 sm:$0xff]  }
 0xb71   :  { %9017 = vmatprep.subr.bf16.mxu1 %v17858_v30  ;;  %v17939_v30 = vld [vmem:[%s24354_s7 + $0x8cc] ss:$16 sps:$4 sm:$0xff]  }
 0xb74   :  { %9018 = vmatpush1.bf16.msra.mxu1 %v17856_v15  ;;  %v14821_v15 = vld [vmem:[%s24353_s6 + $0x110] sm:$0xff] }
 0xb75   :  { %9019 = vmatprep.subr.bf16.mxu1 %v17861_v54  ;;  %v17886_v54 = vld [vmem:[%s24354_s7 + $0x7c0] ss:$16 sps:$4 sm:$0xff]  }
 0xb78   :  { %9020 = vmatpush1.bf16.msra.mxu1 %v17859_v36  ;;  %v17894_v36 = vld [vmem:[%s24354_s7 + $0x7e4] ss:$16 sps:$4 sm:$0xff]  }
 0xb79   :  { %9021 = vmatprep.subr.bf16.mxu1 %v17864_v25  ;;  %v17937_v25 = vld [vmem:[%s24354_s7 + $0x8c8] ss:$16 sps:$4 sm:$0xff]  }
 0xb7c   :  { %9022 = vmatpush1.bf16.msra.mxu1 %v17862_v61  ;;  %v17945_v61 = vld [vmem:[%s24354_s7 + $0x8ec] ss:$16 sps:$4 sm:$0xff]  }
 0xb7d   :  { %9023 = vmatprep.subr.bf16.mxu1 %v17867_v19  ;;  %v14822_v19 = vld [vmem:[%s24353_s6 + $0x118] sm:$0xff] }
 0xb80   :  { %9024 = vmatpush1.bf16.msra.mxu1 %v17865_v22  ;;  %v17892_v22 = vld [vmem:[%s24354_s7 + $0x7e0] ss:$16 sps:$4 sm:$0xff]  }
 0xb81   :  { %9025 = vmatprep.subr.bf16.mxu1 %v17870_v44  ;;  %v17900_v44 = vld [vmem:[%s24354_s7 + $0x804] ss:$16 sps:$4 sm:$0xff]  }
 0xb84   :  { %9026 = vmatpush1.bf16.msra.mxu1 %v17868_v59  ;;  %v17943_v59 = vld [vmem:[%s24354_s7 + $0x8e8] ss:$16 sps:$4 sm:$0xff]  }
 0xb85   :  { %9027 = vmatprep.subr.bf16.mxu1 %v17873_v52  ;;  %v17951_v52 = vld [vmem:[%s24354_s7 + $0x90c] ss:$16 sps:$4 sm:$0xff]  }
 0xb88   :  { %9028 = vmatpush1.bf16.msra.mxu1 %v17871_v7  ;;  %v14823_v7 = vld [vmem:[%s24353_s6 + $0x120] sm:$0xff] }
 0xb89   :  { %9704 = vmatprep.subr.bf16.mxu1 %v17879_v5  ;;  %v17898_v5 = vld [vmem:[%s24354_s7 + $0x800] ss:$16 sps:$4 sm:$0xff]  }
 0xc21   :  { %v8498_v56 = vpop.f32.mrb[40].mxu1 }
 0xc22   :  { %v8500_v3 = vpop.f32.mrb[41].mxu1 }
 0xc25   :  { %v8504_v27 = vpop.f32.mrb[42].mxu1 }
 0xc26   :  { %v8545_v10 = vpack.c.bf16 %v8504_v27, %v8498_v56  ;;  %v8506_v9 = vpop.f32.mrb[43].mxu1  ;;  %v17906_v56 = vld [vmem:[%s24354_s7 + $0x824] ss:$16 sps:$4 sm:$0xff]   ;;  %v14824_v27 = vld [vmem:[%s24353_s6 + $0x128] sm:$0xff] }
 0xc27   :  { %v8546_v45 = vpack.c.bf16 %v8506_v9, %v8500_v3  ;;  %v17949_v3 = vld [vmem:[%s24354_s7 + $0x908] ss:$16 sps:$4 sm:$0xff]   ;;  %v17912_v9 = vld [vmem:[%s24354_s7 + $0x844] ss:$16 sps:$4 sm:$0xff]  }
 0xc29   :  { %v8510_v58 = vpop.f32.mrb[44].mxu1  ;;  %14811 = vmatprep.mubr.msk.bf16.mxu0 %vm7077_vm4, %v8546_v45  ;;  %14815 = vmatprep.mubr.msk.bf16.mxu1 %vm7077_vm4, %v8546_v45  ;;  %v14825_v45 = vld [vmem:[%s24353_s6 + $0x130] sm:$0xff] }
 0xc2a   :  { %v8512_v24 = vpop.f32.mrb[45].mxu1  ;;  %8959 = vmatmul.mubr.bf16.vlgmr.msra.gmra.mrb[24].mxu0 %v8545_v10  ;;  %9032 = vmatmul.mubr.bf16.vlgmr.msra.gmra.mrb[24].mxu1 %v8545_v10  ;;  %v17904_v10 = vld [vmem:[%s24354_s7 + $0x820] ss:$16 sps:$4 sm:$0xff]  }
 0xc2b   :  { %16289 = vmatpush1.bf16.msra.mxu0 %v22185_v12  ;;  %9705 = vmatpush1.bf16.msra.mxu1 %v17877_v38  ;;  %v17889_v12 = vld [vmem:[%s24354_s7 + $0x7c8] ss:$16 sps:$4 sm:$0xff]   ;;  %v17910_v38 = vld [vmem:[%s24354_s7 + $0x840] ss:$16 sps:$4 sm:$0xff]  }
 0xc2c   :  { %16291 = vmatprep.subr.bf16.mxu0 %v22207_v31  ;;  %9706 = vmatprep.subr.bf16.mxu1 %v17885_v41  ;;  %v17897_v31 = vld [vmem:[%s24354_s7 + $0x7ec] ss:$16 sps:$4 sm:$0xff]   ;;  %v17918_v41 = vld [vmem:[%s24354_s7 + $0x864] ss:$16 sps:$4 sm:$0xff]  }
 0xc2d   :  { %v8516_v47 = vpop.f32.mrb[46].mxu1 }
 0xc2e   :  { %v8547_v46 = vpack.c.bf16 %v8516_v47, %v8510_v58  ;;  %v8518_v40 = vpop.f32.mrb[47].mxu1  ;;  %v14826_v58 = vld [vmem:[%s24353_s6 + $0x138] sm:$0xff]  ;;  %v17930_v47 = vld [vmem:[%s24354_s7 + $0x8a4] ss:$16 sps:$4 sm:$0xff]  }
 0xc2f   :  { %v8548_v14 = vpack.c.bf16 %v8518_v40, %v8512_v24  ;;  %16293 = vmatpush1.bf16.msra.mxu0 %v22205_v50  ;;  %9707 = vmatpush1.bf16.msra.mxu1 %v17883_v6  ;;  %v17895_v50 = vld [vmem:[%s24354_s7 + $0x7e8] ss:$16 sps:$4 sm:$0xff]   ;;  %v17916_v24 = vld [vmem:[%s24354_s7 + $0x860] ss:$16 sps:$4 sm:$0xff]   ;;  %v17924_v6 = vld [vmem:[%s24354_s7 + $0x884] ss:$16 sps:$4 sm:$0xff]  }
 0xc30   :  { %16295 = vmatprep.subr.bf16.mxu0 %v22227_v17  ;;  %9708 = vmatprep.subr.bf16.mxu1 %v17891_v53  ;;  %v17903_v17 = vld [vmem:[%s24354_s7 + $0x80c] ss:$16 sps:$4 sm:$0xff]   ;;  %v17922_v53 = vld [vmem:[%s24354_s7 + $0x880] ss:$16 sps:$4 sm:$0xff]   ;;  %v17936_v40 = vld [vmem:[%s24354_s7 + $0x8c4] ss:$16 sps:$4 sm:$0xff]  }
 0xc31   :  { %v8522_v60 = vpop.f32.mrb[96].mxu1  ;;  %14812 = vmatprep.mubr.msk.bf16.mxu0 %vm7077_vm4, %v8548_v14  ;;  %14816 = vmatprep.mubr.msk.bf16.mxu1 %vm7077_vm4, %v8548_v14  ;;  %v17934_v14 = vld [vmem:[%s24354_s7 + $0x8c0] ss:$16 sps:$4 sm:$0xff]  }
 0xc32   :  { %v8524_v51 = vpop.f32.mrb[97].mxu1  ;;  %8969 = vmatmul.mubr.bf16.gmra.mrb[28].mxu0 %v8547_v46  ;;  %9042 = vmatmul.mubr.bf16.gmra.mrb[28].mxu1 %v8547_v46  ;;  %v17928_v46 = vld [vmem:[%s24354_s7 + $0x8a0] ss:$16 sps:$4 sm:$0xff]  }
 0xc33   :  { %16297 = vmatpush1.bf16.msra.mxu0 %v22225_v42  ;;  %9709 = vmatpush1.bf16.msra.mxu1 %v17889_v12  ;;  %v17901_v42 = vld [vmem:[%s24354_s7 + $0x808] ss:$16 sps:$4 sm:$0xff]   ;;  %v17942_v12 = vld [vmem:[%s24354_s7 + $0x8e4] ss:$16 sps:$4 sm:$0xff]  }
 0xc34   :  { %16299 = vmatprep.subr.bf16.mxu0 %v22247_v0  ;;  %9710 = vmatprep.subr.bf16.mxu1 %v17897_v31  ;;  %v17909_v0 = vld [vmem:[%s24354_s7 + $0x82c] ss:$16 sps:$4 sm:$0xff]   ;;  %v17940_v31 = vld [vmem:[%s24354_s7 + $0x8e0] ss:$16 sps:$4 sm:$0xff]  }
 0xc35   :  { %v8528_v34 = vpop.f32.mrb[98].mxu1 }
 0xc36   :  { %v8549_v39 = vpack.c.bf16 %v8528_v34, %v8522_v60  ;;  %v8530_v57 = vpop.f32.mrb[99].mxu1  ;;  %v17948_v60 = vld [vmem:[%s24354_s7 + $0x904] ss:$16 sps:$4 sm:$0xff]   ;;  %v17952_v34 = vld [vmem:[%s24354_s7 + $0x920] ss:$16 sps:$4 sm:$0xff]  }
 0xc37   :  { %v8550_v28 = vpack.c.bf16 %v8530_v57, %v8524_v51  ;;  %16301 = vmatpush1.bf16.msra.mxu0 %v22245_v4  ;;  %9711 = vmatpush1.bf16.msra.mxu1 %v17895_v50  ;;  %v17907_v4 = vld [vmem:[%s24354_s7 + $0x828] ss:$16 sps:$4 sm:$0xff]   ;;  %v17946_v51 = vld [vmem:[%s24354_s7 + $0x900] ss:$16 sps:$4 sm:$0xff]   ;;  %v17954_v50 = vld [vmem:[%s24354_s7 + $0x924] ss:$16 sps:$4 sm:$0xff]  }
 0xc38   :  { %16303 = vmatprep.subr.bf16.mxu0 %v22267_v49  ;;  %9712 = vmatprep.subr.bf16.mxu1 %v17903_v17  ;;  %v17876_v49 = vld [vmem:[%s24354_s7 + $0x784] ss:$16 sps:$4 sm:$0xff]   ;;  %v17957_v17 = vld [vmem:[%s24354_s7 + $0x92c] ss:$16 sps:$4 sm:$0xff]  }
 0xc39   :  { %v8534_v43 = vpop.f32.mrb[100].mxu1  ;;  %14813 = vmatprep.mubr.msk.bf16.mxu0 %vm7077_vm4, %v8550_v28  ;;  %14817 = vmatprep.mubr.msk.bf16.mxu1 %vm7077_vm4, %v8550_v28  ;;  %v17960_v57 = vld [vmem:[%s24354_s7 + $0x944] ss:$16 sps:$4 sm:$0xff]   ;;  %v17963_v28 = vld [vmem:[%s24354_s7 + $0x94c] ss:$16 sps:$4 sm:$0xff]  }
 0xc3a   :  { %v8536_v37 = vpop.f32.mrb[101].mxu1  ;;  %8979 = vmatmul.mubr.bf16.gmra.mrb[32].mxu0 %v8549_v39  ;;  %9052 = vmatmul.mubr.bf16.gmra.mrb[32].mxu1 %v8549_v39  ;;  %v17955_v39 = vld [vmem:[%s24354_s7 + $0x928] ss:$16 sps:$4 sm:$0xff]  }
 0xc3b   :  { %16305 = vmatpush1.bf16.msra.mxu0 %v22265_v62  ;;  %9713 = vmatpush1.bf16.msra.mxu1 %v17901_v42  ;;  %v17958_v42 = vld [vmem:[%s24354_s7 + $0x940] ss:$16 sps:$4 sm:$0xff]  }
 0xc3c   :  { %16307 = vmatprep.subr.bf16.mxu0 %v22287_v13  ;;  %9714 = vmatprep.subr.bf16.mxu1 %v17909_v0  ;;  %v17913_v13 = vld [vmem:[%s24354_s7 + $0x848] ss:$16 sps:$4 sm:$0xff]  }
 0xc3d   :  { %v8540_v48 = vpop.f32.mrb[102].mxu1  ;;  %v17961_v0 = vld [vmem:[%s24354_s7 + $0x948] ss:$16 sps:$4 sm:$0xff]  }
 0xc3e   :  { %v8551_v21 = vpack.c.bf16 %v8540_v48, %v8534_v43  ;;  %v8542_v32 = vpop.f32.mrb[103].mxu1 }
 0xc3f   :  { %v8552_v62 = vpack.c.bf16 %v8542_v32, %v8536_v37  ;;  %16309 = vmatpush1.bf16.msra.mxu0 %v22285_v33  ;;  %9715 = vmatpush1.bf16.msra.mxu1 %v17907_v4  ;;  %v17919_v33 = vld [vmem:[%s24354_s7 + $0x868] ss:$16 sps:$4 sm:$0xff]  }
 0xc40   :  { %9631 = vmatprep.subr.bf16.mxu0 %v17876_v49  ;;  %9716 = vmatprep.subr.bf16.mxu1 %v17915_v55 }
 0xc41   :  { %14814 = vmatprep.mubr.msk.bf16.mxu0 %vm7077_vm4, %v8552_v62  ;;  %14818 = vmatprep.mubr.msk.bf16.mxu1 %vm7077_vm4, %v8552_v62 }
 0xc42   :  { %8989 = vmatmul.mubr.bf16.gmra.mrb[36].mxu0 %v8551_v21  ;;  %9062 = vmatmul.mubr.bf16.gmra.mrb[36].mxu1 %v8551_v21 }
 0xc43   :  { %9201 = vmatprep.mubr.f32.mxu0 %v24795_v23  ;;  %9717 = vmatpush1.bf16.msra.mxu1 %v17913_v13 }
 0xc44   :  { %9718 = vmatprep.subr.bf16.mxu1 %v17921_v35 }
 0xc47   :  { %9719 = vmatpush1.bf16.msra.mxu1 %v17919_v33 }
 0xc48   :  { %9720 = vmatprep.subr.bf16.mxu1 %v17927_v2 }
 0xc4a   :  { %14827 = vmatmul.mubr.msk.f32.vlgmr.msra.gmra.mrb[104].mxu0 %vm158_vm0, %v14819_v18 }
 0xc4b   :  { %9207 = vmatprep.mubr.f32.mxu0 %v24795_v23  ;;  %9632 = vmatpush1.bf16.msra.mxu0 %v17874_v11 }
 0xc4c   :  { %9633 = vmatprep.subr.bf16.mxu0 %v17882_v63  ;;  %9721 = vmatpush1.bf16.msra.mxu1 %v17925_v1 }
 0xc4d   :  { %9722 = vmatprep.subr.bf16.mxu1 %v17933_v29 }
 0xc4e   :  { %14828 = vmatmul.mubr.msk.f32.gmra.mrb[106].mxu0 %vm158_vm0, %v14820_v8 }
 0xc4f   :  { %9213 = vmatprep.mubr.f32.mxu0 %v24795_v23  ;;  %9634 = vmatpush1.bf16.msra.mxu0 %v17880_v20 }
 0xc50   :  { %9635 = vmatprep.subr.bf16.mxu0 %v17888_v16  ;;  %9723 = vmatpush1.bf16.msra.mxu1 %v17931_v26 }
 0xc51   :  { %9724 = vmatprep.subr.bf16.mxu1 %v17939_v30 }
 0xc52   :  { %14829 = vmatmul.mubr.msk.f32.gmra.mrb[108].mxu0 %vm158_vm0, %v14821_v15 }
 0xc53   :  { %9219 = vmatprep.mubr.f32.mxu0 %v24795_v23  ;;  %9636 = vmatpush1.bf16.msra.mxu0 %v17886_v54  ;;  %v9809_v54 = vld [vmem:[%s24355_s8] sm:$0xf] }
 0xc54   :  { %9637 = vmatprep.subr.bf16.mxu0 %v17894_v36  ;;  %9725 = vmatpush1.bf16.msra.mxu1 %v17937_v25  ;;  %v24796_v36 = vld [vmem:[#allocation8_spill] sm:$0xff] }
 0xc55   :  { %9726 = vmatprep.subr.bf16.mxu1 %v17945_v61  ;;  %v23505_v25 = vrot.slane %v9809_v54, %v24796_v36  ;;  %v24797_v61 = vld [vmem:[#allocation9_spill] sm:$0xff] }
 0xc56   :  { %14830 = vmatmul.mubr.msk.f32.gmra.mrb[110].mxu0 %vm158_vm0, %v14822_v19  ;;  %v23508_v19 = vrot.slane %v9809_v54, %v24797_v61  ;;  %v10614_v61 = vld [vmem:[#allocation2 + $0x450] sm:$0xff]  ;;  %v10617_v36 = vld [vmem:[#allocation2 + $0x468] sm:$0xff] }
 0xc57   :  { %9225 = vmatprep.mubr.f32.mxu0 %v24795_v23  ;;  %9638 = vmatpush1.bf16.msra.mxu0 %v17892_v22  ;;  %v24798_v22 = vld [vmem:[#allocation10_spill] sm:$0xff] }
 0xc58   :  { %9639 = vmatprep.subr.bf16.mxu0 %v17900_v44  ;;  %9727 = vmatpush1.bf16.msra.mxu1 %v17943_v59  ;;  %v23511_v44 = vrot.slane %v9809_v54, %v24798_v22  ;;  %v24799_v59 = vld [vmem:[#allocation11_spill] sm:$0xff] }
 0xc59   :  { %9728 = vmatprep.subr.bf16.mxu1 %v17951_v52  ;;  %v23514_v52 = vrot.slane %v9809_v54, %v24799_v59  ;;  %v10610_v59 = vld [vmem:[#allocation2 + $0x430] sm:$0xff] }
 0xc5a   :  { %14831 = vmatmul.mubr.msk.f32.gmra.mrb[112].mxu0 %vm158_vm0, %v14823_v7 }
 0xc5b   :  { %9231 = vmatprep.mubr.f32.mxu0 %v24795_v23  ;;  %9640 = vmatpush1.bf16.msra.mxu0 %v17898_v5 }
 0xc5c   :  { %9641 = vmatprep.subr.bf16.mxu0 %v17906_v56  ;;  %9729 = vmatpush1.bf16.msra.mxu1 %v17949_v3 }
 0xc5d   :  { %9730 = vmatprep.subr.bf16.mxu1 %v17957_v17 }
 0xc5e   :  { %14832 = vmatmul.mubr.msk.f32.gmra.mrb[114].mxu0 %vm158_vm0, %v14824_v27 }
 0xc5f   :  { %9237 = vmatprep.mubr.f32.mxu0 %v24795_v23  ;;  %9642 = vmatpush1.bf16.msra.mxu0 %v17904_v10 }
 0xc60   :  { %9643 = vmatprep.subr.bf16.mxu0 %v17912_v9  ;;  %9731 = vmatpush1.bf16.msra.mxu1 %v17955_v39 }
 0xc61   :  { %9732 = vmatprep.subr.bf16.mxu1 %v17963_v28 }
 0xc62   :  { %14833 = vmatmul.mubr.msk.f32.gmra.mrb[116].mxu0 %vm158_vm0, %v14825_v45 }
 0xc63   :  { %9243 = vmatprep.mubr.f32.mxu0 %v24795_v23  ;;  %9644 = vmatpush1.bf16.msra.mxu0 %v17910_v38 }
 0xc64   :  { %9645 = vmatprep.subr.bf16.mxu0 %v17918_v41  ;;  %9733 = vmatpush1.bf16.msra.mxu1 %v17961_v0 }
 0xc66   :  { %14834 = vmatmul.mubr.msk.f32.gmra.mrb[118].mxu0 %vm158_vm0, %v14826_v58 }
 0xc67   :  { %9646 = vmatpush1.bf16.msra.mxu0 %v17916_v24 }
 0xc68   :  { %9647 = vmatprep.subr.bf16.mxu0 %v17924_v6 }
 0xc6b   :  { %9648 = vmatpush1.bf16.msra.mxu0 %v17922_v53 }
 0xc6c   :  { %9649 = vmatprep.subr.bf16.mxu0 %v17930_v47 }
 0xc6f   :  { %9650 = vmatpush1.bf16.msra.mxu0 %v17928_v46 }
 0xc70   :  { %9651 = vmatprep.subr.bf16.mxu0 %v17936_v40 }
 0xc73   :  { %9652 = vmatpush1.bf16.msra.mxu0 %v17934_v14 }
 0xc74   :  { %9653 = vmatprep.subr.bf16.mxu0 %v17942_v12 }
 0xc77   :  { %9654 = vmatpush1.bf16.msra.mxu0 %v17940_v31 }
 0xc78   :  { %9655 = vmatprep.subr.bf16.mxu0 %v17948_v60 }
 0xc7b   :  { %9656 = vmatpush1.bf16.msra.mxu0 %v17946_v51 }
 0xc7c   :  { %9657 = vmatprep.subr.bf16.mxu0 %v17954_v50 }
 0xc7f   :  { %9658 = vmatpush1.bf16.msra.mxu0 %v17952_v34 }
 0xc80   :  { %9659 = vmatprep.subr.bf16.mxu0 %v17960_v57 }
 0xc83   :  { %9660 = vmatpush1.bf16.msra.mxu0 %v17958_v42 }
 0xd1d   :  { %v9203_v43 = vpop.f32.mrb[104].mxu0 }
 0xd1e   :  { %v9205_v37 = vpop.f32.mrb[105].mxu0 }
 0xd21   :  { %v9209_v4 = vpop.f32.mrb[106].mxu0 }
 0xd22   :  { %v9250_v49 = vpack.c.bf16 %v9209_v4, %v9203_v43  ;;  %v9211_v55 = vpop.f32.mrb[107].mxu0 }
 0xd23   :  { %v9251_v48 = vpack.c.bf16 %v9211_v55, %v9205_v37 }
 0xd25   :  { %v9215_v21 = vpop.f32.mrb[108].mxu0  ;;  %14955 = vmatprep.mubr.msk.bf16.mxu0 %vm7077_vm4, %v9251_v48  ;;  %14959 = vmatprep.mubr.msk.bf16.mxu1 %vm7077_vm4, %v9251_v48 }
 0xd26   :  { %v9217_v32 = vpop.f32.mrb[109].mxu0  ;;  %9664 = vmatmul.mubr.bf16.vlgmr.msra.gmra.mrb[24].mxu0 %v9250_v49  ;;  %9737 = vmatmul.mubr.bf16.vlgmr.msra.gmra.mrb[24].mxu1 %v9250_v49 }
 0xd29   :  { %v9221_v62 = vpop.f32.mrb[110].mxu0 }
 0xd2a   :  { %v9252_v13 = vpack.c.bf16 %v9221_v62, %v9215_v21  ;;  %v9223_v35 = vpop.f32.mrb[111].mxu0 }
 0xd2b   :  { %v9253_v33 = vpack.c.bf16 %v9223_v35, %v9217_v32 }
 0xd2d   :  { %v9227_v2 = vpop.f32.mrb[112].mxu0  ;;  %14956 = vmatprep.mubr.msk.bf16.mxu0 %vm7077_vm4, %v9253_v33  ;;  %14960 = vmatprep.mubr.msk.bf16.mxu1 %vm7077_vm4, %v9253_v33 }
 0xd2e   :  { %v9229_v18 = vpop.f32.mrb[113].mxu0  ;;  %9674 = vmatmul.mubr.bf16.gmra.mrb[28].mxu0 %v9252_v13  ;;  %9747 = vmatmul.mubr.bf16.gmra.mrb[28].mxu1 %v9252_v13 }
 0xd31   :  { %v9233_v11 = vpop.f32.mrb[114].mxu0 }
 0xd32   :  { %v9254_v63 = vpack.c.bf16 %v9233_v11, %v9227_v2  ;;  %v9235_v1 = vpop.f32.mrb[115].mxu0 }
 0xd33   :  { %v9255_v29 = vpack.c.bf16 %v9235_v1, %v9229_v18 }
 0xd35   :  { %v9239_v8 = vpop.f32.mrb[116].mxu0  ;;  %14957 = vmatprep.mubr.msk.bf16.mxu0 %vm7077_vm4, %v9255_v29  ;;  %14961 = vmatprep.mubr.msk.bf16.mxu1 %vm7077_vm4, %v9255_v29 }
 0xd36   :  { %v9241_v20 = vpop.f32.mrb[117].mxu0  ;;  %9684 = vmatmul.mubr.bf16.gmra.mrb[32].mxu0 %v9254_v63  ;;  %9757 = vmatmul.mubr.bf16.gmra.mrb[32].mxu1 %v9254_v63 }
 0xd39   :  { %v9245_v16 = vpop.f32.mrb[118].mxu0 }
 0xd3a   :  { %v9256_v26 = vpack.c.bf16 %v9245_v16, %v9239_v8  ;;  %v9247_v30 = vpop.f32.mrb[119].mxu0 }
 0xd3b   :  { %v9257_v15 = vpack.c.bf16 %v9247_v30, %v9241_v20 }
 0xd3d   :  { %14958 = vmatprep.mubr.msk.bf16.mxu0 %vm7077_vm4, %v9257_v15  ;;  %14962 = vmatprep.mubr.msk.bf16.mxu1 %vm7077_vm4, %v9257_v15 }
 0xd3e   :  { %9694 = vmatmul.mubr.bf16.gmra.mrb[36].mxu0 %v9256_v26  ;;  %9767 = vmatmul.mubr.bf16.gmra.mrb[36].mxu1 %v9256_v26 }
 0xd3f   :  { %9975 = vmatprep.mubr.f32.mxu1 %v24795_v23  ;;  %10170 = vmatprep.mubr.f32.mxu0 %v24795_v23 }
 0xdf9   :  { %v9665_v7 = vpop.f32.mrb[24].mxu0  ;;  %v9738_v5 = vpop.f32.mrb[24].mxu1 }
 0xdfa   :  { %v9831_v56 = vadd.f32 %v23505_v25, %v9665_v7  ;;  %v9833_v3 = vadd.f32 %v23508_v19, %v9738_v5  ;;  %v9667_v27 = vpop.f32.mrb[25].mxu0  ;;  %v9740_v10 = vpop.f32.mrb[25].mxu1 }
 0xdfb   :  { %v9832_v9 = vadd.f32 %v23511_v44, %v9667_v27  ;;  %v9834_v45 = vadd.f32 %v23514_v52, %v9740_v10  ;;  %v9669_v38 = vpop.f32.mrb[26].mxu0  ;;  %v9742_v41 = vpop.f32.mrb[26].mxu1 }
 0xdfc   :  { %v9835_v58 = vadd.f32 %v23505_v25, %v9669_v38  ;;  %v9837_v24 = vadd.f32 %v23508_v19, %v9742_v41  ;;  %v9671_v6 = vpop.f32.mrb[27].mxu0  ;;  %v9744_v53 = vpop.f32.mrb[27].mxu1  ;;  %v9863_v40 = vmax.f32 %v9831_v56, 0.0  ;;  %v9865_v14 = vmax.f32 %v9833_v3, 0.0 }
 0xdfd   :  { %v9836_v47 = vadd.f32 %v23511_v44, %v9671_v6  ;;  %v9838_v46 = vadd.f32 %v23514_v52, %v9744_v53  ;;  %v9864_v60 = vmax.f32 %v9832_v9, 0.0  ;;  %v9866_v51 = vmax.f32 %v9834_v45, 0.0 }
 0xdfe   :  { %v9867_v12 = vmax.f32 %v9835_v58, 0.0  ;;  %v9869_v31 = vmax.f32 %v9837_v24, 0.0 }
 0xdff   :  { %v9868_v50 = vmax.f32 %v9836_v47, 0.0  ;;  %v9870_v17 = vmax.f32 %v9838_v46, 0.0 }
 0xe00   :  { %v16312_v34 = vpack.c.bf16 %v9867_v12, %v9863_v40  ;;  %v23524_v39 = vpack.c.bf16 %v9869_v31, %v9865_v14 }
 0xe01   :  { %v16310_v57 = vpack.c.bf16 %v9868_v50, %v9864_v60  ;;  %v23526_v28 = vpack.c.bf16 %v9870_v17, %v9866_v51  ;;  %v9675_v42 = vpop.f32.mrb[28].mxu0  ;;  %v9748_v0 = vpop.f32.mrb[28].mxu1 }
 0xe02   :  { %v9839_v43 = vadd.f32 %v23505_v25, %v9675_v42  ;;  %v9841_v37 = vadd.f32 %v23508_v19, %v9748_v0  ;;  %v9677_v4 = vpop.f32.mrb[29].mxu0  ;;  %v9750_v49 = vpop.f32.mrb[29].mxu1 }
 0xe03   :  { %v9840_v55 = vadd.f32 %v23511_v44, %v9677_v4  ;;  %v9842_v48 = vadd.f32 %v23514_v52, %v9750_v49  ;;  %v9679_v21 = vpop.f32.mrb[30].mxu0  ;;  %v9752_v32 = vpop.f32.mrb[30].mxu1  ;;  %16311 = vmatprep.subr.bf16.mxu1 %v16310_v57  ;;  %16343 = vmatprep.subr.bf16.mxu0 %v16310_v57 }
 0xe04   :  { %v9843_v62 = vadd.f32 %v23505_v25, %v9679_v21  ;;  %v9845_v13 = vadd.f32 %v23508_v19, %v9752_v32  ;;  %v9681_v35 = vpop.f32.mrb[31].mxu0  ;;  %v9754_v33 = vpop.f32.mrb[31].mxu1  ;;  %16313 = vmatpush1.bf16.msra.mxu1 %v16312_v34  ;;  %16345 = vmatpush1.bf16.msra.mxu0 %v16312_v34  ;;  %v9871_v11 = vmax.f32 %v9839_v43, 0.0  ;;  %v9873_v63 = vmax.f32 %v9841_v37, 0.0 }
 0xe05   :  { %v9844_v2 = vadd.f32 %v23511_v44, %v9681_v35  ;;  %v9846_v18 = vadd.f32 %v23514_v52, %v9754_v33  ;;  %v9872_v8 = vmax.f32 %v9840_v55, 0.0  ;;  %v9874_v20 = vmax.f32 %v9842_v48, 0.0 }
 0xe06   :  { %v9875_v1 = vmax.f32 %v9843_v62, 0.0  ;;  %v9877_v29 = vmax.f32 %v9845_v13, 0.0 }
 0xe07   :  { %v9876_v16 = vmax.f32 %v9844_v2, 0.0  ;;  %v9878_v26 = vmax.f32 %v9846_v18, 0.0 }
 0xe08   :  { %v16316_v30 = vpack.c.bf16 %v9875_v1, %v9871_v11  ;;  %v23536_v15 = vpack.c.bf16 %v9877_v29, %v9873_v63 }
 0xe09   :  { %v16314_v54 = vpack.c.bf16 %v9876_v16, %v9872_v8  ;;  %v23538_v7 = vpack.c.bf16 %v9878_v26, %v9874_v20  ;;  %v9685_v5 = vpop.f32.mrb[32].mxu0  ;;  %v9758_v56 = vpop.f32.mrb[32].mxu1  ;;  %v10285_v26 = vld [vmem:[#allocation2 + $0x8] sm:$0xff] }
 0xe0a   :  { %v9847_v3 = vadd.f32 %v23505_v25, %v9685_v5  ;;  %v9849_v27 = vadd.f32 %v23508_v19, %v9758_v56  ;;  %v9687_v10 = vpop.f32.mrb[33].mxu0  ;;  %v9760_v9 = vpop.f32.mrb[33].mxu1 }
 0xe0b   :  { %v9848_v45 = vadd.f32 %v23511_v44, %v9687_v10  ;;  %v9850_v38 = vadd.f32 %v23514_v52, %v9760_v9  ;;  %v9689_v41 = vpop.f32.mrb[34].mxu0  ;;  %v9762_v58 = vpop.f32.mrb[34].mxu1  ;;  %16315 = vmatprep.subr.bf16.mxu1 %v16314_v54  ;;  %16347 = vmatprep.subr.bf16.mxu0 %v16314_v54 }
 0xe0c   :  { %v9851_v24 = vadd.f32 %v23505_v25, %v9689_v41  ;;  %v9853_v6 = vadd.f32 %v23508_v19, %v9762_v58  ;;  %v9691_v53 = vpop.f32.mrb[35].mxu0  ;;  %v9764_v47 = vpop.f32.mrb[35].mxu1  ;;  %16317 = vmatpush1.bf16.msra.mxu1 %v16316_v30  ;;  %16349 = vmatpush1.bf16.msra.mxu0 %v16316_v30  ;;  %v9879_v14 = vmax.f32 %v9847_v3, 0.0  ;;  %v9881_v12 = vmax.f32 %v9849_v27, 0.0  ;;  %v10287_v30 = vld [vmem:[#allocation2 + $0x18] sm:$0xff]  ;;  %v10289_v58 = vld [vmem:[#allocation2 + $0x28] sm:$0xff] }
 0xe0d   :  { %v9852_v46 = vadd.f32 %v23511_v44, %v9691_v53  ;;  %v9854_v40 = vadd.f32 %v23514_v52, %v9764_v47  ;;  %v9880_v51 = vmax.f32 %v9848_v45, 0.0  ;;  %v9882_v50 = vmax.f32 %v9850_v38, 0.0  ;;  %v9895_v45 = vld [vmem:[%s24357_s10] sm:$0xff]  ;;  %v23589_v53 = vld [vmem:[%s24357_s10 + $0x28] sm:$0xff] }
 0xe0e   :  { %v9883_v31 = vmax.f32 %v9851_v24, 0.0  ;;  %v9885_v60 = vmax.f32 %v9853_v6, 0.0  ;;  %v23564_v9 = vpack.c.bf16 %v10287_v30, %v10285_v26  ;;  %v23572_v38 = vld [vmem:[%s24357_s10 + $0x20] sm:$0xff]  ;;  %v10291_v24 = vld [vmem:[#allocation2 + $0x38] sm:$0xff]  ;;  %v9896_v6 = vld [vmem:[%s24357_s10 + $0x8] sm:$0xff] }
 0xe0f   :  { %v9884_v17 = vmax.f32 %v9852_v46, 0.0  ;;  %v9886_v34 = vmax.f32 %v9854_v40, 0.0  ;;  %v23594_v47 = vpack.c.bf16 %v10291_v24, %v10289_v58  ;;  %v10288_v46 = vld [vmem:[#allocation2 + $0x20] sm:$0xff]  ;;  %v10290_v40 = vld [vmem:[#allocation2 + $0x30] sm:$0xff]  ;;  %v10317_v58 = vld [vmem:[#allocation2 + $0x108] sm:$0xff] }
 0xe10   :  { %v16320_v57 = vpack.c.bf16 %v9883_v31, %v9879_v14  ;;  %v23548_v42 = vpack.c.bf16 %v9885_v60, %v9881_v12  ;;  %v9897_v14 = vld [vmem:[%s24357_s10 + $0x10] sm:$0xff]  ;;  %v23612_v31 = vpack.c.bf16 %v10290_v40, %v10288_v46  ;;  %v10293_v60 = vld [vmem:[#allocation2 + $0x48] sm:$0xff]  ;;  %v10308_v30 = vld [vmem:[#allocation2 + $0xc0] sm:$0xff] }
 0xe11   :  { %v16318_v0 = vpack.c.bf16 %v9884_v17, %v9880_v51  ;;  %v23550_v43 = vpack.c.bf16 %v9886_v34, %v9882_v50  ;;  %v9695_v37 = vpop.f32.mrb[36].mxu0  ;;  %v9768_v4 = vpop.f32.mrb[36].mxu1  ;;  %v23607_v12 = vld [vmem:[%s24357_s10 + $0x30] sm:$0xff]  ;;  %v10295_v51 = vld [vmem:[#allocation2 + $0x58] sm:$0xff]  ;;  %v10292_v17 = vld [vmem:[#allocation2 + $0x40] sm:$0xff] }
 0xe12   :  { %v9855_v49 = vadd.f32 %v23505_v25, %v9695_v37  ;;  %v9857_v55 = vadd.f32 %v23508_v19, %v9768_v4  ;;  %v9697_v48 = vpop.f32.mrb[37].mxu0  ;;  %v9770_v21 = vpop.f32.mrb[37].mxu1  ;;  %v23618_v50 = vld [vmem:[%s24357_s10 + $0x18] sm:$0xff]  ;;  %v10294_v34 = vld [vmem:[#allocation2 + $0x50] sm:$0xff]  ;;  %v23631_v4 = vpack.c.bf16 %v10295_v51, %v10293_v60  ;;  %v10580_v46 = vld [vmem:[#allocation2 + $0x340] sm:$0xff] }
 0xe13   :  { %v9856_v32 = vadd.f32 %v23511_v44, %v9697_v48  ;;  %v9858_v62 = vadd.f32 %v23514_v52, %v9770_v21  ;;  %v9699_v13 = vpop.f32.mrb[38].mxu0  ;;  %v9772_v35 = vpop.f32.mrb[38].mxu1  ;;  %16319 = vmatprep.subr.bf16.mxu1 %v16318_v0  ;;  %16351 = vmatprep.subr.bf16.mxu0 %v16318_v0  ;;  %v10297_v0 = vld [vmem:[#allocation2 + $0x68] sm:$0xff]  ;;  %v10299_v37 = vld [vmem:[#allocation2 + $0x78] sm:$0xff]  ;;  %v10296_v48 = vld [vmem:[#allocation2 + $0x60] sm:$0xff] }
 0xe14   :  { %v9859_v33 = vadd.f32 %v23505_v25, %v9699_v13  ;;  %v9861_v2 = vadd.f32 %v23508_v19, %v9772_v35  ;;  %v9701_v18 = vpop.f32.mrb[39].mxu0  ;;  %v9774_v11 = vpop.f32.mrb[39].mxu1  ;;  %16321 = vmatpush1.bf16.msra.mxu1 %v16320_v57  ;;  %16353 = vmatpush1.bf16.msra.mxu0 %v16320_v57  ;;  %v9887_v29 = vmax.f32 %v9855_v49, 0.0  ;;  %v9889_v8 = vmax.f32 %v9857_v55, 0.0  ;;  %v23627_v57 = vld [vmem:[%s24357_s10 + $0x38] sm:$0xff]  ;;  %v10298_v21 = vld [vmem:[#allocation2 + $0x70] sm:$0xff] }
 0xe15   :  { %v9860_v63 = vadd.f32 %v23511_v44, %v9701_v18  ;;  %v9862_v1 = vadd.f32 %v23514_v52, %v9774_v11  ;;  %v9888_v54 = vmax.f32 %v9856_v32, 0.0  ;;  %v9890_v5 = vmax.f32 %v9858_v62, 0.0  ;;  %v10284_v44 = vld [vmem:[#allocation2] sm:$0xff]  ;;  %v10286_v52 = vld [vmem:[#allocation2 + $0x10] sm:$0xff]  ;;  %v10301_v32 = vld [vmem:[#allocation2 + $0x88] sm:$0xff] }
 0xe16   :  { %v9891_v20 = vmax.f32 %v9859_v33, 0.0  ;;  %v9893_v16 = vmax.f32 %v9861_v2, 0.0  ;;  %v23576_v41 = vpack.c.bf16 %v10286_v52, %v10284_v44  ;;  %v23634_v49 = vpack.c.bf16 %v10294_v34, %v10292_v17  ;;  %v10303_v62 = vld [vmem:[#allocation2 + $0x98] sm:$0xff]  ;;  %v10300_v33 = vld [vmem:[#allocation2 + $0x80] sm:$0xff]  ;;  %v10302_v2 = vld [vmem:[#allocation2 + $0x90] sm:$0xff] }
 0xe17   :  { %v9892_v56 = vmax.f32 %v9860_v63, 0.0  ;;  %v9894_v25 = vmax.f32 %v9862_v1, 0.0  ;;  %v23640_v55 = vpack.c.bf16 %v10299_v37, %v10297_v0  ;;  %v23647_v13 = vpack.c.bf16 %v10298_v21, %v10296_v48  ;;  %v10305_v18 = vld [vmem:[#allocation2 + $0xa8] sm:$0xff]  ;;  %v10304_v1 = vld [vmem:[#allocation2 + $0xa0] sm:$0xff]  ;;  %v10319_v24 = vld [vmem:[#allocation2 + $0x118] sm:$0xff] }
 0xe18   :  { %v16324_v3 = vpack.c.bf16 %v9891_v20, %v9887_v29  ;;  %v23560_v19 = vpack.c.bf16 %v9893_v16, %v9889_v8  ;;  %v23651_v35 = vpack.c.bf16 %v10303_v62, %v10301_v32  ;;  %v23657_v11 = vpack.c.bf16 %v10302_v2, %v10300_v33  ;;  %v10306_v29 = vld [vmem:[#allocation2 + $0xb0] sm:$0xff]  ;;  %v10311_v8 = vld [vmem:[#allocation2 + $0xd8] sm:$0xff]  ;;  %v10312_v52 = vld [vmem:[#allocation2 + $0xe0] sm:$0xff] }
 0xe19   :  { %v16322_v27 = vpack.c.bf16 %v9892_v56, %v9888_v54  ;;  %v23562_v10 = vpack.c.bf16 %v9894_v25, %v9890_v5  ;;  %v10579_v20 = vld [vmem:[#allocation2 + $0x338] sm:$0xff]  ;;  %v23667_v16 = vpack.c.bf16 %v10306_v29, %v10304_v1  ;;  %v10313_v54 = vld [vmem:[#allocation2 + $0xe8] sm:$0xff]  ;;  %v10576_v56 = vld [vmem:[#allocation2 + $0x320] sm:$0xff] }
 0xe1a   :  { %v10578_v25 = vld [vmem:[#allocation2 + $0x330] sm:$0xff]  ;;  %v10587_v60 = vld [vmem:[#allocation2 + $0x378] sm:$0xff]  ;;  %v10321_v0 = vld [vmem:[#allocation2 + $0x128] sm:$0xff] }
 0xe1b   :  { %16323 = vmatprep.subr.bf16.mxu1 %v16322_v27  ;;  %16355 = vmatprep.subr.bf16.mxu0 %v16322_v27  ;;  %v10583_v27 = vld [vmem:[#allocation2 + $0x358] sm:$0xff]  ;;  %v10582_v40 = vld [vmem:[#allocation2 + $0x350] sm:$0xff]  ;;  %v10584_v21 = vld [vmem:[#allocation2 + $0x360] sm:$0xff] }
 0xe1c   :  { %16325 = vmatpush1.bf16.msra.mxu1 %v16324_v3  ;;  %16357 = vmatpush1.bf16.msra.mxu0 %v16324_v3  ;;  %v10581_v3 = vld [vmem:[#allocation2 + $0x348] sm:$0xff]  ;;  %v10318_v17 = vld [vmem:[#allocation2 + $0x110] sm:$0xff]  ;;  %v23703_v34 = vpack.c.bf16 %v10582_v40, %v10580_v46  ;;  %v10323_v37 = vld [vmem:[#allocation2 + $0x138] sm:$0xff] }
 0xe1d   :  { %16327 = vmatprep.subr.bf16.mxu1 %v23526_v28  ;;  %16375 = vmatprep.subr.bf16.mxu0 %v23564_v9  ;;  %v10589_v32 = vld [vmem:[#allocation2 + $0x388] sm:$0xff]  ;;  %v10591_v62 = vld [vmem:[#allocation2 + $0x398] sm:$0xff]  ;;  %v23714_v2 = vpack.c.bf16 %v10323_v37, %v10321_v0 }
 0xe1e   :  { %v10325_v29 = vld [vmem:[#allocation2 + $0x148] sm:$0xff]  ;;  %v10335_v0 = vld [vmem:[#allocation2 + $0x198] sm:$0xff] }
 0xe1f   :  { %14963 = vmatmul.mubr.msk.f32.vlgmr.msra.gmra.mrb[104].mxu1 %vm4222_vm3, %v9895_v45  ;;  %14975 = vmatmul.mubr.msk.f32.vlgmr.msra.gmra.mrb[120].mxu0 %vm4222_vm3, %v23572_v38 }
 0xe20   :  { %16329 = vmatpush1.bf16.msra.mxu1 %v23524_v39  ;;  %9981 = vmatprep.mubr.f32.mxu1 %v24795_v23 }
 0xe21   :  { %16331 = vmatprep.subr.bf16.mxu1 %v23538_v7  ;;  %10176 = vmatprep.mubr.f32.mxu0 %v24795_v23 }
 0xe22   :  { %16377 = vmatpush1.bf16.msra.mxu0 %v23576_v41 }
 0xe23   :  { %14964 = vmatmul.mubr.msk.f32.gmra.mrb[106].mxu1 %vm4222_vm3, %v9896_v6  ;;  %14976 = vmatmul.mubr.msk.f32.gmra.mrb[122].mxu0 %vm4222_vm3, %v23589_v53 }
 0xe24   :  { %16333 = vmatpush1.bf16.msra.mxu1 %v23536_v15  ;;  %9987 = vmatprep.mubr.f32.mxu1 %v24795_v23 }
 0xe25   :  { %16335 = vmatprep.subr.bf16.mxu1 %v23550_v43  ;;  %10182 = vmatprep.mubr.f32.mxu0 %v24795_v23 }
 0xe26   :  { %16379 = vmatprep.subr.bf16.mxu0 %v23594_v47 }
 0xe27   :  { %14965 = vmatmul.mubr.msk.f32.gmra.mrb[108].mxu1 %vm4222_vm3, %v9897_v14  ;;  %14977 = vmatmul.mubr.msk.f32.gmra.mrb[124].mxu0 %vm4222_vm3, %v23607_v12 }
 0xe28   :  { %16337 = vmatpush1.bf16.msra.mxu1 %v23548_v42  ;;  %9993 = vmatprep.mubr.f32.mxu1 %v24795_v23 }
 0xe29   :  { %16339 = vmatprep.subr.bf16.mxu1 %v23562_v10  ;;  %10188 = vmatprep.mubr.f32.mxu0 %v24795_v23 }
 0xe2a   :  { %16381 = vmatpush1.bf16.msra.mxu0 %v23612_v31 }
 0xe2b   :  { %14966 = vmatmul.mubr.msk.f32.gmra.mrb[110].mxu1 %vm4222_vm3, %v23618_v50  ;;  %14978 = vmatmul.mubr.msk.f32.gmra.mrb[126].mxu0 %vm4222_vm3, %v23627_v57 }
 0xe2c   :  { %16341 = vmatpush1.bf16.msra.mxu1 %v23560_v19  ;;  %10064 = vmatprep.mubr.f32.mxu1 %v24795_v23 }
 0xe2d   :  { %16359 = vmatprep.subr.bf16.mxu1 %v23526_v28  ;;  %16383 = vmatprep.subr.bf16.mxu0 %v23631_v4  ;;  %v10307_v28 = vld [vmem:[#allocation2 + $0xb8] sm:$0xff] }
 0xe2e   :  { %16385 = vmatpush1.bf16.msra.mxu0 %v23634_v49  ;;  %v23661_v63 = vpack.c.bf16 %v10307_v28, %v10305_v18  ;;  %v10320_v18 = vld [vmem:[#allocation2 + $0x120] sm:$0xff]  ;;  %v10322_v28 = vld [vmem:[#allocation2 + $0x130] sm:$0xff] }
 0xe2f   :  { %14967 = vmatmul.mubr.msk.f32.vlgmr.msra.gmra.mrb[112].mxu1 %vm4222_vm3, %v9895_v45  ;;  %16387 = vmatprep.subr.bf16.mxu0 %v23640_v55  ;;  %v10314_v45 = vld [vmem:[#allocation2 + $0xf0] sm:$0xff] }
 0xe30   :  { %16361 = vmatpush1.bf16.msra.mxu1 %v23524_v39  ;;  %10070 = vmatprep.mubr.f32.mxu1 %v24795_v23  ;;  %v10309_v39 = vld [vmem:[#allocation2 + $0xc8] sm:$0xff]  ;;  %v23694_v51 = vpack.c.bf16 %v10314_v45, %v10312_v52  ;;  %v10592_v45 = vld [vmem:[#allocation2 + $0x3a0] sm:$0xff] }
 0xe31   :  { %16363 = vmatprep.subr.bf16.mxu1 %v23538_v7  ;;  %v10577_v7 = vld [vmem:[#allocation2 + $0x328] sm:$0xff]  ;;  %v23671_v26 = vpack.c.bf16 %v10311_v8, %v10309_v39  ;;  %v10327_v39 = vld [vmem:[#allocation2 + $0x158] sm:$0xff]  ;;  %v23721_v8 = vpack.c.bf16 %v10591_v62, %v10589_v32 }
 0xe32   :  { %16389 = vmatpush1.bf16.msra.mxu0 %v23647_v13  ;;  %v23676_v5 = vpack.c.bf16 %v10579_v20, %v10577_v7  ;;  %v10588_v7 = vld [vmem:[#allocation2 + $0x380] sm:$0xff]  ;;  %v10593_v20 = vld [vmem:[#allocation2 + $0x3a8] sm:$0xff] }
 0xe33   :  { %14968 = vmatmul.mubr.msk.f32.gmra.mrb[114].mxu1 %vm4222_vm3, %v9896_v6  ;;  %16391 = vmatprep.subr.bf16.mxu0 %v23651_v35  ;;  %v23691_v6 = vpack.c.bf16 %v10583_v27, %v10581_v3  ;;  %v10329_v3 = vld [vmem:[#allocation2 + $0x168] sm:$0xff]  ;;  %v10331_v27 = vld [vmem:[#allocation2 + $0x178] sm:$0xff] }
 0xe34   :  { %16365 = vmatpush1.bf16.msra.mxu1 %v23536_v15  ;;  %10076 = vmatprep.mubr.f32.mxu1 %v24795_v23  ;;  %v10310_v15 = vld [vmem:[#allocation2 + $0xd0] sm:$0xff]  ;;  %v23744_v40 = vpack.c.bf16 %v10331_v27, %v10329_v3  ;;  %v10601_v32 = vld [vmem:[#allocation2 + $0x3e8] sm:$0xff]  ;;  %v10607_v3 = vld [vmem:[#allocation2 + $0x418] sm:$0xff] }
 0xe35   :  { %16367 = vmatprep.subr.bf16.mxu1 %v23550_v43  ;;  %v10315_v43 = vld [vmem:[#allocation2 + $0xf8] sm:$0xff]  ;;  %v23679_v44 = vpack.c.bf16 %v10310_v15, %v10308_v30  ;;  %v23724_v15 = vpack.c.bf16 %v10322_v28, %v10320_v18  ;;  %v10332_v28 = vld [vmem:[#allocation2 + $0x180] sm:$0xff] }
 0xe36   :  { %16393 = vmatpush1.bf16.msra.mxu0 %v23657_v11  ;;  %v10595_v30 = vld [vmem:[#allocation2 + $0x3b8] sm:$0xff]  ;;  %24803 = vst [vmem:[#allocation21_spill] sm:$0xff] %v23744_v40 }
 0xe37   :  { %14969 = vmatmul.mubr.msk.f32.gmra.mrb[116].mxu1 %vm4222_vm3, %v9897_v14  ;;  %16395 = vmatprep.subr.bf16.mxu0 %v23661_v63  ;;  %v10585_v14 = vld [vmem:[#allocation2 + $0x368] sm:$0xff]  ;;  %24800 = vst [vmem:[#allocation13_spill] sm:$0xff] %v23724_v15  ;;  %v23736_v52 = vpack.c.bf16 %v10595_v30, %v10593_v20  ;;  %v10600_v30 = vld [vmem:[#allocation2 + $0x3e0] sm:$0xff] }
 0xe38   :  { %16369 = vmatpush1.bf16.msra.mxu1 %v23548_v42  ;;  %10082 = vmatprep.mubr.f32.mxu1 %v24795_v23  ;;  %v23684_v42 = vpack.c.bf16 %v10315_v43, %v10313_v54  ;;  %v23706_v48 = vpack.c.bf16 %v10587_v60, %v10585_v14  ;;  %v23729_v54 = vpack.c.bf16 %v10327_v39, %v10325_v29  ;;  %v10324_v43 = vld [vmem:[#allocation2 + $0x140] sm:$0xff]  ;;  %v10330_v60 = vld [vmem:[#allocation2 + $0x170] sm:$0xff] }
 0xe39   :  { %16371 = vmatprep.subr.bf16.mxu1 %v23562_v10  ;;  %v23688_v10 = vpack.c.bf16 %v10578_v25, %v10576_v56  ;;  %v10326_v56 = vld [vmem:[#allocation2 + $0x150] sm:$0xff]  ;;  %v10328_v14 = vld [vmem:[#allocation2 + $0x160] sm:$0xff] }
 0xe3a   :  { %16397 = vmatpush1.bf16.msra.mxu0 %v23667_v16  ;;  %24801 = vst [vmem:[#allocation15_spill] sm:$0xff] %v23729_v54  ;;  %v23739_v46 = vpack.c.bf16 %v10326_v56, %v10324_v43  ;;  %v23753_v62 = vpack.c.bf16 %v10330_v60, %v10328_v14  ;;  %v10334_v29 = vld [vmem:[#allocation2 + $0x190] sm:$0xff]  ;;  %v10605_v56 = vld [vmem:[#allocation2 + $0x408] sm:$0xff]  ;;  %v10343_v60 = vld [vmem:[#allocation2 + $0x1d8] sm:$0xff] }
 0xe3b   :  { %14970 = vmatmul.mubr.msk.f32.gmra.mrb[118].mxu1 %vm4222_vm3, %v23618_v50  ;;  %16399 = vmatprep.subr.bf16.mxu0 %v23671_v26  ;;  %v10316_v50 = vld [vmem:[#allocation2 + $0x100] sm:$0xff]  ;;  %v10602_v43 = vld [vmem:[#allocation2 + $0x3f0] sm:$0xff]  ;;  %v23765_v27 = vpack.c.bf16 %v10334_v29, %v10332_v28  ;;  %v10341_v14 = vld [vmem:[#allocation2 + $0x1c8] sm:$0xff] }
 0xe3c   :  { %16373 = vmatpush1.bf16.msra.mxu1 %v23560_v19  ;;  %10259 = vmatprep.mubr.f32.mxu1 %v24795_v23  ;;  %v23699_v19 = vpack.c.bf16 %v10319_v24, %v10317_v58  ;;  %v23709_v33 = vpack.c.bf16 %v10318_v17, %v10316_v50  ;;  %v10597_v58 = vld [vmem:[#allocation2 + $0x3c8] sm:$0xff]  ;;  %v10599_v24 = vld [vmem:[#allocation2 + $0x3d8] sm:$0xff]  ;;  %24802 = vst [vmem:[#allocation18_spill] sm:$0xff] %v23739_v46  ;;  %24804 = vst [vmem:[#allocation24_spill] sm:$0xff] %v23753_v62 }
 0xe3d   :  { %16475 = vmatprep.subr.bf16.mxu1 %v23676_v5  ;;  %v10333_v17 = vld [vmem:[#allocation2 + $0x188] sm:$0xff]  ;;  %v23750_v37 = vpack.c.bf16 %v10599_v24, %v10597_v58  ;;  %24806 = vst [vmem:[#allocation30_spill] sm:$0xff] %v23765_v27  ;;  %v10338_v58 = vld [vmem:[#allocation2 + $0x1b0] sm:$0xff]  ;;  %v23771_v24 = vpack.c.bf16 %v10602_v43, %v10600_v30  ;;  %v23780_v28 = vpack.c.bf16 %v10343_v60, %v10341_v14  ;;  %v10340_v29 = vld [vmem:[#allocation2 + $0x1c0] sm:$0xff] }
 0xe3e   :  { %16401 = vmatpush1.bf16.msra.mxu0 %v23679_v44  ;;  %v23756_v18 = vpack.c.bf16 %v10335_v0, %v10333_v17  ;;  %v23774_v17 = vpack.c.bf16 %v10607_v3, %v10605_v56  ;;  %v10604_v0 = vld [vmem:[#allocation2 + $0x400] sm:$0xff]  ;;  %v10345_v30 = vld [vmem:[#allocation2 + $0x1e8] sm:$0xff]  ;;  %v10347_v43 = vld [vmem:[#allocation2 + $0x1f8] sm:$0xff] }
 0xe3f   :  { %14979 = vmatmul.mubr.msk.f32.vlgmr.msra.gmra.mrb[120].mxu1 %vm4222_vm3, %v23572_v38  ;;  %16403 = vmatprep.subr.bf16.mxu0 %v23684_v42  ;;  %v10586_v38 = vld [vmem:[#allocation2 + $0x370] sm:$0xff]  ;;  %24809 = vst [vmem:[#allocation39_spill] sm:$0xff] %v23780_v28  ;;  %v10608_v3 = vld [vmem:[#allocation2 + $0x420] sm:$0xff]  ;;  %v23792_v60 = vpack.c.bf16 %v10347_v43, %v10345_v30 }
 0xe40   :  { %10265 = vmatprep.mubr.f32.mxu1 %v24795_v23  ;;  %16477 = vmatpush1.bf16.msra.mxu1 %v23688_v10  ;;  %v23718_v1 = vpack.c.bf16 %v10586_v38, %v10584_v21  ;;  %v10596_v21 = vld [vmem:[#allocation2 + $0x3c0] sm:$0xff]  ;;  %v10598_v38 = vld [vmem:[#allocation2 + $0x3d0] sm:$0xff]  ;;  %24805 = vst [vmem:[#allocation27_spill] sm:$0xff] %v23756_v18  ;;  %v23795_v22 = vpack.c.bf16 %v10610_v59, %v10608_v3  ;;  %v10621_v3 = vld [vmem:[#allocation2 + $0x488] sm:$0xff] }
 0xe41   :  { %16479 = vmatprep.subr.bf16.mxu1 %v23691_v6  ;;  %v23759_v39 = vpack.c.bf16 %v10598_v38, %v10596_v21  ;;  %v10606_v21 = vld [vmem:[#allocation2 + $0x410] sm:$0xff]  ;;  %v10609_v38 = vld [vmem:[#allocation2 + $0x428] sm:$0xff]  ;;  %24811 = vst [vmem:[#allocation42_spill] sm:$0xff] %v23792_v60  ;;  %v10616_v30 = vld [vmem:[#allocation2 + $0x460] sm:$0xff] }
 0xe42   :  { %16405 = vmatpush1.bf16.msra.mxu0 %v23694_v51  ;;  %v10618_v43 = vld [vmem:[#allocation2 + $0x470] sm:$0xff] }
 0xe43   :  { %14980 = vmatmul.mubr.msk.f32.gmra.mrb[122].mxu1 %vm4222_vm3, %v23589_v53  ;;  %16407 = vmatprep.subr.bf16.mxu0 %v23699_v19  ;;  %v10590_v53 = vld [vmem:[#allocation2 + $0x390] sm:$0xff] }
 0xe44   :  { %10271 = vmatprep.mubr.f32.mxu1 %v24795_v23  ;;  %16481 = vmatpush1.bf16.msra.mxu1 %v23703_v34  ;;  %v23733_v25 = vpack.c.bf16 %v10590_v53, %v10588_v7  ;;  %v10337_v7 = vld [vmem:[#allocation2 + $0x1a8] sm:$0xff]  ;;  %v10339_v53 = vld [vmem:[#allocation2 + $0x1b8] sm:$0xff] }
 0xe45   :  { %16483 = vmatprep.subr.bf16.mxu1 %v23706_v48 }
 0xe46   :  { %16409 = vmatpush1.bf16.msra.mxu0 %v23709_v33 }
 0xe47   :  { %14981 = vmatmul.mubr.msk.f32.gmra.mrb[124].mxu1 %vm4222_vm3, %v23607_v12  ;;  %16411 = vmatprep.subr.bf16.mxu0 %v23714_v2  ;;  %v10594_v12 = vld [vmem:[#allocation2 + $0x3b0] sm:$0xff] }
 0xe48   :  { %10277 = vmatprep.mubr.f32.mxu1 %v24795_v23  ;;  %16485 = vmatpush1.bf16.msra.mxu1 %v23718_v1  ;;  %v23747_v50 = vpack.c.bf16 %v10594_v12, %v10592_v45  ;;  %v23768_v45 = vpack.c.bf16 %v10339_v53, %v10337_v7  ;;  %v10336_v12 = vld [vmem:[#allocation2 + $0x1a0] sm:$0xff]  ;;  %v10342_v7 = vld [vmem:[#allocation2 + $0x1d0] sm:$0xff]  ;;  %v23783_v53 = vpack.c.bf16 %v10606_v21, %v10604_v0  ;;  %v10619_v23 = vld [vmem:[#allocation2 + $0x478] sm:$0xff] }
 0xe49   :  { %16487 = vmatprep.subr.bf16.mxu1 %v23721_v8  ;;  %v23789_v14 = vpack.c.bf16 %v10342_v7, %v10340_v29  ;;  %v10344_v0 = vld [vmem:[#allocation2 + $0x1e0] sm:$0xff]  ;;  %v10346_v21 = vld [vmem:[#allocation2 + $0x1f0] sm:$0xff]  ;;  %v23808_v59 = vpack.c.bf16 %v10619_v23, %v10617_v36 }
 0xe4a   :  { %16413 = vmatpush1.bf16.msra.mxu0 %v23724_v15  ;;  %24807 = vst [vmem:[#allocation33_spill] sm:$0xff] %v23768_v45  ;;  %v23801_v29 = vpack.c.bf16 %v10346_v21, %v10344_v0  ;;  %v10622_v21 = vld [vmem:[#allocation2 + $0x490] sm:$0xff] }
 0xe4b   :  { %14982 = vmatmul.mubr.msk.f32.gmra.mrb[126].mxu1 %vm4222_vm3, %v23627_v57  ;;  %16415 = vmatprep.subr.bf16.mxu0 %v23729_v54  ;;  %v10603_v57 = vld [vmem:[#allocation2 + $0x3f8] sm:$0xff]  ;;  %24810 = vst [vmem:[#allocation14_spill] sm:$0xff] %v23789_v14  ;;  %24815 = vst [vmem:[#allocation44_spill] sm:$0xff] %v23808_v59  ;;  %v10668_v54 = vld [vmem:[#allocation2 + $0x600] sm:$0xff] }
 0xe4c   :  { %16489 = vmatpush1.bf16.msra.mxu1 %v23733_v25  ;;  %v23762_v20 = vpack.c.bf16 %v10603_v57, %v10601_v32  ;;  %v10611_v32 = vld [vmem:[#allocation2 + $0x438] sm:$0xff]  ;;  %v23777_v57 = vpack.c.bf16 %v10338_v58, %v10336_v12  ;;  %v10613_v12 = vld [vmem:[#allocation2 + $0x448] sm:$0xff]  ;;  %24813 = vst [vmem:[#allocation43_spill] sm:$0xff] %v23801_v29 }
 0xe4d   :  { %16491 = vmatprep.subr.bf16.mxu1 %v23736_v52  ;;  %v23786_v56 = vpack.c.bf16 %v10611_v32, %v10609_v38  ;;  %v10615_v58 = vld [vmem:[#allocation2 + $0x458] sm:$0xff]  ;;  %v10612_v32 = vld [vmem:[#allocation2 + $0x440] sm:$0xff] }
 0xe4e   :  { %16417 = vmatpush1.bf16.msra.mxu0 %v23739_v46  ;;  %24808 = vst [vmem:[#allocation36_spill] sm:$0xff] %v23777_v57  ;;  %v23798_v38 = vpack.c.bf16 %v10615_v58, %v10613_v12  ;;  %v23805_v7 = vpack.c.bf16 %v10614_v61, %v10612_v32  ;;  %v10623_v12 = vld [vmem:[#allocation2 + $0x498] sm:$0xff]  ;;  %v23812_v58 = vpack.c.bf16 %v10618_v43, %v10616_v30  ;;  %v10620_v61 = vld [vmem:[#allocation2 + $0x480] sm:$0xff]  ;;  %v10625_v32 = vld [vmem:[#allocation2 + $0x4a8] sm:$0xff] }
 0xe4f   :  { %16419 = vmatprep.subr.bf16.mxu0 %v23744_v40  ;;  %v23815_v0 = vpack.c.bf16 %v10623_v12, %v10621_v3  ;;  %v23818_v23 = vpack.c.bf16 %v10622_v21, %v10620_v61  ;;  %v10629_v30 = vld [vmem:[#allocation2 + $0x4c8] sm:$0xff]  ;;  %v10631_v43 = vld [vmem:[#allocation2 + $0x4d8] sm:$0xff]  ;;  %v10650_v46 = vld [vmem:[#allocation2 + $0x570] sm:$0xff] }
 0xe50   :  { %16493 = vmatpush1.bf16.msra.mxu1 %v23747_v50  ;;  %24812 = vst [vmem:[#allocation16_spill] sm:$0xff] %v23798_v38  ;;  %24814 = vst [vmem:[#allocation17_spill] sm:$0xff] %v23805_v7  ;;  %v23827_v12 = vpack.c.bf16 %v10631_v43, %v10629_v30  ;;  %v10633_v61 = vld [vmem:[#allocation2 + $0x4e8] sm:$0xff]  ;;  %v10635_v21 = vld [vmem:[#allocation2 + $0x4f8] sm:$0xff] }
 0xe51   :  { %16495 = vmatprep.subr.bf16.mxu1 %v23750_v37  ;;  %24816 = vst [vmem:[#allocation19_spill] sm:$0xff] %v23812_v58  ;;  %24817 = vst [vmem:[#allocation45_spill] sm:$0xff] %v23815_v0  ;;  %v10357_v40 = vld [vmem:[#allocation2 + $0x248] sm:$0xff] }
 0xe52   :  { %16421 = vmatpush1.bf16.msra.mxu0 %v23753_v62  ;;  %24818 = vst [vmem:[#allocation20_spill] sm:$0xff] %v23818_v23  ;;  %24821 = vst [vmem:[#allocation26_spill] sm:$0xff] %v23827_v12  ;;  %v10644_v62 = vld [vmem:[#allocation2 + $0x540] sm:$0xff] }
 0xe53   :  { %16423 = vmatprep.subr.bf16.mxu0 %v23756_v18  ;;  %v10349_v18 = vld [vmem:[#allocation2 + $0x208] sm:$0xff] }
 0xe54   :  { %16497 = vmatpush1.bf16.msra.mxu1 %v23759_v39 }
 0xe55   :  { %16499 = vmatprep.subr.bf16.mxu1 %v23762_v20 }
 0xe56   :  { %16425 = vmatpush1.bf16.msra.mxu0 %v23765_v27  ;;  %v10634_v27 = vld [vmem:[#allocation2 + $0x4f0] sm:$0xff] }
 0xe57   :  { %16427 = vmatprep.subr.bf16.mxu0 %v23768_v45  ;;  %v10632_v45 = vld [vmem:[#allocation2 + $0x4e0] sm:$0xff] }
 0xe58   :  { %16501 = vmatpush1.bf16.msra.mxu1 %v23771_v24  ;;  %v23838_v43 = vpack.c.bf16 %v10634_v27, %v10632_v45  ;;  %v10348_v27 = vld [vmem:[#allocation2 + $0x200] sm:$0xff]  ;;  %v10350_v45 = vld [vmem:[#allocation2 + $0x210] sm:$0xff] }
 0xe59   :  { %16503 = vmatprep.subr.bf16.mxu1 %v23774_v17 }
 0xe5a   :  { %16429 = vmatpush1.bf16.msra.mxu0 %v23777_v57  ;;  %v10630_v57 = vld [vmem:[#allocation2 + $0x4d0] sm:$0xff]  ;;  %24825 = vst [vmem:[#allocation28_spill] sm:$0xff] %v23838_v43 }
 0xe5b   :  { %16431 = vmatprep.subr.bf16.mxu0 %v23780_v28  ;;  %v10628_v28 = vld [vmem:[#allocation2 + $0x4c0] sm:$0xff] }
 0xe5c   :  { %16505 = vmatpush1.bf16.msra.mxu1 %v23783_v53 }
 0xe5d   :  { %16507 = vmatprep.subr.bf16.mxu1 %v23786_v56 }
 0xe5e   :  { %16433 = vmatpush1.bf16.msra.mxu0 %v23789_v14  ;;  %v10626_v14 = vld [vmem:[#allocation2 + $0x4b0] sm:$0xff] }
 0xe5f   :  { %16435 = vmatprep.subr.bf16.mxu0 %v23792_v60  ;;  %v10627_v60 = vld [vmem:[#allocation2 + $0x4b8] sm:$0xff] }
 0xe60   :  { %16509 = vmatpush1.bf16.msra.mxu1 %v23795_v22  ;;  %v23821_v36 = vpack.c.bf16 %v10627_v60, %v10625_v32  ;;  %v23830_v60 = vpack.c.bf16 %v10630_v57, %v10628_v28  ;;  %v23833_v32 = vpack.c.bf16 %v10635_v21, %v10633_v61  ;;  %v10636_v28 = vld [vmem:[#allocation2 + $0x500] sm:$0xff]  ;;  %v10641_v61 = vld [vmem:[#allocation2 + $0x528] sm:$0xff]  ;;  %v10643_v21 = vld [vmem:[#allocation2 + $0x538] sm:$0xff] }
 0xe61   :  { %16511 = vmatprep.subr.bf16.mxu1 %v23798_v38  ;;  %v10674_v38 = vld [vmem:[#allocation2 + $0x630] sm:$0xff] }
 0xe62   :  { %16437 = vmatpush1.bf16.msra.mxu0 %v23801_v29  ;;  %24819 = vst [vmem:[#allocation46_spill] sm:$0xff] %v23821_v36  ;;  %v10624_v29 = vld [vmem:[#allocation2 + $0x4a0] sm:$0xff]  ;;  %24822 = vst [vmem:[#allocation23_spill] sm:$0xff] %v23830_v60 }
 0xe63   :  { %v23824_v3 = vpack.c.bf16 %v10626_v14, %v10624_v29  ;;  %24823 = vst [vmem:[#allocation25_spill] sm:$0xff] %v23833_v32  ;;  %v10637_v14 = vld [vmem:[#allocation2 + $0x508] sm:$0xff]  ;;  %v10639_v29 = vld [vmem:[#allocation2 + $0x518] sm:$0xff] }
 0xe64   :  { %16513 = vmatpush1.bf16.msra.mxu1 %v23805_v7  ;;  %v23841_v57 = vpack.c.bf16 %v10639_v29, %v10637_v14  ;;  %v10642_v14 = vld [vmem:[#allocation2 + $0x530] sm:$0xff]  ;;  %v10353_v29 = vld [vmem:[#allocation2 + $0x228] sm:$0xff] }
 0xe65   :  { %16515 = vmatprep.subr.bf16.mxu1 %v23808_v59  ;;  %24820 = vst [vmem:[#allocation22_spill] sm:$0xff] %v23824_v3  ;;  %v10655_v59 = vld [vmem:[#allocation2 + $0x598] sm:$0xff]  ;;  %v10670_v7 = vld [vmem:[#allocation2 + $0x610] sm:$0xff] }
 0xe66   :  { %24826 = vst [vmem:[#allocation29_spill] sm:$0xff] %v23841_v57 }
 0xe68   :  { %16517 = vmatpush1.bf16.msra.mxu1 %v23812_v58 }
 0xe69   :  { %16519 = vmatprep.subr.bf16.mxu1 %v23815_v0  ;;  %v10646_v0 = vld [vmem:[#allocation2 + $0x550] sm:$0xff] }
 0xe6c   :  { %16521 = vmatpush1.bf16.msra.mxu1 %v23818_v23 }
 0xe6d   :  { %16523 = vmatprep.subr.bf16.mxu1 %v23821_v36  ;;  %v10351_v36 = vld [vmem:[#allocation2 + $0x218] sm:$0xff] }
 0xe6e   :  { %v23835_v30 = vpack.c.bf16 %v10351_v36, %v10349_v18  ;;  %v23848_v18 = vpack.c.bf16 %v10643_v21, %v10641_v61  ;;  %v10640_v36 = vld [vmem:[#allocation2 + $0x520] sm:$0xff]  ;;  %v10354_v61 = vld [vmem:[#allocation2 + $0x230] sm:$0xff] }
 0xe70   :  { %16525 = vmatpush1.bf16.msra.mxu1 %v23824_v3  ;;  %24824 = vst [vmem:[#allocation38_spill] sm:$0xff] %v23835_v30  ;;  %16439 = vmatprep.subr.bf16.mxu0 %v23835_v30  ;;  %24828 = vst [vmem:[#allocation31_spill] sm:$0xff] %v23848_v18  ;;  %v10355_v30 = vld [vmem:[#allocation2 + $0x238] sm:$0xff] }
 0xe71   :  { %16527 = vmatprep.subr.bf16.mxu1 %v23827_v12  ;;  %v10638_v12 = vld [vmem:[#allocation2 + $0x510] sm:$0xff] }
 0xe72   :  { %v23845_v3 = vpack.c.bf16 %v10638_v12, %v10636_v28  ;;  %v23854_v12 = vpack.c.bf16 %v10642_v14, %v10640_v36  ;;  %v10352_v28 = vld [vmem:[#allocation2 + $0x220] sm:$0xff]  ;;  %v10651_v36 = vld [vmem:[#allocation2 + $0x578] sm:$0xff]  ;;  %v10358_v14 = vld [vmem:[#allocation2 + $0x250] sm:$0xff] }
 0xe74   :  { %16529 = vmatpush1.bf16.msra.mxu1 %v23830_v60  ;;  %24827 = vst [vmem:[#allocation34_spill] sm:$0xff] %v23845_v3  ;;  %v10647_v60 = vld [vmem:[#allocation2 + $0x558] sm:$0xff]  ;;  %24830 = vst [vmem:[#allocation50_spill] sm:$0xff] %v23854_v12 }
 0xe75   :  { %16531 = vmatprep.subr.bf16.mxu1 %v23833_v32  ;;  %v10645_v32 = vld [vmem:[#allocation2 + $0x548] sm:$0xff] }
 0xe78   :  { %16533 = vmatpush1.bf16.msra.mxu1 %v23838_v43  ;;  %v23852_v43 = vpack.c.bf16 %v10350_v45, %v10348_v27  ;;  %v10359_v27 = vld [vmem:[#allocation2 + $0x258] sm:$0xff]  ;;  %v10649_v45 = vld [vmem:[#allocation2 + $0x568] sm:$0xff] }
 0xe79   :  { %16535 = vmatprep.subr.bf16.mxu1 %v23841_v57  ;;  %v23858_v57 = vpack.c.bf16 %v10355_v30, %v10353_v29  ;;  %v23866_v30 = vpack.c.bf16 %v10354_v61, %v10352_v28 }
 0xe7a   :  { %24829 = vst [vmem:[#allocation32_spill] sm:$0xff] %v23852_v43 }
 0xe7b   :  { %24832 = vst [vmem:[#allocation37_spill] sm:$0xff] %v23858_v57  ;;  %24834 = vst [vmem:[#allocation40_spill] sm:$0xff] %v23866_v30 }
 0xe7c   :  { %16537 = vmatpush1.bf16.msra.mxu1 %v23845_v3 }
 0xe7d   :  { %16539 = vmatprep.subr.bf16.mxu1 %v23848_v18  ;;  %v23860_v18 = vpack.c.bf16 %v10647_v60, %v10645_v32  ;;  %v23868_v60 = vpack.c.bf16 %v10646_v0, %v10644_v62  ;;  %v10356_v32 = vld [vmem:[#allocation2 + $0x240] sm:$0xff]  ;;  %v10363_v62 = vld [vmem:[#allocation2 + $0x278] sm:$0xff]  ;;  %v10653_v0 = vld [vmem:[#allocation2 + $0x588] sm:$0xff] }
 0xe7f   :  { %24833 = vst [vmem:[#allocation47_spill] sm:$0xff] %v23860_v18  ;;  %24835 = vst [vmem:[#allocation41_spill] sm:$0xff] %v23868_v60 }
 0xef2   :  { %v9977_v23 = vpop.f32.mrb[104].mxu1  ;;  %v23856_v21 = vpop.f32.mrb[120].mxu0 }
 0xef3   :  { %24831 = vst [vmem:[#allocation35_spill] sm:$0xff] %v23856_v21  ;;  %v9979_v3 = vpop.f32.mrb[105].mxu1  ;;  %v23862_v58 = vpop.f32.mrb[121].mxu0 }
 0xef4   :  { %10461 = vmatprep.mubr.f32.mxu0 %v9979_v3  ;;  %10740 = vmatprep.mubr.f32.mxu1 %v9979_v3  ;;  %v23874_v3 = vpack.c.bf16 %v10359_v27, %v10357_v40  ;;  %v23882_v40 = vpack.c.bf16 %v10358_v14, %v10356_v32 }
 0xef5   :  { %10462 = vmatmul.mubr.f32.vlgmr.msra.gmra.mrb[128].mxu0 %v9977_v23  ;;  %10741 = vmatmul.mubr.f32.vlgmr.msra.gmra.mrb[128].mxu1 %v9977_v23  ;;  %v23876_v23 = vpack.c.bf16 %v10651_v36, %v10649_v45  ;;  %v10360_v45 = vld [vmem:[#allocation2 + $0x260] sm:$0xff]  ;;  %v10362_v36 = vld [vmem:[#allocation2 + $0x270] sm:$0xff] }
 0xef6   :  { %16441 = vmatpush1.bf16.msra.mxu0 %v23852_v43  ;;  %16541 = vmatpush1.bf16.msra.mxu1 %v23854_v12  ;;  %v9983_v29 = vpop.f32.mrb[106].mxu1  ;;  %v23870_v21 = vpop.f32.mrb[122].mxu0  ;;  %24837 = vst [vmem:[#allocation48_spill] sm:$0xff] %v23874_v3  ;;  %v10648_v43 = vld [vmem:[#allocation2 + $0x560] sm:$0xff]  ;;  %v10361_v12 = vld [vmem:[#allocation2 + $0x268] sm:$0xff]  ;;  %24840 = vst [vmem:[#allocation51_spill] sm:$0xff] %v23882_v40 }
 0xef7   :  { %24836 = vst [vmem:[#allocation56_spill] sm:$0xff] %v23870_v21  ;;  %16443 = vmatprep.subr.bf16.mxu0 %v23858_v57  ;;  %16543 = vmatprep.subr.bf16.mxu1 %v23860_v18  ;;  %24838 = vst [vmem:[#allocation49_spill] sm:$0xff] %v23876_v23  ;;  %v9985_v28 = vpop.f32.mrb[107].mxu1  ;;  %v23878_v61 = vpop.f32.mrb[123].mxu0  ;;  %v23884_v27 = vpack.c.bf16 %v10650_v46, %v10648_v43  ;;  %v10367_v46 = vld [vmem:[#allocation2 + $0x298] sm:$0xff]  ;;  %v10657_v43 = vld [vmem:[#allocation2 + $0x5a8] sm:$0xff] }
 0xef8   :  { %24839 = vst [vmem:[#allocation53_spill] sm:$0xff] %v23878_v61  ;;  %10467 = vmatprep.mubr.f32.mxu0 %v9985_v28  ;;  %10746 = vmatprep.mubr.f32.mxu1 %v9985_v28  ;;  %v23890_v28 = vpack.c.bf16 %v10363_v62, %v10361_v12  ;;  %v10654_v61 = vld [vmem:[#allocation2 + $0x590] sm:$0xff]  ;;  %v10659_v57 = vld [vmem:[#allocation2 + $0x5b8] sm:$0xff]  ;;  %v23898_v12 = vpack.c.bf16 %v10362_v36, %v10360_v45  ;;  %v10364_v62 = vld [vmem:[#allocation2 + $0x280] sm:$0xff] }
 0xef9   :  { %10468 = vmatmul.mubr.f32.gmra.mrb[130].mxu0 %v9983_v29  ;;  %10747 = vmatmul.mubr.f32.gmra.mrb[130].mxu1 %v9983_v29  ;;  %24841 = vst [vmem:[#allocation52_spill] sm:$0xff] %v23884_v27  ;;  %v23892_v29 = vpack.c.bf16 %v10655_v59, %v10653_v0  ;;  %v10366_v0 = vld [vmem:[#allocation2 + $0x290] sm:$0xff] }
 0xefa   :  { %16445 = vmatpush1.bf16.msra.mxu0 %v23866_v30  ;;  %16545 = vmatpush1.bf16.msra.mxu1 %v23868_v60  ;;  %v9989_v21 = vpop.f32.mrb[108].mxu1  ;;  %v23886_v18 = vpop.f32.mrb[124].mxu0  ;;  %24843 = vst [vmem:[#allocation54_spill] sm:$0xff] %v23890_v28  ;;  %v10652_v30 = vld [vmem:[#allocation2 + $0x580] sm:$0xff]  ;;  %v10365_v60 = vld [vmem:[#allocation2 + $0x288] sm:$0xff]  ;;  %24846 = vst [vmem:[#allocation57_spill] sm:$0xff] %v23898_v12 }
 0xefb   :  { %24842 = vst [vmem:[#allocation62_spill] sm:$0xff] %v23886_v18  ;;  %16447 = vmatprep.subr.bf16.mxu0 %v23874_v3  ;;  %16547 = vmatprep.subr.bf16.mxu1 %v23876_v23  ;;  %24844 = vst [vmem:[#allocation55_spill] sm:$0xff] %v23892_v29  ;;  %v9991_v32 = vpop.f32.mrb[109].mxu1  ;;  %v23894_v14 = vpop.f32.mrb[125].mxu0  ;;  %v23900_v59 = vpack.c.bf16 %v10654_v61, %v10652_v30  ;;  %v10371_v30 = vld [vmem:[#allocation2 + $0x2b8] sm:$0xff]  ;;  %v10661_v61 = vld [vmem:[#allocation2 + $0x5c8] sm:$0xff] }
 0xefc   :  { %24845 = vst [vmem:[#allocation59_spill] sm:$0xff] %v23894_v14  ;;  %10473 = vmatprep.mubr.f32.mxu0 %v9991_v32  ;;  %10752 = vmatprep.mubr.f32.mxu1 %v9991_v32  ;;  %v23906_v32 = vpack.c.bf16 %v10367_v46, %v10365_v60  ;;  %v10658_v14 = vld [vmem:[#allocation2 + $0x5b0] sm:$0xff]  ;;  %v10663_v3 = vld [vmem:[#allocation2 + $0x5d8] sm:$0xff]  ;;  %v10368_v46 = vld [vmem:[#allocation2 + $0x2a0] sm:$0xff] }
 0xefd   :  { %10474 = vmatmul.mubr.f32.gmra.mrb[132].mxu0 %v9989_v21  ;;  %10753 = vmatmul.mubr.f32.gmra.mrb[132].mxu1 %v9989_v21  ;;  %24847 = vst [vmem:[#allocation58_spill] sm:$0xff] %v23900_v59  ;;  %v23908_v21 = vpack.c.bf16 %v10659_v57, %v10657_v43  ;;  %v23914_v57 = vpack.c.bf16 %v10366_v0, %v10364_v62  ;;  %v10370_v43 = vld [vmem:[#allocation2 + $0x2b0] sm:$0xff]  ;;  %v10375_v62 = vld [vmem:[#allocation2 + $0x2d8] sm:$0xff]  ;;  %v10665_v0 = vld [vmem:[#allocation2 + $0x5e8] sm:$0xff] }
 0xefe   :  { %16449 = vmatpush1.bf16.msra.mxu0 %v23882_v40  ;;  %16549 = vmatpush1.bf16.msra.mxu1 %v23884_v27  ;;  %v9995_v18 = vpop.f32.mrb[110].mxu1  ;;  %v23902_v23 = vpop.f32.mrb[126].mxu0  ;;  %24849 = vst [vmem:[#allocation60_spill] sm:$0xff] %v23906_v32  ;;  %v10656_v40 = vld [vmem:[#allocation2 + $0x5a0] sm:$0xff]  ;;  %v10369_v27 = vld [vmem:[#allocation2 + $0x2a8] sm:$0xff] }
 0xeff   :  { %24848 = vst [vmem:[#allocation68_spill] sm:$0xff] %v23902_v23  ;;  %16451 = vmatprep.subr.bf16.mxu0 %v23890_v28  ;;  %16551 = vmatprep.subr.bf16.mxu1 %v23892_v29  ;;  %24850 = vst [vmem:[#allocation61_spill] sm:$0xff] %v23908_v21  ;;  %v9997_v45 = vpop.f32.mrb[111].mxu1  ;;  %v23910_v36 = vpop.f32.mrb[127].mxu0  ;;  %v23916_v60 = vpack.c.bf16 %v10658_v14, %v10656_v40  ;;  %v10373_v29 = vld [vmem:[#allocation2 + $0x2c8] sm:$0xff]  ;;  %v10667_v40 = vld [vmem:[#allocation2 + $0x5f8] sm:$0xff]  ;;  %v23930_v14 = vpack.c.bf16 %v10370_v43, %v10368_v46 }
 0xf00   :  { %24851 = vst [vmem:[#allocation65_spill] sm:$0xff] %v23910_v36  ;;  %10479 = vmatprep.mubr.f32.mxu0 %v9997_v45  ;;  %10758 = vmatprep.mubr.f32.mxu1 %v9997_v45  ;;  %24852 = vst [vmem:[#allocation63_spill] sm:$0xff] %v23914_v57  ;;  %v23922_v45 = vpack.c.bf16 %v10371_v30, %v10369_v27  ;;  %v10660_v36 = vld [vmem:[#allocation2 + $0x5c0] sm:$0xff]  ;;  %v10374_v30 = vld [vmem:[#allocation2 + $0x2d0] sm:$0xff] }
 0xf01   :  { %10480 = vmatmul.mubr.f32.gmra.mrb[134].mxu0 %v9995_v18  ;;  %10759 = vmatmul.mubr.f32.gmra.mrb[134].mxu1 %v9995_v18  ;;  %24853 = vst [vmem:[#allocation64_spill] sm:$0xff] %v23916_v60  ;;  %v23924_v18 = vpack.c.bf16 %v10663_v3, %v10661_v61  ;;  %24856 = vst [vmem:[#allocation67_spill] sm:$0xff] %v23930_v14  ;;  %v10372_v3 = vld [vmem:[#allocation2 + $0x2c0] sm:$0xff]  ;;  %v10377_v28 = vld [vmem:[#allocation2 + $0x2e8] sm:$0xff] }
 0xf02   :  { %16453 = vmatpush1.bf16.msra.mxu0 %v23898_v12  ;;  %16553 = vmatpush1.bf16.msra.mxu1 %v23900_v59  ;;  %v23918_v23 = vpop.f32.mrb[112].mxu1  ;;  %24854 = vst [vmem:[#allocation74_spill] sm:$0xff] %v23922_v45  ;;  %v10662_v12 = vld [vmem:[#allocation2 + $0x5d0] sm:$0xff]  ;;  %v10379_v46 = vld [vmem:[#allocation2 + $0x2f8] sm:$0xff]  ;;  %v10669_v43 = vld [vmem:[#allocation2 + $0x608] sm:$0xff] }
 0xf03   :  { %16455 = vmatprep.subr.bf16.mxu0 %v23906_v32  ;;  %16555 = vmatprep.subr.bf16.mxu1 %v23908_v21  ;;  %24855 = vst [vmem:[#allocation66_spill] sm:$0xff] %v23924_v18  ;;  %v10068_v59 = vpop.f32.mrb[113].mxu1  ;;  %v23932_v27 = vpack.c.bf16 %v10662_v12, %v10660_v36  ;;  %v23938_v21 = vpack.c.bf16 %v10375_v62, %v10373_v29  ;;  %v10671_v12 = vld [vmem:[#allocation2 + $0x618] sm:$0xff]  ;;  %v10378_v29 = vld [vmem:[#allocation2 + $0x2f0] sm:$0xff] }
 0xf04   :  { %14983 = vmatprep.mubr.msk.f32.mxu0 %vm10384_vm5, %v10068_v59  ;;  %14987 = vmatprep.mubr.msk.f32.mxu1 %vm10384_vm5, %v10068_v59  ;;  %v23940_v32 = vpack.c.bf16 %v10667_v40, %v10665_v0  ;;  %v10664_v59 = vld [vmem:[#allocation2 + $0x5e0] sm:$0xff]  ;;  %v23944_v36 = vpack.c.bf16 %v10374_v30, %v10372_v3  ;;  %v23950_v0 = vpack.c.bf16 %v10379_v46, %v10377_v28  ;;  %v10673_v3 = vld [vmem:[#allocation2 + $0x628] sm:$0xff]  ;;  %v10675_v30 = vld [vmem:[#allocation2 + $0x638] sm:$0xff] }
 0xf05   :  { %24857 = vst [vmem:[#allocation71_spill] sm:$0xff] %v23932_v27  ;;  %24858 = vst [vmem:[#allocation69_spill] sm:$0xff] %v23938_v21  ;;  %v23952_v40 = vpack.c.bf16 %v10671_v12, %v10669_v43  ;;  %v23964_v43 = vpack.c.bf16 %v10675_v30, %v10673_v3  ;;  %v10382_v12 = vld [vmem:[#allocation2 + $0x310] sm:$0xff]  ;;  %v24904_v3 = vld [vmem:[#allocation52_spill] sm:$0xff] }
 0xf06   :  { %16457 = vmatpush1.bf16.msra.mxu0 %v23914_v57  ;;  %16557 = vmatpush1.bf16.msra.mxu1 %v23916_v60  ;;  %v23934_v61 = vpop.f32.mrb[114].mxu1  ;;  %24859 = vst [vmem:[#allocation70_spill] sm:$0xff] %v23940_v32  ;;  %v10666_v57 = vld [vmem:[#allocation2 + $0x5f0] sm:$0xff]  ;;  %24860 = vst [vmem:[#allocation80_spill] sm:$0xff] %v23944_v36 }
 0xf07   :  { %16459 = vmatprep.subr.bf16.mxu0 %v23922_v45  ;;  %16559 = vmatprep.subr.bf16.mxu1 %v23924_v18  ;;  %v10074_v60 = vpop.f32.mrb[115].mxu1  ;;  %v23946_v45 = vpack.c.bf16 %v10666_v57, %v10664_v59  ;;  %v10376_v18 = vld [vmem:[#allocation2 + $0x2e0] sm:$0xff]  ;;  %v23958_v59 = vpack.c.bf16 %v10670_v7, %v10668_v54  ;;  %v24905_v30 = vld [vmem:[#allocation54_spill] sm:$0xff] }
 0xf08   :  { %v23956_v57 = vpack.c.bf16 %v10378_v29, %v10376_v18  ;;  %v24902_v29 = vld [vmem:[#allocation62_spill] sm:$0xff] }
 0xf0a   :  { %16461 = vmatpush1.bf16.msra.mxu0 %v23930_v14  ;;  %16561 = vmatpush1.bf16.msra.mxu1 %v23932_v27  ;;  %v10078_v62 = vpop.f32.mrb[116].mxu1  ;;  %v10381_v14 = vld [vmem:[#allocation2 + $0x308] sm:$0xff]  ;;  %v10383_v27 = vld [vmem:[#allocation2 + $0x318] sm:$0xff] }
 0xf0b   :  { %16463 = vmatprep.subr.bf16.mxu0 %v23938_v21  ;;  %16563 = vmatprep.subr.bf16.mxu1 %v23940_v32  ;;  %v10080_v15 = vpop.f32.mrb[117].mxu1  ;;  %v10380_v32 = vld [vmem:[#allocation2 + $0x300] sm:$0xff]  ;;  %v23962_v46 = vpack.c.bf16 %v10383_v27, %v10381_v14 }
 0xf0c   :  { %v10672_v21 = vld [vmem:[#allocation2 + $0x620] sm:$0xff]  ;;  %v23968_v54 = vpack.c.bf16 %v10382_v12, %v10380_v32  ;;  %v24907_v12 = vld [vmem:[#allocation65_spill] sm:$0xff] }
 0xf0d   :  { %v23970_v7 = vpack.c.bf16 %v10674_v38, %v10672_v21 }
 0xf0e   :  { %16465 = vmatpush1.bf16.msra.mxu0 %v23944_v36  ;;  %16565 = vmatpush1.bf16.msra.mxu1 %v23946_v45  ;;  %v10084_v28 = vpop.f32.mrb[118].mxu1 }
 0xf0f   :  { %16467 = vmatprep.subr.bf16.mxu0 %v23950_v0  ;;  %16567 = vmatprep.subr.bf16.mxu1 %v23952_v40  ;;  %v10086_v36 = vpop.f32.mrb[119].mxu1 }
 0xf12   :  { %16469 = vmatpush1.bf16.msra.mxu0 %v23956_v57  ;;  %16569 = vmatpush1.bf16.msra.mxu1 %v23958_v59  ;;  %v23972_v18 = vpop.f32.mrb[120].mxu1 }
 0xf13   :  { %16471 = vmatprep.subr.bf16.mxu0 %v23962_v46  ;;  %16571 = vmatprep.subr.bf16.mxu1 %v23964_v43  ;;  %v23976_v14 = vpop.f32.mrb[121].mxu1 }
 0xf16   :  { %16473 = vmatpush1.bf16.msra.mxu0 %v23968_v54  ;;  %16573 = vmatpush1.bf16.msra.mxu1 %v23970_v7  ;;  %v23980_v27 = vpop.f32.mrb[122].mxu1 }
 0xf17   :  { %16575 = vmatprep.subr.bf16.mxu0 %v23564_v9  ;;  %16675 = vmatprep.subr.bf16.mxu1 %v23676_v5  ;;  %v23984_v38 = vpop.f32.mrb[123].mxu1  ;;  %v24873_v5 = vld [vmem:[#allocation46_spill] sm:$0xff] }
 0xf19   :  { %10551 = vmatmul.mubr.f32.vlgmr.msra.gmra.mrb[128].mxu0 %v23918_v23  ;;  %10830 = vmatmul.mubr.f32.vlgmr.msra.gmra.mrb[128].mxu1 %v23918_v23  ;;  %v24898_v23 = vld [vmem:[#allocation41_spill] sm:$0xff] }
 0xf1a   :  { %16577 = vmatpush1.bf16.msra.mxu0 %v23576_v41  ;;  %16677 = vmatpush1.bf16.msra.mxu1 %v23688_v10  ;;  %v23990_v32 = vpop.f32.mrb[124].mxu1  ;;  %v24876_v10 = vld [vmem:[#allocation33_spill] sm:$0xff] }
 0xf1b   :  { %14984 = vmatprep.mubr.msk.f32.mxu0 %vm10384_vm5, %v10074_v60  ;;  %14988 = vmatprep.mubr.msk.f32.mxu1 %vm10384_vm5, %v10074_v60  ;;  %v23994_v21 = vpop.f32.mrb[125].mxu1  ;;  %v24899_v60 = vld [vmem:[#allocation48_spill] sm:$0xff] }
 0xf1c   :  { %16579 = vmatprep.subr.bf16.mxu0 %v23594_v47  ;;  %16679 = vmatprep.subr.bf16.mxu1 %v23691_v6  ;;  %v24861_v47 = vld [vmem:[#allocation16_spill] sm:$0xff]  ;;  %v24877_v6 = vld [vmem:[#allocation26_spill] sm:$0xff] }
 0xf1d   :  { %10557 = vmatmul.mubr.f32.gmra.mrb[130].mxu0 %v23934_v61  ;;  %10836 = vmatmul.mubr.f32.gmra.mrb[130].mxu1 %v23934_v61  ;;  %v24900_v61 = vld [vmem:[#allocation49_spill] sm:$0xff] }
 0xf1e   :  { %16581 = vmatpush1.bf16.msra.mxu0 %v23612_v31  ;;  %16681 = vmatpush1.bf16.msra.mxu1 %v23703_v34  ;;  %v24002_v9 = vpop.f32.mrb[126].mxu1  ;;  %v24862_v31 = vld [vmem:[#allocation13_spill] sm:$0xff]  ;;  %v24880_v34 = vld [vmem:[#allocation39_spill] sm:$0xff] }
 0xf1f   :  { %14985 = vmatprep.mubr.msk.f32.mxu0 %vm10384_vm5, %v10080_v15  ;;  %14989 = vmatprep.mubr.msk.f32.mxu1 %vm10384_vm5, %v10080_v15  ;;  %v24006_v41 = vpop.f32.mrb[127].mxu1  ;;  %v24886_v15 = vld [vmem:[#allocation43_spill] sm:$0xff] }
 0xf20   :  { %16583 = vmatprep.subr.bf16.mxu0 %v23631_v4  ;;  %16683 = vmatprep.subr.bf16.mxu1 %v23706_v48  ;;  %v24863_v4 = vld [vmem:[#allocation17_spill] sm:$0xff] }
 0xf21   :  { %10563 = vmatmul.mubr.f32.gmra.mrb[132].mxu0 %v10078_v62  ;;  %10842 = vmatmul.mubr.f32.gmra.mrb[132].mxu1 %v10078_v62  ;;  %v24881_v48 = vld [vmem:[#allocation25_spill] sm:$0xff]  ;;  %v24903_v62 = vld [vmem:[#allocation51_spill] sm:$0xff] }
 0xf22   :  { %16585 = vmatpush1.bf16.msra.mxu0 %v23634_v49  ;;  %16685 = vmatpush1.bf16.msra.mxu1 %v23718_v1  ;;  %v24864_v49 = vld [vmem:[#allocation15_spill] sm:$0xff]  ;;  %v24884_v1 = vld [vmem:[#allocation42_spill] sm:$0xff] }
 0xf23   :  { %14986 = vmatprep.mubr.msk.f32.mxu0 %vm10384_vm5, %v10086_v36  ;;  %14990 = vmatprep.mubr.msk.f32.mxu1 %vm10384_vm5, %v10086_v36  ;;  %v24901_v36 = vld [vmem:[#allocation59_spill] sm:$0xff] }
 0xf24   :  { %16587 = vmatprep.subr.bf16.mxu0 %v23640_v55  ;;  %16687 = vmatprep.subr.bf16.mxu1 %v23721_v8  ;;  %v24865_v55 = vld [vmem:[#allocation44_spill] sm:$0xff]  ;;  %v24885_v8 = vld [vmem:[#allocation29_spill] sm:$0xff] }
 0xf25   :  { %10569 = vmatmul.mubr.f32.gmra.mrb[134].mxu0 %v10084_v28  ;;  %10848 = vmatmul.mubr.f32.gmra.mrb[134].mxu1 %v10084_v28  ;;  %v24906_v28 = vld [vmem:[#allocation55_spill] sm:$0xff] }
 0xf26   :  { %16589 = vmatpush1.bf16.msra.mxu0 %v23647_v13  ;;  %16689 = vmatpush1.bf16.msra.mxu1 %v23733_v25  ;;  %v24866_v13 = vld [vmem:[#allocation18_spill] sm:$0xff] }
 0xf27   :  { %16591 = vmatprep.subr.bf16.mxu0 %v23651_v35  ;;  %16691 = vmatprep.subr.bf16.mxu1 %v23736_v52  ;;  %v24867_v35 = vld [vmem:[#allocation19_spill] sm:$0xff]  ;;  %v24887_v25 = vld [vmem:[#allocation34_spill] sm:$0xff] }
 0xf28   :  { %10938 = vmatprep.mubr.f32.mxu0 %v23862_v58  ;;  %11116 = vmatprep.mubr.f32.mxu1 %v23862_v58  ;;  %v24888_v52 = vld [vmem:[#allocation38_spill] sm:$0xff]  ;;  %v24897_v58 = vld [vmem:[#allocation40_spill] sm:$0xff] }
 0xf2a   :  { %16593 = vmatpush1.bf16.msra.mxu0 %v23657_v11  ;;  %16693 = vmatpush1.bf16.msra.mxu1 %v23747_v50  ;;  %v24868_v11 = vld [vmem:[#allocation21_spill] sm:$0xff]  ;;  %v24889_v50 = vld [vmem:[#allocation31_spill] sm:$0xff] }
 0xf2b   :  { %16595 = vmatprep.subr.bf16.mxu0 %v23661_v63  ;;  %16695 = vmatprep.subr.bf16.mxu1 %v23750_v37  ;;  %v24869_v63 = vld [vmem:[#allocation45_spill] sm:$0xff]  ;;  %v24890_v37 = vld [vmem:[#allocation35_spill] sm:$0xff] }
 0xf2e   :  { %16597 = vmatpush1.bf16.msra.mxu0 %v23667_v16  ;;  %16697 = vmatpush1.bf16.msra.mxu1 %v23759_v39  ;;  %v24871_v16 = vld [vmem:[#allocation20_spill] sm:$0xff] }
 0xf2f   :  { %16599 = vmatprep.subr.bf16.mxu0 %v23671_v26  ;;  %16699 = vmatprep.subr.bf16.mxu1 %v23762_v20  ;;  %v24872_v26 = vld [vmem:[#allocation27_spill] sm:$0xff]  ;;  %v24891_v39 = vld [vmem:[#allocation32_spill] sm:$0xff]  ;;  %v24892_v20 = vld [vmem:[#allocation50_spill] sm:$0xff] }
 0xf32   :  { %16601 = vmatpush1.bf16.msra.mxu0 %v23679_v44  ;;  %16701 = vmatpush1.bf16.msra.mxu1 %v23771_v24  ;;  %v24874_v44 = vld [vmem:[#allocation30_spill] sm:$0xff]  ;;  %v24893_v24 = vld [vmem:[#allocation37_spill] sm:$0xff] }
 0xf33   :  { %16603 = vmatprep.subr.bf16.mxu0 %v23684_v42  ;;  %16703 = vmatprep.subr.bf16.mxu1 %v23774_v17  ;;  %v24875_v42 = vld [vmem:[#allocation22_spill] sm:$0xff]  ;;  %v24894_v17 = vld [vmem:[#allocation47_spill] sm:$0xff] }
 0xf36   :  { %16605 = vmatpush1.bf16.msra.mxu0 %v23694_v51  ;;  %16705 = vmatpush1.bf16.msra.mxu1 %v23783_v53  ;;  %v24878_v51 = vld [vmem:[#allocation36_spill] sm:$0xff]  ;;  %v24895_v53 = vld [vmem:[#allocation53_spill] sm:$0xff] }
 0xf37   :  { %16607 = vmatprep.subr.bf16.mxu0 %v23699_v19  ;;  %16707 = vmatprep.subr.bf16.mxu1 %v23786_v56  ;;  %v24879_v19 = vld [vmem:[#allocation23_spill] sm:$0xff]  ;;  %v24896_v56 = vld [vmem:[#allocation56_spill] sm:$0xff] }
 0xf3a   :  { %16609 = vmatpush1.bf16.msra.mxu0 %v23709_v33  ;;  %16709 = vmatpush1.bf16.msra.mxu1 %v23795_v22  ;;  %v24870_v22 = vld [vmem:[#allocation24_spill] sm:$0xff]  ;;  %v24882_v33 = vld [vmem:[#allocation14_spill] sm:$0xff] }
 0xf3b   :  { %16611 = vmatprep.subr.bf16.mxu0 %v23714_v2  ;;  %16711 = vmatprep.subr.bf16.mxu1 %v24861_v47  ;;  %v24883_v2 = vld [vmem:[#allocation28_spill] sm:$0xff] }
 0xf3c   :  { %v24908_v47 = vld [vmem:[#allocation68_spill] sm:$0xff] }
 0xf3e   :  { %16613 = vmatpush1.bf16.msra.mxu0 %v24862_v31  ;;  %16713 = vmatpush1.bf16.msra.mxu1 %v24863_v4  ;;  %v24909_v31 = vld [vmem:[#allocation57_spill] sm:$0xff]  ;;  %v24910_v4 = vld [vmem:[#allocation58_spill] sm:$0xff] }
 0xf3f   :  { %16615 = vmatprep.subr.bf16.mxu0 %v24864_v49  ;;  %16715 = vmatprep.subr.bf16.mxu1 %v24865_v55  ;;  %v24911_v49 = vld [vmem:[#allocation60_spill] sm:$0xff]  ;;  %v24912_v55 = vld [vmem:[#allocation61_spill] sm:$0xff] }
 0xf42   :  { %16617 = vmatpush1.bf16.msra.mxu0 %v24866_v13  ;;  %16717 = vmatpush1.bf16.msra.mxu1 %v24867_v35  ;;  %v24913_v13 = vld [vmem:[#allocation63_spill] sm:$0xff]  ;;  %v24914_v35 = vld [vmem:[#allocation64_spill] sm:$0xff] }
 0xf43   :  { %16619 = vmatprep.subr.bf16.mxu0 %v24868_v11  ;;  %16719 = vmatprep.subr.bf16.mxu1 %v24869_v63  ;;  %v24915_v11 = vld [vmem:[#allocation74_spill] sm:$0xff] }
 0xf44   :  { %v24916_v63 = vld [vmem:[#allocation66_spill] sm:$0xff] }
 0xf46   :  { %16621 = vmatpush1.bf16.msra.mxu0 %v24870_v22  ;;  %16721 = vmatpush1.bf16.msra.mxu1 %v24871_v16  ;;  %v24917_v22 = vld [vmem:[#allocation67_spill] sm:$0xff] }
 0xf47   :  { %16623 = vmatprep.subr.bf16.mxu0 %v24872_v26  ;;  %16723 = vmatprep.subr.bf16.mxu1 %v24873_v5  ;;  %v24918_v16 = vld [vmem:[#allocation71_spill] sm:$0xff]  ;;  %v24919_v26 = vld [vmem:[#allocation69_spill] sm:$0xff]  ;;  %v24920_v5 = vld [vmem:[#allocation70_spill] sm:$0xff] }
 0xf4a   :  { %16625 = vmatpush1.bf16.msra.mxu0 %v24874_v44  ;;  %16725 = vmatpush1.bf16.msra.mxu1 %v24875_v42  ;;  %v24921_v44 = vld [vmem:[#allocation80_spill] sm:$0xff] }
 0xf4b   :  { %16627 = vmatprep.subr.bf16.mxu0 %v24876_v10  ;;  %16727 = vmatprep.subr.bf16.mxu1 %v24877_v6 }
 0xf4e   :  { %16629 = vmatpush1.bf16.msra.mxu0 %v24878_v51  ;;  %16729 = vmatpush1.bf16.msra.mxu1 %v24879_v19 }
 0xf4f   :  { %16631 = vmatprep.subr.bf16.mxu0 %v24880_v34  ;;  %16731 = vmatprep.subr.bf16.mxu1 %v24881_v48 }
 0xf52   :  { %16633 = vmatpush1.bf16.msra.mxu0 %v24882_v33  ;;  %16733 = vmatpush1.bf16.msra.mxu1 %v24883_v2 }
 0xf53   :  { %16635 = vmatprep.subr.bf16.mxu0 %v24884_v1  ;;  %16735 = vmatprep.subr.bf16.mxu1 %v24885_v8 }
 0xf56   :  { %16637 = vmatpush1.bf16.msra.mxu0 %v24886_v15  ;;  %16737 = vmatpush1.bf16.msra.mxu1 %v24887_v25 }
 0xf57   :  { %16639 = vmatprep.subr.bf16.mxu0 %v24888_v52  ;;  %16739 = vmatprep.subr.bf16.mxu1 %v24889_v50 }
 0xf59   :  { %10939 = vmatmul.mubr.f32.vlgmr.msra.gmra.mrb[136].mxu0 %v24890_v37  ;;  %11117 = vmatmul.mubr.f32.vlgmr.msra.gmra.mrb[136].mxu1 %v24890_v37 }
 0xf5a   :  { %16641 = vmatpush1.bf16.msra.mxu0 %v24891_v39  ;;  %16741 = vmatpush1.bf16.msra.mxu1 %v24892_v20 }
 0xf5b   :  { %16643 = vmatprep.subr.bf16.mxu0 %v24893_v24  ;;  %16743 = vmatprep.subr.bf16.mxu1 %v24894_v17 }
 0xf5c   :  { %10944 = vmatprep.mubr.f32.mxu0 %v24895_v53  ;;  %11122 = vmatprep.mubr.f32.mxu1 %v24895_v53 }
 0xf5d   :  { %10945 = vmatmul.mubr.f32.gmra.mrb[138].mxu0 %v24896_v56  ;;  %11123 = vmatmul.mubr.f32.gmra.mrb[138].mxu1 %v24896_v56 }
 0xf5e   :  { %16645 = vmatpush1.bf16.msra.mxu0 %v24897_v58  ;;  %16745 = vmatpush1.bf16.msra.mxu1 %v24898_v23 }
 0xf5f   :  { %16647 = vmatprep.subr.bf16.mxu0 %v24899_v60  ;;  %16747 = vmatprep.subr.bf16.mxu1 %v24900_v61 }
 0xf60   :  { %10950 = vmatprep.mubr.f32.mxu0 %v24901_v36  ;;  %11128 = vmatprep.mubr.f32.mxu1 %v24901_v36 }
 0xf61   :  { %10951 = vmatmul.mubr.f32.gmra.mrb[140].mxu0 %v24902_v29  ;;  %11129 = vmatmul.mubr.f32.gmra.mrb[140].mxu1 %v24902_v29 }
 0xf62   :  { %16649 = vmatpush1.bf16.msra.mxu0 %v24903_v62  ;;  %16749 = vmatpush1.bf16.msra.mxu1 %v24904_v3 }
 0xf63   :  { %16651 = vmatprep.subr.bf16.mxu0 %v24905_v30  ;;  %16751 = vmatprep.subr.bf16.mxu1 %v24906_v28 }
 0xf64   :  { %10956 = vmatprep.mubr.f32.mxu0 %v24907_v12  ;;  %11134 = vmatprep.mubr.f32.mxu1 %v24907_v12 }
 0xf65   :  { %10957 = vmatmul.mubr.f32.gmra.mrb[142].mxu0 %v24908_v47  ;;  %11135 = vmatmul.mubr.f32.gmra.mrb[142].mxu1 %v24908_v47 }
 0xf66   :  { %16653 = vmatpush1.bf16.msra.mxu0 %v24909_v31  ;;  %16753 = vmatpush1.bf16.msra.mxu1 %v24910_v4 }
 0xf67   :  { %16655 = vmatprep.subr.bf16.mxu0 %v24911_v49  ;;  %16755 = vmatprep.subr.bf16.mxu1 %v24912_v55 }
 0xf68   :  { %14991 = vmatprep.mubr.msk.f32.mxu0 %vm10384_vm5, %v23976_v14  ;;  %14995 = vmatprep.mubr.msk.f32.mxu1 %vm10384_vm5, %v23976_v14 }
 0xf6a   :  { %16657 = vmatpush1.bf16.msra.mxu0 %v24913_v13  ;;  %16757 = vmatpush1.bf16.msra.mxu1 %v24914_v35 }
 0xf6b   :  { %16659 = vmatprep.subr.bf16.mxu0 %v24915_v11  ;;  %16759 = vmatprep.subr.bf16.mxu1 %v24916_v63 }
 0xf6e   :  { %16661 = vmatpush1.bf16.msra.mxu0 %v24917_v22  ;;  %16761 = vmatpush1.bf16.msra.mxu1 %v24918_v16 }
 0xf6f   :  { %16663 = vmatprep.subr.bf16.mxu0 %v24919_v26  ;;  %16763 = vmatprep.subr.bf16.mxu1 %v24920_v5  ;;  %v17966_v26 = vld [vmem:[#allocation4 + $0x194] ss:$16 sps:$4 sm:$0xff]   ;;  %v17969_v5 = vld [vmem:[#allocation4 + $0x19c] ss:$16 sps:$4 sm:$0xff]  }
 0xf72   :  { %16665 = vmatpush1.bf16.msra.mxu0 %v24921_v44  ;;  %16765 = vmatpush1.bf16.msra.mxu1 %v23946_v45  ;;  %v24922_v45 = vmov 0.0   ;;  %v15000_v44 = vld [vmem:[%s24358_s11 + $0x8] sm:$0xff] }
 0xf73   :  { %16667 = vmatprep.subr.bf16.mxu0 %v23950_v0  ;;  %16767 = vmatprep.subr.bf16.mxu1 %v23952_v40 }
 0xf76   :  { %16669 = vmatpush1.bf16.msra.mxu0 %v23956_v57  ;;  %16769 = vmatpush1.bf16.msra.mxu1 %v23958_v59 }
 0xf77   :  { %16671 = vmatprep.subr.bf16.mxu0 %v23962_v46  ;;  %16771 = vmatprep.subr.bf16.mxu1 %v23964_v43 }
 0xf7a   :  { %16673 = vmatpush1.bf16.msra.mxu0 %v23968_v54  ;;  %16773 = vmatpush1.bf16.msra.mxu1 %v23970_v7 }
 0xf7d   :  { %11028 = vmatmul.mubr.f32.vlgmr.msra.gmra.mrb[136].mxu0 %v23972_v18  ;;  %11206 = vmatmul.mubr.f32.vlgmr.msra.gmra.mrb[136].mxu1 %v23972_v18 }
 0xf7e   :  { %14992 = vmatprep.mubr.msk.f32.mxu0 %vm10384_vm5, %v23984_v38  ;;  %14996 = vmatprep.mubr.msk.f32.mxu1 %vm10384_vm5, %v23984_v38 }
 0xf81   :  { %11034 = vmatmul.mubr.f32.gmra.mrb[138].mxu0 %v23980_v27  ;;  %11212 = vmatmul.mubr.f32.gmra.mrb[138].mxu1 %v23980_v27 }
 0xf82   :  { %14993 = vmatprep.mubr.msk.f32.mxu0 %vm10384_vm5, %v23994_v21  ;;  %14997 = vmatprep.mubr.msk.f32.mxu1 %vm10384_vm5, %v23994_v21 }
 0xf85   :  { %11040 = vmatmul.mubr.f32.gmra.mrb[140].mxu0 %v23990_v32  ;;  %11218 = vmatmul.mubr.f32.gmra.mrb[140].mxu1 %v23990_v32 }
 0xf86   :  { %14994 = vmatprep.mubr.msk.f32.mxu0 %vm10384_vm5, %v24006_v41  ;;  %14998 = vmatprep.mubr.msk.f32.mxu1 %vm10384_vm5, %v24006_v41 }
 0xf89   :  { %11046 = vmatmul.mubr.f32.gmra.mrb[142].mxu0 %v24002_v9  ;;  %11224 = vmatmul.mubr.f32.gmra.mrb[142].mxu1 %v24002_v9 }
 0xf8a   :  { %11443 = vmatprep.mubr.f32.mxu1 %v24922_v45  ;;  %11315 = vmatprep.mubr.f32.mxu0 %v24922_v45 }
 0xfec   :  { %v10552_v0 = vpop.f32.mrb[128].mxu0  ;;  %v10831_v40 = vpop.f32.mrb[128].mxu1 }
 0xfed   :  { %v10854_v57 = vmax.f32 %v10552_v0, %v10831_v40  ;;  %v10554_v59 = vpop.f32.mrb[129].mxu0  ;;  %v10833_v46 = vpop.f32.mrb[129].mxu1  ;;  %v11246_v0 = vld [vmem:[%s24358_s11] sm:$0xff] }
 0xfee   :  { %v10855_v43 = vmax.f32 %v10554_v59, %v10833_v46  ;;  %v17964_v40 = vld [vmem:[#allocation4 + $0x190] ss:$16 sps:$4 sm:$0xff]   ;;  %v17972_v59 = vld [vmem:[#allocation4 + $0x1b4] ss:$16 sps:$4 sm:$0xff]   ;;  %v17975_v46 = vld [vmem:[#allocation4 + $0x1bc] ss:$16 sps:$4 sm:$0xff]  }
 0xff0   :  { %v10558_v54 = vpop.f32.mrb[130].mxu0  ;;  %v10837_v7 = vpop.f32.mrb[130].mxu1 }
 0xff1   :  { %v10856_v18 = vmax.f32 %v10558_v54, %v10837_v7  ;;  %v10560_v14 = vpop.f32.mrb[131].mxu0  ;;  %v10839_v27 = vpop.f32.mrb[131].mxu1  ;;  %v17973_v54 = vld [vmem:[#allocation4 + $0x1b8] ss:$16 sps:$4 sm:$0xff]   ;;  %v17978_v7 = vld [vmem:[#allocation4 + $0x1d4] ss:$16 sps:$4 sm:$0xff]  }
 0xff2   :  { %v10857_v38 = vmax.f32 %v10560_v14, %v10839_v27  ;;  %v17976_v14 = vld [vmem:[#allocation4 + $0x1d0] ss:$16 sps:$4 sm:$0xff]   ;;  %v17979_v27 = vld [vmem:[#allocation4 + $0x1d8] ss:$16 sps:$4 sm:$0xff]  }
 0xff4   :  { %v10564_v32 = vpop.f32.mrb[132].mxu0  ;;  %v10843_v21 = vpop.f32.mrb[132].mxu1 }
 0xff5   :  { %v10858_v41 = vmax.f32 %v10564_v32, %v10843_v21  ;;  %v10566_v9 = vpop.f32.mrb[133].mxu0  ;;  %v10845_v42 = vpop.f32.mrb[133].mxu1  ;;  %v17987_v32 = vld [vmem:[#allocation4 + $0x1fc] ss:$16 sps:$4 sm:$0xff]   ;;  %v17982_v21 = vld [vmem:[#allocation4 + $0x1f0] ss:$16 sps:$4 sm:$0xff]  }
 0xff6   :  { %v10859_v10 = vmax.f32 %v10566_v9, %v10845_v42  ;;  %v17990_v9 = vld [vmem:[#allocation4 + $0x214] ss:$16 sps:$4 sm:$0xff]   ;;  %v17993_v42 = vld [vmem:[#allocation4 + $0x21c] ss:$16 sps:$4 sm:$0xff]  }
 0xff8   :  { %v10570_v6 = vpop.f32.mrb[134].mxu0  ;;  %v10849_v51 = vpop.f32.mrb[134].mxu1 }
 0xff9   :  { %v10860_v19 = vmax.f32 %v10570_v6, %v10849_v51  ;;  %v10572_v34 = vpop.f32.mrb[135].mxu0  ;;  %v10851_v48 = vpop.f32.mrb[135].mxu1  ;;  %v17991_v6 = vld [vmem:[#allocation4 + $0x218] ss:$16 sps:$4 sm:$0xff]   ;;  %v17996_v51 = vld [vmem:[#allocation4 + $0x234] ss:$16 sps:$4 sm:$0xff]  }
 0xffa   :  { %v10861_v33 = vmax.f32 %v10572_v34, %v10851_v48  ;;  %v17994_v34 = vld [vmem:[#allocation4 + $0x230] ss:$16 sps:$4 sm:$0xff]   ;;  %v17997_v48 = vld [vmem:[#allocation4 + $0x238] ss:$16 sps:$4 sm:$0xff]  }
0x1050   :  { %v11029_v2 = vpop.f32.mrb[136].mxu0  ;;  %v11207_v1 = vpop.f32.mrb[136].mxu1 }
0x1051   :  { %v11230_v8 = vmax.f32 %v11029_v2, %v11207_v1  ;;  %v11031_v15 = vpop.f32.mrb[137].mxu0  ;;  %v11209_v25 = vpop.f32.mrb[137].mxu1  ;;  %v18005_v2 = vld [vmem:[#allocation4 + $0x25c] ss:$16 sps:$4 sm:$0xff]   ;;  %v18000_v1 = vld [vmem:[#allocation4 + $0x250] ss:$16 sps:$4 sm:$0xff]  }
0x1052   :  { %v11231_v52 = vmax.f32 %v11031_v15, %v11209_v25  ;;  %v18008_v15 = vld [vmem:[#allocation4 + $0x274] ss:$16 sps:$4 sm:$0xff]   ;;  %v18011_v25 = vld [vmem:[#allocation4 + $0x27c] ss:$16 sps:$4 sm:$0xff]  }
0x1053   :  { %v11238_v50 = vmax.f32 %v10854_v57, %v11230_v8  ;;  %v17967_v57 = vld [vmem:[#allocation4 + $0x198] ss:$16 sps:$4 sm:$0xff]  }
0x1054   :  { %v11239_v37 = vmax.f32 %v10855_v43, %v11231_v52  ;;  %v11035_v39 = vpop.f32.mrb[138].mxu0  ;;  %v11213_v20 = vpop.f32.mrb[138].mxu1  ;;  %v17970_v43 = vld [vmem:[#allocation4 + $0x1b0] ss:$16 sps:$4 sm:$0xff]   ;;  %v18003_v8 = vld [vmem:[#allocation4 + $0x258] ss:$16 sps:$4 sm:$0xff]  }
0x1055   :  { %v11232_v24 = vmax.f32 %v11035_v39, %v11213_v20  ;;  %v11037_v17 = vpop.f32.mrb[139].mxu0  ;;  %v11215_v53 = vpop.f32.mrb[139].mxu1  ;;  %v18006_v52 = vld [vmem:[#allocation4 + $0x270] ss:$16 sps:$4 sm:$0xff]   ;;  %v18017_v39 = vld [vmem:[#allocation4 + $0x29c] ss:$16 sps:$4 sm:$0xff]  }
0x1056   :  { %v11233_v56 = vmax.f32 %v11037_v17, %v11215_v53  ;;  %v18012_v20 = vld [vmem:[#allocation4 + $0x290] ss:$16 sps:$4 sm:$0xff]   ;;  %v18020_v17 = vld [vmem:[#allocation4 + $0x2b4] ss:$16 sps:$4 sm:$0xff]   ;;  %v18023_v53 = vld [vmem:[#allocation4 + $0x2bc] ss:$16 sps:$4 sm:$0xff]  }
0x1057   :  { %v11240_v58 = vmax.f32 %v10856_v18, %v11232_v24  ;;  %v17981_v18 = vld [vmem:[#allocation4 + $0x1dc] ss:$16 sps:$4 sm:$0xff]   ;;  %v18015_v24 = vld [vmem:[#allocation4 + $0x298] ss:$16 sps:$4 sm:$0xff]  }
0x1058   :  { %v11241_v23 = vmax.f32 %v10857_v38, %v11233_v56  ;;  %v11041_v60 = vpop.f32.mrb[140].mxu0  ;;  %v11219_v61 = vpop.f32.mrb[140].mxu1  ;;  %v17984_v38 = vld [vmem:[#allocation4 + $0x1f4] ss:$16 sps:$4 sm:$0xff]   ;;  %v18018_v56 = vld [vmem:[#allocation4 + $0x2b0] ss:$16 sps:$4 sm:$0xff]  }
0x1059   :  { %v24144_v36 = vpack.c.bf16 %v11240_v58, %v11238_v50  ;;  %v11234_v29 = vmax.f32 %v11041_v60, %v11219_v61  ;;  %v11043_v62 = vpop.f32.mrb[141].mxu0  ;;  %v11221_v3 = vpop.f32.mrb[141].mxu1  ;;  %v18009_v50 = vld [vmem:[#allocation4 + $0x278] ss:$16 sps:$4 sm:$0xff]   ;;  %v18029_v60 = vld [vmem:[#allocation4 + $0x2dc] ss:$16 sps:$4 sm:$0xff]  }
0x105a   :  { %v24146_v30 = vpack.c.bf16 %v11241_v23, %v11239_v37  ;;  %v11235_v28 = vmax.f32 %v11043_v62, %v11221_v3  ;;  %v18014_v37 = vld [vmem:[#allocation4 + $0x294] ss:$16 sps:$4 sm:$0xff]   ;;  %v18021_v58 = vld [vmem:[#allocation4 + $0x2b8] ss:$16 sps:$4 sm:$0xff]   ;;  %v18024_v61 = vld [vmem:[#allocation4 + $0x2d0] ss:$16 sps:$4 sm:$0xff]  }
0x105b   :  { %v11242_v12 = vmax.f32 %v10858_v41, %v11234_v29  ;;  %v17985_v41 = vld [vmem:[#allocation4 + $0x1f8] ss:$16 sps:$4 sm:$0xff]   ;;  %v18026_v23 = vld [vmem:[#allocation4 + $0x2d4] ss:$16 sps:$4 sm:$0xff]   ;;  %v18035_v3 = vld [vmem:[#allocation4 + $0x2fc] ss:$16 sps:$4 sm:$0xff]  }
0x105c   :  { %v11243_v47 = vmax.f32 %v10859_v10, %v11235_v28  ;;  %v11047_v31 = vpop.f32.mrb[142].mxu0  ;;  %v11225_v4 = vpop.f32.mrb[142].mxu1  ;;  %16775 = vmatprep.subr.bf16.mxu0 %v24146_v30  ;;  %16783 = vmatprep.subr.bf16.mxu1 %v24146_v30  ;;  %v17988_v10 = vld [vmem:[#allocation4 + $0x210] ss:$16 sps:$4 sm:$0xff]   ;;  %v18027_v29 = vld [vmem:[#allocation4 + $0x2d8] ss:$16 sps:$4 sm:$0xff]  }
0x105d   :  { %v11236_v49 = vmax.f32 %v11047_v31, %v11225_v4  ;;  %v11049_v55 = vpop.f32.mrb[143].mxu0  ;;  %v11227_v13 = vpop.f32.mrb[143].mxu1  ;;  %16777 = vmatpush1.bf16.msra.mxu0 %v24144_v36  ;;  %16785 = vmatpush1.bf16.msra.mxu1 %v24144_v36  ;;  %v18032_v62 = vld [vmem:[#allocation4 + $0x2f4] ss:$16 sps:$4 sm:$0xff]   ;;  %v18030_v28 = vld [vmem:[#allocation4 + $0x2f0] ss:$16 sps:$4 sm:$0xff]  }
0x105e   :  { %v11237_v35 = vmax.f32 %v11049_v55, %v11227_v13  ;;  %v11502_v31 = vld [vmem:[#allocation4 + $0x318] sm:$0xff] }
0x105f   :  { %v11244_v11 = vmax.f32 %v10860_v19, %v11236_v49  ;;  %v17999_v19 = vld [vmem:[#allocation4 + $0x23c] ss:$16 sps:$4 sm:$0xff]   ;;  %v15053_v49 = vcombine.high %v11502_v31, %v11502_v31  ;;  %v15052_v13 = vcombine.low %v11502_v31, %v11502_v31 }
0x1060   :  { %v11245_v63 = vmax.f32 %v10861_v33, %v11237_v35  ;;  %v18002_v33 = vld [vmem:[#allocation4 + $0x254] ss:$16 sps:$4 sm:$0xff]   ;;  %v18111_v31 = vld [vmem:[#allocation4 + $0x16c] ss:$16 sps:$4 sm:$0xff]  }
0x1061   :  { %v24152_v22 = vpack.c.bf16 %v11244_v11, %v11242_v12  ;;  %v18033_v12 = vld [vmem:[#allocation4 + $0x2f8] ss:$16 sps:$4 sm:$0xff]   ;;  %v11765_v11 = vsel %vm11757_vm7, %v15052_v13, 0 }
0x1062   :  { %v24154_v16 = vpack.c.bf16 %v11245_v63, %v11243_v47  ;;  %v11501_v47 = vld [vmem:[#allocation4 + $0x310] sm:$0xff]  ;;  %v18109_v13 = vld [vmem:[#allocation4 + $0x168] ss:$16 sps:$4 sm:$0xff]  }
0x1063   :  { %v15051_v4 = vcombine.high %v11501_v47, %v11501_v47  ;;  %v15050_v55 = vcombine.low %v11501_v47, %v11501_v47  ;;  %v18042_v63 = vld [vmem:[#allocation4 + $0x4] ss:$16 sps:$4 sm:$0xff]  }
0x1064   :  { %16779 = vmatprep.subr.bf16.mxu0 %v24154_v16  ;;  %16787 = vmatprep.subr.bf16.mxu1 %v24154_v16  ;;  %v18108_v47 = vld [vmem:[#allocation4 + $0x164] ss:$16 sps:$4 sm:$0xff]  }
0x1065   :  { %16781 = vmatpush1.bf16.msra.mxu0 %v24152_v22  ;;  %16789 = vmatpush1.bf16.msra.mxu1 %v24152_v22  ;;  %v11759_v35 = vsel %vm11757_vm7, %v15050_v55, 0  ;;  %v18106_v55 = vld [vmem:[#allocation4 + $0x160] ss:$16 sps:$4 sm:$0xff]  }
0x1066   :  { %11770 = vmatprep.subr.bf16.mxu0 %v17966_v26  ;;  %11811 = vmatprep.subr.bf16.mxu1 %v17969_v5  ;;  %v18045_v26 = vld [vmem:[#allocation4 + $0xc] ss:$16 sps:$4 sm:$0xff]  }
0x1068   :  { %15001 = vmatmul.mubr.msk.f32.vlgmr.msra.gmra.mrb[48].mxu1 %vm11247_vm6, %v15000_v44  ;;  %14999 = vmatmul.mubr.msk.f32.vlgmr.msra.gmra.mrb[144].mxu0 %vm11247_vm6, %v11246_v0 }
0x1069   :  { %11771 = vmatpush1.bf16.msra.mxu0 %v17964_v40  ;;  %11812 = vmatpush1.bf16.msra.mxu1 %v17967_v57 }
0x106a   :  { %11772 = vmatprep.subr.bf16.mxu0 %v17972_v59  ;;  %11813 = vmatprep.subr.bf16.mxu1 %v17975_v46  ;;  %v18040_v59 = vld [vmem:[#allocation4] ss:$16 sps:$4 sm:$0xff]   ;;  %v18043_v46 = vld [vmem:[#allocation4 + $0x8] ss:$16 sps:$4 sm:$0xff]  }
0x106d   :  { %11773 = vmatpush1.bf16.msra.mxu0 %v17970_v43  ;;  %11814 = vmatpush1.bf16.msra.mxu1 %v17973_v54  ;;  %v18048_v54 = vld [vmem:[#allocation4 + $0x24] ss:$16 sps:$4 sm:$0xff]  }
0x106e   :  { %11774 = vmatprep.subr.bf16.mxu0 %v17978_v7  ;;  %11815 = vmatprep.subr.bf16.mxu1 %v17981_v18  ;;  %v18051_v7 = vld [vmem:[#allocation4 + $0x2c] ss:$16 sps:$4 sm:$0xff]  }
0x1071   :  { %11775 = vmatpush1.bf16.msra.mxu0 %v17976_v14  ;;  %11816 = vmatpush1.bf16.msra.mxu1 %v17979_v27  ;;  %v18046_v14 = vld [vmem:[#allocation4 + $0x20] ss:$16 sps:$4 sm:$0xff]   ;;  %v18049_v27 = vld [vmem:[#allocation4 + $0x28] ss:$16 sps:$4 sm:$0xff]  }
0x1072   :  { %11776 = vmatprep.subr.bf16.mxu0 %v17984_v38  ;;  %11817 = vmatprep.subr.bf16.mxu1 %v17987_v32  ;;  %v18054_v38 = vld [vmem:[#allocation4 + $0x44] ss:$16 sps:$4 sm:$0xff]   ;;  %v18057_v32 = vld [vmem:[#allocation4 + $0x4c] ss:$16 sps:$4 sm:$0xff]  }
0x1075   :  { %11777 = vmatpush1.bf16.msra.mxu0 %v17982_v21  ;;  %11818 = vmatpush1.bf16.msra.mxu1 %v17985_v41  ;;  %v18052_v21 = vld [vmem:[#allocation4 + $0x40] ss:$16 sps:$4 sm:$0xff]   ;;  %v18055_v41 = vld [vmem:[#allocation4 + $0x48] ss:$16 sps:$4 sm:$0xff]  }
0x1076   :  { %11778 = vmatprep.subr.bf16.mxu0 %v17990_v9  ;;  %11819 = vmatprep.subr.bf16.mxu1 %v17993_v42  ;;  %v18060_v9 = vld [vmem:[#allocation4 + $0x64] ss:$16 sps:$4 sm:$0xff]   ;;  %v18063_v42 = vld [vmem:[#allocation4 + $0x6c] ss:$16 sps:$4 sm:$0xff]  }
0x1079   :  { %11779 = vmatpush1.bf16.msra.mxu0 %v17988_v10  ;;  %11820 = vmatpush1.bf16.msra.mxu1 %v17991_v6  ;;  %v18058_v10 = vld [vmem:[#allocation4 + $0x60] ss:$16 sps:$4 sm:$0xff]   ;;  %v18061_v6 = vld [vmem:[#allocation4 + $0x68] ss:$16 sps:$4 sm:$0xff]  }
0x107a   :  { %11780 = vmatprep.subr.bf16.mxu0 %v17996_v51  ;;  %11821 = vmatprep.subr.bf16.mxu1 %v17999_v19  ;;  %v18066_v51 = vld [vmem:[#allocation4 + $0x84] ss:$16 sps:$4 sm:$0xff]   ;;  %v18069_v19 = vld [vmem:[#allocation4 + $0x8c] ss:$16 sps:$4 sm:$0xff]  }
0x107d   :  { %11781 = vmatpush1.bf16.msra.mxu0 %v17994_v34  ;;  %11822 = vmatpush1.bf16.msra.mxu1 %v17997_v48  ;;  %v18064_v34 = vld [vmem:[#allocation4 + $0x80] ss:$16 sps:$4 sm:$0xff]   ;;  %v18067_v48 = vld [vmem:[#allocation4 + $0x88] ss:$16 sps:$4 sm:$0xff]  }
0x107e   :  { %11782 = vmatprep.subr.bf16.mxu0 %v18002_v33  ;;  %11823 = vmatprep.subr.bf16.mxu1 %v18005_v2  ;;  %v18072_v33 = vld [vmem:[#allocation4 + $0xa4] ss:$16 sps:$4 sm:$0xff]   ;;  %v18075_v2 = vld [vmem:[#allocation4 + $0xac] ss:$16 sps:$4 sm:$0xff]  }
0x1081   :  { %11783 = vmatpush1.bf16.msra.mxu0 %v18000_v1  ;;  %11824 = vmatpush1.bf16.msra.mxu1 %v18003_v8  ;;  %v18070_v1 = vld [vmem:[#allocation4 + $0xa0] ss:$16 sps:$4 sm:$0xff]   ;;  %v18073_v8 = vld [vmem:[#allocation4 + $0xa8] ss:$16 sps:$4 sm:$0xff]  }
0x1082   :  { %11784 = vmatprep.subr.bf16.mxu0 %v18008_v15  ;;  %11825 = vmatprep.subr.bf16.mxu1 %v18011_v25  ;;  %v18078_v15 = vld [vmem:[#allocation4 + $0xc4] ss:$16 sps:$4 sm:$0xff]   ;;  %v18081_v25 = vld [vmem:[#allocation4 + $0xcc] ss:$16 sps:$4 sm:$0xff]  }
0x1085   :  { %11785 = vmatpush1.bf16.msra.mxu0 %v18006_v52  ;;  %11826 = vmatpush1.bf16.msra.mxu1 %v18009_v50  ;;  %v18076_v52 = vld [vmem:[#allocation4 + $0xc0] ss:$16 sps:$4 sm:$0xff]   ;;  %v18079_v50 = vld [vmem:[#allocation4 + $0xc8] ss:$16 sps:$4 sm:$0xff]  }
0x1086   :  { %11786 = vmatprep.subr.bf16.mxu0 %v18014_v37  ;;  %11827 = vmatprep.subr.bf16.mxu1 %v18017_v39  ;;  %v18084_v37 = vld [vmem:[#allocation4 + $0xe4] ss:$16 sps:$4 sm:$0xff]   ;;  %v18087_v39 = vld [vmem:[#allocation4 + $0xec] ss:$16 sps:$4 sm:$0xff]  }
0x1089   :  { %11787 = vmatpush1.bf16.msra.mxu0 %v18012_v20  ;;  %11828 = vmatpush1.bf16.msra.mxu1 %v18015_v24  ;;  %v18082_v20 = vld [vmem:[#allocation4 + $0xe0] ss:$16 sps:$4 sm:$0xff]   ;;  %v18085_v24 = vld [vmem:[#allocation4 + $0xe8] ss:$16 sps:$4 sm:$0xff]  }
0x108a   :  { %11788 = vmatprep.subr.bf16.mxu0 %v18020_v17  ;;  %11829 = vmatprep.subr.bf16.mxu1 %v18023_v53  ;;  %v18090_v17 = vld [vmem:[#allocation4 + $0x104] ss:$16 sps:$4 sm:$0xff]   ;;  %v18093_v53 = vld [vmem:[#allocation4 + $0x10c] ss:$16 sps:$4 sm:$0xff]  }
0x108d   :  { %11789 = vmatpush1.bf16.msra.mxu0 %v18018_v56  ;;  %11830 = vmatpush1.bf16.msra.mxu1 %v18021_v58  ;;  %v18088_v56 = vld [vmem:[#allocation4 + $0x100] ss:$16 sps:$4 sm:$0xff]   ;;  %v18091_v58 = vld [vmem:[#allocation4 + $0x108] ss:$16 sps:$4 sm:$0xff]  }
0x108e   :  { %11790 = vmatprep.subr.bf16.mxu0 %v18026_v23  ;;  %11831 = vmatprep.subr.bf16.mxu1 %v18029_v60  ;;  %v18096_v23 = vld [vmem:[#allocation4 + $0x124] ss:$16 sps:$4 sm:$0xff]   ;;  %v18099_v60 = vld [vmem:[#allocation4 + $0x12c] ss:$16 sps:$4 sm:$0xff]  }
0x1091   :  { %11791 = vmatpush1.bf16.msra.mxu0 %v18024_v61  ;;  %11832 = vmatpush1.bf16.msra.mxu1 %v18027_v29  ;;  %v18094_v61 = vld [vmem:[#allocation4 + $0x120] ss:$16 sps:$4 sm:$0xff]   ;;  %v18097_v29 = vld [vmem:[#allocation4 + $0x128] ss:$16 sps:$4 sm:$0xff]  }
0x1092   :  { %11792 = vmatprep.subr.bf16.mxu0 %v18032_v62  ;;  %11833 = vmatprep.subr.bf16.mxu1 %v18035_v3  ;;  %v18102_v62 = vld [vmem:[#allocation4 + $0x144] ss:$16 sps:$4 sm:$0xff]   ;;  %v18105_v3 = vld [vmem:[#allocation4 + $0x14c] ss:$16 sps:$4 sm:$0xff]  }
0x1095   :  { %11793 = vmatpush1.bf16.msra.mxu0 %v18030_v28  ;;  %11834 = vmatpush1.bf16.msra.mxu1 %v18033_v12  ;;  %v18100_v28 = vld [vmem:[#allocation4 + $0x140] ss:$16 sps:$4 sm:$0xff]   ;;  %v18103_v12 = vld [vmem:[#allocation4 + $0x148] ss:$16 sps:$4 sm:$0xff]  }
0x1096   :  { %15054 = vmatprep.subr.msk.bf16.mxu0 %vm11757_vm7, %v15051_v4  ;;  %15056 = vmatprep.subr.msk.bf16.mxu1 %vm11757_vm7, %v15053_v49  ;;  %v11372_v4 = vld [vmem:[#allocation4 + $0x180] sm:$0xff]  ;;  %v11373_v49 = vld [vmem:[#allocation4 + $0x188] sm:$0xff] }
0x1099   :  { %11795 = vmatpush1.bf16.msra.mxu0 %v11759_v35  ;;  %11836 = vmatpush1.bf16.msra.mxu1 %v11765_v11  ;;  %v15107_v35 = vcombine.high %v11372_v4, %v11372_v4  ;;  %v15109_v11 = vcombine.high %v11373_v49, %v11373_v49 }
0x109a   :  { %12117 = vmatprep.subr.bf16.mxu0 %v18042_v63  ;;  %12158 = vmatprep.subr.bf16.mxu1 %v18045_v26  ;;  %v15106_v63 = vcombine.low %v11372_v4, %v11372_v4  ;;  %v15108_v26 = vcombine.low %v11373_v49, %v11373_v49  ;;  %v18186_v4 = vld [vmem:[#allocation4 + $0x46c] ss:$16 sps:$4 sm:$0xff]   ;;  %v18184_v49 = vld [vmem:[#allocation4 + $0x468] ss:$16 sps:$4 sm:$0xff]  }
0x113b   :  { %v11445_v5 = vpop.f32.mrb[48].mxu1  ;;  %v24172_v44 = vpop.f32.mrb[144].mxu0 }
0x113c   :  { %v11447_v0 = vpop.f32.mrb[49].mxu1  ;;  %v11319_v40 = vpop.f32.mrb[145].mxu0  ;;  %v11450_v43 = vpack.c.bf16 %v11445_v5, %v11445_v5  ;;  %v12106_v5 = vsel %vm11757_vm7, %v15106_v63, 0 }
0x113d   :  { %v11451_v57 = vpack.c.bf16 %v11447_v0, %v11447_v0  ;;  %v11323_v18 = vpack.c.bf16 %v11319_v40, %v11319_v40  ;;  %v12112_v0 = vsel %vm11757_vm7, %v15108_v26, 0  ;;  %v18118_v40 = vld [vmem:[#allocation4 + $0x324] ss:$16 sps:$4 sm:$0xff]  }
0x113f   :  { %15055 = vmatprep.mubr.msk.bf16.mxu0 %vm11753_vm8, %v11451_v57  ;;  %15057 = vmatprep.mubr.msk.bf16.mxu1 %vm11753_vm8, %v11451_v57  ;;  %v18116_v57 = vld [vmem:[#allocation4 + $0x320] ss:$16 sps:$4 sm:$0xff]  }
0x1140   :  { %11803 = vmatmul.mubr.bf16.vlgmr.msra.gmra.mrb[148].mxu0 %v11450_v43  ;;  %11844 = vmatmul.mubr.bf16.vlgmr.msra.gmra.mrb[52].mxu1 %v11450_v43  ;;  %v18119_v43 = vld [vmem:[#allocation4 + $0x340] ss:$16 sps:$4 sm:$0xff]  }
0x1141   :  { %12118 = vmatpush1.bf16.msra.mxu0 %v18040_v59  ;;  %12159 = vmatpush1.bf16.msra.mxu1 %v18043_v46  ;;  %v11322_v59 = vpack.c.bf16 %v24172_v44, %v24172_v44  ;;  %v18121_v46 = vld [vmem:[#allocation4 + $0x344] ss:$16 sps:$4 sm:$0xff]  }
0x1142   :  { %12119 = vmatprep.subr.bf16.mxu0 %v18048_v54  ;;  %12160 = vmatprep.subr.bf16.mxu1 %v18051_v7  ;;  %v18124_v54 = vld [vmem:[#allocation4 + $0x364] ss:$16 sps:$4 sm:$0xff]   ;;  %v18122_v7 = vld [vmem:[#allocation4 + $0x360] ss:$16 sps:$4 sm:$0xff]  }
0x1143   :  { %15111 = vmatprep.mubr.msk.bf16.mxu0 %vm11753_vm8, %v11323_v18  ;;  %15113 = vmatprep.mubr.msk.bf16.mxu1 %vm11753_vm8, %v11323_v18  ;;  %v15114_v44 = vld [vmem:[%s24358_s11 + $0x10] sm:$0xff] }
0x1144   :  { %v18127_v18 = vld [vmem:[#allocation4 + $0x384] ss:$16 sps:$4 sm:$0xff]  }
0x1145   :  { %12120 = vmatpush1.bf16.msra.mxu0 %v18046_v14  ;;  %12161 = vmatpush1.bf16.msra.mxu1 %v18049_v27  ;;  %v18125_v14 = vld [vmem:[#allocation4 + $0x380] ss:$16 sps:$4 sm:$0xff]   ;;  %v18130_v27 = vld [vmem:[#allocation4 + $0x3a4] ss:$16 sps:$4 sm:$0xff]  }
0x1146   :  { %12121 = vmatprep.subr.bf16.mxu0 %v18054_v38  ;;  %12162 = vmatprep.subr.bf16.mxu1 %v18057_v32  ;;  %v18128_v38 = vld [vmem:[#allocation4 + $0x3a0] ss:$16 sps:$4 sm:$0xff]   ;;  %v18133_v32 = vld [vmem:[#allocation4 + $0x3c4] ss:$16 sps:$4 sm:$0xff]  }
0x1149   :  { %12122 = vmatpush1.bf16.msra.mxu0 %v18052_v21  ;;  %12163 = vmatpush1.bf16.msra.mxu1 %v18055_v41  ;;  %v18131_v21 = vld [vmem:[#allocation4 + $0x3c0] ss:$16 sps:$4 sm:$0xff]   ;;  %v18136_v41 = vld [vmem:[#allocation4 + $0x3e4] ss:$16 sps:$4 sm:$0xff]  }
0x114a   :  { %12123 = vmatprep.subr.bf16.mxu0 %v18060_v9  ;;  %12164 = vmatprep.subr.bf16.mxu1 %v18063_v42  ;;  %v18134_v9 = vld [vmem:[#allocation4 + $0x3e0] ss:$16 sps:$4 sm:$0xff]   ;;  %v18139_v42 = vld [vmem:[#allocation4 + $0x404] ss:$16 sps:$4 sm:$0xff]  }
0x114d   :  { %12124 = vmatpush1.bf16.msra.mxu0 %v18058_v10  ;;  %12165 = vmatpush1.bf16.msra.mxu1 %v18061_v6  ;;  %v18137_v10 = vld [vmem:[#allocation4 + $0x400] ss:$16 sps:$4 sm:$0xff]   ;;  %v18142_v6 = vld [vmem:[#allocation4 + $0x424] ss:$16 sps:$4 sm:$0xff]  }
0x114e   :  { %12125 = vmatprep.subr.bf16.mxu0 %v18066_v51  ;;  %12166 = vmatprep.subr.bf16.mxu1 %v18069_v19  ;;  %v18140_v51 = vld [vmem:[#allocation4 + $0x420] ss:$16 sps:$4 sm:$0xff]   ;;  %v18145_v19 = vld [vmem:[#allocation4 + $0x444] ss:$16 sps:$4 sm:$0xff]  }
0x1151   :  { %12126 = vmatpush1.bf16.msra.mxu0 %v18064_v34  ;;  %12167 = vmatpush1.bf16.msra.mxu1 %v18067_v48  ;;  %v18143_v34 = vld [vmem:[#allocation4 + $0x440] ss:$16 sps:$4 sm:$0xff]   ;;  %v18148_v48 = vld [vmem:[#allocation4 + $0x464] ss:$16 sps:$4 sm:$0xff]  }
0x1152   :  { %12127 = vmatprep.subr.bf16.mxu0 %v18072_v33  ;;  %12168 = vmatprep.subr.bf16.mxu1 %v18075_v2  ;;  %v18154_v33 = vld [vmem:[#allocation4 + $0x328] ss:$16 sps:$4 sm:$0xff]   ;;  %v18156_v2 = vld [vmem:[#allocation4 + $0x32c] ss:$16 sps:$4 sm:$0xff]  }
0x1155   :  { %12128 = vmatpush1.bf16.msra.mxu0 %v18070_v1  ;;  %12169 = vmatpush1.bf16.msra.mxu1 %v18073_v8  ;;  %v18159_v1 = vld [vmem:[#allocation4 + $0x34c] ss:$16 sps:$4 sm:$0xff]   ;;  %v18146_v8 = vld [vmem:[#allocation4 + $0x460] ss:$16 sps:$4 sm:$0xff]  }
0x1156   :  { %12129 = vmatprep.subr.bf16.mxu0 %v18078_v15  ;;  %12170 = vmatprep.subr.bf16.mxu1 %v18081_v25  ;;  %v18157_v15 = vld [vmem:[#allocation4 + $0x348] ss:$16 sps:$4 sm:$0xff]   ;;  %v18151_v25 = vld [vmem:[#allocation4 + $0x484] ss:$16 sps:$4 sm:$0xff]  }
0x1159   :  { %12130 = vmatpush1.bf16.msra.mxu0 %v18076_v52  ;;  %12171 = vmatpush1.bf16.msra.mxu1 %v18079_v50  ;;  %v18162_v52 = vld [vmem:[#allocation4 + $0x36c] ss:$16 sps:$4 sm:$0xff]   ;;  %v12326_v50 = vld [vmem:[#allocation4 + $0x4a0] sm:$0xff] }
0x115a   :  { %12131 = vmatprep.subr.bf16.mxu0 %v18084_v37  ;;  %12172 = vmatprep.subr.bf16.mxu1 %v18087_v39  ;;  %v18149_v37 = vld [vmem:[#allocation4 + $0x480] ss:$16 sps:$4 sm:$0xff]   ;;  %v18160_v39 = vld [vmem:[#allocation4 + $0x368] ss:$16 sps:$4 sm:$0xff]  }
0x115d   :  { %12132 = vmatpush1.bf16.msra.mxu0 %v18082_v20  ;;  %12173 = vmatpush1.bf16.msra.mxu1 %v18085_v24  ;;  %v15165_v20 = vcombine.high %v12326_v50, %v12326_v50  ;;  %v15164_v24 = vcombine.low %v12326_v50, %v12326_v50  ;;  %v18203_v50 = vld [vmem:[#allocation4 + $0x4dc] ss:$16 sps:$4 sm:$0xff]  }
0x115e   :  { %12133 = vmatprep.subr.bf16.mxu0 %v18090_v17  ;;  %12174 = vmatprep.subr.bf16.mxu1 %v18093_v53  ;;  %v18165_v17 = vld [vmem:[#allocation4 + $0x38c] ss:$16 sps:$4 sm:$0xff]   ;;  %v18163_v53 = vld [vmem:[#allocation4 + $0x388] ss:$16 sps:$4 sm:$0xff]  }
0x1161   :  { %12134 = vmatpush1.bf16.msra.mxu0 %v18088_v56  ;;  %12175 = vmatpush1.bf16.msra.mxu1 %v18091_v58  ;;  %v12582_v56 = vsel %vm11757_vm7, %v15164_v24, 0  ;;  %v18168_v58 = vld [vmem:[#allocation4 + $0x3ac] ss:$16 sps:$4 sm:$0xff]  }
0x1162   :  { %12135 = vmatprep.subr.bf16.mxu0 %v18096_v23  ;;  %12176 = vmatprep.subr.bf16.mxu1 %v18099_v60  ;;  %v18166_v23 = vld [vmem:[#allocation4 + $0x3a8] ss:$16 sps:$4 sm:$0xff]   ;;  %v18171_v60 = vld [vmem:[#allocation4 + $0x3cc] ss:$16 sps:$4 sm:$0xff]  }
0x1163   :  { %v18215_v24 = vld [vmem:[#allocation4 + $0x51c] ss:$16 sps:$4 sm:$0xff]  }
0x1165   :  { %12136 = vmatpush1.bf16.msra.mxu0 %v18094_v61  ;;  %12177 = vmatpush1.bf16.msra.mxu1 %v18097_v29  ;;  %v18169_v61 = vld [vmem:[#allocation4 + $0x3c8] ss:$16 sps:$4 sm:$0xff]   ;;  %v18174_v29 = vld [vmem:[#allocation4 + $0x3ec] ss:$16 sps:$4 sm:$0xff]  }
0x1166   :  { %12137 = vmatprep.subr.bf16.mxu0 %v18102_v62  ;;  %12178 = vmatprep.subr.bf16.mxu1 %v18105_v3  ;;  %v18172_v62 = vld [vmem:[#allocation4 + $0x3e8] ss:$16 sps:$4 sm:$0xff]   ;;  %v18177_v3 = vld [vmem:[#allocation4 + $0x40c] ss:$16 sps:$4 sm:$0xff]  }
0x1169   :  { %12138 = vmatpush1.bf16.msra.mxu0 %v18100_v28  ;;  %12179 = vmatpush1.bf16.msra.mxu1 %v18103_v12  ;;  %v18175_v28 = vld [vmem:[#allocation4 + $0x408] ss:$16 sps:$4 sm:$0xff]   ;;  %v18180_v12 = vld [vmem:[#allocation4 + $0x42c] ss:$16 sps:$4 sm:$0xff]  }
0x116a   :  { %12139 = vmatprep.subr.bf16.mxu0 %v18108_v47  ;;  %12180 = vmatprep.subr.bf16.mxu1 %v18111_v31  ;;  %v18178_v47 = vld [vmem:[#allocation4 + $0x428] ss:$16 sps:$4 sm:$0xff]   ;;  %v18183_v31 = vld [vmem:[#allocation4 + $0x44c] ss:$16 sps:$4 sm:$0xff]  }
0x116d   :  { %12140 = vmatpush1.bf16.msra.mxu0 %v18106_v55  ;;  %12181 = vmatpush1.bf16.msra.mxu1 %v18109_v13  ;;  %v18187_v55 = vld [vmem:[#allocation4 + $0x488] ss:$16 sps:$4 sm:$0xff]   ;;  %v18189_v13 = vld [vmem:[#allocation4 + $0x48c] ss:$16 sps:$4 sm:$0xff]  }
0x116e   :  { %15110 = vmatprep.subr.msk.bf16.mxu0 %vm11757_vm7, %v15107_v35  ;;  %15112 = vmatprep.subr.msk.bf16.mxu1 %vm11757_vm7, %v15109_v11  ;;  %v12327_v35 = vld [vmem:[#allocation4 + $0x4a8] sm:$0xff] }
0x116f   :  { %v15167_v11 = vcombine.high %v12327_v35, %v12327_v35  ;;  %v15166_v63 = vcombine.low %v12327_v35, %v12327_v35  ;;  %v18245_v35 = vld [vmem:[#allocation4 + $0x5bc] ss:$16 sps:$4 sm:$0xff]  }
0x1171   :  { %12142 = vmatpush1.bf16.msra.mxu0 %v12106_v5  ;;  %12183 = vmatpush1.bf16.msra.mxu1 %v12112_v0  ;;  %v12588_v26 = vsel %vm11757_vm7, %v15166_v63, 0  ;;  %v18194_v5 = vld [vmem:[#allocation4 + $0x4b4] ss:$16 sps:$4 sm:$0xff]   ;;  %v18243_v63 = vld [vmem:[#allocation4 + $0x5b8] ss:$16 sps:$4 sm:$0xff]  }
0x1172   :  { %16791 = vmatprep.subr.bf16.mxu0 %v24146_v30  ;;  %12593 = vmatprep.subr.bf16.mxu1 %v18118_v40 }
0x1174   :  { %12150 = vmatmul.mubr.bf16.vlgmr.msra.gmra.mrb[152].mxu0 %v11322_v59  ;;  %12191 = vmatmul.mubr.bf16.vlgmr.msra.gmra.mrb[56].mxu1 %v11322_v59 }
0x1175   :  { %16793 = vmatpush1.bf16.msra.mxu0 %v24144_v36  ;;  %12594 = vmatpush1.bf16.msra.mxu1 %v18116_v57 }
0x1176   :  { %16795 = vmatprep.subr.bf16.mxu0 %v24154_v16  ;;  %12595 = vmatprep.subr.bf16.mxu1 %v18121_v46 }
0x1177   :  { %12268 = vmatprep.mubr.f32.mxu0 %v24922_v45 }
0x1179   :  { %16797 = vmatpush1.bf16.msra.mxu0 %v24152_v22  ;;  %12596 = vmatpush1.bf16.msra.mxu1 %v18119_v43 }
0x117a   :  { %12597 = vmatprep.subr.bf16.mxu1 %v18124_v54  ;;  %12634 = vmatprep.subr.bf16.mxu0 %v18156_v2  ;;  %v18200_v2 = vld [vmem:[#allocation4 + $0x4d4] ss:$16 sps:$4 sm:$0xff]  }
0x117c   :  { %15115 = vmatmul.mubr.msk.f32.vlgmr.msra.gmra.mrb[146].mxu0 %vm11247_vm6, %v15114_v44 }
0x117d   :  { %12598 = vmatpush1.bf16.msra.mxu1 %v18122_v7  ;;  %12635 = vmatpush1.bf16.msra.mxu0 %v18154_v33  ;;  %v18192_v33 = vld [vmem:[#allocation4 + $0x4b0] ss:$16 sps:$4 sm:$0xff]  }
0x117e   :  { %12599 = vmatprep.subr.bf16.mxu1 %v18127_v18  ;;  %12636 = vmatprep.subr.bf16.mxu0 %v18159_v1  ;;  %v18197_v1 = vld [vmem:[#allocation4 + $0x4bc] ss:$16 sps:$4 sm:$0xff]  }
0x1181   :  { %12600 = vmatpush1.bf16.msra.mxu1 %v18125_v14  ;;  %12637 = vmatpush1.bf16.msra.mxu0 %v18157_v15  ;;  %v18206_v15 = vld [vmem:[#allocation4 + $0x4f4] ss:$16 sps:$4 sm:$0xff]  }
0x1182   :  { %12601 = vmatprep.subr.bf16.mxu1 %v18130_v27  ;;  %12638 = vmatprep.subr.bf16.mxu0 %v18162_v52  ;;  %v18195_v52 = vld [vmem:[#allocation4 + $0x4b8] ss:$16 sps:$4 sm:$0xff]  }
0x1185   :  { %12602 = vmatpush1.bf16.msra.mxu1 %v18128_v38  ;;  %12639 = vmatpush1.bf16.msra.mxu0 %v18160_v39  ;;  %v18210_v39 = vld [vmem:[#allocation4 + $0x510] ss:$16 sps:$4 sm:$0xff]  }
0x1186   :  { %12603 = vmatprep.subr.bf16.mxu1 %v18133_v32  ;;  %12640 = vmatprep.subr.bf16.mxu0 %v18165_v17  ;;  %v18216_v17 = vld [vmem:[#allocation4 + $0x530] ss:$16 sps:$4 sm:$0xff]  }
0x1189   :  { %12604 = vmatpush1.bf16.msra.mxu1 %v18131_v21  ;;  %12641 = vmatpush1.bf16.msra.mxu0 %v18163_v53  ;;  %v18224_v53 = vld [vmem:[#allocation4 + $0x554] ss:$16 sps:$4 sm:$0xff]  }
0x118a   :  { %12605 = vmatprep.subr.bf16.mxu1 %v18136_v41  ;;  %12642 = vmatprep.subr.bf16.mxu0 %v18168_v58  ;;  %v18221_v58 = vld [vmem:[#allocation4 + $0x53c] ss:$16 sps:$4 sm:$0xff]  }
0x118d   :  { %12606 = vmatpush1.bf16.msra.mxu1 %v18134_v9  ;;  %12643 = vmatpush1.bf16.msra.mxu0 %v18166_v23  ;;  %v18222_v23 = vld [vmem:[#allocation4 + $0x550] ss:$16 sps:$4 sm:$0xff]  }
0x118e   :  { %12607 = vmatprep.subr.bf16.mxu1 %v18139_v42  ;;  %12644 = vmatprep.subr.bf16.mxu0 %v18171_v60  ;;  %v18230_v60 = vld [vmem:[#allocation4 + $0x574] ss:$16 sps:$4 sm:$0xff]  }
0x1191   :  { %12608 = vmatpush1.bf16.msra.mxu1 %v18137_v10  ;;  %12645 = vmatpush1.bf16.msra.mxu0 %v18169_v61  ;;  %v18219_v61 = vld [vmem:[#allocation4 + $0x538] ss:$16 sps:$4 sm:$0xff]  }
0x1192   :  { %12609 = vmatprep.subr.bf16.mxu1 %v18142_v6  ;;  %12646 = vmatprep.subr.bf16.mxu0 %v18174_v29  ;;  %v18227_v29 = vld [vmem:[#allocation4 + $0x55c] ss:$16 sps:$4 sm:$0xff]  }
0x1195   :  { %12610 = vmatpush1.bf16.msra.mxu1 %v18140_v51  ;;  %12647 = vmatpush1.bf16.msra.mxu0 %v18172_v62  ;;  %v18228_v62 = vld [vmem:[#allocation4 + $0x570] ss:$16 sps:$4 sm:$0xff]  }
0x1196   :  { %12611 = vmatprep.subr.bf16.mxu1 %v18145_v19  ;;  %12648 = vmatprep.subr.bf16.mxu0 %v18177_v3  ;;  %v18236_v3 = vld [vmem:[#allocation4 + $0x594] ss:$16 sps:$4 sm:$0xff]  }
0x1199   :  { %12612 = vmatpush1.bf16.msra.mxu1 %v18143_v34  ;;  %12649 = vmatpush1.bf16.msra.mxu0 %v18175_v28  ;;  %v18225_v28 = vld [vmem:[#allocation4 + $0x558] ss:$16 sps:$4 sm:$0xff]  }
0x119a   :  { %12613 = vmatprep.subr.bf16.mxu1 %v18148_v48  ;;  %12650 = vmatprep.subr.bf16.mxu0 %v18180_v12  ;;  %v18233_v12 = vld [vmem:[#allocation4 + $0x57c] ss:$16 sps:$4 sm:$0xff]  }
0x119d   :  { %12614 = vmatpush1.bf16.msra.mxu1 %v18146_v8  ;;  %12651 = vmatpush1.bf16.msra.mxu0 %v18178_v47  ;;  %v18198_v8 = vld [vmem:[#allocation4 + $0x4d0] ss:$16 sps:$4 sm:$0xff]  }
0x119e   :  { %12615 = vmatprep.subr.bf16.mxu1 %v18151_v25  ;;  %12652 = vmatprep.subr.bf16.mxu0 %v18183_v31  ;;  %v15172_v25 = vld [vmem:[%s24358_s11 + $0x18] sm:$0xff]  ;;  %v18234_v47 = vld [vmem:[#allocation4 + $0x590] ss:$16 sps:$4 sm:$0xff]   ;;  %v18242_v31 = vld [vmem:[#allocation4 + $0x5b4] ss:$16 sps:$4 sm:$0xff]  }
0x11a1   :  { %12616 = vmatpush1.bf16.msra.mxu1 %v18149_v37  ;;  %v18209_v37 = vld [vmem:[#allocation4 + $0x4fc] ss:$16 sps:$4 sm:$0xff]  }
0x11a2   :  { %15168 = vmatprep.subr.msk.bf16.mxu1 %vm11757_vm7, %v15165_v20  ;;  %v18207_v20 = vld [vmem:[#allocation4 + $0x4f8] ss:$16 sps:$4 sm:$0xff]  }
0x11a5   :  { %12618 = vmatpush1.bf16.msra.mxu1 %v12582_v56  ;;  %v18213_v56 = vld [vmem:[#allocation4 + $0x518] ss:$16 sps:$4 sm:$0xff]  }
0x11a6   :  { %16799 = vmatprep.subr.bf16.mxu1 %v24146_v30  ;;  %v18181_v30 = vld [vmem:[#allocation4 + $0x448] ss:$16 sps:$4 sm:$0xff]  }
0x11a7   :  { %12653 = vmatpush1.bf16.msra.mxu0 %v18181_v30  ;;  %v18231_v30 = vld [vmem:[#allocation4 + $0x578] ss:$16 sps:$4 sm:$0xff]  }
0x11a8   :  { %12654 = vmatprep.subr.bf16.mxu0 %v18186_v4  ;;  %v18239_v4 = vld [vmem:[#allocation4 + $0x59c] ss:$16 sps:$4 sm:$0xff]  }
0x11ab   :  { %12655 = vmatpush1.bf16.msra.mxu0 %v18184_v49  ;;  %v18240_v49 = vld [vmem:[#allocation4 + $0x5b0] ss:$16 sps:$4 sm:$0xff]  }
0x11ac   :  { %12656 = vmatprep.subr.bf16.mxu0 %v18189_v13  ;;  %v18237_v13 = vld [vmem:[#allocation4 + $0x598] ss:$16 sps:$4 sm:$0xff]  }
0x11af   :  { %12657 = vmatpush1.bf16.msra.mxu0 %v18187_v55  ;;  %v18248_v55 = vld [vmem:[#allocation4 + $0x5d4] ss:$16 sps:$4 sm:$0xff]  }
0x11b0   :  { %15170 = vmatprep.subr.msk.bf16.mxu0 %vm11757_vm7, %v15167_v11  ;;  %v18246_v11 = vld [vmem:[#allocation4 + $0x5d0] ss:$16 sps:$4 sm:$0xff]  }
0x11b3   :  { %12659 = vmatpush1.bf16.msra.mxu0 %v12588_v26  ;;  %v18251_v26 = vld [vmem:[#allocation4 + $0x5dc] ss:$16 sps:$4 sm:$0xff]  }
0x11b4   :  { %13073 = vmatprep.subr.bf16.mxu0 %v18194_v5  ;;  %v18249_v5 = vld [vmem:[#allocation4 + $0x5d8] ss:$16 sps:$4 sm:$0xff]  }
0x1213   :  { %v11804_v0 = vpop.f32.mrb[148].mxu0  ;;  %v11845_v40 = vpop.f32.mrb[52].mxu1 }
0x1214   :  { %v11806_v57 = vpop.f32.mrb[149].mxu0  ;;  %v11847_v59 = vpop.f32.mrb[53].mxu1 }
0x1215   :  { %v11808_v46 = vpop.f32.mrb[150].mxu0  ;;  %v11849_v43 = vpop.f32.mrb[54].mxu1 }
0x1216   :  { %v11809_v54 = vpop.f32.mrb[151].mxu0  ;;  %v11850_v44 = vpop.f32.mrb[55].mxu1  ;;  %v18258_v46 = vld [vmem:[#allocation4 + $0x610] ss:$16 sps:$4 sm:$0xff]   ;;  %v18260_v43 = vld [vmem:[#allocation4 + $0x614] ss:$16 sps:$4 sm:$0xff]  }
0x1217   :  { %v18261_v54 = vld [vmem:[#allocation4 + $0x618] ss:$16 sps:$4 sm:$0xff]   ;;  %v18263_v44 = vld [vmem:[#allocation4 + $0x61c] ss:$16 sps:$4 sm:$0xff]  }
0x1247   :  { %v12151_v7 = vpop.f32.mrb[152].mxu0  ;;  %v12192_v18 = vpop.f32.mrb[56].mxu1 }
0x1248   :  { %v24198_v14 = vadd.f32 %v12151_v7, %v11804_v0  ;;  %v24200_v27 = vadd.f32 %v12192_v18, %v11845_v40  ;;  %v12153_v38 = vpop.f32.mrb[153].mxu0  ;;  %v12194_v32 = vpop.f32.mrb[57].mxu1  ;;  %v18254_v0 = vld [vmem:[#allocation4 + $0x5f4] ss:$16 sps:$4 sm:$0xff]   ;;  %v18257_v40 = vld [vmem:[#allocation4 + $0x5fc] ss:$16 sps:$4 sm:$0xff]  }
0x1249   :  { %v24202_v21 = vadd.f32 %v12153_v38, %v11806_v57  ;;  %v24204_v41 = vadd.f32 %v12194_v32, %v11847_v59  ;;  %v12155_v9 = vpop.f32.mrb[154].mxu0  ;;  %v12196_v42 = vpop.f32.mrb[58].mxu1  ;;  %v18252_v57 = vld [vmem:[#allocation4 + $0x5f0] ss:$16 sps:$4 sm:$0xff]   ;;  %v18255_v59 = vld [vmem:[#allocation4 + $0x5f8] ss:$16 sps:$4 sm:$0xff]  }
0x124a   :  { %v12156_v10 = vpop.f32.mrb[155].mxu0  ;;  %v12197_v6 = vpop.f32.mrb[59].mxu1  ;;  %v12806_v7 = vld [vmem:[#allocation4 + $0x630] sm:$0xff]  ;;  %v12807_v18 = vld [vmem:[#allocation4 + $0x638] sm:$0xff] }
0x124b   :  { %v15223_v38 = vcombine.high %v12806_v7, %v12806_v7  ;;  %v15225_v32 = vcombine.high %v12807_v18, %v12807_v18  ;;  %v15222_v9 = vcombine.low %v12806_v7, %v12806_v7  ;;  %v15224_v42 = vcombine.low %v12807_v18, %v12807_v18  ;;  %v24926_v18 = vld [vmem:[#allocation11_spill] sm:$0xff] }
0x124d   :  { %v13062_v10 = vsel %vm11757_vm7, %v15222_v9, 0  ;;  %v13068_v6 = vsel %vm11757_vm7, %v15224_v42, 0 }
0x124f   :  { %v12270_v51 = vpop.f32.mrb[146].mxu0 }
0x1250   :  { %v12272_v19 = vpop.f32.mrb[147].mxu0  ;;  %v12275_v48 = vpack.c.bf16 %v12270_v51, %v12270_v51  ;;  %v18268_v51 = vld [vmem:[%s24361_s14 + $0x40] sm:$0xff]  }
0x1251   :  { %v12276_v34 = vpack.c.bf16 %v12272_v19, %v12272_v19  ;;  %v18269_v19 = vld [vmem:[%s24361_s14 + $0xc0] sm:$0xff]  }
0x1253   :  { %15169 = vmatprep.mubr.msk.bf16.mxu1 %vm11753_vm8, %v12276_v34  ;;  %15171 = vmatprep.mubr.msk.bf16.mxu0 %vm11753_vm8, %v12276_v34 }
0x1254   :  { %12626 = vmatmul.mubr.bf16.vlgmr.msra.gmra.mrb[60].mxu1 %v12275_v48  ;;  %12667 = vmatmul.mubr.bf16.vlgmr.msra.gmra.mrb[156].mxu0 %v12275_v48 }
0x1255   :  { %16801 = vmatpush1.bf16.msra.mxu1 %v24144_v36  ;;  %12748 = vmatprep.mubr.f32.mxu1 %v24922_v45  ;;  %v18204_v36 = vld [vmem:[#allocation4 + $0x4f0] ss:$16 sps:$4 sm:$0xff]   ;;  %v18212_v45 = vld [vmem:[#allocation4 + $0x514] ss:$16 sps:$4 sm:$0xff]  }
0x1256   :  { %16803 = vmatprep.subr.bf16.mxu1 %v24154_v16  ;;  %13074 = vmatpush1.bf16.msra.mxu0 %v18192_v33  ;;  %v18201_v16 = vld [vmem:[#allocation4 + $0x4d8] ss:$16 sps:$4 sm:$0xff]  }
0x1257   :  { %13075 = vmatprep.subr.bf16.mxu0 %v18200_v2 }
0x1259   :  { %16805 = vmatpush1.bf16.msra.mxu1 %v24152_v22  ;;  %v18218_v22 = vld [vmem:[#allocation4 + $0x534] ss:$16 sps:$4 sm:$0xff]  }
0x125a   :  { %13114 = vmatprep.subr.bf16.mxu1 %v18197_v1  ;;  %13076 = vmatpush1.bf16.msra.mxu0 %v18198_v8 }
0x125b   :  { %13077 = vmatprep.subr.bf16.mxu0 %v18206_v15 }
0x125c   :  { %15173 = vmatmul.mubr.msk.f32.vlgmr.msra.gmra.mrb[50].mxu1 %vm11247_vm6, %v15172_v25 }
0x125d   :  { %13115 = vmatpush1.bf16.msra.mxu1 %v18195_v52 }
0x125e   :  { %13116 = vmatprep.subr.bf16.mxu1 %v18203_v50  ;;  %13078 = vmatpush1.bf16.msra.mxu0 %v18204_v36 }
0x125f   :  { %13079 = vmatprep.subr.bf16.mxu0 %v18212_v45 }
0x1261   :  { %13117 = vmatpush1.bf16.msra.mxu1 %v18201_v16 }
0x1262   :  { %13118 = vmatprep.subr.bf16.mxu1 %v18209_v37  ;;  %13080 = vmatpush1.bf16.msra.mxu0 %v18210_v39 }
0x1263   :  { %13081 = vmatprep.subr.bf16.mxu0 %v18218_v22  ;;  %v18273_v22 = vld [vmem:[%s24361_s14 + $0xc8] sm:$0xff]  }
0x1265   :  { %13119 = vmatpush1.bf16.msra.mxu1 %v18207_v20  ;;  %v18274_v20 = vld [vmem:[%s24361_s14 + $0x8] sm:$0xff]  }
0x1266   :  { %13120 = vmatprep.subr.bf16.mxu1 %v18215_v24  ;;  %13082 = vmatpush1.bf16.msra.mxu0 %v18216_v17  ;;  %v18275_v24 = vld [vmem:[%s24361_s14 + $0x88] sm:$0xff]   ;;  %v18276_v17 = vld [vmem:[%s24361_s14 + $0x50] sm:$0xff]  }
0x1267   :  { %13083 = vmatprep.subr.bf16.mxu0 %v18224_v53  ;;  %v18277_v53 = vld [vmem:[%s24361_s14 + $0xd0] sm:$0xff]  }
0x1269   :  { %13121 = vmatpush1.bf16.msra.mxu1 %v18213_v56  ;;  %v18278_v56 = vld [vmem:[%s24361_s14 + $0x10] sm:$0xff]  }
0x126a   :  { %13122 = vmatprep.subr.bf16.mxu1 %v18221_v58  ;;  %13084 = vmatpush1.bf16.msra.mxu0 %v18222_v23  ;;  %v18279_v58 = vld [vmem:[%s24361_s14 + $0x90] sm:$0xff]   ;;  %v18280_v23 = vld [vmem:[%s24361_s14 + $0x58] sm:$0xff]  }
0x126b   :  { %13085 = vmatprep.subr.bf16.mxu0 %v18230_v60  ;;  %v18281_v60 = vld [vmem:[%s24361_s14 + $0xd8] sm:$0xff]  }
0x126d   :  { %13123 = vmatpush1.bf16.msra.mxu1 %v18219_v61  ;;  %v18282_v61 = vld [vmem:[%s24361_s14 + $0x18] sm:$0xff]  }
0x126e   :  { %13124 = vmatprep.subr.bf16.mxu1 %v18227_v29  ;;  %13086 = vmatpush1.bf16.msra.mxu0 %v18228_v62  ;;  %v18283_v29 = vld [vmem:[%s24361_s14 + $0x98] sm:$0xff]   ;;  %v18284_v62 = vld [vmem:[%s24361_s14 + $0x60] sm:$0xff]  }
0x126f   :  { %13087 = vmatprep.subr.bf16.mxu0 %v18236_v3  ;;  %v18285_v3 = vld [vmem:[%s24361_s14 + $0xe0] sm:$0xff]  }
0x1271   :  { %13125 = vmatpush1.bf16.msra.mxu1 %v18225_v28  ;;  %v18286_v28 = vld [vmem:[%s24361_s14 + $0x20] sm:$0xff]  }
0x1272   :  { %13126 = vmatprep.subr.bf16.mxu1 %v18233_v12  ;;  %13088 = vmatpush1.bf16.msra.mxu0 %v18234_v47  ;;  %v18287_v12 = vld [vmem:[%s24361_s14 + $0xa0] sm:$0xff]   ;;  %v18288_v47 = vld [vmem:[%s24361_s14 + $0x68] sm:$0xff]  }
0x1273   :  { %13089 = vmatprep.subr.bf16.mxu0 %v18242_v31  ;;  %v18289_v31 = vld [vmem:[%s24361_s14 + $0xe8] sm:$0xff]  }
0x1275   :  { %13127 = vmatpush1.bf16.msra.mxu1 %v18231_v30  ;;  %v18290_v30 = vld [vmem:[%s24361_s14 + $0x28] sm:$0xff]  }
0x1276   :  { %13128 = vmatprep.subr.bf16.mxu1 %v18239_v4  ;;  %13090 = vmatpush1.bf16.msra.mxu0 %v18240_v49  ;;  %v18291_v4 = vld [vmem:[%s24361_s14 + $0xa8] sm:$0xff]   ;;  %v18292_v49 = vld [vmem:[%s24361_s14 + $0x70] sm:$0xff]  }
0x1277   :  { %13091 = vmatprep.subr.bf16.mxu0 %v18248_v55  ;;  %v18293_v55 = vld [vmem:[%s24361_s14 + $0xf0] sm:$0xff]  }
0x1279   :  { %13129 = vmatpush1.bf16.msra.mxu1 %v18237_v13  ;;  %v18294_v13 = vld [vmem:[%s24361_s14 + $0x30] sm:$0xff]  }
0x127a   :  { %13130 = vmatprep.subr.bf16.mxu1 %v18245_v35  ;;  %13092 = vmatpush1.bf16.msra.mxu0 %v18246_v11  ;;  %v18295_v35 = vld [vmem:[%s24361_s14 + $0xb0] sm:$0xff]   ;;  %v18296_v11 = vld [vmem:[%s24361_s14 + $0x78] sm:$0xff]  }
0x127b   :  { %13093 = vmatprep.subr.bf16.mxu0 %v18254_v0  ;;  %v13159_v0 = vld [vmem:[%s24360_s13] sm:$0xf] }
0x127d   :  { %13131 = vmatpush1.bf16.msra.mxu1 %v18243_v63  ;;  %v18297_v63 = vld [vmem:[%s24361_s14 + $0xf8] ss:$0 sps:$4 sm:$0x33]  }
0x127e   :  { %13132 = vmatprep.subr.bf16.mxu1 %v18251_v26  ;;  %13094 = vmatpush1.bf16.msra.mxu0 %v18252_v57  ;;  %v18298_v26 = vld [vmem:[%s24361_s14 + $0x38] sm:$0xff]  }
0x127f   :  { %13095 = vmatprep.subr.bf16.mxu0 %v18260_v43 }
0x1281   :  { %13133 = vmatpush1.bf16.msra.mxu1 %v18249_v5  ;;  %v18299_v5 = vld [vmem:[%s24361_s14 + $0xb8] sm:$0xff]  }
0x1282   :  { %13134 = vmatprep.subr.bf16.mxu1 %v18257_v40  ;;  %13096 = vmatpush1.bf16.msra.mxu0 %v18258_v46  ;;  %v24923_v40 = vld [vmem:[#allocation8_spill] sm:$0xff] }
0x1283   :  { %15226 = vmatprep.subr.msk.bf16.mxu0 %vm11757_vm7, %v15223_v38  ;;  %v13164_v57 = vrot.slane %v13159_v0, %v24923_v40  ;;  %v13176_v38 = vrot.slane %v13159_v0, %v24926_v18 }
0x1285   :  { %13135 = vmatpush1.bf16.msra.mxu1 %v18255_v59  ;;  %v24924_v59 = vld [vmem:[#allocation9_spill] sm:$0xff] }
0x1286   :  { %13136 = vmatprep.subr.bf16.mxu1 %v18263_v44  ;;  %13098 = vmatpush1.bf16.msra.mxu0 %v13062_v10  ;;  %v13172_v46 = vrot.slane %v13159_v0, %v24924_v59  ;;  %v24925_v44 = vld [vmem:[#allocation10_spill] sm:$0xff] }
0x1287   :  { %15264 = vmatprep.subr.bf16.mxu0 %v18268_v51  ;;  %v13168_v7 = vrot.slane %v13159_v0, %v24925_v44 }
0x1289   :  { %13137 = vmatpush1.bf16.msra.mxu1 %v18261_v54 }
0x128a   :  { %15228 = vmatprep.subr.msk.bf16.mxu1 %vm11757_vm7, %v15225_v32 }
0x128d   :  { %13139 = vmatpush1.bf16.msra.mxu1 %v13068_v6 }
0x128e   :  { %15286 = vmatprep.subr.bf16.mxu1 %v18269_v19 }
0x1327   :  { %v12627_v34 = vpop.f32.mrb[60].mxu1  ;;  %v12668_v48 = vpop.f32.mrb[156].mxu0 }
0x1328   :  { %v24227_v33 = vadd.f32 %v12627_v34, %v24198_v14  ;;  %v24230_v2 = vadd.f32 %v12668_v48, %v24200_v27  ;;  %v12629_v1 = vpop.f32.mrb[61].mxu1  ;;  %v12670_v8 = vpop.f32.mrb[157].mxu0  ;;  %v18270_v14 = vld [vmem:[%s24361_s14] sm:$0xff]  }
0x1329   :  { %v24233_v15 = vadd.f32 %v12629_v1, %v24202_v21  ;;  %v24236_v25 = vadd.f32 %v12670_v8, %v24204_v41  ;;  %v12631_v52 = vpop.f32.mrb[62].mxu1  ;;  %v12672_v50 = vpop.f32.mrb[158].mxu0  ;;  %v18271_v27 = vld [vmem:[%s24361_s14 + $0x80] sm:$0xff]   ;;  %v18272_v41 = vld [vmem:[%s24361_s14 + $0x48] sm:$0xff]  }
0x132a   :  { %v12632_v36 = vpop.f32.mrb[63].mxu1  ;;  %v12673_v45 = vpop.f32.mrb[159].mxu0 }
0x132f   :  { %v12750_v16 = vpop.f32.mrb[50].mxu1 }
0x1330   :  { %v12752_v37 = vpop.f32.mrb[51].mxu1  ;;  %v12755_v21 = vpack.c.bf16 %v12750_v16, %v12750_v16 }
0x1331   :  { %v12756_v39 = vpack.c.bf16 %v12752_v37, %v12752_v37 }
0x1333   :  { %15227 = vmatprep.mubr.msk.bf16.mxu0 %vm11753_vm8, %v12756_v39  ;;  %15229 = vmatprep.mubr.msk.bf16.mxu1 %vm11753_vm8, %v12756_v39 }
0x1334   :  { %13106 = vmatmul.mubr.bf16.vlgmr.msra.gmra.mrb[160].mxu0 %v12755_v21  ;;  %13147 = vmatmul.mubr.bf16.vlgmr.msra.gmra.mrb[64].mxu1 %v12755_v21  ;;  %v15230_v21 = vld [vmem:[%s24362_s15] ss:$0 sm:$0xff] }
0x1335   :  { %15265 = vmatpush3.bf16.msra.mxu0 %v18270_v14  ;;  %15287 = vmatpush3.bf16.msra.mxu1 %v18271_v27 }
0x1336   :  { %15266 = vmatprep.subr.bf16.mxu0 %v18272_v41  ;;  %15288 = vmatprep.subr.bf16.mxu1 %v18273_v22 }
0x1339   :  { %15267 = vmatpush3.bf16.msra.mxu0 %v18274_v20  ;;  %15289 = vmatpush3.bf16.msra.mxu1 %v18275_v24 }
0x133a   :  { %15268 = vmatprep.subr.bf16.mxu0 %v18276_v17  ;;  %15290 = vmatprep.subr.bf16.mxu1 %v18277_v53 }
0x133d   :  { %15269 = vmatpush3.bf16.msra.mxu0 %v18278_v56  ;;  %15291 = vmatpush3.bf16.msra.mxu1 %v18279_v58 }
0x133e   :  { %15270 = vmatprep.subr.bf16.mxu0 %v18280_v23  ;;  %15292 = vmatprep.subr.bf16.mxu1 %v18281_v60 }
0x1341   :  { %15271 = vmatpush3.bf16.msra.mxu0 %v18282_v61  ;;  %15293 = vmatpush3.bf16.msra.mxu1 %v18283_v29 }
0x1342   :  { %15272 = vmatprep.subr.bf16.mxu0 %v18284_v62  ;;  %15294 = vmatprep.subr.bf16.mxu1 %v18285_v3 }
0x1345   :  { %15273 = vmatpush3.bf16.msra.mxu0 %v18286_v28  ;;  %15295 = vmatpush3.bf16.msra.mxu1 %v18287_v12 }
0x1346   :  { %15274 = vmatprep.subr.bf16.mxu0 %v18288_v47  ;;  %15296 = vmatprep.subr.bf16.mxu1 %v18289_v31 }
0x1349   :  { %15275 = vmatpush3.bf16.msra.mxu0 %v18290_v30  ;;  %15297 = vmatpush3.bf16.msra.mxu1 %v18291_v4 }
0x134a   :  { %15276 = vmatprep.subr.bf16.mxu0 %v18292_v49  ;;  %15298 = vmatprep.subr.bf16.mxu1 %v18293_v55 }
0x134d   :  { %15277 = vmatpush3.bf16.msra.mxu0 %v18294_v13  ;;  %15299 = vmatpush3.bf16.msra.mxu1 %v18295_v35 }
0x134e   :  { %15278 = vmatprep.subr.bf16.mxu0 %v18296_v11  ;;  %17446 = vmatprep.subr.msk.bf16.mxu1 %vm13456_vm9, %v18297_v63 }
0x1351   :  { %15279 = vmatpush3.bf16.msra.mxu0 %v18298_v26  ;;  %15301 = vmatpush3.bf16.msra.mxu1 %v18299_v5 }
0x1407   :  { %v13107_v43 = vpop.f32.mrb[160].mxu0  ;;  %v13148_v54 = vpop.f32.mrb[64].mxu1 }
0x1408   :  { %v13155_v32 = vadd.f32 %v13107_v43, %v24227_v33  ;;  %v13157_v9 = vadd.f32 %v13148_v54, %v24230_v2  ;;  %v13109_v42 = vpop.f32.mrb[161].mxu0  ;;  %v13150_v10 = vpop.f32.mrb[65].mxu1 }
0x1409   :  { %v13156_v6 = vadd.f32 %v13109_v42, %v24233_v15  ;;  %v13158_v51 = vadd.f32 %v13150_v10, %v24236_v25  ;;  %v13111_v19 = vpop.f32.mrb[162].mxu0  ;;  %v13152_v34 = vpop.f32.mrb[66].mxu1 }
0x140a   :  { %v13181_v48 = vadd.f32 %v13164_v57, %v13155_v32  ;;  %v13183_v1 = vadd.f32 %v13172_v46, %v13157_v9  ;;  %v13112_v8 = vpop.f32.mrb[163].mxu0  ;;  %v13153_v52 = vpop.f32.mrb[67].mxu1 }
0x140b   :  { %v13182_v50 = vadd.f32 %v13168_v7, %v13156_v6  ;;  %v13184_v36 = vadd.f32 %v13176_v38, %v13158_v51 }
0x140c   :  { %v13185_v45 = vmax.f32 %v13181_v48, 0.0  ;;  %v13187_v16 = vmax.f32 %v13183_v1, 0.0 }
0x140d   :  { %v13186_v37 = vmax.f32 %v13182_v50, 0.0  ;;  %v13188_v33 = vmax.f32 %v13184_v36, 0.0 }
0x140e   :  { %v13189_v14 = vpack.c.bf16 %v13185_v45, %v13185_v45  ;;  %v13191_v27 = vpack.c.bf16 %v13187_v16, %v13187_v16 }
0x140f   :  { %v13190_v2 = vpack.c.bf16 %v13186_v37, %v13186_v37  ;;  %v13192_v39 = vpack.c.bf16 %v13188_v33, %v13188_v33 }
0x1411   :  { %13492 = vmatprep.mubr.bf16.mxu0 %v13190_v2  ;;  %15263 = vmatprep.mubr.msk.bf16.mxu1 %vm13452_vm10, %v13192_v39 }
0x1412   :  { %13493 = vmatmul.mubr.bf16.vlgmr.msra.gmra.mrb[164].mxu0 %v13189_v14  ;;  %13533 = vmatmul.mubr.bf16.vlgmr.msra.gmra.mrb[68].mxu1 %v13191_v27 }
0x14e5   :  { %v15280_v15 = vpop.f32.mrb[164].mxu0  ;;  %v15302_v25 = vpop.f32.mrb[68].mxu1 }
0x14e6   :  { %v15281_v41 = vpop.f32.mrb[165].mxu0  ;;  %v15303_v22 = vpop.f32.mrb[69].mxu1 }
0x14e7   :  { %v15282_v20 = vadd.f32 %v15281_v41, %v15280_v15  ;;  %v15304_v24 = vadd.f32 %v15303_v22, %v15302_v25  ;;  %v15283_v17 = vpop.f32.mrb[166].mxu0  ;;  %v15305_v53 = vpop.f32.mrb[70].mxu1 }
0x14e8   :  { %v15284_v56 = vpop.f32.mrb[167].mxu0  ;;  %v15306_v58 = vpop.f32.mrb[71].mxu1 }
0x14e9   :  { %v13495_v23 = vadd.f32 %v15282_v20, %v15230_v21 }
0x14eb   :  { %v13535_v60 = vadd.f32 %v15304_v24, %v13495_v23 }
0x14ed   :  { %13540 = vmax.xlane.f32.xlu0 %v13535_v60 }
0x157a   :  { %v13541_v61 = vpop.xlane.xlu0 %13540 }
0x157b   :  { %v13542_v29 = vsub.f32 %v13535_v60, %v13541_v61 }
0x157d   :  { %v13543_v62 = vmul.f32 1.442695, %v13542_v29 }
0x157f   :  { %18300 = vpow2.f32 %v13543_v62 }
0x1589   :  { %v18301_v3 = vpop.eup %18300 }
0x158a   :  { %13545 = vadd.xlane.f32.xlu0 %v18301_v3 }
0x1617   :  { %v13546_v28 = vpop.xlane.xlu0 %13545 }
0x1618   :  { %18302 = vlog2.f32 %v13546_v28 }
0x1622   :  { %v18303_v12 = vpop.eup %18302 }
0x1623   :  { %v13548_v47 = vmul.f32 0.6931472, %v18303_v12 }
0x1625   :  { %v13549_v31 = vsub.f32 %v13542_v29, %v13548_v47 }
0x1627   :  { %13550 = vst [vmem:[%s24363_s16] sm:$0xff] %v13549_v31 }
0x1628   :  { %13555 = vsyncpa [#allocation3], 1 }
0x1629   :  { %13556 = vsyncpa [#allocation5], 1 }

</bundles_post_ra>
